<compile_context>
chip_gen: v7x
topology: tpu7x:2x2x1
jax: 0.10.0
libtpu: 0.0.40
codegen_flags: <defaults>
</compile_context>

<pallas_src>
import functools
import math

import jax
import jax.numpy as jnp
import numpy as np
from jax.experimental import pallas as pl
from jax.experimental.pallas import tpu as pltpu


# ---------------------------------------------------------------------------
# Single fused kernel: input projection + GRU recurrence + attention + decoder
# grid = (B // BB,)  (parallel batch axis; BB = B//2 maps to the 2 v7x TCs)
# ---------------------------------------------------------------------------
def _classifier_kernel(x_ref, wih_ref, whh_ref, bgi_ref, bhn_ref, len_ref,
                       wdec_ref, bdec_ref, logits_ref, energy_ref, keys_scr,
                       *, seq_len, hidden, scale):
    T, H = seq_len, hidden
    BB = x_ref.shape[0]
    D = x_ref.shape[2]

    # -- 1) hoisted input projection: one (BB*T, D) @ (D, 3H) MXU pass -------
    x2 = x_ref[...].reshape(BB * T, D)
    gi_all = (jnp.dot(x2, wih_ref[...], preferred_element_type=jnp.float32)
              + bgi_ref[...]).reshape(BB, T, 3 * H)          # (BB, T, 3H)

    # -- 2) GRU recurrence (PyTorch gate order r, z, n) ------------------------
    whh = whh_ref[...]          # hoisted: stays in vregs for the whole chain
    bhn = bhn_ref[...]
    lens = len_ref[:, 0, :]     # (BB, 1) int32

    h = jnp.zeros((BB, H), jnp.float32)
    for t in range(T):          # static unroll; only h @ W_hh is on the chain
        gi = gi_all[:, t, :]                                       # (BB, 3H)
        gh = jnp.dot(h, whh, preferred_element_type=jnp.float32)   # (BB, 3H)
        r = jax.nn.sigmoid(gi[:, 0 * H:1 * H] + gh[:, 0 * H:1 * H])
        z = jax.nn.sigmoid(gi[:, 1 * H:2 * H] + gh[:, 1 * H:2 * H])
        n = jnp.tanh(gi[:, 2 * H:3 * H] + r * (gh[:, 2 * H:3 * H] + bhn))
        h_new = (1.0 - z) * n + z * h
        mask = (t < lens).astype(jnp.float32)                      # (BB, 1)
        h = mask * h_new + (1.0 - mask) * h                        # freeze
        # VMEM-scratch store only (never hits HBM; off the recurrent chain).
        # TODO(synk): accumulate the chunk and issue one dense (BB,T,H) store.
        keys_scr[:, t, :] = mask * h_new                           # pad -> 0

    # -- 3) single-pass scaled dot-product attention ---------------------------
    keys = keys_scr[...]                                           # (BB, T, H)
    q3 = h[:, None, :]                                             # (BB, 1, H)
    # NT-form batched dot: no (H, T) transpose materialized.
    s = (jnp.einsum("bqh,bkh->bqk", q3, keys,
                    preferred_element_type=jnp.float32)[:, 0, :] * scale)  # (BB,T)
    m = jnp.max(s, axis=-1, keepdims=True)
    p = jnp.exp(s - m)
    l = jnp.sum(p, axis=-1, keepdims=True)
    # TODO(synk): approx=True (EUP, free slot) for production; exact keeps the
    #             1e-4 correctness check tight.
    attn = p * pl.reciprocal(l, approx=False)                      # (BB, T)

    lin = jnp.einsum("bqk,bkh->bqh", attn[:, None, :], keys,
                     preferred_element_type=jnp.float32)[:, 0, :]  # (BB, H)

    # -- 4) decoder -------------------------------------------------------------
    logits = (jnp.dot(lin, wdec_ref[...], preferred_element_type=jnp.float32)
              + bdec_ref[...])                                     # (BB, C)

    energy_ref[...] = attn[:, None, :]                             # (BB, 1, T) lane-dense
    logits_ref[...] = logits[:, None, :]                           # (BB, 1, C)


# ---------------------------------------------------------------------------
# Wrapper (glue only: specs, grid, free reshapes)
# ---------------------------------------------------------------------------
def classifier_forward(x_btd, lengths, params, *, batch_block=None):
    B, T, D = x_btd.shape
    H = params["w_hh_cat"].shape[0]
    C = params["w_dec_t"].shape[-1]

    BB = B if batch_block is None else batch_block
    assert B % BB == 0, "batch_block must divide the batch size"

    scale = 1.0 / math.sqrt(H)
    len3 = lengths.astype(jnp.int32).reshape(B, 1, 1)       # leading-dim batch

    kernel = functools.partial(_classifier_kernel,
                               seq_len=T, hidden=H, scale=scale)

    logits3, energy = pl.pallas_call(
        kernel,
        out_shape=(jax.ShapeDtypeStruct((B, 1, C), jnp.float32),
                   jax.ShapeDtypeStruct((B, 1, T), jnp.float32)),
        grid_spec=pltpu.PrefetchScalarGridSpec(
            num_scalar_prefetch=0,
            grid=(B // BB,),
            in_specs=[
                pl.BlockSpec((BB, T, D), lambda b: (b, 0, 0)),     # x
                pl.BlockSpec((D, 3 * H), lambda b: (0, 0)),        # W_ih_cat
                pl.BlockSpec((H, 3 * H), lambda b: (0, 0)),        # W_hh_cat
                pl.BlockSpec((1, 3 * H), lambda b: (0, 0)),        # b_gi
                pl.BlockSpec((1, H), lambda b: (0, 0)),            # b_hh_n
                pl.BlockSpec((BB, 1, 1), lambda b: (b, 0, 0)),     # lengths
                pl.BlockSpec((H, C), lambda b: (0, 0)),            # W_dec^T
                pl.BlockSpec((1, C), lambda b: (0, 0)),            # b_dec
            ],
            out_specs=[
                pl.BlockSpec((BB, 1, C), lambda b: (b, 0, 0)),     # logits
                pl.BlockSpec((BB, 1, T), lambda b: (b, 0, 0)),     # energy
            ],
            scratch_shapes=[pltpu.VMEM((BB, T, H), jnp.float32)],  # keys
        ),
        compiler_params=pltpu.CompilerParams(
            dimension_semantics=("parallel",)),
    )(x_btd.astype(jnp.float32), params["w_ih_cat"], params["w_hh_cat"],
      params["b_gi"], params["b_hh_n"], len3,
      params["w_dec_t"], params["b_dec"])

    return logits3.reshape(B, C), energy


# ---------------------------------------------------------------------------
# Deterministic synthetic parameters (PyTorch-style uniform(-1/sqrt(H), 1/sqrt(H)))
# with fused/folded layouts for the kernel.
# ---------------------------------------------------------------------------
def init_params(key, input_dim, hidden_dim, num_classes):
    ks = jax.random.split(key, 6)
    bound = 1.0 / math.sqrt(hidden_dim)
    u = lambda k, shape: jax.random.uniform(k, shape, jnp.float32, -bound, bound)
    w_ih = u(ks[0], (3, input_dim, hidden_dim))       # gates (r, z, n)
    w_hh = u(ks[1], (3, hidden_dim, hidden_dim))
    b_ih = u(ks[2], (3, hidden_dim))
    b_hh = u(ks[3], (3, hidden_dim))
    w_dec_t = u(ks[4], (hidden_dim, num_classes))     # decoder weight (transposed)
    b_dec = u(ks[5], (1, num_classes))

    # fused layouts: concat gates along the output dim, fold biases offline
    w_ih_cat = jnp.concatenate([w_ih[0], w_ih[1], w_ih[2]], axis=1)   # (D, 3H)
    w_hh_cat = jnp.concatenate([w_hh[0], w_hh[1], w_hh[2]], axis=1)   # (H, 3H)
    b_gi = jnp.concatenate([b_ih[0] + b_hh[0],
                            b_ih[1] + b_hh[1],
                            b_ih[2]], axis=0)[None, :]                # (1, 3H)
    b_hh_n = b_hh[2][None, :]                                         # (1, H)

    return dict(w_ih=w_ih, w_hh=w_hh, b_ih=b_ih, b_hh=b_hh,
                w_ih_cat=w_ih_cat, w_hh_cat=w_hh_cat,
                b_gi=b_gi, b_hh_n=b_hh_n,
                w_dec_t=w_dec_t, b_dec=b_dec)


# ---------------------------------------------------------------------------
# Pure-JAX reference of the same math (correctness check)
# ---------------------------------------------------------------------------
def reference_forward(x_btd, lengths, p):
    B, T, D = x_btd.shape
    H = p["w_hh"].shape[-1]
    h = jnp.zeros((B, H), jnp.float32)
    outs = []
    for t in range(T):
        xt = x_btd[:, t, :]
        gi = [xt @ p["w_ih"][g] + p["b_ih"][g] for g in range(3)]
        gh = [h @ p["w_hh"][g] + p["b_hh"][g] for g in range(3)]
        r = jax.nn.sigmoid(gi[0] + gh[0])
        z = jax.nn.sigmoid(gi[1] + gh[1])
        n = jnp.tanh(gi[2] + r * gh[2])
        h_new = (1.0 - z) * n + z * h
        mask = (t < lengths).astype(jnp.float32)[:, None]
        h = mask * h_new + (1.0 - mask) * h
        outs.append(mask * h_new)
    keys = jnp.stack(outs, axis=1)                    # (B, T, H)
    scale = 1.0 / math.sqrt(H)
    scores = jnp.einsum("bh,bth->bt", h, keys) * scale
    attn = jax.nn.softmax(scores, axis=-1)
    lin = jnp.einsum("bt,bth->bh", attn, keys)
    logits = lin @ p["w_dec_t"] + p["b_dec"]
    return logits, attn[:, None, :]


if __name__ == "__main__":
    B, T, D, H, C = 4, 16, 16, 32, 5
    key = jax.random.PRNGKey(0)
    kx, kp = jax.random.split(key)

    x = jax.random.normal(kx, (B, T, D), jnp.float32)
    # sorted descending (pack_padded_sequence enforce_sorted=True), max == T
    lengths = jnp.array([16, 13, 9, 5], dtype=jnp.int32)
    params = init_params(kp, D, H, C)

    ref_logits, ref_energy = reference_forward(x, lengths, params)

    # Default: whole batch in one grid step (single launch, single step).
    fwd = jax.jit(classifier_forward)
    logits, energy = fwd(x, lengths, params)
    jax.block_until_ready((logits, energy))
    np.testing.assert_allclose(np.asarray(logits), np.asarray(ref_logits),
                               rtol=1e-4, atol=1e-5)
    np.testing.assert_allclose(np.asarray(energy), np.asarray(ref_energy),
                               rtol=1e-4, atol=1e-5)

    # v7x megacore path: split the fused kernel (incl. the GRU recurrence)
    # across a parallel batch axis of size 2.
    fwd_split = jax.jit(functools.partial(classifier_forward, batch_block=2))
    logits2, energy2 = fwd_split(x, lengths, params)
    jax.block_until_ready((logits2, energy2))
    np.testing.assert_allclose(np.asarray(logits2), np.asarray(ref_logits),
                               rtol=1e-4, atol=1e-5)
    np.testing.assert_allclose(np.asarray(energy2), np.asarray(ref_energy),
                               rtol=1e-4, atol=1e-5)

    print("KERNEL_OK")
</pallas_src>

<mosaic_0001>
module attributes {stable_mosaic.version = 11 : i64} {
  func.func @_classifier_kernel(%arg0: i32, %arg1: memref<4x16x16xf32, #tpu.memory_space<vmem>>, %arg2: memref<16x96xf32, #tpu.memory_space<vmem>>, %arg3: memref<32x96xf32, #tpu.memory_space<vmem>>, %arg4: memref<1x96xf32, #tpu.memory_space<vmem>>, %arg5: memref<1x32xf32, #tpu.memory_space<vmem>>, %arg6: memref<4x1x1xi32, #tpu.memory_space<vmem>>, %arg7: memref<32x5xf32, #tpu.memory_space<vmem>>, %arg8: memref<1x5xf32, #tpu.memory_space<vmem>>, %arg9: memref<4x1x5xf32, #tpu.memory_space<vmem>>, %arg10: memref<4x1x16xf32, #tpu.memory_space<vmem>>, %arg11: memref<4x16x32xf32, #tpu.memory_space<vmem>>) attributes {dimension_semantics = [#tpu.dimension_semantics<parallel>], iteration_bounds = array<i64: 1>, scalar_prefetch = 0 : i64, scratch_operands = 1 : i64, tpu.core_type = #tpu.core_type<tc>, window_params = [{transform_indices = @transform_0, window_bounds = array<i64: 4, 16, 16>}, {pipeline_mode = #tpu.pipeline_mode<synchronous>, transform_indices = @transform_1, window_bounds = array<i64: 16, 96>}, {pipeline_mode = #tpu.pipeline_mode<synchronous>, transform_indices = @transform_2, window_bounds = array<i64: 32, 96>}, {pipeline_mode = #tpu.pipeline_mode<synchronous>, transform_indices = @transform_3, window_bounds = array<i64: 1, 96>}, {pipeline_mode = #tpu.pipeline_mode<synchronous>, transform_indices = @transform_4, window_bounds = array<i64: 1, 32>}, {transform_indices = @transform_5, window_bounds = array<i64: 4, 1, 1>}, {pipeline_mode = #tpu.pipeline_mode<synchronous>, transform_indices = @transform_6, window_bounds = array<i64: 32, 5>}, {pipeline_mode = #tpu.pipeline_mode<synchronous>, transform_indices = @transform_7, window_bounds = array<i64: 1, 5>}, {transform_indices = @transform_8, window_bounds = array<i64: 4, 1, 5>}, {transform_indices = @transform_9, window_bounds = array<i64: 4, 1, 16>}]} {
    %c0 = arith.constant 0 : index
    %c0_0 = arith.constant 0 : index
    %c0_1 = arith.constant 0 : index
    %0 = vector.load %arg1[%c0, %c0_0, %c0_1] : memref<4x16x16xf32, #tpu.memory_space<vmem>>, vector<4x16x16xf32>
    %1 = vector.shape_cast %0 : vector<4x16x16xf32> to vector<64x16xf32>
    %c0_2 = arith.constant 0 : index
    %c0_3 = arith.constant 0 : index
    %2 = vector.load %arg2[%c0_2, %c0_3] : memref<16x96xf32, #tpu.memory_space<vmem>>, vector<16x96xf32>
    %cst = arith.constant dense<0.000000e+00> : vector<64x96xf32>
    %3 = tpu.matmul %1, %2, %cst {dimension_numbers = #tpu.dot_dimension_numbers<[1], [0], [0], [1], [0, 0, 1, 1], [], []>} : vector<64x16xf32>, vector<16x96xf32>, vector<64x96xf32> -> vector<64x96xf32>
    %c0_4 = arith.constant 0 : index
    %c0_5 = arith.constant 0 : index
    %4 = vector.load %arg4[%c0_4, %c0_5] : memref<1x96xf32, #tpu.memory_space<vmem>>, vector<1x96xf32>
    %5 = vector.broadcast %4 : vector<1x96xf32> to vector<64x96xf32>
    %6 = arith.addf %3, %5 : vector<64x96xf32>
    %7 = vector.shape_cast %6 : vector<64x96xf32> to vector<4x16x96xf32>
    %c0_6 = arith.constant 0 : index
    %c0_7 = arith.constant 0 : index
    %8 = vector.load %arg3[%c0_6, %c0_7] : memref<32x96xf32, #tpu.memory_space<vmem>>, vector<32x96xf32>
    %c0_8 = arith.constant 0 : index
    %c0_9 = arith.constant 0 : index
    %9 = vector.load %arg5[%c0_8, %c0_9] : memref<1x32xf32, #tpu.memory_space<vmem>>, vector<1x32xf32>
    %c0_10 = arith.constant 0 : index
    %c0_11 = arith.constant 0 : index
    %c0_12 = arith.constant 0 : index
    %10 = vector.load %arg6[%c0_10, %c0_11, %c0_12] : memref<4x1x1xi32, #tpu.memory_space<vmem>>, vector<4x1x1xi32>
    %11 = vector.shape_cast %10 : vector<4x1x1xi32> to vector<4x1xi32>
    %cst_13 = arith.constant 0.000000e+00 : f32
    %12 = vector.broadcast %cst_13 : f32 to vector<4x32xf32>
    %13 = vector.extract_strided_slice %7 {offsets = [0, 0, 0], sizes = [4, 1, 96], strides = [1, 1, 1]} : vector<4x16x96xf32> to vector<4x1x96xf32>
    %14 = vector.shape_cast %13 : vector<4x1x96xf32> to vector<4x96xf32>
    %cst_14 = arith.constant dense<0.000000e+00> : vector<4x96xf32>
    %15 = tpu.matmul %12, %8, %cst_14 {dimension_numbers = #tpu.dot_dimension_numbers<[1], [0], [0], [1], [0, 0, 1, 1], [], []>} : vector<4x32xf32>, vector<32x96xf32>, vector<4x96xf32> -> vector<4x96xf32>
    %16 = vector.extract_strided_slice %14 {offsets = [0, 0], sizes = [4, 32], strides = [1, 1]} : vector<4x96xf32> to vector<4x32xf32>
    %17 = vector.extract_strided_slice %15 {offsets = [0, 0], sizes = [4, 32], strides = [1, 1]} : vector<4x96xf32> to vector<4x32xf32>
    %18 = arith.addf %16, %17 : vector<4x32xf32>
    %19 = arith.negf %18 : vector<4x32xf32>
    %20 = math.exp %19 : vector<4x32xf32>
    %cst_15 = arith.constant 1.000000e+00 : f32
    %21 = vector.broadcast %cst_15 : f32 to vector<4x32xf32>
    %22 = arith.addf %21, %20 : vector<4x32xf32>
    %23 = arith.divf %21, %22 : vector<4x32xf32>
    %24 = vector.extract_strided_slice %14 {offsets = [0, 32], sizes = [4, 32], strides = [1, 1]} : vector<4x96xf32> to vector<4x32xf32>
    %25 = vector.extract_strided_slice %15 {offsets = [0, 32], sizes = [4, 32], strides = [1, 1]} : vector<4x96xf32> to vector<4x32xf32>
    %26 = arith.addf %24, %25 : vector<4x32xf32>
    %27 = arith.negf %26 : vector<4x32xf32>
    %28 = math.exp %27 : vector<4x32xf32>
    %cst_16 = arith.constant 1.000000e+00 : f32
    %29 = vector.broadcast %cst_16 : f32 to vector<4x32xf32>
    %30 = arith.addf %29, %28 : vector<4x32xf32>
    %31 = arith.divf %29, %30 : vector<4x32xf32>
    %32 = vector.extract_strided_slice %14 {offsets = [0, 64], sizes = [4, 32], strides = [1, 1]} : vector<4x96xf32> to vector<4x32xf32>
    %33 = vector.extract_strided_slice %15 {offsets = [0, 64], sizes = [4, 32], strides = [1, 1]} : vector<4x96xf32> to vector<4x32xf32>
    %34 = vector.broadcast %9 : vector<1x32xf32> to vector<4x32xf32>
    %35 = arith.addf %33, %34 : vector<4x32xf32>
    %36 = arith.mulf %23, %35 : vector<4x32xf32>
    %37 = arith.addf %32, %36 : vector<4x32xf32>
    %38 = math.tanh %37 : vector<4x32xf32>
    %cst_17 = arith.constant 1.000000e+00 : f32
    %39 = vector.broadcast %cst_17 : f32 to vector<4x32xf32>
    %40 = arith.subf %39, %31 : vector<4x32xf32>
    %41 = arith.mulf %40, %38 : vector<4x32xf32>
    %42 = arith.mulf %31, %12 : vector<4x32xf32>
    %43 = arith.addf %41, %42 : vector<4x32xf32>
    %c0_i32 = arith.constant 0 : i32
    %44 = vector.broadcast %c0_i32 : i32 to vector<4x1xi32>
    %45 = arith.cmpi sgt, %11, %44 : vector<4x1xi32>
    %46 = arith.extui %45 : vector<4x1xi1> to vector<4x1xi32>
    %47 = arith.sitofp %46 : vector<4x1xi32> to vector<4x1xf32>
    %48 = vector.broadcast %47 : vector<4x1xf32> to vector<4x32xf32>
    %49 = arith.mulf %48, %43 : vector<4x32xf32>
    %cst_18 = arith.constant 1.000000e+00 : f32
    %50 = vector.broadcast %cst_18 : f32 to vector<4x1xf32>
    %51 = arith.subf %50, %47 : vector<4x1xf32>
    %52 = vector.broadcast %51 : vector<4x1xf32> to vector<4x32xf32>
    %53 = arith.mulf %52, %12 : vector<4x32xf32>
    %54 = arith.addf %49, %53 : vector<4x32xf32>
    %55 = vector.broadcast %47 : vector<4x1xf32> to vector<4x32xf32>
    %56 = arith.mulf %55, %43 : vector<4x32xf32>
    %c0_19 = arith.constant 0 : index
    %c0_20 = arith.constant 0 : index
    %c0_21 = arith.constant 0 : index
    %57 = vector.load %arg11[%c0_19, %c0_20, %c0_21] : memref<4x16x32xf32, #tpu.memory_space<vmem>>, vector<4x1x32xf32>
    %58 = vector.shape_cast %57 : vector<4x1x32xf32> to vector<4x32xf32>
    %59 = vector.shape_cast %56 : vector<4x32xf32> to vector<4x1x32xf32>
    tpu.vector_store %arg11[%c0_19, %c0_20, %c0_21], %59 {strides = array<i32>} : memref<4x16x32xf32, #tpu.memory_space<vmem>>, vector<4x1x32xf32>,
    %60 = vector.extract_strided_slice %7 {offsets = [0, 1, 0], sizes = [4, 1, 96], strides = [1, 1, 1]} : vector<4x16x96xf32> to vector<4x1x96xf32>
    %61 = vector.shape_cast %60 : vector<4x1x96xf32> to vector<4x96xf32>
    %cst_22 = arith.constant dense<0.000000e+00> : vector<4x96xf32>
    %62 = tpu.matmul %54, %8, %cst_22 {dimension_numbers = #tpu.dot_dimension_numbers<[1], [0], [0], [1], [0, 0, 1, 1], [], []>} : vector<4x32xf32>, vector<32x96xf32>, vector<4x96xf32> -> vector<4x96xf32>
    %63 = vector.extract_strided_slice %61 {offsets = [0, 0], sizes = [4, 32], strides = [1, 1]} : vector<4x96xf32> to vector<4x32xf32>
    %64 = vector.extract_strided_slice %62 {offsets = [0, 0], sizes = [4, 32], strides = [1, 1]} : vector<4x96xf32> to vector<4x32xf32>
    %65 = arith.addf %63, %64 : vector<4x32xf32>
    %66 = arith.negf %65 : vector<4x32xf32>
    %67 = math.exp %66 : vector<4x32xf32>
    %cst_23 = arith.constant 1.000000e+00 : f32
    %68 = vector.broadcast %cst_23 : f32 to vector<4x32xf32>
    %69 = arith.addf %68, %67 : vector<4x32xf32>
    %70 = arith.divf %68, %69 : vector<4x32xf32>
    %71 = vector.extract_strided_slice %61 {offsets = [0, 32], sizes = [4, 32], strides = [1, 1]} : vector<4x96xf32> to vector<4x32xf32>
    %72 = vector.extract_strided_slice %62 {offsets = [0, 32], sizes = [4, 32], strides = [1, 1]} : vector<4x96xf32> to vector<4x32xf32>
    %73 = arith.addf %71, %72 : vector<4x32xf32>
    %74 = arith.negf %73 : vector<4x32xf32>
    %75 = math.exp %74 : vector<4x32xf32>
    %cst_24 = arith.constant 1.000000e+00 : f32
    %76 = vector.broadcast %cst_24 : f32 to vector<4x32xf32>
    %77 = arith.addf %76, %75 : vector<4x32xf32>
    %78 = arith.divf %76, %77 : vector<4x32xf32>
    %79 = vector.extract_strided_slice %61 {offsets = [0, 64], sizes = [4, 32], strides = [1, 1]} : vector<4x96xf32> to vector<4x32xf32>
    %80 = vector.extract_strided_slice %62 {offsets = [0, 64], sizes = [4, 32], strides = [1, 1]} : vector<4x96xf32> to vector<4x32xf32>
    %81 = vector.broadcast %9 : vector<1x32xf32> to vector<4x32xf32>
    %82 = arith.addf %80, %81 : vector<4x32xf32>
    %83 = arith.mulf %70, %82 : vector<4x32xf32>
    %84 = arith.addf %79, %83 : vector<4x32xf32>
    %85 = math.tanh %84 : vector<4x32xf32>
    %cst_25 = arith.constant 1.000000e+00 : f32
    %86 = vector.broadcast %cst_25 : f32 to vector<4x32xf32>
    %87 = arith.subf %86, %78 : vector<4x32xf32>
    %88 = arith.mulf %87, %85 : vector<4x32xf32>
    %89 = arith.mulf %78, %54 : vector<4x32xf32>
    %90 = arith.addf %88, %89 : vector<4x32xf32>
    %c1_i32 = arith.constant 1 : i32
    %91 = vector.broadcast %c1_i32 : i32 to vector<4x1xi32>
    %92 = arith.cmpi sgt, %11, %91 : vector<4x1xi32>
    %93 = arith.extui %92 : vector<4x1xi1> to vector<4x1xi32>
    %94 = arith.sitofp %93 : vector<4x1xi32> to vector<4x1xf32>
    %95 = vector.broadcast %94 : vector<4x1xf32> to vector<4x32xf32>
    %96 = arith.mulf %95, %90 : vector<4x32xf32>
    %cst_26 = arith.constant 1.000000e+00 : f32
    %97 = vector.broadcast %cst_26 : f32 to vector<4x1xf32>
    %98 = arith.subf %97, %94 : vector<4x1xf32>
    %99 = vector.broadcast %98 : vector<4x1xf32> to vector<4x32xf32>
    %100 = arith.mulf %99, %54 : vector<4x32xf32>
    %101 = arith.addf %96, %100 : vector<4x32xf32>
    %102 = vector.broadcast %94 : vector<4x1xf32> to vector<4x32xf32>
    %103 = arith.mulf %102, %90 : vector<4x32xf32>
    %c0_27 = arith.constant 0 : index
    %c1 = arith.constant 1 : index
    %c0_28 = arith.constant 0 : index
    %104 = vector.load %arg11[%c0_27, %c1, %c0_28] : memref<4x16x32xf32, #tpu.memory_space<vmem>>, vector<4x1x32xf32>
    %105 = vector.shape_cast %104 : vector<4x1x32xf32> to vector<4x32xf32>
    %106 = vector.shape_cast %103 : vector<4x32xf32> to vector<4x1x32xf32>
    tpu.vector_store %arg11[%c0_27, %c1, %c0_28], %106 {strides = array<i32>} : memref<4x16x32xf32, #tpu.memory_space<vmem>>, vector<4x1x32xf32>,
    %107 = vector.extract_strided_slice %7 {offsets = [0, 2, 0], sizes = [4, 1, 96], strides = [1, 1, 1]} : vector<4x16x96xf32> to vector<4x1x96xf32>
    %108 = vector.shape_cast %107 : vector<4x1x96xf32> to vector<4x96xf32>
    %cst_29 = arith.constant dense<0.000000e+00> : vector<4x96xf32>
    %109 = tpu.matmul %101, %8, %cst_29 {dimension_numbers = #tpu.dot_dimension_numbers<[1], [0], [0], [1], [0, 0, 1, 1], [], []>} : vector<4x32xf32>, vector<32x96xf32>, vector<4x96xf32> -> vector<4x96xf32>
    %110 = vector.extract_strided_slice %108 {offsets = [0, 0], sizes = [4, 32], strides = [1, 1]} : vector<4x96xf32> to vector<4x32xf32>
    %111 = vector.extract_strided_slice %109 {offsets = [0, 0], sizes = [4, 32], strides = [1, 1]} : vector<4x96xf32> to vector<4x32xf32>
    %112 = arith.addf %110, %111 : vector<4x32xf32>
    %113 = arith.negf %112 : vector<4x32xf32>
    %114 = math.exp %113 : vector<4x32xf32>
    %cst_30 = arith.constant 1.000000e+00 : f32
    %115 = vector.broadcast %cst_30 : f32 to vector<4x32xf32>
    %116 = arith.addf %115, %114 : vector<4x32xf32>
    %117 = arith.divf %115, %116 : vector<4x32xf32>
    %118 = vector.extract_strided_slice %108 {offsets = [0, 32], sizes = [4, 32], strides = [1, 1]} : vector<4x96xf32> to vector<4x32xf32>
    %119 = vector.extract_strided_slice %109 {offsets = [0, 32], sizes = [4, 32], strides = [1, 1]} : vector<4x96xf32> to vector<4x32xf32>
    %120 = arith.addf %118, %119 : vector<4x32xf32>
    %121 = arith.negf %120 : vector<4x32xf32>
    %122 = math.exp %121 : vector<4x32xf32>
    %cst_31 = arith.constant 1.000000e+00 : f32
    %123 = vector.broadcast %cst_31 : f32 to vector<4x32xf32>
    %124 = arith.addf %123, %122 : vector<4x32xf32>
    %125 = arith.divf %123, %124 : vector<4x32xf32>
    %126 = vector.extract_strided_slice %108 {offsets = [0, 64], sizes = [4, 32], strides = [1, 1]} : vector<4x96xf32> to vector<4x32xf32>
    %127 = vector.extract_strided_slice %109 {offsets = [0, 64], sizes = [4, 32], strides = [1, 1]} : vector<4x96xf32> to vector<4x32xf32>
    %128 = vector.broadcast %9 : vector<1x32xf32> to vector<4x32xf32>
    %129 = arith.addf %127, %128 : vector<4x32xf32>
    %130 = arith.mulf %117, %129 : vector<4x32xf32>
    %131 = arith.addf %126, %130 : vector<4x32xf32>
    %132 = math.tanh %131 : vector<4x32xf32>
    %cst_32 = arith.constant 1.000000e+00 : f32
    %133 = vector.broadcast %cst_32 : f32 to vector<4x32xf32>
    %134 = arith.subf %133, %125 : vector<4x32xf32>
    %135 = arith.mulf %134, %132 : vector<4x32xf32>
    %136 = arith.mulf %125, %101 : vector<4x32xf32>
    %137 = arith.addf %135, %136 : vector<4x32xf32>
    %c2_i32 = arith.constant 2 : i32
    %138 = vector.broadcast %c2_i32 : i32 to vector<4x1xi32>
    %139 = arith.cmpi sgt, %11, %138 : vector<4x1xi32>
    %140 = arith.extui %139 : vector<4x1xi1> to vector<4x1xi32>
    %141 = arith.sitofp %140 : vector<4x1xi32> to vector<4x1xf32>
    %142 = vector.broadcast %141 : vector<4x1xf32> to vector<4x32xf32>
    %143 = arith.mulf %142, %137 : vector<4x32xf32>
    %cst_33 = arith.constant 1.000000e+00 : f32
    %144 = vector.broadcast %cst_33 : f32 to vector<4x1xf32>
    %145 = arith.subf %144, %141 : vector<4x1xf32>
    %146 = vector.broadcast %145 : vector<4x1xf32> to vector<4x32xf32>
    %147 = arith.mulf %146, %101 : vector<4x32xf32>
    %148 = arith.addf %143, %147 : vector<4x32xf32>
    %149 = vector.broadcast %141 : vector<4x1xf32> to vector<4x32xf32>
    %150 = arith.mulf %149, %137 : vector<4x32xf32>
    %c0_34 = arith.constant 0 : index
    %c2 = arith.constant 2 : index
    %c0_35 = arith.constant 0 : index
    %151 = vector.load %arg11[%c0_34, %c2, %c0_35] : memref<4x16x32xf32, #tpu.memory_space<vmem>>, vector<4x1x32xf32>
    %152 = vector.shape_cast %151 : vector<4x1x32xf32> to vector<4x32xf32>
    %153 = vector.shape_cast %150 : vector<4x32xf32> to vector<4x1x32xf32>
    tpu.vector_store %arg11[%c0_34, %c2, %c0_35], %153 {strides = array<i32>} : memref<4x16x32xf32, #tpu.memory_space<vmem>>, vector<4x1x32xf32>,
    %154 = vector.extract_strided_slice %7 {offsets = [0, 3, 0], sizes = [4, 1, 96], strides = [1, 1, 1]} : vector<4x16x96xf32> to vector<4x1x96xf32>
    %155 = vector.shape_cast %154 : vector<4x1x96xf32> to vector<4x96xf32>
    %cst_36 = arith.constant dense<0.000000e+00> : vector<4x96xf32>
    %156 = tpu.matmul %148, %8, %cst_36 {dimension_numbers = #tpu.dot_dimension_numbers<[1], [0], [0], [1], [0, 0, 1, 1], [], []>} : vector<4x32xf32>, vector<32x96xf32>, vector<4x96xf32> -> vector<4x96xf32>
    %157 = vector.extract_strided_slice %155 {offsets = [0, 0], sizes = [4, 32], strides = [1, 1]} : vector<4x96xf32> to vector<4x32xf32>
    %158 = vector.extract_strided_slice %156 {offsets = [0, 0], sizes = [4, 32], strides = [1, 1]} : vector<4x96xf32> to vector<4x32xf32>
    %159 = arith.addf %157, %158 : vector<4x32xf32>
    %160 = arith.negf %159 : vector<4x32xf32>
    %161 = math.exp %160 : vector<4x32xf32>
    %cst_37 = arith.constant 1.000000e+00 : f32
    %162 = vector.broadcast %cst_37 : f32 to vector<4x32xf32>
    %163 = arith.addf %162, %161 : vector<4x32xf32>
    %164 = arith.divf %162, %163 : vector<4x32xf32>
    %165 = vector.extract_strided_slice %155 {offsets = [0, 32], sizes = [4, 32], strides = [1, 1]} : vector<4x96xf32> to vector<4x32xf32>
    %166 = vector.extract_strided_slice %156 {offsets = [0, 32], sizes = [4, 32], strides = [1, 1]} : vector<4x96xf32> to vector<4x32xf32>
    %167 = arith.addf %165, %166 : vector<4x32xf32>
    %168 = arith.negf %167 : vector<4x32xf32>
    %169 = math.exp %168 : vector<4x32xf32>
    %cst_38 = arith.constant 1.000000e+00 : f32
    %170 = vector.broadcast %cst_38 : f32 to vector<4x32xf32>
    %171 = arith.addf %170, %169 : vector<4x32xf32>
    %172 = arith.divf %170, %171 : vector<4x32xf32>
    %173 = vector.extract_strided_slice %155 {offsets = [0, 64], sizes = [4, 32], strides = [1, 1]} : vector<4x96xf32> to vector<4x32xf32>
    %174 = vector.extract_strided_slice %156 {offsets = [0, 64], sizes = [4, 32], strides = [1, 1]} : vector<4x96xf32> to vector<4x32xf32>
    %175 = vector.broadcast %9 : vector<1x32xf32> to vector<4x32xf32>
    %176 = arith.addf %174, %175 : vector<4x32xf32>
    %177 = arith.mulf %164, %176 : vector<4x32xf32>
    %178 = arith.addf %173, %177 : vector<4x32xf32>
    %179 = math.tanh %178 : vector<4x32xf32>
    %cst_39 = arith.constant 1.000000e+00 : f32
    %180 = vector.broadcast %cst_39 : f32 to vector<4x32xf32>
    %181 = arith.subf %180, %172 : vector<4x32xf32>
    %182 = arith.mulf %181, %179 : vector<4x32xf32>
    %183 = arith.mulf %172, %148 : vector<4x32xf32>
    %184 = arith.addf %182, %183 : vector<4x32xf32>
    %c3_i32 = arith.constant 3 : i32
    %185 = vector.broadcast %c3_i32 : i32 to vector<4x1xi32>
    %186 = arith.cmpi sgt, %11, %185 : vector<4x1xi32>
    %187 = arith.extui %186 : vector<4x1xi1> to vector<4x1xi32>
    %188 = arith.sitofp %187 : vector<4x1xi32> to vector<4x1xf32>
    %189 = vector.broadcast %188 : vector<4x1xf32> to vector<4x32xf32>
    %190 = arith.mulf %189, %184 : vector<4x32xf32>
    %cst_40 = arith.constant 1.000000e+00 : f32
    %191 = vector.broadcast %cst_40 : f32 to vector<4x1xf32>
    %192 = arith.subf %191, %188 : vector<4x1xf32>
    %193 = vector.broadcast %192 : vector<4x1xf32> to vector<4x32xf32>
    %194 = arith.mulf %193, %148 : vector<4x32xf32>
    %195 = arith.addf %190, %194 : vector<4x32xf32>
    %196 = vector.broadcast %188 : vector<4x1xf32> to vector<4x32xf32>
    %197 = arith.mulf %196, %184 : vector<4x32xf32>
    %c0_41 = arith.constant 0 : index
    %c3 = arith.constant 3 : index
    %c0_42 = arith.constant 0 : index
    %198 = vector.load %arg11[%c0_41, %c3, %c0_42] : memref<4x16x32xf32, #tpu.memory_space<vmem>>, vector<4x1x32xf32>
    %199 = vector.shape_cast %198 : vector<4x1x32xf32> to vector<4x32xf32>
    %200 = vector.shape_cast %197 : vector<4x32xf32> to vector<4x1x32xf32>
    tpu.vector_store %arg11[%c0_41, %c3, %c0_42], %200 {strides = array<i32>} : memref<4x16x32xf32, #tpu.memory_space<vmem>>, vector<4x1x32xf32>,
    %201 = vector.extract_strided_slice %7 {offsets = [0, 4, 0], sizes = [4, 1, 96], strides = [1, 1, 1]} : vector<4x16x96xf32> to vector<4x1x96xf32>
    %202 = vector.shape_cast %201 : vector<4x1x96xf32> to vector<4x96xf32>
    %cst_43 = arith.constant dense<0.000000e+00> : vector<4x96xf32>
    %203 = tpu.matmul %195, %8, %cst_43 {dimension_numbers = #tpu.dot_dimension_numbers<[1], [0], [0], [1], [0, 0, 1, 1], [], []>} : vector<4x32xf32>, vector<32x96xf32>, vector<4x96xf32> -> vector<4x96xf32>
    %204 = vector.extract_strided_slice %202 {offsets = [0, 0], sizes = [4, 32], strides = [1, 1]} : vector<4x96xf32> to vector<4x32xf32>
    %205 = vector.extract_strided_slice %203 {offsets = [0, 0], sizes = [4, 32], strides = [1, 1]} : vector<4x96xf32> to vector<4x32xf32>
    %206 = arith.addf %204, %205 : vector<4x32xf32>
    %207 = arith.negf %206 : vector<4x32xf32>
    %208 = math.exp %207 : vector<4x32xf32>
    %cst_44 = arith.constant 1.000000e+00 : f32
    %209 = vector.broadcast %cst_44 : f32 to vector<4x32xf32>
    %210 = arith.addf %209, %208 : vector<4x32xf32>
    %211 = arith.divf %209, %210 : vector<4x32xf32>
    %212 = vector.extract_strided_slice %202 {offsets = [0, 32], sizes = [4, 32], strides = [1, 1]} : vector<4x96xf32> to vector<4x32xf32>
    %213 = vector.extract_strided_slice %203 {offsets = [0, 32], sizes = [4, 32], strides = [1, 1]} : vector<4x96xf32> to vector<4x32xf32>
    %214 = arith.addf %212, %213 : vector<4x32xf32>
    %215 = arith.negf %214 : vector<4x32xf32>
    %216 = math.exp %215 : vector<4x32xf32>
    %cst_45 = arith.constant 1.000000e+00 : f32
    %217 = vector.broadcast %cst_45 : f32 to vector<4x32xf32>
    %218 = arith.addf %217, %216 : vector<4x32xf32>
    %219 = arith.divf %217, %218 : vector<4x32xf32>
    %220 = vector.extract_strided_slice %202 {offsets = [0, 64], sizes = [4, 32], strides = [1, 1]} : vector<4x96xf32> to vector<4x32xf32>
    %221 = vector.extract_strided_slice %203 {offsets = [0, 64], sizes = [4, 32], strides = [1, 1]} : vector<4x96xf32> to vector<4x32xf32>
    %222 = vector.broadcast %9 : vector<1x32xf32> to vector<4x32xf32>
    %223 = arith.addf %221, %222 : vector<4x32xf32>
    %224 = arith.mulf %211, %223 : vector<4x32xf32>
    %225 = arith.addf %220, %224 : vector<4x32xf32>
    %226 = math.tanh %225 : vector<4x32xf32>
    %cst_46 = arith.constant 1.000000e+00 : f32
    %227 = vector.broadcast %cst_46 : f32 to vector<4x32xf32>
    %228 = arith.subf %227, %219 : vector<4x32xf32>
    %229 = arith.mulf %228, %226 : vector<4x32xf32>
    %230 = arith.mulf %219, %195 : vector<4x32xf32>
    %231 = arith.addf %229, %230 : vector<4x32xf32>
    %c4_i32 = arith.constant 4 : i32
    %232 = vector.broadcast %c4_i32 : i32 to vector<4x1xi32>
    %233 = arith.cmpi sgt, %11, %232 : vector<4x1xi32>
    %234 = arith.extui %233 : vector<4x1xi1> to vector<4x1xi32>
    %235 = arith.sitofp %234 : vector<4x1xi32> to vector<4x1xf32>
    %236 = vector.broadcast %235 : vector<4x1xf32> to vector<4x32xf32>
    %237 = arith.mulf %236, %231 : vector<4x32xf32>
    %cst_47 = arith.constant 1.000000e+00 : f32
    %238 = vector.broadcast %cst_47 : f32 to vector<4x1xf32>
    %239 = arith.subf %238, %235 : vector<4x1xf32>
    %240 = vector.broadcast %239 : vector<4x1xf32> to vector<4x32xf32>
    %241 = arith.mulf %240, %195 : vector<4x32xf32>
    %242 = arith.addf %237, %241 : vector<4x32xf32>
    %243 = vector.broadcast %235 : vector<4x1xf32> to vector<4x32xf32>
    %244 = arith.mulf %243, %231 : vector<4x32xf32>
    %c0_48 = arith.constant 0 : index
    %c4 = arith.constant 4 : index
    %c0_49 = arith.constant 0 : index
    %245 = vector.load %arg11[%c0_48, %c4, %c0_49] : memref<4x16x32xf32, #tpu.memory_space<vmem>>, vector<4x1x32xf32>
    %246 = vector.shape_cast %245 : vector<4x1x32xf32> to vector<4x32xf32>
    %247 = vector.shape_cast %244 : vector<4x32xf32> to vector<4x1x32xf32>
    tpu.vector_store %arg11[%c0_48, %c4, %c0_49], %247 {strides = array<i32>} : memref<4x16x32xf32, #tpu.memory_space<vmem>>, vector<4x1x32xf32>,
    %248 = vector.extract_strided_slice %7 {offsets = [0, 5, 0], sizes = [4, 1, 96], strides = [1, 1, 1]} : vector<4x16x96xf32> to vector<4x1x96xf32>
    %249 = vector.shape_cast %248 : vector<4x1x96xf32> to vector<4x96xf32>
    %cst_50 = arith.constant dense<0.000000e+00> : vector<4x96xf32>
    %250 = tpu.matmul %242, %8, %cst_50 {dimension_numbers = #tpu.dot_dimension_numbers<[1], [0], [0], [1], [0, 0, 1, 1], [], []>} : vector<4x32xf32>, vector<32x96xf32>, vector<4x96xf32> -> vector<4x96xf32>
    %251 = vector.extract_strided_slice %249 {offsets = [0, 0], sizes = [4, 32], strides = [1, 1]} : vector<4x96xf32> to vector<4x32xf32>
    %252 = vector.extract_strided_slice %250 {offsets = [0, 0], sizes = [4, 32], strides = [1, 1]} : vector<4x96xf32> to vector<4x32xf32>
    %253 = arith.addf %251, %252 : vector<4x32xf32>
    %254 = arith.negf %253 : vector<4x32xf32>
    %255 = math.exp %254 : vector<4x32xf32>
    %cst_51 = arith.constant 1.000000e+00 : f32
    %256 = vector.broadcast %cst_51 : f32 to vector<4x32xf32>
    %257 = arith.addf %256, %255 : vector<4x32xf32>
    %258 = arith.divf %256, %257 : vector<4x32xf32>
    %259 = vector.extract_strided_slice %249 {offsets = [0, 32], sizes = [4, 32], strides = [1, 1]} : vector<4x96xf32> to vector<4x32xf32>
    %260 = vector.extract_strided_slice %250 {offsets = [0, 32], sizes = [4, 32], strides = [1, 1]} : vector<4x96xf32> to vector<4x32xf32>
    %261 = arith.addf %259, %260 : vector<4x32xf32>
    %262 = arith.negf %261 : vector<4x32xf32>
    %263 = math.exp %262 : vector<4x32xf32>
    %cst_52 = arith.constant 1.000000e+00 : f32
    %264 = vector.broadcast %cst_52 : f32 to vector<4x32xf32>
    %265 = arith.addf %264, %263 : vector<4x32xf32>
    %266 = arith.divf %264, %265 : vector<4x32xf32>
    %267 = vector.extract_strided_slice %249 {offsets = [0, 64], sizes = [4, 32], strides = [1, 1]} : vector<4x96xf32> to vector<4x32xf32>
    %268 = vector.extract_strided_slice %250 {offsets = [0, 64], sizes = [4, 32], strides = [1, 1]} : vector<4x96xf32> to vector<4x32xf32>
    %269 = vector.broadcast %9 : vector<1x32xf32> to vector<4x32xf32>
    %270 = arith.addf %268, %269 : vector<4x32xf32>
    %271 = arith.mulf %258, %270 : vector<4x32xf32>
    %272 = arith.addf %267, %271 : vector<4x32xf32>
    %273 = math.tanh %272 : vector<4x32xf32>
    %cst_53 = arith.constant 1.000000e+00 : f32
    %274 = vector.broadcast %cst_53 : f32 to vector<4x32xf32>
    %275 = arith.subf %274, %266 : vector<4x32xf32>
    %276 = arith.mulf %275, %273 : vector<4x32xf32>
    %277 = arith.mulf %266, %242 : vector<4x32xf32>
    %278 = arith.addf %276, %277 : vector<4x32xf32>
    %c5_i32 = arith.constant 5 : i32
    %279 = vector.broadcast %c5_i32 : i32 to vector<4x1xi32>
    %280 = arith.cmpi sgt, %11, %279 : vector<4x1xi32>
    %281 = arith.extui %280 : vector<4x1xi1> to vector<4x1xi32>
    %282 = arith.sitofp %281 : vector<4x1xi32> to vector<4x1xf32>
    %283 = vector.broadcast %282 : vector<4x1xf32> to vector<4x32xf32>
    %284 = arith.mulf %283, %278 : vector<4x32xf32>
    %cst_54 = arith.constant 1.000000e+00 : f32
    %285 = vector.broadcast %cst_54 : f32 to vector<4x1xf32>
    %286 = arith.subf %285, %282 : vector<4x1xf32>
    %287 = vector.broadcast %286 : vector<4x1xf32> to vector<4x32xf32>
    %288 = arith.mulf %287, %242 : vector<4x32xf32>
    %289 = arith.addf %284, %288 : vector<4x32xf32>
    %290 = vector.broadcast %282 : vector<4x1xf32> to vector<4x32xf32>
    %291 = arith.mulf %290, %278 : vector<4x32xf32>
    %c0_55 = arith.constant 0 : index
    %c5 = arith.constant 5 : index
    %c0_56 = arith.constant 0 : index
    %292 = vector.load %arg11[%c0_55, %c5, %c0_56] : memref<4x16x32xf32, #tpu.memory_space<vmem>>, vector<4x1x32xf32>
    %293 = vector.shape_cast %292 : vector<4x1x32xf32> to vector<4x32xf32>
    %294 = vector.shape_cast %291 : vector<4x32xf32> to vector<4x1x32xf32>
    tpu.vector_store %arg11[%c0_55, %c5, %c0_56], %294 {strides = array<i32>} : memref<4x16x32xf32, #tpu.memory_space<vmem>>, vector<4x1x32xf32>,
    %295 = vector.extract_strided_slice %7 {offsets = [0, 6, 0], sizes = [4, 1, 96], strides = [1, 1, 1]} : vector<4x16x96xf32> to vector<4x1x96xf32>
    %296 = vector.shape_cast %295 : vector<4x1x96xf32> to vector<4x96xf32>
    %cst_57 = arith.constant dense<0.000000e+00> : vector<4x96xf32>
    %297 = tpu.matmul %289, %8, %cst_57 {dimension_numbers = #tpu.dot_dimension_numbers<[1], [0], [0], [1], [0, 0, 1, 1], [], []>} : vector<4x32xf32>, vector<32x96xf32>, vector<4x96xf32> -> vector<4x96xf32>
    %298 = vector.extract_strided_slice %296 {offsets = [0, 0], sizes = [4, 32], strides = [1, 1]} : vector<4x96xf32> to vector<4x32xf32>
    %299 = vector.extract_strided_slice %297 {offsets = [0, 0], sizes = [4, 32], strides = [1, 1]} : vector<4x96xf32> to vector<4x32xf32>
    %300 = arith.addf %298, %299 : vector<4x32xf32>
    %301 = arith.negf %300 : vector<4x32xf32>
    %302 = math.exp %301 : vector<4x32xf32>
    %cst_58 = arith.constant 1.000000e+00 : f32
    %303 = vector.broadcast %cst_58 : f32 to vector<4x32xf32>
    %304 = arith.addf %303, %302 : vector<4x32xf32>
    %305 = arith.divf %303, %304 : vector<4x32xf32>
    %306 = vector.extract_strided_slice %296 {offsets = [0, 32], sizes = [4, 32], strides = [1, 1]} : vector<4x96xf32> to vector<4x32xf32>
    %307 = vector.extract_strided_slice %297 {offsets = [0, 32], sizes = [4, 32], strides = [1, 1]} : vector<4x96xf32> to vector<4x32xf32>
    %308 = arith.addf %306, %307 : vector<4x32xf32>
    %309 = arith.negf %308 : vector<4x32xf32>
    %310 = math.exp %309 : vector<4x32xf32>
    %cst_59 = arith.constant 1.000000e+00 : f32
    %311 = vector.broadcast %cst_59 : f32 to vector<4x32xf32>
    %312 = arith.addf %311, %310 : vector<4x32xf32>
    %313 = arith.divf %311, %312 : vector<4x32xf32>
    %314 = vector.extract_strided_slice %296 {offsets = [0, 64], sizes = [4, 32], strides = [1, 1]} : vector<4x96xf32> to vector<4x32xf32>
    %315 = vector.extract_strided_slice %297 {offsets = [0, 64], sizes = [4, 32], strides = [1, 1]} : vector<4x96xf32> to vector<4x32xf32>
    %316 = vector.broadcast %9 : vector<1x32xf32> to vector<4x32xf32>
    %317 = arith.addf %315, %316 : vector<4x32xf32>
    %318 = arith.mulf %305, %317 : vector<4x32xf32>
    %319 = arith.addf %314, %318 : vector<4x32xf32>
    %320 = math.tanh %319 : vector<4x32xf32>
    %cst_60 = arith.constant 1.000000e+00 : f32
    %321 = vector.broadcast %cst_60 : f32 to vector<4x32xf32>
    %322 = arith.subf %321, %313 : vector<4x32xf32>
    %323 = arith.mulf %322, %320 : vector<4x32xf32>
    %324 = arith.mulf %313, %289 : vector<4x32xf32>
    %325 = arith.addf %323, %324 : vector<4x32xf32>
    %c6_i32 = arith.constant 6 : i32
    %326 = vector.broadcast %c6_i32 : i32 to vector<4x1xi32>
    %327 = arith.cmpi sgt, %11, %326 : vector<4x1xi32>
    %328 = arith.extui %327 : vector<4x1xi1> to vector<4x1xi32>
    %329 = arith.sitofp %328 : vector<4x1xi32> to vector<4x1xf32>
    %330 = vector.broadcast %329 : vector<4x1xf32> to vector<4x32xf32>
    %331 = arith.mulf %330, %325 : vector<4x32xf32>
    %cst_61 = arith.constant 1.000000e+00 : f32
    %332 = vector.broadcast %cst_61 : f32 to vector<4x1xf32>
    %333 = arith.subf %332, %329 : vector<4x1xf32>
    %334 = vector.broadcast %333 : vector<4x1xf32> to vector<4x32xf32>
    %335 = arith.mulf %334, %289 : vector<4x32xf32>
    %336 = arith.addf %331, %335 : vector<4x32xf32>
    %337 = vector.broadcast %329 : vector<4x1xf32> to vector<4x32xf32>
    %338 = arith.mulf %337, %325 : vector<4x32xf32>
    %c0_62 = arith.constant 0 : index
    %c6 = arith.constant 6 : index
    %c0_63 = arith.constant 0 : index
    %339 = vector.load %arg11[%c0_62, %c6, %c0_63] : memref<4x16x32xf32, #tpu.memory_space<vmem>>, vector<4x1x32xf32>
    %340 = vector.shape_cast %339 : vector<4x1x32xf32> to vector<4x32xf32>
    %341 = vector.shape_cast %338 : vector<4x32xf32> to vector<4x1x32xf32>
    tpu.vector_store %arg11[%c0_62, %c6, %c0_63], %341 {strides = array<i32>} : memref<4x16x32xf32, #tpu.memory_space<vmem>>, vector<4x1x32xf32>,
    %342 = vector.extract_strided_slice %7 {offsets = [0, 7, 0], sizes = [4, 1, 96], strides = [1, 1, 1]} : vector<4x16x96xf32> to vector<4x1x96xf32>
    %343 = vector.shape_cast %342 : vector<4x1x96xf32> to vector<4x96xf32>
    %cst_64 = arith.constant dense<0.000000e+00> : vector<4x96xf32>
    %344 = tpu.matmul %336, %8, %cst_64 {dimension_numbers = #tpu.dot_dimension_numbers<[1], [0], [0], [1], [0, 0, 1, 1], [], []>} : vector<4x32xf32>, vector<32x96xf32>, vector<4x96xf32> -> vector<4x96xf32>
    %345 = vector.extract_strided_slice %343 {offsets = [0, 0], sizes = [4, 32], strides = [1, 1]} : vector<4x96xf32> to vector<4x32xf32>
    %346 = vector.extract_strided_slice %344 {offsets = [0, 0], sizes = [4, 32], strides = [1, 1]} : vector<4x96xf32> to vector<4x32xf32>
    %347 = arith.addf %345, %346 : vector<4x32xf32>
    %348 = arith.negf %347 : vector<4x32xf32>
    %349 = math.exp %348 : vector<4x32xf32>
    %cst_65 = arith.constant 1.000000e+00 : f32
    %350 = vector.broadcast %cst_65 : f32 to vector<4x32xf32>
    %351 = arith.addf %350, %349 : vector<4x32xf32>
    %352 = arith.divf %350, %351 : vector<4x32xf32>
    %353 = vector.extract_strided_slice %343 {offsets = [0, 32], sizes = [4, 32], strides = [1, 1]} : vector<4x96xf32> to vector<4x32xf32>
    %354 = vector.extract_strided_slice %344 {offsets = [0, 32], sizes = [4, 32], strides = [1, 1]} : vector<4x96xf32> to vector<4x32xf32>
    %355 = arith.addf %353, %354 : vector<4x32xf32>
    %356 = arith.negf %355 : vector<4x32xf32>
    %357 = math.exp %356 : vector<4x32xf32>
    %cst_66 = arith.constant 1.000000e+00 : f32
    %358 = vector.broadcast %cst_66 : f32 to vector<4x32xf32>
    %359 = arith.addf %358, %357 : vector<4x32xf32>
    %360 = arith.divf %358, %359 : vector<4x32xf32>
    %361 = vector.extract_strided_slice %343 {offsets = [0, 64], sizes = [4, 32], strides = [1, 1]} : vector<4x96xf32> to vector<4x32xf32>
    %362 = vector.extract_strided_slice %344 {offsets = [0, 64], sizes = [4, 32], strides = [1, 1]} : vector<4x96xf32> to vector<4x32xf32>
    %363 = vector.broadcast %9 : vector<1x32xf32> to vector<4x32xf32>
    %364 = arith.addf %362, %363 : vector<4x32xf32>
    %365 = arith.mulf %352, %364 : vector<4x32xf32>
    %366 = arith.addf %361, %365 : vector<4x32xf32>
    %367 = math.tanh %366 : vector<4x32xf32>
    %cst_67 = arith.constant 1.000000e+00 : f32
    %368 = vector.broadcast %cst_67 : f32 to vector<4x32xf32>
    %369 = arith.subf %368, %360 : vector<4x32xf32>
    %370 = arith.mulf %369, %367 : vector<4x32xf32>
    %371 = arith.mulf %360, %336 : vector<4x32xf32>
    %372 = arith.addf %370, %371 : vector<4x32xf32>
    %c7_i32 = arith.constant 7 : i32
    %373 = vector.broadcast %c7_i32 : i32 to vector<4x1xi32>
    %374 = arith.cmpi sgt, %11, %373 : vector<4x1xi32>
    %375 = arith.extui %374 : vector<4x1xi1> to vector<4x1xi32>
    %376 = arith.sitofp %375 : vector<4x1xi32> to vector<4x1xf32>
    %377 = vector.broadcast %376 : vector<4x1xf32> to vector<4x32xf32>
    %378 = arith.mulf %377, %372 : vector<4x32xf32>
    %cst_68 = arith.constant 1.000000e+00 : f32
    %379 = vector.broadcast %cst_68 : f32 to vector<4x1xf32>
    %380 = arith.subf %379, %376 : vector<4x1xf32>
    %381 = vector.broadcast %380 : vector<4x1xf32> to vector<4x32xf32>
    %382 = arith.mulf %381, %336 : vector<4x32xf32>
    %383 = arith.addf %378, %382 : vector<4x32xf32>
    %384 = vector.broadcast %376 : vector<4x1xf32> to vector<4x32xf32>
    %385 = arith.mulf %384, %372 : vector<4x32xf32>
    %c0_69 = arith.constant 0 : index
    %c7 = arith.constant 7 : index
    %c0_70 = arith.constant 0 : index
    %386 = vector.load %arg11[%c0_69, %c7, %c0_70] : memref<4x16x32xf32, #tpu.memory_space<vmem>>, vector<4x1x32xf32>
    %387 = vector.shape_cast %386 : vector<4x1x32xf32> to vector<4x32xf32>
    %388 = vector.shape_cast %385 : vector<4x32xf32> to vector<4x1x32xf32>
    tpu.vector_store %arg11[%c0_69, %c7, %c0_70], %388 {strides = array<i32>} : memref<4x16x32xf32, #tpu.memory_space<vmem>>, vector<4x1x32xf32>,
    %389 = vector.extract_strided_slice %7 {offsets = [0, 8, 0], sizes = [4, 1, 96], strides = [1, 1, 1]} : vector<4x16x96xf32> to vector<4x1x96xf32>
    %390 = vector.shape_cast %389 : vector<4x1x96xf32> to vector<4x96xf32>
    %cst_71 = arith.constant dense<0.000000e+00> : vector<4x96xf32>
    %391 = tpu.matmul %383, %8, %cst_71 {dimension_numbers = #tpu.dot_dimension_numbers<[1], [0], [0], [1], [0, 0, 1, 1], [], []>} : vector<4x32xf32>, vector<32x96xf32>, vector<4x96xf32> -> vector<4x96xf32>
    %392 = vector.extract_strided_slice %390 {offsets = [0, 0], sizes = [4, 32], strides = [1, 1]} : vector<4x96xf32> to vector<4x32xf32>
    %393 = vector.extract_strided_slice %391 {offsets = [0, 0], sizes = [4, 32], strides = [1, 1]} : vector<4x96xf32> to vector<4x32xf32>
    %394 = arith.addf %392, %393 : vector<4x32xf32>
    %395 = arith.negf %394 : vector<4x32xf32>
    %396 = math.exp %395 : vector<4x32xf32>
    %cst_72 = arith.constant 1.000000e+00 : f32
    %397 = vector.broadcast %cst_72 : f32 to vector<4x32xf32>
    %398 = arith.addf %397, %396 : vector<4x32xf32>
    %399 = arith.divf %397, %398 : vector<4x32xf32>
    %400 = vector.extract_strided_slice %390 {offsets = [0, 32], sizes = [4, 32], strides = [1, 1]} : vector<4x96xf32> to vector<4x32xf32>
    %401 = vector.extract_strided_slice %391 {offsets = [0, 32], sizes = [4, 32], strides = [1, 1]} : vector<4x96xf32> to vector<4x32xf32>
    %402 = arith.addf %400, %401 : vector<4x32xf32>
    %403 = arith.negf %402 : vector<4x32xf32>
    %404 = math.exp %403 : vector<4x32xf32>
    %cst_73 = arith.constant 1.000000e+00 : f32
    %405 = vector.broadcast %cst_73 : f32 to vector<4x32xf32>
    %406 = arith.addf %405, %404 : vector<4x32xf32>
    %407 = arith.divf %405, %406 : vector<4x32xf32>
    %408 = vector.extract_strided_slice %390 {offsets = [0, 64], sizes = [4, 32], strides = [1, 1]} : vector<4x96xf32> to vector<4x32xf32>
    %409 = vector.extract_strided_slice %391 {offsets = [0, 64], sizes = [4, 32], strides = [1, 1]} : vector<4x96xf32> to vector<4x32xf32>
    %410 = vector.broadcast %9 : vector<1x32xf32> to vector<4x32xf32>
    %411 = arith.addf %409, %410 : vector<4x32xf32>
    %412 = arith.mulf %399, %411 : vector<4x32xf32>
    %413 = arith.addf %408, %412 : vector<4x32xf32>
    %414 = math.tanh %413 : vector<4x32xf32>
    %cst_74 = arith.constant 1.000000e+00 : f32
    %415 = vector.broadcast %cst_74 : f32 to vector<4x32xf32>
    %416 = arith.subf %415, %407 : vector<4x32xf32>
    %417 = arith.mulf %416, %414 : vector<4x32xf32>
    %418 = arith.mulf %407, %383 : vector<4x32xf32>
    %419 = arith.addf %417, %418 : vector<4x32xf32>
    %c8_i32 = arith.constant 8 : i32
    %420 = vector.broadcast %c8_i32 : i32 to vector<4x1xi32>
    %421 = arith.cmpi sgt, %11, %420 : vector<4x1xi32>
    %422 = arith.extui %421 : vector<4x1xi1> to vector<4x1xi32>
    %423 = arith.sitofp %422 : vector<4x1xi32> to vector<4x1xf32>
    %424 = vector.broadcast %423 : vector<4x1xf32> to vector<4x32xf32>
    %425 = arith.mulf %424, %419 : vector<4x32xf32>
    %cst_75 = arith.constant 1.000000e+00 : f32
    %426 = vector.broadcast %cst_75 : f32 to vector<4x1xf32>
    %427 = arith.subf %426, %423 : vector<4x1xf32>
    %428 = vector.broadcast %427 : vector<4x1xf32> to vector<4x32xf32>
    %429 = arith.mulf %428, %383 : vector<4x32xf32>
    %430 = arith.addf %425, %429 : vector<4x32xf32>
    %431 = vector.broadcast %423 : vector<4x1xf32> to vector<4x32xf32>
    %432 = arith.mulf %431, %419 : vector<4x32xf32>
    %c0_76 = arith.constant 0 : index
    %c8 = arith.constant 8 : index
    %c0_77 = arith.constant 0 : index
    %433 = vector.load %arg11[%c0_76, %c8, %c0_77] : memref<4x16x32xf32, #tpu.memory_space<vmem>>, vector<4x1x32xf32>
    %434 = vector.shape_cast %433 : vector<4x1x32xf32> to vector<4x32xf32>
    %435 = vector.shape_cast %432 : vector<4x32xf32> to vector<4x1x32xf32>
    tpu.vector_store %arg11[%c0_76, %c8, %c0_77], %435 {strides = array<i32>} : memref<4x16x32xf32, #tpu.memory_space<vmem>>, vector<4x1x32xf32>,
    %436 = vector.extract_strided_slice %7 {offsets = [0, 9, 0], sizes = [4, 1, 96], strides = [1, 1, 1]} : vector<4x16x96xf32> to vector<4x1x96xf32>
    %437 = vector.shape_cast %436 : vector<4x1x96xf32> to vector<4x96xf32>
    %cst_78 = arith.constant dense<0.000000e+00> : vector<4x96xf32>
    %438 = tpu.matmul %430, %8, %cst_78 {dimension_numbers = #tpu.dot_dimension_numbers<[1], [0], [0], [1], [0, 0, 1, 1], [], []>} : vector<4x32xf32>, vector<32x96xf32>, vector<4x96xf32> -> vector<4x96xf32>
    %439 = vector.extract_strided_slice %437 {offsets = [0, 0], sizes = [4, 32], strides = [1, 1]} : vector<4x96xf32> to vector<4x32xf32>
    %440 = vector.extract_strided_slice %438 {offsets = [0, 0], sizes = [4, 32], strides = [1, 1]} : vector<4x96xf32> to vector<4x32xf32>
    %441 = arith.addf %439, %440 : vector<4x32xf32>
    %442 = arith.negf %441 : vector<4x32xf32>
    %443 = math.exp %442 : vector<4x32xf32>
    %cst_79 = arith.constant 1.000000e+00 : f32
    %444 = vector.broadcast %cst_79 : f32 to vector<4x32xf32>
    %445 = arith.addf %444, %443 : vector<4x32xf32>
    %446 = arith.divf %444, %445 : vector<4x32xf32>
    %447 = vector.extract_strided_slice %437 {offsets = [0, 32], sizes = [4, 32], strides = [1, 1]} : vector<4x96xf32> to vector<4x32xf32>
    %448 = vector.extract_strided_slice %438 {offsets = [0, 32], sizes = [4, 32], strides = [1, 1]} : vector<4x96xf32> to vector<4x32xf32>
    %449 = arith.addf %447, %448 : vector<4x32xf32>
    %450 = arith.negf %449 : vector<4x32xf32>
    %451 = math.exp %450 : vector<4x32xf32>
    %cst_80 = arith.constant 1.000000e+00 : f32
    %452 = vector.broadcast %cst_80 : f32 to vector<4x32xf32>
    %453 = arith.addf %452, %451 : vector<4x32xf32>
    %454 = arith.divf %452, %453 : vector<4x32xf32>
    %455 = vector.extract_strided_slice %437 {offsets = [0, 64], sizes = [4, 32], strides = [1, 1]} : vector<4x96xf32> to vector<4x32xf32>
    %456 = vector.extract_strided_slice %438 {offsets = [0, 64], sizes = [4, 32], strides = [1, 1]} : vector<4x96xf32> to vector<4x32xf32>
    %457 = vector.broadcast %9 : vector<1x32xf32> to vector<4x32xf32>
    %458 = arith.addf %456, %457 : vector<4x32xf32>
    %459 = arith.mulf %446, %458 : vector<4x32xf32>
    %460 = arith.addf %455, %459 : vector<4x32xf32>
    %461 = math.tanh %460 : vector<4x32xf32>
    %cst_81 = arith.constant 1.000000e+00 : f32
    %462 = vector.broadcast %cst_81 : f32 to vector<4x32xf32>
    %463 = arith.subf %462, %454 : vector<4x32xf32>
    %464 = arith.mulf %463, %461 : vector<4x32xf32>
    %465 = arith.mulf %454, %430 : vector<4x32xf32>
    %466 = arith.addf %464, %465 : vector<4x32xf32>
    %c9_i32 = arith.constant 9 : i32
    %467 = vector.broadcast %c9_i32 : i32 to vector<4x1xi32>
    %468 = arith.cmpi sgt, %11, %467 : vector<4x1xi32>
    %469 = arith.extui %468 : vector<4x1xi1> to vector<4x1xi32>
    %470 = arith.sitofp %469 : vector<4x1xi32> to vector<4x1xf32>
    %471 = vector.broadcast %470 : vector<4x1xf32> to vector<4x32xf32>
    %472 = arith.mulf %471, %466 : vector<4x32xf32>
    %cst_82 = arith.constant 1.000000e+00 : f32
    %473 = vector.broadcast %cst_82 : f32 to vector<4x1xf32>
    %474 = arith.subf %473, %470 : vector<4x1xf32>
    %475 = vector.broadcast %474 : vector<4x1xf32> to vector<4x32xf32>
    %476 = arith.mulf %475, %430 : vector<4x32xf32>
    %477 = arith.addf %472, %476 : vector<4x32xf32>
    %478 = vector.broadcast %470 : vector<4x1xf32> to vector<4x32xf32>
    %479 = arith.mulf %478, %466 : vector<4x32xf32>
    %c0_83 = arith.constant 0 : index
    %c9 = arith.constant 9 : index
    %c0_84 = arith.constant 0 : index
    %480 = vector.load %arg11[%c0_83, %c9, %c0_84] : memref<4x16x32xf32, #tpu.memory_space<vmem>>, vector<4x1x32xf32>
    %481 = vector.shape_cast %480 : vector<4x1x32xf32> to vector<4x32xf32>
    %482 = vector.shape_cast %479 : vector<4x32xf32> to vector<4x1x32xf32>
    tpu.vector_store %arg11[%c0_83, %c9, %c0_84], %482 {strides = array<i32>} : memref<4x16x32xf32, #tpu.memory_space<vmem>>, vector<4x1x32xf32>,
    %483 = vector.extract_strided_slice %7 {offsets = [0, 10, 0], sizes = [4, 1, 96], strides = [1, 1, 1]} : vector<4x16x96xf32> to vector<4x1x96xf32>
    %484 = vector.shape_cast %483 : vector<4x1x96xf32> to vector<4x96xf32>
    %cst_85 = arith.constant dense<0.000000e+00> : vector<4x96xf32>
    %485 = tpu.matmul %477, %8, %cst_85 {dimension_numbers = #tpu.dot_dimension_numbers<[1], [0], [0], [1], [0, 0, 1, 1], [], []>} : vector<4x32xf32>, vector<32x96xf32>, vector<4x96xf32> -> vector<4x96xf32>
    %486 = vector.extract_strided_slice %484 {offsets = [0, 0], sizes = [4, 32], strides = [1, 1]} : vector<4x96xf32> to vector<4x32xf32>
    %487 = vector.extract_strided_slice %485 {offsets = [0, 0], sizes = [4, 32], strides = [1, 1]} : vector<4x96xf32> to vector<4x32xf32>
    %488 = arith.addf %486, %487 : vector<4x32xf32>
    %489 = arith.negf %488 : vector<4x32xf32>
    %490 = math.exp %489 : vector<4x32xf32>
    %cst_86 = arith.constant 1.000000e+00 : f32
    %491 = vector.broadcast %cst_86 : f32 to vector<4x32xf32>
    %492 = arith.addf %491, %490 : vector<4x32xf32>
    %493 = arith.divf %491, %492 : vector<4x32xf32>
    %494 = vector.extract_strided_slice %484 {offsets = [0, 32], sizes = [4, 32], strides = [1, 1]} : vector<4x96xf32> to vector<4x32xf32>
    %495 = vector.extract_strided_slice %485 {offsets = [0, 32], sizes = [4, 32], strides = [1, 1]} : vector<4x96xf32> to vector<4x32xf32>
    %496 = arith.addf %494, %495 : vector<4x32xf32>
    %497 = arith.negf %496 : vector<4x32xf32>
    %498 = math.exp %497 : vector<4x32xf32>
    %cst_87 = arith.constant 1.000000e+00 : f32
    %499 = vector.broadcast %cst_87 : f32 to vector<4x32xf32>
    %500 = arith.addf %499, %498 : vector<4x32xf32>
    %501 = arith.divf %499, %500 : vector<4x32xf32>
    %502 = vector.extract_strided_slice %484 {offsets = [0, 64], sizes = [4, 32], strides = [1, 1]} : vector<4x96xf32> to vector<4x32xf32>
    %503 = vector.extract_strided_slice %485 {offsets = [0, 64], sizes = [4, 32], strides = [1, 1]} : vector<4x96xf32> to vector<4x32xf32>
    %504 = vector.broadcast %9 : vector<1x32xf32> to vector<4x32xf32>
    %505 = arith.addf %503, %504 : vector<4x32xf32>
    %506 = arith.mulf %493, %505 : vector<4x32xf32>
    %507 = arith.addf %502, %506 : vector<4x32xf32>
    %508 = math.tanh %507 : vector<4x32xf32>
    %cst_88 = arith.constant 1.000000e+00 : f32
    %509 = vector.broadcast %cst_88 : f32 to vector<4x32xf32>
    %510 = arith.subf %509, %501 : vector<4x32xf32>
    %511 = arith.mulf %510, %508 : vector<4x32xf32>
    %512 = arith.mulf %501, %477 : vector<4x32xf32>
    %513 = arith.addf %511, %512 : vector<4x32xf32>
    %c10_i32 = arith.constant 10 : i32
    %514 = vector.broadcast %c10_i32 : i32 to vector<4x1xi32>
    %515 = arith.cmpi sgt, %11, %514 : vector<4x1xi32>
    %516 = arith.extui %515 : vector<4x1xi1> to vector<4x1xi32>
    %517 = arith.sitofp %516 : vector<4x1xi32> to vector<4x1xf32>
    %518 = vector.broadcast %517 : vector<4x1xf32> to vector<4x32xf32>
    %519 = arith.mulf %518, %513 : vector<4x32xf32>
    %cst_89 = arith.constant 1.000000e+00 : f32
    %520 = vector.broadcast %cst_89 : f32 to vector<4x1xf32>
    %521 = arith.subf %520, %517 : vector<4x1xf32>
    %522 = vector.broadcast %521 : vector<4x1xf32> to vector<4x32xf32>
    %523 = arith.mulf %522, %477 : vector<4x32xf32>
    %524 = arith.addf %519, %523 : vector<4x32xf32>
    %525 = vector.broadcast %517 : vector<4x1xf32> to vector<4x32xf32>
    %526 = arith.mulf %525, %513 : vector<4x32xf32>
    %c0_90 = arith.constant 0 : index
    %c10 = arith.constant 10 : index
    %c0_91 = arith.constant 0 : index
    %527 = vector.load %arg11[%c0_90, %c10, %c0_91] : memref<4x16x32xf32, #tpu.memory_space<vmem>>, vector<4x1x32xf32>
    %528 = vector.shape_cast %527 : vector<4x1x32xf32> to vector<4x32xf32>
    %529 = vector.shape_cast %526 : vector<4x32xf32> to vector<4x1x32xf32>
    tpu.vector_store %arg11[%c0_90, %c10, %c0_91], %529 {strides = array<i32>} : memref<4x16x32xf32, #tpu.memory_space<vmem>>, vector<4x1x32xf32>,
    %530 = vector.extract_strided_slice %7 {offsets = [0, 11, 0], sizes = [4, 1, 96], strides = [1, 1, 1]} : vector<4x16x96xf32> to vector<4x1x96xf32>
    %531 = vector.shape_cast %530 : vector<4x1x96xf32> to vector<4x96xf32>
    %cst_92 = arith.constant dense<0.000000e+00> : vector<4x96xf32>
    %532 = tpu.matmul %524, %8, %cst_92 {dimension_numbers = #tpu.dot_dimension_numbers<[1], [0], [0], [1], [0, 0, 1, 1], [], []>} : vector<4x32xf32>, vector<32x96xf32>, vector<4x96xf32> -> vector<4x96xf32>
    %533 = vector.extract_strided_slice %531 {offsets = [0, 0], sizes = [4, 32], strides = [1, 1]} : vector<4x96xf32> to vector<4x32xf32>
    %534 = vector.extract_strided_slice %532 {offsets = [0, 0], sizes = [4, 32], strides = [1, 1]} : vector<4x96xf32> to vector<4x32xf32>
    %535 = arith.addf %533, %534 : vector<4x32xf32>
    %536 = arith.negf %535 : vector<4x32xf32>
    %537 = math.exp %536 : vector<4x32xf32>
    %cst_93 = arith.constant 1.000000e+00 : f32
    %538 = vector.broadcast %cst_93 : f32 to vector<4x32xf32>
    %539 = arith.addf %538, %537 : vector<4x32xf32>
    %540 = arith.divf %538, %539 : vector<4x32xf32>
    %541 = vector.extract_strided_slice %531 {offsets = [0, 32], sizes = [4, 32], strides = [1, 1]} : vector<4x96xf32> to vector<4x32xf32>
    %542 = vector.extract_strided_slice %532 {offsets = [0, 32], sizes = [4, 32], strides = [1, 1]} : vector<4x96xf32> to vector<4x32xf32>
    %543 = arith.addf %541, %542 : vector<4x32xf32>
    %544 = arith.negf %543 : vector<4x32xf32>
    %545 = math.exp %544 : vector<4x32xf32>
    %cst_94 = arith.constant 1.000000e+00 : f32
    %546 = vector.broadcast %cst_94 : f32 to vector<4x32xf32>
    %547 = arith.addf %546, %545 : vector<4x32xf32>
    %548 = arith.divf %546, %547 : vector<4x32xf32>
    %549 = vector.extract_strided_slice %531 {offsets = [0, 64], sizes = [4, 32], strides = [1, 1]} : vector<4x96xf32> to vector<4x32xf32>
    %550 = vector.extract_strided_slice %532 {offsets = [0, 64], sizes = [4, 32], strides = [1, 1]} : vector<4x96xf32> to vector<4x32xf32>
    %551 = vector.broadcast %9 : vector<1x32xf32> to vector<4x32xf32>
    %552 = arith.addf %550, %551 : vector<4x32xf32>
    %553 = arith.mulf %540, %552 : vector<4x32xf32>
    %554 = arith.addf %549, %553 : vector<4x32xf32>
    %555 = math.tanh %554 : vector<4x32xf32>
    %cst_95 = arith.constant 1.000000e+00 : f32
    %556 = vector.broadcast %cst_95 : f32 to vector<4x32xf32>
    %557 = arith.subf %556, %548 : vector<4x32xf32>
    %558 = arith.mulf %557, %555 : vector<4x32xf32>
    %559 = arith.mulf %548, %524 : vector<4x32xf32>
    %560 = arith.addf %558, %559 : vector<4x32xf32>
    %c11_i32 = arith.constant 11 : i32
    %561 = vector.broadcast %c11_i32 : i32 to vector<4x1xi32>
    %562 = arith.cmpi sgt, %11, %561 : vector<4x1xi32>
    %563 = arith.extui %562 : vector<4x1xi1> to vector<4x1xi32>
    %564 = arith.sitofp %563 : vector<4x1xi32> to vector<4x1xf32>
    %565 = vector.broadcast %564 : vector<4x1xf32> to vector<4x32xf32>
    %566 = arith.mulf %565, %560 : vector<4x32xf32>
    %cst_96 = arith.constant 1.000000e+00 : f32
    %567 = vector.broadcast %cst_96 : f32 to vector<4x1xf32>
    %568 = arith.subf %567, %564 : vector<4x1xf32>
    %569 = vector.broadcast %568 : vector<4x1xf32> to vector<4x32xf32>
    %570 = arith.mulf %569, %524 : vector<4x32xf32>
    %571 = arith.addf %566, %570 : vector<4x32xf32>
    %572 = vector.broadcast %564 : vector<4x1xf32> to vector<4x32xf32>
    %573 = arith.mulf %572, %560 : vector<4x32xf32>
    %c0_97 = arith.constant 0 : index
    %c11 = arith.constant 11 : index
    %c0_98 = arith.constant 0 : index
    %574 = vector.load %arg11[%c0_97, %c11, %c0_98] : memref<4x16x32xf32, #tpu.memory_space<vmem>>, vector<4x1x32xf32>
    %575 = vector.shape_cast %574 : vector<4x1x32xf32> to vector<4x32xf32>
    %576 = vector.shape_cast %573 : vector<4x32xf32> to vector<4x1x32xf32>
    tpu.vector_store %arg11[%c0_97, %c11, %c0_98], %576 {strides = array<i32>} : memref<4x16x32xf32, #tpu.memory_space<vmem>>, vector<4x1x32xf32>,
    %577 = vector.extract_strided_slice %7 {offsets = [0, 12, 0], sizes = [4, 1, 96], strides = [1, 1, 1]} : vector<4x16x96xf32> to vector<4x1x96xf32>
    %578 = vector.shape_cast %577 : vector<4x1x96xf32> to vector<4x96xf32>
    %cst_99 = arith.constant dense<0.000000e+00> : vector<4x96xf32>
    %579 = tpu.matmul %571, %8, %cst_99 {dimension_numbers = #tpu.dot_dimension_numbers<[1], [0], [0], [1], [0, 0, 1, 1], [], []>} : vector<4x32xf32>, vector<32x96xf32>, vector<4x96xf32> -> vector<4x96xf32>
    %580 = vector.extract_strided_slice %578 {offsets = [0, 0], sizes = [4, 32], strides = [1, 1]} : vector<4x96xf32> to vector<4x32xf32>
    %581 = vector.extract_strided_slice %579 {offsets = [0, 0], sizes = [4, 32], strides = [1, 1]} : vector<4x96xf32> to vector<4x32xf32>
    %582 = arith.addf %580, %581 : vector<4x32xf32>
    %583 = arith.negf %582 : vector<4x32xf32>
    %584 = math.exp %583 : vector<4x32xf32>
    %cst_100 = arith.constant 1.000000e+00 : f32
    %585 = vector.broadcast %cst_100 : f32 to vector<4x32xf32>
    %586 = arith.addf %585, %584 : vector<4x32xf32>
    %587 = arith.divf %585, %586 : vector<4x32xf32>
    %588 = vector.extract_strided_slice %578 {offsets = [0, 32], sizes = [4, 32], strides = [1, 1]} : vector<4x96xf32> to vector<4x32xf32>
    %589 = vector.extract_strided_slice %579 {offsets = [0, 32], sizes = [4, 32], strides = [1, 1]} : vector<4x96xf32> to vector<4x32xf32>
    %590 = arith.addf %588, %589 : vector<4x32xf32>
    %591 = arith.negf %590 : vector<4x32xf32>
    %592 = math.exp %591 : vector<4x32xf32>
    %cst_101 = arith.constant 1.000000e+00 : f32
    %593 = vector.broadcast %cst_101 : f32 to vector<4x32xf32>
    %594 = arith.addf %593, %592 : vector<4x32xf32>
    %595 = arith.divf %593, %594 : vector<4x32xf32>
    %596 = vector.extract_strided_slice %578 {offsets = [0, 64], sizes = [4, 32], strides = [1, 1]} : vector<4x96xf32> to vector<4x32xf32>
    %597 = vector.extract_strided_slice %579 {offsets = [0, 64], sizes = [4, 32], strides = [1, 1]} : vector<4x96xf32> to vector<4x32xf32>
    %598 = vector.broadcast %9 : vector<1x32xf32> to vector<4x32xf32>
    %599 = arith.addf %597, %598 : vector<4x32xf32>
    %600 = arith.mulf %587, %599 : vector<4x32xf32>
    %601 = arith.addf %596, %600 : vector<4x32xf32>
    %602 = math.tanh %601 : vector<4x32xf32>
    %cst_102 = arith.constant 1.000000e+00 : f32
    %603 = vector.broadcast %cst_102 : f32 to vector<4x32xf32>
    %604 = arith.subf %603, %595 : vector<4x32xf32>
    %605 = arith.mulf %604, %602 : vector<4x32xf32>
    %606 = arith.mulf %595, %571 : vector<4x32xf32>
    %607 = arith.addf %605, %606 : vector<4x32xf32>
    %c12_i32 = arith.constant 12 : i32
    %608 = vector.broadcast %c12_i32 : i32 to vector<4x1xi32>
    %609 = arith.cmpi sgt, %11, %608 : vector<4x1xi32>
    %610 = arith.extui %609 : vector<4x1xi1> to vector<4x1xi32>
    %611 = arith.sitofp %610 : vector<4x1xi32> to vector<4x1xf32>
    %612 = vector.broadcast %611 : vector<4x1xf32> to vector<4x32xf32>
    %613 = arith.mulf %612, %607 : vector<4x32xf32>
    %cst_103 = arith.constant 1.000000e+00 : f32
    %614 = vector.broadcast %cst_103 : f32 to vector<4x1xf32>
    %615 = arith.subf %614, %611 : vector<4x1xf32>
    %616 = vector.broadcast %615 : vector<4x1xf32> to vector<4x32xf32>
    %617 = arith.mulf %616, %571 : vector<4x32xf32>
    %618 = arith.addf %613, %617 : vector<4x32xf32>
    %619 = vector.broadcast %611 : vector<4x1xf32> to vector<4x32xf32>
    %620 = arith.mulf %619, %607 : vector<4x32xf32>
    %c0_104 = arith.constant 0 : index
    %c12 = arith.constant 12 : index
    %c0_105 = arith.constant 0 : index
    %621 = vector.load %arg11[%c0_104, %c12, %c0_105] : memref<4x16x32xf32, #tpu.memory_space<vmem>>, vector<4x1x32xf32>
    %622 = vector.shape_cast %621 : vector<4x1x32xf32> to vector<4x32xf32>
    %623 = vector.shape_cast %620 : vector<4x32xf32> to vector<4x1x32xf32>
    tpu.vector_store %arg11[%c0_104, %c12, %c0_105], %623 {strides = array<i32>} : memref<4x16x32xf32, #tpu.memory_space<vmem>>, vector<4x1x32xf32>,
    %624 = vector.extract_strided_slice %7 {offsets = [0, 13, 0], sizes = [4, 1, 96], strides = [1, 1, 1]} : vector<4x16x96xf32> to vector<4x1x96xf32>
    %625 = vector.shape_cast %624 : vector<4x1x96xf32> to vector<4x96xf32>
    %cst_106 = arith.constant dense<0.000000e+00> : vector<4x96xf32>
    %626 = tpu.matmul %618, %8, %cst_106 {dimension_numbers = #tpu.dot_dimension_numbers<[1], [0], [0], [1], [0, 0, 1, 1], [], []>} : vector<4x32xf32>, vector<32x96xf32>, vector<4x96xf32> -> vector<4x96xf32>
    %627 = vector.extract_strided_slice %625 {offsets = [0, 0], sizes = [4, 32], strides = [1, 1]} : vector<4x96xf32> to vector<4x32xf32>
    %628 = vector.extract_strided_slice %626 {offsets = [0, 0], sizes = [4, 32], strides = [1, 1]} : vector<4x96xf32> to vector<4x32xf32>
    %629 = arith.addf %627, %628 : vector<4x32xf32>
    %630 = arith.negf %629 : vector<4x32xf32>
    %631 = math.exp %630 : vector<4x32xf32>
    %cst_107 = arith.constant 1.000000e+00 : f32
    %632 = vector.broadcast %cst_107 : f32 to vector<4x32xf32>
    %633 = arith.addf %632, %631 : vector<4x32xf32>
    %634 = arith.divf %632, %633 : vector<4x32xf32>
    %635 = vector.extract_strided_slice %625 {offsets = [0, 32], sizes = [4, 32], strides = [1, 1]} : vector<4x96xf32> to vector<4x32xf32>
    %636 = vector.extract_strided_slice %626 {offsets = [0, 32], sizes = [4, 32], strides = [1, 1]} : vector<4x96xf32> to vector<4x32xf32>
    %637 = arith.addf %635, %636 : vector<4x32xf32>
    %638 = arith.negf %637 : vector<4x32xf32>
    %639 = math.exp %638 : vector<4x32xf32>
    %cst_108 = arith.constant 1.000000e+00 : f32
    %640 = vector.broadcast %cst_108 : f32 to vector<4x32xf32>
    %641 = arith.addf %640, %639 : vector<4x32xf32>
    %642 = arith.divf %640, %641 : vector<4x32xf32>
    %643 = vector.extract_strided_slice %625 {offsets = [0, 64], sizes = [4, 32], strides = [1, 1]} : vector<4x96xf32> to vector<4x32xf32>
    %644 = vector.extract_strided_slice %626 {offsets = [0, 64], sizes = [4, 32], strides = [1, 1]} : vector<4x96xf32> to vector<4x32xf32>
    %645 = vector.broadcast %9 : vector<1x32xf32> to vector<4x32xf32>
    %646 = arith.addf %644, %645 : vector<4x32xf32>
    %647 = arith.mulf %634, %646 : vector<4x32xf32>
    %648 = arith.addf %643, %647 : vector<4x32xf32>
    %649 = math.tanh %648 : vector<4x32xf32>
    %cst_109 = arith.constant 1.000000e+00 : f32
    %650 = vector.broadcast %cst_109 : f32 to vector<4x32xf32>
    %651 = arith.subf %650, %642 : vector<4x32xf32>
    %652 = arith.mulf %651, %649 : vector<4x32xf32>
    %653 = arith.mulf %642, %618 : vector<4x32xf32>
    %654 = arith.addf %652, %653 : vector<4x32xf32>
    %c13_i32 = arith.constant 13 : i32
    %655 = vector.broadcast %c13_i32 : i32 to vector<4x1xi32>
    %656 = arith.cmpi sgt, %11, %655 : vector<4x1xi32>
    %657 = arith.extui %656 : vector<4x1xi1> to vector<4x1xi32>
    %658 = arith.sitofp %657 : vector<4x1xi32> to vector<4x1xf32>
    %659 = vector.broadcast %658 : vector<4x1xf32> to vector<4x32xf32>
    %660 = arith.mulf %659, %654 : vector<4x32xf32>
    %cst_110 = arith.constant 1.000000e+00 : f32
    %661 = vector.broadcast %cst_110 : f32 to vector<4x1xf32>
    %662 = arith.subf %661, %658 : vector<4x1xf32>
    %663 = vector.broadcast %662 : vector<4x1xf32> to vector<4x32xf32>
    %664 = arith.mulf %663, %618 : vector<4x32xf32>
    %665 = arith.addf %660, %664 : vector<4x32xf32>
    %666 = vector.broadcast %658 : vector<4x1xf32> to vector<4x32xf32>
    %667 = arith.mulf %666, %654 : vector<4x32xf32>
    %c0_111 = arith.constant 0 : index
    %c13 = arith.constant 13 : index
    %c0_112 = arith.constant 0 : index
    %668 = vector.load %arg11[%c0_111, %c13, %c0_112] : memref<4x16x32xf32, #tpu.memory_space<vmem>>, vector<4x1x32xf32>
    %669 = vector.shape_cast %668 : vector<4x1x32xf32> to vector<4x32xf32>
    %670 = vector.shape_cast %667 : vector<4x32xf32> to vector<4x1x32xf32>
    tpu.vector_store %arg11[%c0_111, %c13, %c0_112], %670 {strides = array<i32>} : memref<4x16x32xf32, #tpu.memory_space<vmem>>, vector<4x1x32xf32>,
    %671 = vector.extract_strided_slice %7 {offsets = [0, 14, 0], sizes = [4, 1, 96], strides = [1, 1, 1]} : vector<4x16x96xf32> to vector<4x1x96xf32>
    %672 = vector.shape_cast %671 : vector<4x1x96xf32> to vector<4x96xf32>
    %cst_113 = arith.constant dense<0.000000e+00> : vector<4x96xf32>
    %673 = tpu.matmul %665, %8, %cst_113 {dimension_numbers = #tpu.dot_dimension_numbers<[1], [0], [0], [1], [0, 0, 1, 1], [], []>} : vector<4x32xf32>, vector<32x96xf32>, vector<4x96xf32> -> vector<4x96xf32>
    %674 = vector.extract_strided_slice %672 {offsets = [0, 0], sizes = [4, 32], strides = [1, 1]} : vector<4x96xf32> to vector<4x32xf32>
    %675 = vector.extract_strided_slice %673 {offsets = [0, 0], sizes = [4, 32], strides = [1, 1]} : vector<4x96xf32> to vector<4x32xf32>
    %676 = arith.addf %674, %675 : vector<4x32xf32>
    %677 = arith.negf %676 : vector<4x32xf32>
    %678 = math.exp %677 : vector<4x32xf32>
    %cst_114 = arith.constant 1.000000e+00 : f32
    %679 = vector.broadcast %cst_114 : f32 to vector<4x32xf32>
    %680 = arith.addf %679, %678 : vector<4x32xf32>
    %681 = arith.divf %679, %680 : vector<4x32xf32>
    %682 = vector.extract_strided_slice %672 {offsets = [0, 32], sizes = [4, 32], strides = [1, 1]} : vector<4x96xf32> to vector<4x32xf32>
    %683 = vector.extract_strided_slice %673 {offsets = [0, 32], sizes = [4, 32], strides = [1, 1]} : vector<4x96xf32> to vector<4x32xf32>
    %684 = arith.addf %682, %683 : vector<4x32xf32>
    %685 = arith.negf %684 : vector<4x32xf32>
    %686 = math.exp %685 : vector<4x32xf32>
    %cst_115 = arith.constant 1.000000e+00 : f32
    %687 = vector.broadcast %cst_115 : f32 to vector<4x32xf32>
    %688 = arith.addf %687, %686 : vector<4x32xf32>
    %689 = arith.divf %687, %688 : vector<4x32xf32>
    %690 = vector.extract_strided_slice %672 {offsets = [0, 64], sizes = [4, 32], strides = [1, 1]} : vector<4x96xf32> to vector<4x32xf32>
    %691 = vector.extract_strided_slice %673 {offsets = [0, 64], sizes = [4, 32], strides = [1, 1]} : vector<4x96xf32> to vector<4x32xf32>
    %692 = vector.broadcast %9 : vector<1x32xf32> to vector<4x32xf32>
    %693 = arith.addf %691, %692 : vector<4x32xf32>
    %694 = arith.mulf %681, %693 : vector<4x32xf32>
    %695 = arith.addf %690, %694 : vector<4x32xf32>
    %696 = math.tanh %695 : vector<4x32xf32>
    %cst_116 = arith.constant 1.000000e+00 : f32
    %697 = vector.broadcast %cst_116 : f32 to vector<4x32xf32>
    %698 = arith.subf %697, %689 : vector<4x32xf32>
    %699 = arith.mulf %698, %696 : vector<4x32xf32>
    %700 = arith.mulf %689, %665 : vector<4x32xf32>
    %701 = arith.addf %699, %700 : vector<4x32xf32>
    %c14_i32 = arith.constant 14 : i32
    %702 = vector.broadcast %c14_i32 : i32 to vector<4x1xi32>
    %703 = arith.cmpi sgt, %11, %702 : vector<4x1xi32>
    %704 = arith.extui %703 : vector<4x1xi1> to vector<4x1xi32>
    %705 = arith.sitofp %704 : vector<4x1xi32> to vector<4x1xf32>
    %706 = vector.broadcast %705 : vector<4x1xf32> to vector<4x32xf32>
    %707 = arith.mulf %706, %701 : vector<4x32xf32>
    %cst_117 = arith.constant 1.000000e+00 : f32
    %708 = vector.broadcast %cst_117 : f32 to vector<4x1xf32>
    %709 = arith.subf %708, %705 : vector<4x1xf32>
    %710 = vector.broadcast %709 : vector<4x1xf32> to vector<4x32xf32>
    %711 = arith.mulf %710, %665 : vector<4x32xf32>
    %712 = arith.addf %707, %711 : vector<4x32xf32>
    %713 = vector.broadcast %705 : vector<4x1xf32> to vector<4x32xf32>
    %714 = arith.mulf %713, %701 : vector<4x32xf32>
    %c0_118 = arith.constant 0 : index
    %c14 = arith.constant 14 : index
    %c0_119 = arith.constant 0 : index
    %715 = vector.load %arg11[%c0_118, %c14, %c0_119] : memref<4x16x32xf32, #tpu.memory_space<vmem>>, vector<4x1x32xf32>
    %716 = vector.shape_cast %715 : vector<4x1x32xf32> to vector<4x32xf32>
    %717 = vector.shape_cast %714 : vector<4x32xf32> to vector<4x1x32xf32>
    tpu.vector_store %arg11[%c0_118, %c14, %c0_119], %717 {strides = array<i32>} : memref<4x16x32xf32, #tpu.memory_space<vmem>>, vector<4x1x32xf32>,
    %718 = vector.extract_strided_slice %7 {offsets = [0, 15, 0], sizes = [4, 1, 96], strides = [1, 1, 1]} : vector<4x16x96xf32> to vector<4x1x96xf32>
    %719 = vector.shape_cast %718 : vector<4x1x96xf32> to vector<4x96xf32>
    %cst_120 = arith.constant dense<0.000000e+00> : vector<4x96xf32>
    %720 = tpu.matmul %712, %8, %cst_120 {dimension_numbers = #tpu.dot_dimension_numbers<[1], [0], [0], [1], [0, 0, 1, 1], [], []>} : vector<4x32xf32>, vector<32x96xf32>, vector<4x96xf32> -> vector<4x96xf32>
    %721 = vector.extract_strided_slice %719 {offsets = [0, 0], sizes = [4, 32], strides = [1, 1]} : vector<4x96xf32> to vector<4x32xf32>
    %722 = vector.extract_strided_slice %720 {offsets = [0, 0], sizes = [4, 32], strides = [1, 1]} : vector<4x96xf32> to vector<4x32xf32>
    %723 = arith.addf %721, %722 : vector<4x32xf32>
    %724 = arith.negf %723 : vector<4x32xf32>
    %725 = math.exp %724 : vector<4x32xf32>
    %cst_121 = arith.constant 1.000000e+00 : f32
    %726 = vector.broadcast %cst_121 : f32 to vector<4x32xf32>
    %727 = arith.addf %726, %725 : vector<4x32xf32>
    %728 = arith.divf %726, %727 : vector<4x32xf32>
    %729 = vector.extract_strided_slice %719 {offsets = [0, 32], sizes = [4, 32], strides = [1, 1]} : vector<4x96xf32> to vector<4x32xf32>
    %730 = vector.extract_strided_slice %720 {offsets = [0, 32], sizes = [4, 32], strides = [1, 1]} : vector<4x96xf32> to vector<4x32xf32>
    %731 = arith.addf %729, %730 : vector<4x32xf32>
    %732 = arith.negf %731 : vector<4x32xf32>
    %733 = math.exp %732 : vector<4x32xf32>
    %cst_122 = arith.constant 1.000000e+00 : f32
    %734 = vector.broadcast %cst_122 : f32 to vector<4x32xf32>
    %735 = arith.addf %734, %733 : vector<4x32xf32>
    %736 = arith.divf %734, %735 : vector<4x32xf32>
    %737 = vector.extract_strided_slice %719 {offsets = [0, 64], sizes = [4, 32], strides = [1, 1]} : vector<4x96xf32> to vector<4x32xf32>
    %738 = vector.extract_strided_slice %720 {offsets = [0, 64], sizes = [4, 32], strides = [1, 1]} : vector<4x96xf32> to vector<4x32xf32>
    %739 = vector.broadcast %9 : vector<1x32xf32> to vector<4x32xf32>
    %740 = arith.addf %738, %739 : vector<4x32xf32>
    %741 = arith.mulf %728, %740 : vector<4x32xf32>
    %742 = arith.addf %737, %741 : vector<4x32xf32>
    %743 = math.tanh %742 : vector<4x32xf32>
    %cst_123 = arith.constant 1.000000e+00 : f32
    %744 = vector.broadcast %cst_123 : f32 to vector<4x32xf32>
    %745 = arith.subf %744, %736 : vector<4x32xf32>
    %746 = arith.mulf %745, %743 : vector<4x32xf32>
    %747 = arith.mulf %736, %712 : vector<4x32xf32>
    %748 = arith.addf %746, %747 : vector<4x32xf32>
    %c15_i32 = arith.constant 15 : i32
    %749 = vector.broadcast %c15_i32 : i32 to vector<4x1xi32>
    %750 = arith.cmpi sgt, %11, %749 : vector<4x1xi32>
    %751 = arith.extui %750 : vector<4x1xi1> to vector<4x1xi32>
    %752 = arith.sitofp %751 : vector<4x1xi32> to vector<4x1xf32>
    %753 = vector.broadcast %752 : vector<4x1xf32> to vector<4x32xf32>
    %754 = arith.mulf %753, %748 : vector<4x32xf32>
    %cst_124 = arith.constant 1.000000e+00 : f32
    %755 = vector.broadcast %cst_124 : f32 to vector<4x1xf32>
    %756 = arith.subf %755, %752 : vector<4x1xf32>
    %757 = vector.broadcast %756 : vector<4x1xf32> to vector<4x32xf32>
    %758 = arith.mulf %757, %712 : vector<4x32xf32>
    %759 = arith.addf %754, %758 : vector<4x32xf32>
    %760 = vector.broadcast %752 : vector<4x1xf32> to vector<4x32xf32>
    %761 = arith.mulf %760, %748 : vector<4x32xf32>
    %c0_125 = arith.constant 0 : index
    %c15 = arith.constant 15 : index
    %c0_126 = arith.constant 0 : index
    %762 = vector.load %arg11[%c0_125, %c15, %c0_126] : memref<4x16x32xf32, #tpu.memory_space<vmem>>, vector<4x1x32xf32>
    %763 = vector.shape_cast %762 : vector<4x1x32xf32> to vector<4x32xf32>
    %764 = vector.shape_cast %761 : vector<4x32xf32> to vector<4x1x32xf32>
    tpu.vector_store %arg11[%c0_125, %c15, %c0_126], %764 {strides = array<i32>} : memref<4x16x32xf32, #tpu.memory_space<vmem>>, vector<4x1x32xf32>,
    %c0_127 = arith.constant 0 : index
    %c0_128 = arith.constant 0 : index
    %c0_129 = arith.constant 0 : index
    %765 = vector.load %arg11[%c0_127, %c0_128, %c0_129] : memref<4x16x32xf32, #tpu.memory_space<vmem>>, vector<4x16x32xf32>
    %766 = vector.shape_cast %759 : vector<4x32xf32> to vector<4x1x32xf32>
    "tpu.trace_start"() <{level = 10 : i32, message = "bqh,bkh->bqk"}> : () -> ()
    %cst_130 = arith.constant dense<0.000000e+00> : vector<4x1x16xf32>
    %767 = tpu.matmul %766, %765, %cst_130 {dimension_numbers = #tpu.dot_dimension_numbers<[2], [2], [1], [1], [0, 0, 0, 1, 1, 1], [0], [0]>} : vector<4x1x32xf32>, vector<4x16x32xf32>, vector<4x1x16xf32> -> vector<4x1x16xf32>
    "tpu.trace_stop"() : () -> ()
    %768 = vector.shape_cast %767 : vector<4x1x16xf32> to vector<4x16xf32>
    %cst_131 = arith.constant 0.176776692 : f32
    %769 = vector.broadcast %cst_131 : f32 to vector<4x16xf32>
    %770 = arith.mulf %768, %769 : vector<4x16xf32>
    %cst_132 = arith.constant dense<0xFF800000> : vector<4xf32>
    %771 = vector.multi_reduction <maximumf>, %770, %cst_132 [1] : vector<4x16xf32> to vector<4xf32>
    %772 = vector.shape_cast %771 : vector<4xf32> to vector<4x1xf32>
    %773 = vector.broadcast %772 : vector<4x1xf32> to vector<4x16xf32>
    %774 = arith.subf %770, %773 : vector<4x16xf32>
    %775 = math.exp %774 : vector<4x16xf32>
    %cst_133 = arith.constant dense<0.000000e+00> : vector<4xf32>
    %776 = vector.multi_reduction <add>, %775, %cst_133 [1] : vector<4x16xf32> to vector<4xf32>
    %777 = vector.shape_cast %776 : vector<4xf32> to vector<4x1xf32>
    %778 = tpu.reciprocal %777 : vector<4x1xf32> -> vector<4x1xf32>
    %779 = vector.broadcast %778 : vector<4x1xf32> to vector<4x16xf32>
    %780 = arith.mulf %775, %779 : vector<4x16xf32>
    %781 = vector.shape_cast %780 : vector<4x16xf32> to vector<4x1x16xf32>
    "tpu.trace_start"() <{level = 10 : i32, message = "bqk,bkh->bqh"}> : () -> ()
    %cst_134 = arith.constant dense<0.000000e+00> : vector<4x1x32xf32>
    %782 = tpu.matmul %781, %765, %cst_134 {dimension_numbers = #tpu.dot_dimension_numbers<[2], [1], [1], [2], [0, 0, 0, 1, 1, 2], [0], [0]>} : vector<4x1x16xf32>, vector<4x16x32xf32>, vector<4x1x32xf32> -> vector<4x1x32xf32>
    "tpu.trace_stop"() : () -> ()
    %783 = vector.shape_cast %782 : vector<4x1x32xf32> to vector<4x32xf32>
    %c0_135 = arith.constant 0 : index
    %c0_136 = arith.constant 0 : index
    %784 = vector.load %arg7[%c0_135, %c0_136] : memref<32x5xf32, #tpu.memory_space<vmem>>, vector<32x5xf32>
    %cst_137 = arith.constant dense<0.000000e+00> : vector<4x5xf32>
    %785 = tpu.matmul %783, %784, %cst_137 {dimension_numbers = #tpu.dot_dimension_numbers<[1], [0], [0], [1], [0, 0, 1, 1], [], []>} : vector<4x32xf32>, vector<32x5xf32>, vector<4x5xf32> -> vector<4x5xf32>
    %c0_138 = arith.constant 0 : index
    %c0_139 = arith.constant 0 : index
    %786 = vector.load %arg8[%c0_138, %c0_139] : memref<1x5xf32, #tpu.memory_space<vmem>>, vector<1x5xf32>
    %787 = vector.broadcast %786 : vector<1x5xf32> to vector<4x5xf32>
    %788 = arith.addf %785, %787 : vector<4x5xf32>
    %789 = vector.shape_cast %780 : vector<4x16xf32> to vector<4x1x16xf32>
    %c0_140 = arith.constant 0 : index
    %c0_141 = arith.constant 0 : index
    %c0_142 = arith.constant 0 : index
    %790 = vector.load %arg10[%c0_140, %c0_141, %c0_142] : memref<4x1x16xf32, #tpu.memory_space<vmem>>, vector<4x1x16xf32>
    tpu.vector_store %arg10[%c0_140, %c0_141, %c0_142], %789 {strides = array<i32>} : memref<4x1x16xf32, #tpu.memory_space<vmem>>, vector<4x1x16xf32>,
    %791 = vector.shape_cast %788 : vector<4x5xf32> to vector<4x1x5xf32>
    %c0_143 = arith.constant 0 : index
    %c0_144 = arith.constant 0 : index
    %c0_145 = arith.constant 0 : index
    %792 = vector.load %arg9[%c0_143, %c0_144, %c0_145] : memref<4x1x5xf32, #tpu.memory_space<vmem>>, vector<4x1x5xf32>
    tpu.vector_store %arg9[%c0_143, %c0_144, %c0_145], %791 {strides = array<i32>} : memref<4x1x5xf32, #tpu.memory_space<vmem>>, vector<4x1x5xf32>,
    return
  }
  func.func @transform_0(%arg0: i32) -> (i32, i32, i32) {
    %c0_i32 = arith.constant 0 : i32
    %c0_i32_0 = arith.constant 0 : i32
    %c0_i32_1 = arith.constant 0 : i32
    return %arg0, %c0_i32, %c0_i32_0 : i32, i32, i32
  }
  func.func @transform_1(%arg0: i32) -> (i32, i32) {
    %c0_i32 = arith.constant 0 : i32
    %c0_i32_0 = arith.constant 0 : i32
    %c0_i32_1 = arith.constant 0 : i32
    return %c0_i32, %c0_i32_0 : i32, i32
  }
  func.func @transform_2(%arg0: i32) -> (i32, i32) {
    %c0_i32 = arith.constant 0 : i32
    %c0_i32_0 = arith.constant 0 : i32
    %c0_i32_1 = arith.constant 0 : i32
    return %c0_i32, %c0_i32_0 : i32, i32
  }
  func.func @transform_3(%arg0: i32) -> (i32, i32) {
    %c0_i32 = arith.constant 0 : i32
    %c0_i32_0 = arith.constant 0 : i32
    %c0_i32_1 = arith.constant 0 : i32
    return %c0_i32, %c0_i32_0 : i32, i32
  }
  func.func @transform_4(%arg0: i32) -> (i32, i32) {
    %c0_i32 = arith.constant 0 : i32
    %c0_i32_0 = arith.constant 0 : i32
    %c0_i32_1 = arith.constant 0 : i32
    return %c0_i32, %c0_i32_0 : i32, i32
  }
  func.func @transform_5(%arg0: i32) -> (i32, i32, i32) {
    %c0_i32 = arith.constant 0 : i32
    %c0_i32_0 = arith.constant 0 : i32
    %c0_i32_1 = arith.constant 0 : i32
    return %arg0, %c0_i32, %c0_i32_0 : i32, i32, i32
  }
  func.func @transform_6(%arg0: i32) -> (i32, i32) {
    %c0_i32 = arith.constant 0 : i32
    %c0_i32_0 = arith.constant 0 : i32
    %c0_i32_1 = arith.constant 0 : i32
    return %c0_i32, %c0_i32_0 : i32, i32
  }
  func.func @transform_7(%arg0: i32) -> (i32, i32) {
    %c0_i32 = arith.constant 0 : i32
    %c0_i32_0 = arith.constant 0 : i32
    %c0_i32_1 = arith.constant 0 : i32
    return %c0_i32, %c0_i32_0 : i32, i32
  }
  func.func @transform_8(%arg0: i32) -> (i32, i32, i32) {
    %c0_i32 = arith.constant 0 : i32
    %c0_i32_0 = arith.constant 0 : i32
    %c0_i32_1 = arith.constant 0 : i32
    return %arg0, %c0_i32, %c0_i32_0 : i32, i32, i32
  }
  func.func @transform_9(%arg0: i32) -> (i32, i32, i32) {
    %c0_i32 = arith.constant 0 : i32
    %c0_i32_0 = arith.constant 0 : i32
    %c0_i32_1 = arith.constant 0 : i32
    return %arg0, %c0_i32, %c0_i32_0 : i32, i32, i32
  }
}

</mosaic_0001>

<bundles_post_ra>
// kernel: classifier_forward.1
= control target key start
LH: loop header
LB: loop body
LE: loop exit
PB: predicated region body
PF: predicated region fallthrough
CT: control target
= control target key end

     0   :  { %15 = vsyncpa [#allocation4], 0  ;;  %s11257_s0 = inlined_call_operand.hbm [shape: f32[4,16,16], index: 0, kind: input, shape index: {}]   ;;  %s11258_s1 = inlined_call_operand.vmem [shape: f32[16,96], index: 1, kind: input, shape index: {}]   ;;  %s11259_s2 = inlined_call_operand.vmem [shape: f32[32,96], index: 2, kind: input, shape index: {}]   ;;  %s11260_s3 = inlined_call_operand.vmem [shape: f32[1,96], index: 3, kind: input, shape index: {}]   ;;  %s11261_s4 = inlined_call_operand.vmem [shape: f32[1,32], index: 4, kind: input, shape index: {}]   ;;  %s11262_s5 = inlined_call_operand.vmem [shape: s32[4,1,1], index: 5, kind: input, shape index: {}]   ;;  %s11263_s6 = inlined_call_operand.vmem [shape: f32[32,5], index: 6, kind: input, shape index: {}]   ;;  %s11264_s7 = inlined_call_operand.vmem [shape: f32[1,5], index: 7, kind: input, shape index: {}]   ;;  %s11265_s8 = inlined_call_operand.hbm [shape: f32[4,1,5], index: 8, kind: output, shape index: {0}]   ;;  %s11266_s9 = inlined_call_operand.hbm [shape: f32[4,1,16], index: 9, kind: output, shape index: {1}]  }
   0x1   :  { %16 = vsyncpa [#allocation5], 0 }
   0x2   :  { %17 = vsyncpa [#allocation8], 0  ;;  %s9138_s30 = smov [#allocation3]   ;;  %s9066_s13 = scalar_lea.hbm %s11257_s0, 1024 }
   0x3   :  { %s23_s10 = sshll.u32 %s9138_s30, 4  ;;  %p9067_p0 = scmp.ne.s32.totalorder %s11257_s0, %s9066_s13  ;;  %s24_s10 = int_to_ptr.vmem [resolvable:$true] %s23_s10 }
   0x4   :  { %p9070_p1 = scmp.lt.u32.totalorder %s9066_s13, %s11257_s0 }
   0x6   :  { %p9072_p2 = pnand %p9070_p1, %p9067_p0 }
   0x8   :  { %9075 = shalt.err (!%p9072_p2)
}
   0x9   :  { %s9076_s18 = scalar_lea.vmem %s24_s10, 1024  ;;  %p9081_p4 = scmp.lt.s32.totalorder %s24_s10, %s24_s10 }
   0xa   :  { %p9077_p3 = scmp.ne.s32.totalorder %s24_s10, %s9076_s18  ;;  %p9082_p5 = scmp.lt.s32.totalorder %s9076_s18, %s9076_s18 }
   0xc   :  { %p9083_p6 = por %p9082_p5, %p9081_p4 }
   0xe   :  { %p9084_p7 = pnand %p9083_p6, %p9077_p3 }
  0x10   :  { %9087 = shalt.err (!%p9084_p7)
}
  0x11   :  { %s9139_s19 = smov 128   ;;  %s9140_s20 = smov 8  }
  0x12   :  { %29 = dma.hbm_to_vmem [thread:$0]  %s11257_s0, 1024, %s24_s10, [#allocation4], %s9139_s19, %s9139_s19, %s9140_s20  }
  0x13   :  { %9132 = dma.done.wait [#allocation4], 1024  }
  0x14   :  { %9133 = vsyncadd [#allocation4], 4294966272  ;;  %v9141_v0 = vmov 0.0|0.0   ;;  %vm9142_vm0 = vmmov 0   ;;  %v9143_v1 = vmov 0.0   ;;  %vm64_vm1 = vcmask 130048  }
  0x15   :  { %8345 = vmatprep.subr.bf16.mxu1 %v9141_v0  ;;  %8106 = vmatprep.mubr.msk.f32.mxu1 %vm9142_vm0, %v9143_v1  ;;  %v55_v2 = vld [vmem:[%s11258_s1] sm:$0xff]  ;;  %v56_v3 = vld [vmem:[%s11258_s1 + $0x8] sm:$0xff]  ;;  %v196_v9 = vld [vmem:[%s11259_s2 + $0x10] sm:$0xff]  ;;  %s9144_s14 = smov 64   ;;  %s9146_s22 = smov 96   ;;  %vm570_vm6 = vcmask 253952  }
  0x16   :  { %v194_v4 = vld [vmem:[%s11259_s2] sm:$0xff]  ;;  %v8341_v5 = vpack.c.bf16 %v56_v3, %v55_v2  ;;  %v195_v6 = vld [vmem:[%s11259_s2 + $0x8] sm:$0xff]  ;;  %v197_v10 = vld [vmem:[%s11259_s2 + $0x18] sm:$0xff]  ;;  %vm203_vm7 = vcmask 261120   ;;  %s9148_s23 = smov 32  }
  0x17   :  { %v47_v7 = vld [vmem:[#allocation3] sm:$0xff]  ;;  %v9230_v8 = vpack.c.bf16 %v195_v6, %v194_v4  ;;  %v48_v11 = vld [vmem:[#allocation3 + $0x8] sm:$0xff]  ;;  %v9240_v12 = vpack.c.bf16 %v197_v10, %v196_v9  ;;  %v49_v14 = vld [vmem:[#allocation3 + $0x10] sm:$0xff] }
  0x18   :  { %8086 = vmatprep.mubr.msk.f32.mxu0 %vm64_vm1, %v47_v7  ;;  %8342 = vmatprep.subr.bf16.mxu0 %v8341_v5  ;;  %v7805_v13 = vld [vmem:[%s11261_s4] ss:$0 sm:$0xff]  ;;  %v50_v15 = vld [vmem:[#allocation3 + $0x18] sm:$0xff]  ;;  %v52_v17 = vld [vmem:[#allocation3 + $0x28] sm:$0xff] }
  0x19   :  { %8347 = vmatpush3.bf16.msra.mxu1 %v9230_v8  ;;  %8344 = vmatpush3.bf16.msra.mxu0 %v8341_v5  ;;  %v51_v16 = vld [vmem:[#allocation3 + $0x20] sm:$0xff]  ;;  %v53_v18 = vld [vmem:[#allocation3 + $0x30] sm:$0xff]  ;;  %v54_v19 = vld [vmem:[#allocation3 + $0x38] sm:$0xff] }
  0x1a   :  { %8348 = vmatprep.subr.bf16.mxu1 %v9141_v0  ;;  %318 = vrot.lane.b32.xlu0 %v7805_v13, %s9144_s14  ;;  %v7792_v21 = vld [vmem:[%s11260_s3] ss:$0 sm:$0xff] }
  0x1b   :  { %8357 = vmatprep.subr.bf16.mxu0 %v9141_v0 }
  0x1c   :  { %8087 = vmatmul.mubr.msk.f32.vlgmr.msra.gmra.mrb[0].mxu0 %vm64_vm1, %v48_v11 }
  0x1d   :  { %8350 = vmatpush3.bf16.msra.mxu1 %v9240_v12  ;;  %8089 = vmatprep.mubr.msk.f32.mxu0 %vm64_vm1, %v49_v14 }
  0x1e   :  { %8351 = vmatprep.subr.bf16.mxu1 %v9141_v0  ;;  %8359 = vmatpush3.bf16.msra.mxu0 %v9230_v8 }
  0x1f   :  { %8360 = vmatprep.subr.bf16.mxu0 %v9141_v0 }
  0x20   :  { %8107 = vmatmul.mubr.f32.vlgmr.msra.gmra.mrb[0].mxu1 %v9143_v1  ;;  %8090 = vmatmul.mubr.msk.f32.gmra.mrb[2].mxu0 %vm64_vm1, %v50_v15  ;;  %v9145_v15 = vmov 0  }
  0x21   :  { %8092 = vmatprep.mubr.msk.f32.mxu0 %vm64_vm1, %v51_v16  ;;  %8353 = vmatpush3.bf16.msra.mxu1 %v9230_v8 }
  0x22   :  { %8354 = vmatprep.subr.bf16.mxu1 %v9141_v0  ;;  %8117 = vmatprep.mubr.msk.f32.mxu1 %vm9142_vm0, %v9143_v1 }
  0x23   :  { %8362 = vmatpush3.bf16.msra.mxu0 %v9240_v12  ;;  %8490 = vset.pattern.permute.xlu1 %v9145_v15 }
  0x24   :  { %8093 = vmatmul.mubr.msk.f32.gmra.mrb[4].mxu0 %vm64_vm1, %v52_v17  ;;  %8369 = vmatprep.subr.bf16.mxu0 %v9141_v0 }
  0x25   :  { %8095 = vmatprep.mubr.msk.f32.mxu0 %vm64_vm1, %v53_v18  ;;  %8356 = vmatpush3.bf16.msra.mxu1 %v9240_v12 }
  0x26   :  { %8363 = vmatprep.subr.bf16.mxu1 %v9141_v0  ;;  %8496 = vset.pattern.permute.xlu0 %v9145_v15 }
  0x28   :  { %8096 = vmatmul.mubr.msk.f32.gmra.mrb[6].mxu0 %vm64_vm1, %v54_v19 }
  0x29   :  { %8128 = vmatprep.mubr.msk.f32.mxu0 %vm9142_vm0, %v9143_v1 }
  0x8c   :  { %v9275_v24 = vpop.permute.xlu0 %318 }
  0xef   :  { %v8088_v20 = vpop.f32.mrb[0].mxu0 }
  0xf0   :  { %v9273_v22 = vadd.f32 %v8088_v20, %v7792_v21  ;;  %v155_v23 = vpop.f32.mrb[1].mxu0 }
  0xf1   :  { %v9288_v40 = vadd.f32 %v7792_v21, %v155_v23 }
  0xf3   :  { %v273_v25 = vpop.f32.mrb[0].mxu1  ;;  %v8091_v26 = vpop.f32.mrb[2].mxu0 }
  0xf4   :  { %v8108_v27 = vpop.f32.mrb[1].mxu1  ;;  %v165_v28 = vpop.f32.mrb[3].mxu0  ;;  %v9277_v29 = vadd.f32 %v8091_v26, %v7792_v21  ;;  %v321_v30 = vadd.f32 %v9275_v24, %v273_v25  ;;  %v278_v42 = vrot.slane %v273_v25, 1  ;;  %v285_v43 = vadd.f32 %v273_v25, %v9288_v40  ;;  %v9323_v26 = vld [vmem:[%s11262_s5 + $0x2] sm:$0x1] }
  0xf5   :  { %v9290_v41 = vadd.f32 %v7792_v21, %v165_v28  ;;  %v279_v47 = vrot.slane %v273_v25, 2  ;;  %v280_v48 = vrot.slane %v273_v25, 3  ;;  %v9328_v27 = vld [vmem:[%s11262_s5] sm:$0x1]  ;;  %v9333_v28 = vld [vmem:[%s11262_s5 + $0x1] sm:$0x1] }
  0xf6   :  { %326 = vrot.lane.b32.xlu0 %v321_v30, %s9144_s14  ;;  %v323_v31 = vrot.slane %v321_v30, 1  ;;  %v325_v35 = vrot.slane %v321_v30, 3  ;;  %v324_v36 = vrot.slane %v321_v30, 2  ;;  %v7801_v49 = vmul.f32 -1.442695, %v285_v43 }
  0xf7   :  { %v8094_v32 = vpop.f32.mrb[4].mxu0  ;;  %v286_v46 = vadd.f32 %v278_v42, %v9290_v41  ;;  %vm400_vm2 = vcmp.gt.s32.totalorder %v9323_v26, 0  ;;  %vm398_vm3 = vcmp.gt.s32.totalorder %v9328_v27, 0  ;;  %vm399_vm4 = vcmp.gt.s32.totalorder %v9333_v28, 0 }
  0xf8   :  { %v9281_v33 = vadd.f32 %v8094_v32, %v7792_v21  ;;  %v175_v34 = vpop.f32.mrb[5].mxu0  ;;  %328 = vrot.lane.b32.xlu1 %v323_v31, %s9144_s14  ;;  %8652 = vpow2.f32 %v7801_v49  ;;  %v9338_v31 = vld [vmem:[%s11262_s5 + $0x3] sm:$0x1]  ;;  %vm818_vm8 = vcmp.gt.s32.totalorder %v9323_v26, 1  ;;  %vm816_vm10 = vcmp.gt.s32.totalorder %v9328_v27, 1 }
  0xf9   :  { %v9293_v44 = vadd.f32 %v7792_v21, %v175_v34  ;;  %v7802_v51 = vmul.f32 -1.442695, %v286_v46  ;;  %vm401_vm5 = vcmp.gt.s32.totalorder %v9338_v31, 0  ;;  %v7808_v34 = vsel %vm400_vm2, 1.0, %v9143_v1 }
  0xfa   :  { %332 = vrot.lane.b32.xlu0 %v325_v35, %s9144_s14  ;;  %v7806_v35 = vsel %vm398_vm3, 1.0, %v9143_v1  ;;  %vm819_vm9 = vcmp.gt.s32.totalorder %v9338_v31, 1  ;;  %vm817_vm11 = vcmp.gt.s32.totalorder %v9333_v28, 1  ;;  %vm1239_vm12 = vcmp.gt.s32.totalorder %v9323_v26, 2 }
  0xfb   :  { %v8097_v37 = vpop.f32.mrb[6].mxu0  ;;  %v287_v50 = vadd.f32 %v279_v47, %v9293_v44  ;;  %8654 = vpow2.f32 %v7802_v51  ;;  %v524_v47 = vsub.f32 1.0, %v7808_v34  ;;  %v415_v51 = vlaneseq }
  0xfc   :  { %v9285_v38 = vadd.f32 %v8097_v37, %v7792_v21  ;;  %v185_v39 = vpop.f32.mrb[7].mxu0  ;;  %330 = vrot.lane.b32.xlu1 %v324_v36, %s9144_s14  ;;  %v7807_v36 = vsel %vm399_vm4, 1.0, %v9143_v1  ;;  %vm1240_vm13 = vcmp.gt.s32.totalorder %v9338_v31, 2  ;;  %vm1238_vm14 = vcmp.gt.s32.totalorder %v9333_v28, 2 }
  0xfd   :  { %v9295_v45 = vadd.f32 %v7792_v21, %v185_v39  ;;  %v7803_v53 = vmul.f32 -1.442695, %v287_v50  ;;  %v7809_v39 = vsel %vm401_vm5, 1.0, %v9143_v1  ;;  %v8491_v46 = vpack.i.bf16 %v7807_v36, %v7806_v35 }
  0xfe   :  { %v8497_v43 = vpack.i.bf16 %v7809_v39, %v7808_v34  ;;  %v523_v49 = vsub.f32 1.0, %v7807_v36  ;;  %v525_v50 = vsub.f32 1.0, %v7809_v39  ;;  %vm1237_vm15 = vcmp.gt.s32.totalorder %v9328_v27, 2 }
  0xff   :  { %v288_v52 = vadd.f32 %v280_v48, %v9295_v45  ;;  %8656 = vpow2.f32 %v7803_v53  ;;  %v522_v48 = vsub.f32 1.0, %v7806_v35 }
 0x101   :  { %v7804_v54 = vmul.f32 -1.442695, %v288_v52  ;;  %v9147_v52 = vmov 1966171168  }
 0x102   :  { %v8653_v55 = vpop.eup %8652  ;;  %v451_v53 = vunpack.c.l.s4 %v9147_v52 }
 0x103   :  { %8658 = vpow2.f32 %v7804_v54  ;;  %v301_v57 = vadd.f32 1.0, %v8653_v55  ;;  %v416_v54 = vshrl.u32 %v415_v51, 7 }
 0x104   :  { %v452_v55 = vunpack.c.0.s8 %v451_v53 }
 0x105   :  { %v8655_v56 = vpop.eup %8654  ;;  %8660 = vrcp.f32 %v301_v57  ;;  %v9374_v39 = vsub.s32 0, %v416_v54 }
 0x106   :  { %v302_v59 = vadd.f32 1.0, %v8655_v56 }
 0x108   :  { %8662 = vrcp.f32 %v302_v59  ;;  %v9354_v59 = vsub.s32 %v452_v55, %v416_v54 }
 0x109   :  { %v8657_v58 = vpop.eup %8656 }
 0x10a   :  { %v303_v61 = vadd.f32 1.0, %v8657_v58 }
 0x10c   :  { %8664 = vrcp.f32 %v303_v61 }
 0x10d   :  { %v8659_v60 = vpop.eup %8658 }
 0x10e   :  { %v304_v62 = vadd.f32 1.0, %v8659_v60 }
 0x10f   :  { %v9300_v63 = vpop.eup %8660 }
 0x110   :  { %8666 = vrcp.f32 %v304_v62  ;;  %v366_v56 = vsub.f32 1.0, %v9300_v63  ;;  %v390_v58 = vmul.f32 0.0, %v9300_v63 }
 0x112   :  { %v9303_v4 = vpop.eup %8662 }
 0x113   :  { %v367_v61 = vsub.f32 1.0, %v9303_v4 }
 0x116   :  { %v9307_v9 = vpop.eup %8664 }
 0x11a   :  { %v9310_v10 = vpop.eup %8666 }
 0x11b   :  { %v393_v15 = vmul.f32 0.0, %v9310_v10 }
 0x168   :  { %v327_v2 = vpop.permute.xlu0 %326 }
 0x169   :  { %v338_v3 = vmul.f32 %v9300_v63, %v327_v2 }
 0x16a   :  { %v329_v5 = vpop.permute.xlu1 %328 }
 0x16b   :  { %v339_v6 = vmul.f32 %v9303_v4, %v329_v5  ;;  %346 = vrot.lane.b32.xlu1 %v338_v3, %s9144_s14  ;;  %v391_v3 = vmul.f32 0.0, %v9303_v4 }
 0x16c   :  { %v333_v7 = vpop.permute.xlu0 %332 }
 0x16d   :  { %348 = vrot.lane.b32.xlu0 %v339_v6, %s9144_s14  ;;  %v341_v13 = vmul.f32 %v9310_v10, %v333_v7 }
 0x16e   :  { %v331_v11 = vpop.permute.xlu1 %330 }
 0x16f   :  { %v340_v14 = vmul.f32 %v9307_v9, %v331_v11  ;;  %v369_v11 = vsub.f32 1.0, %v9310_v10 }
 0x171   :  { %352 = vrot.lane.b32.xlu0 %v341_v13, %s9144_s14  ;;  %350 = vrot.lane.b32.xlu1 %v340_v14, %s9144_s14  ;;  %v368_v14 = vsub.f32 1.0, %v9307_v9 }
 0x1dd   :  { %v347_v16 = vpop.permute.xlu1 %346 }
 0x1de   :  { %v358_v17 = vadd.f32 %v347_v16, %v9288_v40 }
 0x1df   :  { %v349_v18 = vpop.permute.xlu0 %348 }
 0x1e0   :  { %8668 = vtanh.f32 %v358_v17  ;;  %v359_v19 = vadd.f32 %v349_v18, %v9290_v41 }
 0x1e2   :  { %8670 = vtanh.f32 %v359_v19  ;;  %v392_v19 = vmul.f32 0.0, %v9307_v9 }
 0x1e3   :  { %v353_v20 = vpop.permute.xlu0 %352  ;;  %v351_v21 = vpop.permute.xlu1 %350 }
 0x1e4   :  { %v361_v23 = vadd.f32 %v353_v20, %v9295_v45  ;;  %v360_v25 = vadd.f32 %v351_v21, %v9293_v44 }
 0x1e6   :  { %8672 = vtanh.f32 %v361_v23 }
 0x1e7   :  { %8674 = vtanh.f32 %v360_v25 }
 0x1ea   :  { %v8669_v30 = vpop.eup %8668 }
 0x1eb   :  { %374 = vrot.lane.b32.xlu1 %v8669_v30, %s9146_s22 }
 0x1ec   :  { %v8671_v32 = vpop.eup %8670 }
 0x1ed   :  { %376 = vrot.lane.b32.xlu0 %v8671_v32, %s9146_s22 }
 0x1f0   :  { %v8673_v37 = vpop.eup %8672 }
 0x1f1   :  { %v8675_v42 = vpop.eup %8674  ;;  %380 = vrot.lane.b32.xlu0 %v8673_v37, %s9146_s22 }
 0x1f2   :  { %378 = vrot.lane.b32.xlu1 %v8675_v42, %s9146_s22 }
 0x1f5   :  { %8498 = vperm.xlu0 %8496, %v8497_v43  }
 0x1f6   :  { %8492 = vperm.xlu1 %8490, %v8491_v46  }
 0x1f9   :  { %546 = vperm.xlu0 %8496, %v524_v47  }
 0x1fa   :  { %528 = vperm.xlu1 %8490, %v522_v48  }
 0x1fe   :  { %537 = vperm.xlu1 %8490, %v523_v49  }
 0x202   :  { %555 = vperm.xlu1 %8490, %v525_v50  }
 0x25d   :  { %v375_v57 = vpop.permute.xlu1 %374 }
 0x25e   :  { %v386_v60 = vmul.f32 %v375_v57, %v366_v56 }
 0x25f   :  { %v377_v62 = vpop.permute.xlu0 %376 }
 0x260   :  { %v394_v2 = vadd.f32 %v390_v58, %v386_v60  ;;  %v387_v5 = vmul.f32 %v377_v62, %v367_v61 }
 0x262   :  { %v456_v6 = vrot.slane %v394_v2, %v9354_v59  ;;  %v395_v7 = vadd.f32 %v391_v3, %v387_v5 }
 0x263   :  { %v381_v13 = vpop.permute.xlu0 %380 }
 0x264   :  { %v470_v63 = vrot.slane %v395_v7, %v9354_v59  ;;  %v389_v16 = vmul.f32 %v381_v13, %v369_v11  ;;  %v379_v17 = vpop.permute.xlu1 %378  ;;  %v463_v18 = vrot.slane %v456_v6, %v9354_v59 }
 0x265   :  { %v388_v4 = vmul.f32 %v379_v17, %v368_v14 }
 0x266   :  { %v397_v20 = vadd.f32 %v393_v15, %v389_v16  ;;  %506 = vrot.lane.b32.xlu0 %v463_v18, %s9146_s22  ;;  %v477_v21 = vrot.slane %v470_v63, %v9354_v59 }
 0x267   :  { %v396_v23 = vadd.f32 %v392_v19, %v388_v4 }
 0x268   :  { %v498_v25 = vrot.slane %v397_v20, %v9354_v59  ;;  %508 = vrot.lane.b32.xlu1 %v477_v21, %s9146_s22 }
 0x269   :  { %v484_v30 = vrot.slane %v396_v23, %v9354_v59 }
 0x26a   :  { %v505_v10 = vrot.slane %v498_v25, %v9354_v59 }
 0x26b   :  { %v491_v32 = vrot.slane %v484_v30, %v9354_v59 }
 0x26c   :  { %512 = vrot.lane.b32.xlu1 %v505_v10, %s9146_s22 }
 0x26d   :  { %510 = vrot.lane.b32.xlu0 %v491_v32, %s9146_s22 }
 0x274   :  { %v8499_v35 = vpop.permute.xlu0 %8498 }
 0x275   :  { %v8493_v9 = vpop.permute.xlu1 %8492  ;;  %v8501_v50 = vunpack.i.h.bf16 %v8499_v35  ;;  %v8500_v55 = vunpack.i.l.bf16 %v8499_v35 }
 0x276   :  { %v8494_v37 = vunpack.i.l.bf16 %v8493_v9  ;;  %v8495_v43 = vunpack.i.h.bf16 %v8493_v9 }
 0x277   :  { %v445_v61 = vrot.slane %v8501_v50, %v9374_v39  ;;  %v436_v3 = vrot.slane %v8500_v55, %v9374_v39 }
 0x278   :  { %v547_v42 = vpop.permute.xlu0 %546  ;;  %v418_v47 = vrot.slane %v8494_v37, %v9374_v39  ;;  %v427_v52 = vrot.slane %v8495_v43, %v9374_v39 }
 0x279   :  { %v529_v34 = vpop.permute.xlu1 %528  ;;  %v552_v60 = vrot.slane %v547_v42, %v9374_v39 }
 0x27a   :  { %v534_v53 = vrot.slane %v529_v34, %v9374_v39 }
 0x27b   :  { %v564_v13 = vmul.f32 0.0, %v552_v60 }
 0x27c   :  { %v562_v62 = vmul.f32 0.0, %v534_v53 }
 0x27d   :  { %v538_v36 = vpop.permute.xlu1 %537 }
 0x27e   :  { %v543_v48 = vrot.slane %v538_v36, %v9374_v39 }
 0x280   :  { %v563_v58 = vmul.f32 0.0, %v543_v48 }
 0x281   :  { %v556_v46 = vpop.permute.xlu1 %555 }
 0x282   :  { %v561_v54 = vrot.slane %v556_v46, %v9374_v39 }
 0x284   :  { %v565_v6 = vmul.f32 0.0, %v561_v54 }
 0x2d8   :  { %v507_v49 = vpop.permute.xlu0 %506 }
 0x2d9   :  { %v518_v51 = vmul.f32 %v507_v49, %v418_v47 }
 0x2da   :  { %v509_v56 = vpop.permute.xlu1 %508 }
 0x2db   :  { %571 = vst.msk [vmem:[#allocation2] sm:$0x1] %vm570_vm6, %v518_v51  ;;  %v519_v57 = vmul.f32 %v509_v56, %v427_v52  ;;  %v9388_v14 = vadd.f32 %v562_v62, %v518_v51 }
 0x2dd   :  { %572 = vst.msk [vmem:[#allocation2 + $0x10] sm:$0x1] %vm570_vm6, %v519_v57  ;;  %v9385_v2 = vadd.f32 %v563_v58, %v519_v57 }
 0x2de   :  { %v513_v5 = vpop.permute.xlu1 %512 }
 0x2df   :  { %v511_v7 = vpop.permute.xlu0 %510  ;;  %v521_v11 = vmul.f32 %v513_v5, %v445_v61  ;;  %v579_v16 = vcombine.low %v9388_v14, %v9385_v2 }
 0x2e0   :  { %v520_v63 = vmul.f32 %v511_v7, %v436_v3 }
 0x2e1   :  { %v9390_v15 = vadd.f32 %v565_v6, %v521_v11  ;;  %574 = vst.msk [vmem:[#allocation2 + $0x30] sm:$0x1] %vm570_vm6, %v521_v11  ;;  %v587_v19 = vrot.slane %v579_v16, %v9354_v59 }
 0x2e2   :  { %v9395_v17 = vadd.f32 %v564_v13, %v520_v63  ;;  %573 = vst.msk [vmem:[#allocation2 + $0x20] sm:$0x1] %vm570_vm6, %v520_v63 }
 0x2e4   :  { %v580_v18 = vcombine.low %v9395_v17, %v9390_v15 }
 0x2e6   :  { %v594_v4 = vrot.slane %v580_v18, %v9354_v59 }
 0x2e8   :  { %v595_v20 = vcombine.low %v587_v19, %v594_v4  ;;  %v787_v19 = vrot.slane %v9385_v2, %v9374_v39  ;;  %v783_v4 = vrot.slane %v9388_v14, %v9374_v39 }
 0x2ea   :  { %v602_v21 = vrot.slane %v595_v20, %v9354_v59 }
 0x2ec   :  { %8118 = vmatmul.mubr.msk.f32.vlgmr.msra.gmra.mrb[2].mxu1 %vm203_vm7, %v602_v21 }
 0x2ed   :  { %8365 = vmatpush3.bf16.msra.mxu1 %v9230_v8  ;;  %8139 = vmatprep.mubr.msk.f32.mxu1 %vm9142_vm0, %v9143_v1 }
 0x2ee   :  { %8366 = vmatprep.subr.bf16.mxu1 %v9141_v0 }
 0x2f1   :  { %8368 = vmatpush3.bf16.msra.mxu1 %v9240_v12 }
 0x2f2   :  { %8375 = vmatprep.subr.bf16.mxu1 %v9141_v0 }
 0x3bf   :  { %v671_v23 = vpop.f32.mrb[2].mxu1 }
 0x3c0   :  { %v8119_v25 = vpop.f32.mrb[3].mxu1  ;;  %v711_v30 = vadd.f32 %v671_v23, %v9275_v24  ;;  %v676_v34 = vrot.slane %v671_v23, 7  ;;  %v678_v35 = vrot.slane %v671_v23, 2  ;;  %v684_v36 = vadd.f32 %v671_v23, %v9290_v41 }
 0x3c1   :  { %v677_v37 = vrot.slane %v671_v23, 1 }
 0x3c2   :  { %718 = vrot.lane.b32.xlu1 %v711_v30, %s9144_s14  ;;  %v713_v10 = vrot.slane %v711_v30, 7  ;;  %v715_v32 = vrot.slane %v711_v30, 2  ;;  %v714_v9 = vrot.slane %v711_v30, 1  ;;  %v683_v42 = vadd.f32 %v676_v34, %v9288_v40 }
 0x3c3   :  { %v686_v43 = vadd.f32 %v678_v35, %v9295_v45  ;;  %v7812_v46 = vmul.f32 -1.442695, %v684_v36  ;;  %v685_v47 = vadd.f32 %v677_v37, %v9293_v44 }
 0x3c4   :  { %716 = vrot.lane.b32.xlu0 %v713_v10, %s9144_s14  ;;  %v7811_v48 = vmul.f32 -1.442695, %v683_v42  ;;  %v7817_v42 = vsel %vm818_vm8, 1.0, %v9143_v1 }
 0x3c5   :  { %8676 = vpow2.f32 %v7812_v46  ;;  %v7814_v49 = vmul.f32 -1.442695, %v686_v43  ;;  %v7813_v50 = vmul.f32 -1.442695, %v685_v47  ;;  %v7818_v43 = vsel %vm819_vm9, 1.0, %v9143_v1 }
 0x3c6   :  { %722 = vrot.lane.b32.xlu1 %v715_v32, %s9144_s14  ;;  %8678 = vpow2.f32 %v7811_v48  ;;  %v795_v46 = vrot.slane %v9390_v15, %v9374_v39  ;;  %v7815_v47 = vsel %vm816_vm10, 1.0, %v9143_v1  ;;  %v7816_v48 = vsel %vm817_vm11, 1.0, %v9143_v1 }
 0x3c7   :  { %8680 = vpow2.f32 %v7814_v49  ;;  %v791_v49 = vrot.slane %v9395_v17, %v9374_v39 }
 0x3c8   :  { %720 = vrot.lane.b32.xlu0 %v714_v9, %s9144_s14  ;;  %8682 = vpow2.f32 %v7813_v50  ;;  %v8507_v50 = vpack.i.bf16 %v7818_v43, %v7817_v42 }
 0x3cf   :  { %v8677_v51 = vpop.eup %8676 }
 0x3d0   :  { %v8679_v52 = vpop.eup %8678  ;;  %v700_v53 = vadd.f32 1.0, %v8677_v51  ;;  %v8502_v51 = vpack.i.bf16 %v7816_v48, %v7815_v47 }
 0x3d1   :  { %v8681_v55 = vpop.eup %8680  ;;  %v699_v56 = vadd.f32 1.0, %v8679_v52  ;;  %v945_v52 = vsub.f32 1.0, %v7816_v48 }
 0x3d2   :  { %v8683_v54 = vpop.eup %8682  ;;  %v702_v57 = vadd.f32 1.0, %v8681_v55  ;;  %8684 = vrcp.f32 %v700_v53  ;;  %v944_v53 = vsub.f32 1.0, %v7815_v47  ;;  %v947_v55 = vsub.f32 1.0, %v7818_v43 }
 0x3d3   :  { %v701_v58 = vadd.f32 1.0, %v8683_v54  ;;  %8686 = vrcp.f32 %v699_v56  ;;  %v946_v56 = vsub.f32 1.0, %v7817_v42 }
 0x3d4   :  { %8688 = vrcp.f32 %v702_v57 }
 0x3d5   :  { %8690 = vrcp.f32 %v701_v58 }
 0x3dc   :  { %v9419_v60 = vpop.eup %8684 }
 0x3dd   :  { %v9422_v3 = vpop.eup %8686  ;;  %v757_v58 = vsub.f32 1.0, %v9419_v60 }
 0x3de   :  { %v9426_v7 = vpop.eup %8688 }
 0x3df   :  { %v9430_v63 = vpop.eup %8690 }
 0x434   :  { %v719_v61 = vpop.permute.xlu1 %718 }
 0x435   :  { %v729_v62 = vmul.f32 %v9419_v60, %v719_v61 }
 0x436   :  { %v717_v5 = vpop.permute.xlu0 %716 }
 0x437   :  { %v728_v6 = vmul.f32 %v9422_v3, %v717_v5  ;;  %738 = vrot.lane.b32.xlu1 %v729_v62, %s9144_s14 }
 0x438   :  { %v723_v11 = vpop.permute.xlu1 %722 }
 0x439   :  { %v731_v13 = vmul.f32 %v9426_v7, %v723_v11  ;;  %736 = vrot.lane.b32.xlu0 %v728_v6, %s9144_s14  ;;  %v756_v6 = vsub.f32 1.0, %v9422_v3 }
 0x43a   :  { %v721_v16 = vpop.permute.xlu0 %720 }
 0x43b   :  { %v730_v18 = vmul.f32 %v9430_v63, %v721_v16  ;;  %742 = vrot.lane.b32.xlu1 %v731_v13, %s9144_s14 }
 0x43d   :  { %740 = vrot.lane.b32.xlu0 %v730_v18, %s9144_s14 }
 0x43f   :  { %798 = vrot.lane.b32.xlu1 %v787_v19, %s9148_s23 }
 0x441   :  { %796 = vrot.lane.b32.xlu0 %v783_v4, %s9148_s23 }
 0x4a9   :  { %v739_v20 = vpop.permute.xlu1 %738 }
 0x4aa   :  { %v749_v21 = vadd.f32 %v739_v20, %v9290_v41 }
 0x4ab   :  { %v737_v23 = vpop.permute.xlu0 %736 }
 0x4ac   :  { %8692 = vtanh.f32 %v749_v21  ;;  %v748_v25 = vadd.f32 %v737_v23, %v9288_v40 }
 0x4ad   :  { %v743_v30 = vpop.permute.xlu1 %742 }
 0x4ae   :  { %8694 = vtanh.f32 %v748_v25  ;;  %v751_v10 = vadd.f32 %v743_v30, %v9295_v45  ;;  %v759_v25 = vsub.f32 1.0, %v9426_v7 }
 0x4af   :  { %v741_v32 = vpop.permute.xlu0 %740 }
 0x4b0   :  { %8696 = vtanh.f32 %v751_v10  ;;  %v750_v9 = vadd.f32 %v741_v32, %v9293_v44 }
 0x4b1   :  { %v799_v54 = vpop.permute.xlu1 %798 }
 0x4b2   :  { %8698 = vtanh.f32 %v750_v9  ;;  %v809_v62 = vmul.f32 %v9419_v60, %v799_v54  ;;  %v758_v60 = vsub.f32 1.0, %v9430_v63 }
 0x4b3   :  { %v797_v57 = vpop.permute.xlu0 %796 }
 0x4b4   :  { %v808_v13 = vmul.f32 %v9422_v3, %v797_v57 }
 0x4b6   :  { %v8693_v34 = vpop.eup %8692 }
 0x4b7   :  { %766 = vrot.lane.b32.xlu1 %v8693_v34, %s9146_s22 }
 0x4b8   :  { %v8695_v35 = vpop.eup %8694 }
 0x4b9   :  { %764 = vrot.lane.b32.xlu0 %v8695_v35, %s9146_s22 }
 0x4ba   :  { %v8697_v36 = vpop.eup %8696 }
 0x4bb   :  { %770 = vrot.lane.b32.xlu1 %v8697_v36, %s9146_s22 }
 0x4bc   :  { %v8699_v37 = vpop.eup %8698 }
 0x4bd   :  { %768 = vrot.lane.b32.xlu0 %v8699_v37, %s9146_s22 }
 0x4bf   :  { %802 = vrot.lane.b32.xlu1 %v795_v46, %s9148_s23 }
 0x4c1   :  { %800 = vrot.lane.b32.xlu0 %v791_v49, %s9148_s23 }
 0x4c3   :  { %8508 = vperm.xlu1 %8490, %v8507_v50  }
 0x4c5   :  { %8503 = vperm.xlu0 %8496, %v8502_v51  }
 0x4c7   :  { %959 = vperm.xlu1 %8490, %v945_v52  }
 0x4c9   :  { %950 = vperm.xlu0 %8496, %v944_v53  }
 0x4cb   :  { %977 = vperm.xlu1 %8490, %v947_v55  }
 0x4cd   :  { %968 = vperm.xlu0 %8496, %v946_v56  }
 0x529   :  { %v767_v61 = vpop.permute.xlu1 %766 }
 0x52a   :  { %v777_v5 = vmul.f32 %v767_v61, %v757_v58 }
 0x52b   :  { %v765_v11 = vpop.permute.xlu0 %764 }
 0x52c   :  { %v813_v16 = vadd.f32 %v809_v62, %v777_v5  ;;  %v776_v18 = vmul.f32 %v765_v11, %v756_v6 }
 0x52d   :  { %v771_v19 = vpop.permute.xlu1 %770 }
 0x52e   :  { %v889_v4 = vrot.slane %v813_v16, %v9354_v59  ;;  %v812_v20 = vadd.f32 %v808_v13, %v776_v18  ;;  %v779_v32 = vmul.f32 %v771_v19, %v759_v25 }
 0x52f   :  { %v769_v21 = vpop.permute.xlu0 %768 }
 0x530   :  { %v874_v23 = vrot.slane %v812_v20, %v9354_v59  ;;  %v890_v30 = vcombine.high %v889_v4, %v889_v4  ;;  %v778_v36 = vmul.f32 %v769_v21, %v758_v60 }
 0x531   :  { %v803_v10 = vpop.permute.xlu1 %802 }
 0x532   :  { %v811_v9 = vmul.f32 %v9426_v7, %v803_v10  ;;  %v897_v3 = vrot.slane %v890_v30, %v9354_v59  ;;  %v875_v34 = vcombine.high %v874_v23, %v874_v23 }
 0x533   :  { %v801_v35 = vpop.permute.xlu0 %800 }
 0x534   :  { %v815_v37 = vadd.f32 %v811_v9, %v779_v32  ;;  %v810_v42 = vmul.f32 %v9430_v63, %v801_v35  ;;  %930 = vrot.lane.b32.xlu1 %v897_v3, %s9146_s22  ;;  %v882_v43 = vrot.slane %v875_v34, %v9354_v59 }
 0x536   :  { %v919_v46 = vrot.slane %v815_v37, %v9354_v59  ;;  %v814_v47 = vadd.f32 %v810_v42, %v778_v36  ;;  %928 = vrot.lane.b32.xlu0 %v882_v43, %s9146_s22 }
 0x538   :  { %v904_v48 = vrot.slane %v814_v47, %v9354_v59  ;;  %v920_v7 = vcombine.high %v919_v46, %v919_v46 }
 0x53a   :  { %v927_v49 = vrot.slane %v920_v7, %v9354_v59  ;;  %v905_v50 = vcombine.high %v904_v48, %v904_v48 }
 0x53c   :  { %934 = vrot.lane.b32.xlu1 %v927_v49, %s9146_s22  ;;  %v912_v51 = vrot.slane %v905_v50, %v9354_v59 }
 0x53e   :  { %932 = vrot.lane.b32.xlu0 %v912_v51, %s9146_s22 }
 0x542   :  { %v8509_v63 = vpop.permute.xlu1 %8508 }
 0x543   :  { %v8511_v13 = vunpack.i.h.bf16 %v8509_v63  ;;  %v8510_v19 = vunpack.i.l.bf16 %v8509_v63 }
 0x544   :  { %v8504_v52 = vpop.permute.xlu0 %8503 }
 0x545   :  { %v8506_v56 = vunpack.i.h.bf16 %v8504_v52  ;;  %v8505_v57 = vunpack.i.l.bf16 %v8504_v52  ;;  %v863_v25 = vrot.slane %v8511_v13, %v9374_v39  ;;  %v854_v9 = vrot.slane %v8510_v19, %v9374_v39 }
 0x546   :  { %v960_v53 = vpop.permute.xlu1 %959 }
 0x547   :  { %v845_v61 = vrot.slane %v8506_v56, %v9374_v39  ;;  %v836_v6 = vrot.slane %v8505_v57, %v9374_v39  ;;  %v965_v4 = vrot.slane %v960_v53, %v9374_v39 }
 0x548   :  { %v951_v55 = vpop.permute.xlu0 %950 }
 0x549   :  { %v956_v16 = vrot.slane %v951_v55, %v9374_v39  ;;  %v985_v60 = vmul.f32 %v965_v4, %v9385_v2 }
 0x54a   :  { %v978_v54 = vpop.permute.xlu1 %977 }
 0x54b   :  { %v984_v20 = vmul.f32 %v956_v16, %v9388_v14  ;;  %v983_v21 = vrot.slane %v978_v54, %v9374_v39 }
 0x54c   :  { %v969_v58 = vpop.permute.xlu0 %968 }
 0x54d   :  { %v974_v23 = vrot.slane %v969_v58, %v9374_v39  ;;  %v987_v34 = vmul.f32 %v983_v21, %v9390_v15 }
 0x54f   :  { %v986_v35 = vmul.f32 %v974_v23, %v9395_v17 }
 0x5a6   :  { %v931_v62 = vpop.permute.xlu1 %930 }
 0x5a7   :  { %v941_v5 = vmul.f32 %v931_v62, %v845_v61 }
 0x5a8   :  { %v929_v11 = vpop.permute.xlu0 %928 }
 0x5a9   :  { %993 = vst.msk [vmem:[#allocation2 + $0x11] sm:$0x1] %vm570_vm6, %v941_v5  ;;  %v940_v18 = vmul.f32 %v929_v11, %v836_v6  ;;  %v9499_v14 = vadd.f32 %v985_v60, %v941_v5 }
 0x5ab   :  { %992 = vst.msk [vmem:[#allocation2 + $0x1] sm:$0x1] %vm570_vm6, %v940_v18  ;;  %v9494_v10 = vadd.f32 %v984_v20, %v940_v18 }
 0x5ad   :  { %v1000_v37 = vcombine.low %v9494_v10, %v9499_v14 }
 0x5ae   :  { %v935_v30 = vpop.permute.xlu1 %934 }
 0x5af   :  { %v943_v32 = vmul.f32 %v935_v30, %v863_v25  ;;  %v1008_v15 = vrot.slane %v1000_v37, %v9354_v59 }
 0x5b0   :  { %v933_v3 = vpop.permute.xlu0 %932 }
 0x5b1   :  { %995 = vst.msk [vmem:[#allocation2 + $0x31] sm:$0x1] %vm570_vm6, %v943_v32  ;;  %v942_v36 = vmul.f32 %v933_v3, %v854_v9  ;;  %v9504_v42 = vadd.f32 %v987_v34, %v943_v32 }
 0x5b3   :  { %v9506_v2 = vadd.f32 %v986_v35, %v942_v36  ;;  %994 = vst.msk [vmem:[#allocation2 + $0x21] sm:$0x1] %vm570_vm6, %v942_v36 }
 0x5b5   :  { %v1001_v43 = vcombine.low %v9506_v2, %v9504_v42 }
 0x5b7   :  { %v1015_v17 = vrot.slane %v1001_v43, %v9354_v59 }
 0x5b9   :  { %v1016_v46 = vcombine.low %v1008_v15, %v1015_v17  ;;  %v1208_v15 = vrot.slane %v9499_v14, %v9374_v39  ;;  %v1204_v17 = vrot.slane %v9494_v10, %v9374_v39 }
 0x5bb   :  { %v1023_v47 = vrot.slane %v1016_v46, %v9354_v59 }
 0x5bd   :  { %8129 = vmatmul.mubr.msk.f32.vlgmr.msra.gmra.mrb[8].mxu0 %vm203_vm7, %v1023_v47 }
 0x5be   :  { %8371 = vmatpush3.bf16.msra.mxu0 %v9230_v8  ;;  %8150 = vmatprep.mubr.msk.f32.mxu0 %vm9142_vm0, %v9143_v1 }
 0x5bf   :  { %8372 = vmatprep.subr.bf16.mxu0 %v9141_v0 }
 0x5c2   :  { %8374 = vmatpush3.bf16.msra.mxu0 %v9240_v12 }
 0x5c3   :  { %8381 = vmatprep.subr.bf16.mxu0 %v9141_v0 }
 0x690   :  { %v1092_v48 = vpop.f32.mrb[8].mxu0 }
 0x691   :  { %v8130_v7 = vpop.f32.mrb[9].mxu0  ;;  %v1132_v49 = vadd.f32 %v1092_v48, %v9275_v24  ;;  %v1097_v52 = vrot.slane %v1092_v48, 6  ;;  %v1098_v53 = vrot.slane %v1092_v48, 7  ;;  %v1099_v56 = vrot.slane %v1092_v48, 1 }
 0x692   :  { %v1106_v57 = vadd.f32 %v1092_v48, %v9293_v44 }
 0x693   :  { %v1135_v50 = vrot.slane %v1132_v49, 7  ;;  %v1134_v51 = vrot.slane %v1132_v49, 6  ;;  %v1136_v63 = vrot.slane %v1132_v49, 1  ;;  %v1104_v55 = vadd.f32 %v1097_v52, %v9288_v40 }
 0x694   :  { %v1105_v54 = vadd.f32 %v1098_v53, %v9290_v41  ;;  %v1107_v61 = vadd.f32 %v1099_v56, %v9295_v45  ;;  %v7822_v5 = vmul.f32 -1.442695, %v1106_v57  ;;  %v7826_v56 = vsel %vm1239_vm12, 1.0, %v9143_v1 }
 0x695   :  { %1139 = vrot.lane.b32.xlu1 %v1135_v50, %s9144_s14  ;;  %1137 = vrot.lane.b32.xlu0 %v1134_v51, %s9144_s14  ;;  %v7820_v58 = vmul.f32 -1.442695, %v1104_v55  ;;  %v1216_v57 = vrot.slane %v9504_v42, %v9374_v39 }
 0x696   :  { %v7821_v62 = vmul.f32 -1.442695, %v1105_v54  ;;  %v7823_v6 = vmul.f32 -1.442695, %v1107_v61  ;;  %v7827_v54 = vsel %vm1240_vm13, 1.0, %v9143_v1  ;;  %v7824_v61 = vsel %vm1237_vm15, 1.0, %v9143_v1 }
 0x697   :  { %8700 = vpow2.f32 %v7820_v58  ;;  %v8517_v31 = vpack.i.bf16 %v7827_v54, %v7826_v56  ;;  %v7825_v58 = vsel %vm1238_vm14, 1.0, %v9143_v1  ;;  %v1368_v27 = vsub.f32 1.0, %v7827_v54 }
 0x698   :  { %8702 = vpow2.f32 %v7821_v62  ;;  %v1212_v62 = vrot.slane %v9506_v2, %v9374_v39  ;;  %v8512_v28 = vpack.i.bf16 %v7825_v58, %v7824_v61 }
 0x699   :  { %1143 = vrot.lane.b32.xlu1 %v1136_v63, %s9144_s14  ;;  %1141 = vrot.lane.b32.xlu0 %v1132_v49, %s9144_s14  ;;  %8704 = vpow2.f32 %v7822_v5  ;;  %v1366_v5 = vsub.f32 1.0, %v7825_v58 }
 0x69a   :  { %8706 = vpow2.f32 %v7823_v6  ;;  %v1365_v6 = vsub.f32 1.0, %v7824_v61 }
 0x6a1   :  { %v8701_v11 = vpop.eup %8700 }
 0x6a2   :  { %v8703_v13 = vpop.eup %8702  ;;  %v1120_v16 = vadd.f32 1.0, %v8701_v11  ;;  %v1367_v11 = vsub.f32 1.0, %v7826_v56 }
 0x6a3   :  { %v8705_v18 = vpop.eup %8704  ;;  %v1121_v19 = vadd.f32 1.0, %v8703_v13 }
 0x6a4   :  { %v8707_v4 = vpop.eup %8706  ;;  %v1122_v20 = vadd.f32 1.0, %v8705_v18  ;;  %8708 = vrcp.f32 %v1120_v16 }
 0x6a5   :  { %v1123_v21 = vadd.f32 1.0, %v8707_v4  ;;  %8710 = vrcp.f32 %v1121_v19 }
 0x6a6   :  { %8712 = vrcp.f32 %v1122_v20 }
 0x6a7   :  { %8714 = vrcp.f32 %v1123_v21 }
 0x6ae   :  { %v9530_v23 = vpop.eup %8708 }
 0x6af   :  { %v9532_v25 = vpop.eup %8710 }
 0x6b0   :  { %v9536_v3 = vpop.eup %8712  ;;  %v1178_v16 = vsub.f32 1.0, %v9532_v25 }
 0x6b1   :  { %v9540_v34 = vpop.eup %8714 }
 0x707   :  { %v1140_v30 = vpop.permute.xlu1 %1139  ;;  %v1138_v60 = vpop.permute.xlu0 %1137 }
 0x708   :  { %v1150_v32 = vmul.f32 %v9532_v25, %v1140_v30  ;;  %v1149_v9 = vmul.f32 %v9530_v23, %v1138_v60 }
 0x70a   :  { %1159 = vrot.lane.b32.xlu1 %v1150_v32, %s9144_s14  ;;  %1157 = vrot.lane.b32.xlu0 %v1149_v9, %s9144_s14  ;;  %v1180_v9 = vsub.f32 1.0, %v9540_v34 }
 0x70b   :  { %v1144_v35 = vpop.permute.xlu1 %1143  ;;  %v1142_v36 = vpop.permute.xlu0 %1141 }
 0x70c   :  { %v1152_v37 = vmul.f32 %v9540_v34, %v1144_v35  ;;  %v1151_v43 = vmul.f32 %v9536_v3, %v1142_v36 }
 0x70e   :  { %1163 = vrot.lane.b32.xlu1 %v1152_v37, %s9144_s14  ;;  %1161 = vrot.lane.b32.xlu0 %v1151_v43, %s9144_s14  ;;  %v1177_v37 = vsub.f32 1.0, %v9530_v23 }
 0x712   :  { %1219 = vrot.lane.b32.xlu1 %v1208_v15, %s9148_s23  ;;  %1217 = vrot.lane.b32.xlu0 %v1204_v17, %s9148_s23 }
 0x77c   :  { %v1160_v46 = vpop.permute.xlu1 %1159  ;;  %v1158_v47 = vpop.permute.xlu0 %1157 }
 0x77d   :  { %v1170_v48 = vadd.f32 %v1160_v46, %v9290_v41  ;;  %v1169_v63 = vadd.f32 %v1158_v47, %v9288_v40 }
 0x77f   :  { %8716 = vtanh.f32 %v1170_v48 }
 0x780   :  { %v1164_v7 = vpop.permute.xlu1 %1163  ;;  %v1162_v49 = vpop.permute.xlu0 %1161 }
 0x781   :  { %v1172_v50 = vadd.f32 %v1164_v7, %v9295_v45  ;;  %v1171_v51 = vadd.f32 %v1162_v49, %v9293_v44  ;;  %v1179_v7 = vsub.f32 1.0, %v9536_v3 }
 0x783   :  { %8718 = vtanh.f32 %v1172_v50 }
 0x784   :  { %8720 = vtanh.f32 %v1171_v51  ;;  %v1220_v13 = vpop.permute.xlu1 %1219  ;;  %v1218_v4 = vpop.permute.xlu0 %1217 }
 0x785   :  { %8722 = vtanh.f32 %v1169_v63  ;;  %v1230_v19 = vmul.f32 %v9532_v25, %v1220_v13  ;;  %v1229_v25 = vmul.f32 %v9530_v23, %v1218_v4 }
 0x789   :  { %v8717_v52 = vpop.eup %8716 }
 0x78a   :  { %1187 = vrot.lane.b32.xlu1 %v8717_v52, %s9146_s22 }
 0x78d   :  { %v8719_v53 = vpop.eup %8718 }
 0x78e   :  { %v8721_v55 = vpop.eup %8720  ;;  %1191 = vrot.lane.b32.xlu1 %v8719_v53, %s9146_s22 }
 0x78f   :  { %1189 = vrot.lane.b32.xlu0 %v8721_v55, %s9146_s22  ;;  %v8723_v26 = vpop.eup %8722 }
 0x792   :  { %1223 = vrot.lane.b32.xlu1 %v1216_v57, %s9148_s23 }
 0x793   :  { %1185 = vrot.lane.b32.xlu0 %v8723_v26, %s9146_s22 }
 0x796   :  { %8518 = vperm.xlu1 %8490, %v8517_v31  }
 0x797   :  { %1221 = vrot.lane.b32.xlu0 %v1212_v62, %s9148_s23 }
 0x79a   :  { %1380 = vperm.xlu1 %8490, %v1366_v5  }
 0x79b   :  { %8513 = vperm.xlu0 %8496, %v8512_v28  }
 0x79e   :  { %1398 = vperm.xlu1 %8490, %v1368_v27  }
 0x79f   :  { %1371 = vperm.xlu0 %8496, %v1365_v6  }
 0x7a3   :  { %1389 = vperm.xlu0 %8496, %v1367_v11  }
 0x7fc   :  { %v1188_v18 = vpop.permute.xlu1 %1187 }
 0x7fd   :  { %v1198_v20 = vmul.f32 %v1188_v18, %v1178_v16 }
 0x7ff   :  { %v1234_v21 = vadd.f32 %v1230_v19, %v1198_v20 }
 0x800   :  { %v1192_v30 = vpop.permute.xlu1 %1191 }
 0x801   :  { %v1310_v60 = vrot.slane %v1234_v21, %v9354_v59  ;;  %v1190_v32 = vpop.permute.xlu0 %1189  ;;  %v1200_v43 = vmul.f32 %v1192_v30, %v1180_v9 }
 0x802   :  { %v1199_v63 = vmul.f32 %v1190_v32, %v1179_v7 }
 0x803   :  { %v1317_v35 = vrot.slane %v1310_v60, %v9354_v59 }
 0x804   :  { %v1224_v36 = vpop.permute.xlu1 %1223 }
 0x805   :  { %v1232_v15 = vmul.f32 %v9540_v34, %v1224_v36  ;;  %v1186_v17 = vpop.permute.xlu0 %1185  ;;  %v1318_v46 = vcombine.high %v1317_v35, %v1317_v35 }
 0x806   :  { %v1197_v47 = vmul.f32 %v1186_v17, %v1177_v37 }
 0x807   :  { %v1236_v48 = vadd.f32 %v1232_v15, %v1200_v43  ;;  %1351 = vrot.lane.b32.xlu1 %v1318_v46, %s9146_s22 }
 0x808   :  { %v1233_v49 = vadd.f32 %v1229_v25, %v1197_v47 }
 0x809   :  { %v1340_v50 = vrot.slane %v1236_v48, %v9354_v59  ;;  %v1222_v51 = vpop.permute.xlu0 %1221 }
 0x80a   :  { %v1295_v52 = vrot.slane %v1233_v49, %v9354_v59  ;;  %v1231_v53 = vmul.f32 %v9536_v3, %v1222_v51 }
 0x80b   :  { %v1347_v34 = vrot.slane %v1340_v50, %v9354_v59 }
 0x80c   :  { %v1235_v55 = vadd.f32 %v1231_v53, %v1199_v63  ;;  %v1302_v23 = vrot.slane %v1295_v52, %v9354_v59 }
 0x80d   :  { %v1348_v56 = vcombine.high %v1347_v34, %v1347_v34 }
 0x80e   :  { %v1325_v54 = vrot.slane %v1235_v55, %v9354_v59  ;;  %v1303_v57 = vcombine.high %v1302_v23, %v1302_v23 }
 0x80f   :  { %1355 = vrot.lane.b32.xlu1 %v1348_v56, %s9146_s22 }
 0x810   :  { %1349 = vrot.lane.b32.xlu0 %v1303_v57, %s9146_s22  ;;  %v1332_v26 = vrot.slane %v1325_v54, %v9354_v59 }
 0x812   :  { %v1333_v31 = vcombine.high %v1332_v26, %v1332_v26 }
 0x814   :  { %1353 = vrot.lane.b32.xlu0 %v1333_v31, %s9146_s22 }
 0x815   :  { %v8519_v58 = vpop.permute.xlu1 %8518 }
 0x816   :  { %v8521_v13 = vunpack.i.h.bf16 %v8519_v58  ;;  %v8520_v20 = vunpack.i.l.bf16 %v8519_v58 }
 0x818   :  { %v1284_v4 = vrot.slane %v8521_v13, %v9374_v39  ;;  %v1275_v46 = vrot.slane %v8520_v20, %v9374_v39 }
 0x819   :  { %v1381_v3 = vpop.permute.xlu1 %1380 }
 0x81a   :  { %v8514_v61 = vpop.permute.xlu0 %8513  ;;  %v1386_v21 = vrot.slane %v1381_v3, %v9374_v39 }
 0x81b   :  { %v8516_v62 = vunpack.i.h.bf16 %v8514_v61  ;;  %v8515_v16 = vunpack.i.l.bf16 %v8514_v61 }
 0x81c   :  { %v1406_v15 = vmul.f32 %v1386_v21, %v9499_v14 }
 0x81d   :  { %v1399_v5 = vpop.permute.xlu1 %1398  ;;  %v1266_v27 = vrot.slane %v8516_v62, %v9374_v39  ;;  %v1257_v60 = vrot.slane %v8515_v16, %v9374_v39 }
 0x81e   :  { %v1372_v28 = vpop.permute.xlu0 %1371  ;;  %v1404_v35 = vrot.slane %v1399_v5, %v9374_v39 }
 0x81f   :  { %v1377_v19 = vrot.slane %v1372_v28, %v9374_v39 }
 0x820   :  { %v1408_v47 = vmul.f32 %v1404_v35, %v9504_v42 }
 0x821   :  { %v1405_v36 = vmul.f32 %v1377_v19, %v9494_v10 }
 0x822   :  { %v1390_v18 = vpop.permute.xlu0 %1389 }
 0x823   :  { %v1395_v37 = vrot.slane %v1390_v18, %v9374_v39 }
 0x825   :  { %v1407_v48 = vmul.f32 %v1395_v37, %v9506_v2 }
 0x879   :  { %v1352_v6 = vpop.permute.xlu1 %1351 }
 0x87a   :  { %v1362_v11 = vmul.f32 %v1352_v6, %v1266_v27 }
 0x87c   :  { %1414 = vst.msk [vmem:[#allocation2 + $0x12] sm:$0x1] %vm570_vm6, %v1362_v11  ;;  %v9611_v7 = vadd.f32 %v1406_v15, %v1362_v11 }
 0x881   :  { %v1356_v30 = vpop.permute.xlu1 %1355 }
 0x882   :  { %v1364_v32 = vmul.f32 %v1356_v30, %v1284_v4  ;;  %v1350_v9 = vpop.permute.xlu0 %1349 }
 0x883   :  { %v1361_v43 = vmul.f32 %v1350_v9, %v1257_v60 }
 0x884   :  { %1416 = vst.msk [vmem:[#allocation2 + $0x32] sm:$0x1] %vm570_vm6, %v1364_v32  ;;  %v9613_v49 = vadd.f32 %v1408_v47, %v1364_v32 }
 0x885   :  { %v9605_v17 = vadd.f32 %v1405_v36, %v1361_v43  ;;  %1413 = vst.msk [vmem:[#allocation2 + $0x2] sm:$0x1] %vm570_vm6, %v1361_v43 }
 0x886   :  { %v1354_v25 = vpop.permute.xlu0 %1353 }
 0x887   :  { %v1363_v10 = vmul.f32 %v1354_v25, %v1275_v46  ;;  %v1421_v50 = vcombine.low %v9605_v17, %v9611_v7 }
 0x889   :  { %v9617_v14 = vadd.f32 %v1407_v48, %v1363_v10  ;;  %1415 = vst.msk [vmem:[#allocation2 + $0x22] sm:$0x1] %vm570_vm6, %v1363_v10  ;;  %v1429_v63 = vrot.slane %v1421_v50, %v9354_v59  ;;  %v1629_v48 = vrot.slane %v9611_v7, %v9374_v39  ;;  %v1625_v10 = vrot.slane %v9605_v17, %v9374_v39 }
 0x88b   :  { %v1422_v51 = vcombine.low %v9617_v14, %v9613_v49 }
 0x88d   :  { %v1436_v42 = vrot.slane %v1422_v51, %v9354_v59 }
 0x88f   :  { %v1437_v2 = vcombine.low %v1429_v63, %v1436_v42 }
 0x891   :  { %v1444_v52 = vrot.slane %v1437_v2, %v9354_v59 }
 0x893   :  { %8140 = vmatmul.mubr.msk.f32.vlgmr.msra.gmra.mrb[4].mxu1 %vm203_vm7, %v1444_v52 }
 0x894   :  { %8377 = vmatpush3.bf16.msra.mxu1 %v9230_v8  ;;  %8161 = vmatprep.mubr.msk.f32.mxu1 %vm9142_vm0, %v9143_v1 }
 0x895   :  { %8378 = vmatprep.subr.bf16.mxu1 %v9141_v0 }
 0x898   :  { %8380 = vmatpush3.bf16.msra.mxu1 %v9240_v12 }
 0x899   :  { %8387 = vmatprep.subr.bf16.mxu1 %v9141_v0 }
 0x966   :  { %v1513_v53 = vpop.f32.mrb[4].mxu1 }
 0x967   :  { %v8141_v34 = vpop.f32.mrb[5].mxu1  ;;  %v1553_v55 = vadd.f32 %v1513_v53, %v9275_v24  ;;  %v1518_v57 = vrot.slane %v1513_v53, 5  ;;  %v1519_v26 = vrot.slane %v1513_v53, 6  ;;  %v1520_v58 = vrot.slane %v1513_v53, 7 }
 0x968   :  { %v1528_v61 = vadd.f32 %v1513_v53, %v9295_v45 }
 0x969   :  { %v1556_v23 = vrot.slane %v1553_v55, 6  ;;  %v1555_v56 = vrot.slane %v1553_v55, 5  ;;  %v1557_v54 = vrot.slane %v1553_v55, 7  ;;  %v1525_v31 = vadd.f32 %v1518_v57, %v9288_v40 }
 0x96a   :  { %v1526_v3 = vadd.f32 %v1519_v26, %v9290_v41  ;;  %v1527_v5 = vadd.f32 %v1520_v58, %v9293_v44  ;;  %v7832_v27 = vmul.f32 -1.442695, %v1528_v61  ;;  %v9687_v58 = vld [vmem:[%s11262_s5 + $0x2] sm:$0x1] }
 0x96b   :  { %1560 = vrot.lane.b32.xlu1 %v1556_v23, %s9144_s14  ;;  %1558 = vrot.lane.b32.xlu0 %v1555_v56, %s9144_s14  ;;  %v7829_v62 = vmul.f32 -1.442695, %v1525_v31  ;;  %v9671_v56 = vld [vmem:[%s11262_s5] sm:$0x1]  ;;  %vm1660_vm4 = vcmp.gt.s32.totalorder %v9687_v58, 3  ;;  %vm2087_vm8 = vcmp.gt.s32.totalorder %v9687_v58, 4 }
 0x96c   :  { %v7830_v28 = vmul.f32 -1.442695, %v1526_v3  ;;  %v7831_v6 = vmul.f32 -1.442695, %v1527_v5  ;;  %vm1658_vm2 = vcmp.gt.s32.totalorder %v9671_v56, 3  ;;  %vm2085_vm10 = vcmp.gt.s32.totalorder %v9671_v56, 4 }
 0x96d   :  { %8724 = vpow2.f32 %v7829_v62  ;;  %v7833_v26 = vsel %vm1658_vm2, 1.0, %v9143_v1  ;;  %v9693_v3 = vld [vmem:[%s11262_s5 + $0x3] sm:$0x1]  ;;  %v1633_v62 = vrot.slane %v9617_v14, %v9374_v39  ;;  %vm2510_vm12 = vcmp.gt.s32.totalorder %v9687_v58, 5 }
 0x96e   :  { %8726 = vpow2.f32 %v7830_v28  ;;  %vm1661_vm5 = vcmp.gt.s32.totalorder %v9693_v3, 3  ;;  %v7835_v28 = vsel %vm1660_vm4, 1.0, %v9143_v1  ;;  %vm2088_vm9 = vcmp.gt.s32.totalorder %v9693_v3, 4 }
 0x96f   :  { %1564 = vrot.lane.b32.xlu1 %v1553_v55, %s9144_s14  ;;  %1562 = vrot.lane.b32.xlu0 %v1557_v54, %s9144_s14  ;;  %8728 = vpow2.f32 %v7832_v27  ;;  %v9677_v54 = vld [vmem:[%s11262_s5 + $0x1] sm:$0x1]  ;;  %v7836_v27 = vsel %vm1661_vm5, 1.0, %v9143_v1  ;;  %vm2511_vm13 = vcmp.gt.s32.totalorder %v9693_v3, 5  ;;  %vm2508_vm14 = vcmp.gt.s32.totalorder %v9671_v56, 5 }
 0x970   :  { %8730 = vpow2.f32 %v7831_v6  ;;  %vm1659_vm3 = vcmp.gt.s32.totalorder %v9677_v54, 3  ;;  %v1637_v6 = vrot.slane %v9613_v49, %v9374_v39  ;;  %vm2086_vm11 = vcmp.gt.s32.totalorder %v9677_v54, 4 }
 0x971   :  { %v7834_v31 = vsel %vm1659_vm3, 1.0, %v9143_v1  ;;  %vm2509_vm15 = vcmp.gt.s32.totalorder %v9677_v54, 5  ;;  %v7851_v58 = vsel %vm2508_vm14, 1.0, %v9143_v1 }
 0x972   :  { %v8522_v5 = vpack.i.bf16 %v7834_v31, %v7833_v26  ;;  %v7852_v3 = vsel %vm2509_vm15, 1.0, %v9143_v1 }
 0x977   :  { %v8725_v11 = vpop.eup %8724 }
 0x978   :  { %v8727_v13 = vpop.eup %8726  ;;  %v1541_v16 = vadd.f32 1.0, %v8725_v11  ;;  %v8527_v11 = vpack.i.bf16 %v7836_v27, %v7835_v28 }
 0x979   :  { %v8729_v18 = vpop.eup %8728  ;;  %v1542_v19 = vadd.f32 1.0, %v8727_v13  ;;  %v1790_v13 = vsub.f32 1.0, %v7833_v26 }
 0x97a   :  { %v8731_v4 = vpop.eup %8730  ;;  %v1544_v20 = vadd.f32 1.0, %v8729_v18  ;;  %8732 = vrcp.f32 %v1541_v16  ;;  %v1791_v16 = vsub.f32 1.0, %v7834_v31  ;;  %v1792_v18 = vsub.f32 1.0, %v7835_v28 }
 0x97b   :  { %v1543_v21 = vadd.f32 1.0, %v8731_v4  ;;  %8734 = vrcp.f32 %v1542_v19  ;;  %v1793_v19 = vsub.f32 1.0, %v7836_v27 }
 0x97c   :  { %8736 = vrcp.f32 %v1544_v20 }
 0x97d   :  { %8738 = vrcp.f32 %v1543_v21 }
 0x984   :  { %v9641_v30 = vpop.eup %8732 }
 0x985   :  { %v9643_v60 = vpop.eup %8734  ;;  %v1598_v21 = vsub.f32 1.0, %v9641_v30 }
 0x986   :  { %v9647_v37 = vpop.eup %8736 }
 0x987   :  { %v9651_v43 = vpop.eup %8738 }
 0x9dd   :  { %v1561_v32 = vpop.permute.xlu1 %1560  ;;  %v1559_v9 = vpop.permute.xlu0 %1558 }
 0x9de   :  { %v1571_v35 = vmul.f32 %v9643_v60, %v1561_v32  ;;  %v1570_v36 = vmul.f32 %v9641_v30, %v1559_v9 }
 0x9e0   :  { %1580 = vrot.lane.b32.xlu1 %v1571_v35, %s9144_s14  ;;  %1578 = vrot.lane.b32.xlu0 %v1570_v36, %s9144_s14 }
 0x9e1   :  { %v1565_v15 = vpop.permute.xlu1 %1564  ;;  %v1563_v46 = vpop.permute.xlu0 %1562 }
 0x9e2   :  { %v1573_v25 = vmul.f32 %v9647_v37, %v1565_v15  ;;  %v1572_v47 = vmul.f32 %v9651_v43, %v1563_v46 }
 0x9e4   :  { %1584 = vrot.lane.b32.xlu1 %v1573_v25, %s9144_s14  ;;  %1582 = vrot.lane.b32.xlu0 %v1572_v47, %s9144_s14  ;;  %v1599_v47 = vsub.f32 1.0, %v9643_v60 }
 0x9e8   :  { %1640 = vrot.lane.b32.xlu1 %v1629_v48, %s9148_s23  ;;  %1638 = vrot.lane.b32.xlu0 %v1625_v10, %s9148_s23  ;;  %v1600_v10 = vsub.f32 1.0, %v9651_v43 }
 0xa52   :  { %v1581_v50 = vpop.permute.xlu1 %1580  ;;  %v1579_v51 = vpop.permute.xlu0 %1578 }
 0xa53   :  { %v1590_v63 = vadd.f32 %v1579_v51, %v9288_v40  ;;  %v1591_v34 = vadd.f32 %v1581_v50, %v9290_v41 }
 0xa55   :  { %8740 = vtanh.f32 %v1590_v63 }
 0xa56   :  { %v1585_v42 = vpop.permute.xlu1 %1584  ;;  %v1583_v2 = vpop.permute.xlu0 %1582 }
 0xa57   :  { %v1593_v52 = vadd.f32 %v1585_v42, %v9295_v45  ;;  %v1592_v53 = vadd.f32 %v1583_v2, %v9293_v44 }
 0xa59   :  { %8742 = vtanh.f32 %v1593_v52 }
 0xa5a   :  { %8744 = vtanh.f32 %v1592_v53  ;;  %v1639_v4 = vpop.permute.xlu0 %1638  ;;  %v1641_v20 = vpop.permute.xlu1 %1640  ;;  %v1601_v53 = vsub.f32 1.0, %v9647_v37 }
 0xa5b   :  { %8746 = vtanh.f32 %v1591_v34  ;;  %v1650_v9 = vmul.f32 %v9641_v30, %v1639_v4  ;;  %v1651_v51 = vmul.f32 %v9643_v60, %v1641_v20 }
 0xa5f   :  { %v8741_v55 = vpop.eup %8740 }
 0xa60   :  { %1606 = vrot.lane.b32.xlu0 %v8741_v55, %s9146_s22 }
 0xa63   :  { %v8743_v23 = vpop.eup %8742 }
 0xa64   :  { %v8745_v57 = vpop.eup %8744  ;;  %1612 = vrot.lane.b32.xlu1 %v8743_v23, %s9146_s22 }
 0xa65   :  { %1610 = vrot.lane.b32.xlu0 %v8745_v57, %s9146_s22  ;;  %v8747_v61 = vpop.eup %8746 }
 0xa68   :  { %1608 = vrot.lane.b32.xlu1 %v8747_v61, %s9146_s22 }
 0xa69   :  { %1642 = vrot.lane.b32.xlu0 %v1633_v62, %s9148_s23 }
 0xa6c   :  { %1644 = vrot.lane.b32.xlu1 %v1637_v6, %s9148_s23 }
 0xa6d   :  { %8523 = vperm.xlu0 %8496, %v8522_v5  }
 0xa70   :  { %8528 = vperm.xlu1 %8490, %v8527_v11  }
 0xa71   :  { %1796 = vperm.xlu0 %8496, %v1790_v13  }
 0xa74   :  { %1805 = vperm.xlu1 %8490, %v1791_v16  }
 0xa75   :  { %1814 = vperm.xlu0 %8496, %v1792_v18  }
 0xa78   :  { %1823 = vperm.xlu1 %8490, %v1793_v19  }
 0xad2   :  { %v1607_v32 = vpop.permute.xlu0 %1606 }
 0xad3   :  { %v1618_v35 = vmul.f32 %v1607_v32, %v1598_v21 }
 0xad5   :  { %v1654_v36 = vadd.f32 %v1650_v9, %v1618_v35 }
 0xad6   :  { %v1613_v15 = vpop.permute.xlu1 %1612 }
 0xad7   :  { %v1611_v46 = vpop.permute.xlu0 %1610  ;;  %v1716_v25 = vrot.slane %v1654_v36, %v9354_v59  ;;  %v1621_v26 = vmul.f32 %v1613_v15, %v1601_v53 }
 0xad8   :  { %v1620_v2 = vmul.f32 %v1611_v46, %v1600_v10 }
 0xad9   :  { %v1717_v48 = vcombine.high %v1716_v25, %v1716_v25 }
 0xada   :  { %v1609_v50 = vpop.permute.xlu1 %1608 }
 0xadb   :  { %v1619_v63 = vmul.f32 %v1609_v50, %v1599_v47  ;;  %v1643_v42 = vpop.permute.xlu0 %1642  ;;  %v1724_v30 = vrot.slane %v1717_v48, %v9354_v59 }
 0xadc   :  { %v1652_v52 = vmul.f32 %v9651_v43, %v1643_v42 }
 0xadd   :  { %v1655_v34 = vadd.f32 %v1651_v51, %v1619_v63  ;;  %v1725_v57 = vcombine.high %v1724_v30, %v1724_v30 }
 0xade   :  { %v1656_v55 = vadd.f32 %v1652_v52, %v1620_v2  ;;  %v1645_v23 = vpop.permute.xlu1 %1644 }
 0xadf   :  { %v1732_v31 = vrot.slane %v1655_v34, %v9354_v59  ;;  %v1653_v61 = vmul.f32 %v9647_v37, %v1645_v23  ;;  %1774 = vrot.lane.b32.xlu0 %v1725_v57, %s9146_s22 }
 0xae0   :  { %v1748_v60 = vrot.slane %v1656_v55, %v9354_v59 }
 0xae1   :  { %v1733_v62 = vcombine.high %v1732_v31, %v1732_v31  ;;  %v1657_v5 = vadd.f32 %v1653_v61, %v1621_v26 }
 0xae2   :  { %v1749_v43 = vcombine.high %v1748_v60, %v1748_v60 }
 0xae3   :  { %v1764_v28 = vrot.slane %v1657_v5, %v9354_v59  ;;  %v1740_v27 = vrot.slane %v1733_v62, %v9354_v59 }
 0xae4   :  { %v1756_v6 = vrot.slane %v1749_v43, %v9354_v59 }
 0xae5   :  { %v1765_v11 = vcombine.high %v1764_v28, %v1764_v28  ;;  %v1741_v13 = vcombine.high %v1740_v27, %v1740_v27 }
 0xae6   :  { %v1757_v16 = vcombine.high %v1756_v6, %v1756_v6 }
 0xae7   :  { %1776 = vrot.lane.b32.xlu1 %v1741_v13, %s9146_s22  ;;  %v1772_v37 = vrot.slane %v1765_v11, %v9354_v59 }
 0xae8   :  { %1778 = vrot.lane.b32.xlu0 %v1757_v16, %s9146_s22 }
 0xae9   :  { %v1773_v18 = vcombine.high %v1772_v37, %v1772_v37 }
 0xaeb   :  { %1780 = vrot.lane.b32.xlu1 %v1773_v18, %s9146_s22 }
 0xaec   :  { %v8524_v19 = vpop.permute.xlu0 %8523 }
 0xaed   :  { %v8525_v21 = vunpack.i.l.bf16 %v8524_v19  ;;  %v8526_v46 = vunpack.i.h.bf16 %v8524_v19 }
 0xaef   :  { %v8529_v20 = vpop.permute.xlu1 %8528  ;;  %v1678_v35 = vrot.slane %v8525_v21, %v9374_v39  ;;  %v1687_v51 = vrot.slane %v8526_v46, %v9374_v39 }
 0xaf0   :  { %v1797_v4 = vpop.permute.xlu0 %1796  ;;  %v8530_v25 = vunpack.i.l.bf16 %v8529_v20  ;;  %v8531_v10 = vunpack.i.h.bf16 %v8529_v20 }
 0xaf1   :  { %v1802_v50 = vrot.slane %v1797_v4, %v9374_v39 }
 0xaf2   :  { %v1696_v42 = vrot.slane %v8530_v25, %v9374_v39  ;;  %v1705_v26 = vrot.slane %v8531_v10, %v9374_v39 }
 0xaf3   :  { %v1806_v9 = vpop.permute.xlu1 %1805  ;;  %v1830_v23 = vmul.f32 %v1802_v50, %v9605_v17 }
 0xaf4   :  { %v1815_v32 = vpop.permute.xlu0 %1814  ;;  %v1811_v48 = vrot.slane %v1806_v9, %v9374_v39 }
 0xaf5   :  { %v1820_v52 = vrot.slane %v1815_v32, %v9374_v39 }
 0xaf6   :  { %v1831_v2 = vmul.f32 %v1811_v48, %v9611_v7 }
 0xaf7   :  { %v1824_v47 = vpop.permute.xlu1 %1823  ;;  %v1832_v7 = vmul.f32 %v1820_v52, %v9617_v14 }
 0xaf8   :  { %v1829_v30 = vrot.slane %v1824_v47, %v9374_v39 }
 0xafa   :  { %v1833_v61 = vmul.f32 %v1829_v30, %v9613_v49 }
 0xb51   :  { %v1775_v36 = vpop.permute.xlu0 %1774 }
 0xb52   :  { %v1786_v15 = vmul.f32 %v1775_v36, %v1678_v35 }
 0xb54   :  { %1838 = vst.msk [vmem:[#allocation2 + $0x3] sm:$0x1] %vm570_vm6, %v1786_v15  ;;  %v9742_v60 = vadd.f32 %v1830_v23, %v1786_v15 }
 0xb59   :  { %v1777_v63 = vpop.permute.xlu1 %1776 }
 0xb5a   :  { %v1787_v53 = vmul.f32 %v1777_v63, %v1687_v51  ;;  %v1779_v34 = vpop.permute.xlu0 %1778 }
 0xb5b   :  { %v1788_v55 = vmul.f32 %v1779_v34, %v1696_v42 }
 0xb5c   :  { %v9735_v57 = vadd.f32 %v1831_v2, %v1787_v53  ;;  %1839 = vst.msk [vmem:[#allocation2 + $0x13] sm:$0x1] %vm570_vm6, %v1787_v53 }
 0xb5d   :  { %1840 = vst.msk [vmem:[#allocation2 + $0x23] sm:$0x1] %vm570_vm6, %v1788_v55  ;;  %v1781_v31 = vpop.permute.xlu1 %1780  ;;  %v9746_v17 = vadd.f32 %v1832_v7, %v1788_v55 }
 0xb5e   :  { %v1789_v62 = vmul.f32 %v1781_v31, %v1705_v26  ;;  %v1846_v5 = vcombine.low %v9742_v60, %v9735_v57 }
 0xb60   :  { %v9748_v43 = vadd.f32 %v1833_v61, %v1789_v62  ;;  %1841 = vst.msk [vmem:[#allocation2 + $0x33] sm:$0x1] %vm570_vm6, %v1789_v62  ;;  %v1854_v27 = vrot.slane %v1846_v5, %v9354_v59 }
 0xb62   :  { %v1847_v28 = vcombine.low %v9746_v17, %v9748_v43 }
 0xb64   :  { %v1861_v14 = vrot.slane %v1847_v28, %v9354_v59 }
 0xb66   :  { %v1862_v49 = vcombine.low %v1854_v27, %v1861_v14 }
 0xb68   :  { %v1869_v6 = vrot.slane %v1862_v49, %v9354_v59  ;;  %v2056_v49 = vrot.slane %v9735_v57, %v9374_v39 }
 0xb6a   :  { %8151 = vmatmul.mubr.msk.f32.vlgmr.msra.gmra.mrb[10].mxu0 %vm203_vm7, %v1869_v6  ;;  %v2052_v6 = vrot.slane %v9742_v60, %v9374_v39 }
 0xb6b   :  { %8383 = vmatpush3.bf16.msra.mxu0 %v9230_v8  ;;  %8172 = vmatprep.mubr.msk.f32.mxu0 %vm9142_vm0, %v9143_v1 }
 0xb6c   :  { %8384 = vmatprep.subr.bf16.mxu0 %v9141_v0 }
 0xb6f   :  { %8386 = vmatpush3.bf16.msra.mxu0 %v9240_v12 }
 0xb70   :  { %8393 = vmatprep.subr.bf16.mxu0 %v9141_v0 }
 0xc3d   :  { %v1938_v11 = vpop.f32.mrb[10].mxu0 }
 0xc3e   :  { %v8152_v13 = vpop.f32.mrb[11].mxu0  ;;  %v1979_v16 = vadd.f32 %v1938_v11, %v9275_v24  ;;  %v1943_v20 = vrot.slane %v1938_v11, 4  ;;  %v1944_v21 = vrot.slane %v1938_v11, 5  ;;  %v1945_v32 = vrot.slane %v1938_v11, 6 }
 0xc3f   :  { %v1946_v35 = vrot.slane %v1938_v11, 7 }
 0xc40   :  { %v1982_v37 = vrot.slane %v1979_v16, 5  ;;  %v1981_v18 = vrot.slane %v1979_v16, 4  ;;  %v1984_v19 = vrot.slane %v1979_v16, 7  ;;  %v1983_v4 = vrot.slane %v1979_v16, 6 }
 0xc41   :  { %v1951_v9 = vadd.f32 %v1943_v20, %v9288_v40  ;;  %v1952_v36 = vadd.f32 %v1944_v21, %v9290_v41  ;;  %v1953_v15 = vadd.f32 %v1945_v32, %v9293_v44  ;;  %v1954_v25 = vadd.f32 %v1946_v35, %v9295_v45 }
 0xc42   :  { %1987 = vrot.lane.b32.xlu1 %v1982_v37, %s9144_s14  ;;  %1985 = vrot.lane.b32.xlu0 %v1981_v18, %s9144_s14 }
 0xc43   :  { %v7838_v46 = vmul.f32 -1.442695, %v1951_v9  ;;  %v7839_v47 = vmul.f32 -1.442695, %v1952_v36  ;;  %v7840_v48 = vmul.f32 -1.442695, %v1953_v15 }
 0xc44   :  { %v7841_v10 = vmul.f32 -1.442695, %v1954_v25  ;;  %v7844_v36 = vsel %vm2087_vm8, 1.0, %v9143_v1  ;;  %v7845_v15 = vsel %vm2088_vm9, 1.0, %v9143_v1  ;;  %v7842_v25 = vsel %vm2085_vm10, 1.0, %v9143_v1 }
 0xc45   :  { %8748 = vpow2.f32 %v7838_v46  ;;  %v2064_v46 = vrot.slane %v9748_v43, %v9374_v39 }
 0xc46   :  { %1991 = vrot.lane.b32.xlu1 %v1984_v19, %s9144_s14  ;;  %1989 = vrot.lane.b32.xlu0 %v1983_v4, %s9144_s14  ;;  %8750 = vpow2.f32 %v7839_v47  ;;  %v7843_v47 = vsel %vm2086_vm11, 1.0, %v9143_v1 }
 0xc47   :  { %8752 = vpow2.f32 %v7840_v48  ;;  %v2060_v48 = vrot.slane %v9746_v17, %v9374_v39 }
 0xc48   :  { %8754 = vpow2.f32 %v7841_v10  ;;  %v8537_v10 = vpack.i.bf16 %v7845_v15, %v7844_v36 }
 0xc4f   :  { %v8749_v50 = vpop.eup %8748 }
 0xc50   :  { %v8751_v51 = vpop.eup %8750  ;;  %v1967_v63 = vadd.f32 1.0, %v8749_v50  ;;  %v8532_v50 = vpack.i.bf16 %v7843_v47, %v7842_v25 }
 0xc51   :  { %v8753_v42 = vpop.eup %8752  ;;  %v1968_v2 = vadd.f32 1.0, %v8751_v51  ;;  %v2214_v51 = vsub.f32 1.0, %v7843_v47 }
 0xc52   :  { %v8755_v52 = vpop.eup %8754  ;;  %v1969_v30 = vadd.f32 1.0, %v8753_v42  ;;  %8756 = vrcp.f32 %v1967_v63  ;;  %v2213_v63 = vsub.f32 1.0, %v7842_v25  ;;  %v2216_v42 = vsub.f32 1.0, %v7845_v15 }
 0xc53   :  { %v1970_v53 = vadd.f32 1.0, %v8755_v52  ;;  %8758 = vrcp.f32 %v1968_v2  ;;  %v2215_v2 = vsub.f32 1.0, %v7844_v36 }
 0xc54   :  { %8760 = vrcp.f32 %v1969_v30 }
 0xc55   :  { %8762 = vrcp.f32 %v1970_v53 }
 0xc5c   :  { %v9772_v34 = vpop.eup %8756 }
 0xc5d   :  { %v9774_v55 = vpop.eup %8758 }
 0xc5e   :  { %v9778_v61 = vpop.eup %8760  ;;  %v2026_v53 = vsub.f32 1.0, %v9774_v55 }
 0xc5f   :  { %v9782_v62 = vpop.eup %8762 }
 0xcb4   :  { %v1988_v23 = vpop.permute.xlu1 %1987  ;;  %v1986_v26 = vpop.permute.xlu0 %1985 }
 0xcb5   :  { %v1998_v31 = vmul.f32 %v9774_v55, %v1988_v23  ;;  %v1997_v7 = vmul.f32 %v9772_v34, %v1986_v26  ;;  %v2025_v26 = vsub.f32 1.0, %v9772_v34 }
 0xcb7   :  { %2007 = vrot.lane.b32.xlu1 %v1998_v31, %s9144_s14  ;;  %2005 = vrot.lane.b32.xlu0 %v1997_v7, %s9144_s14 }
 0xcb8   :  { %v1992_v5 = vpop.permute.xlu1 %1991  ;;  %v1990_v28 = vpop.permute.xlu0 %1989 }
 0xcb9   :  { %v2000_v27 = vmul.f32 %v9782_v62, %v1992_v5  ;;  %v1999_v14 = vmul.f32 %v9778_v61, %v1990_v28 }
 0xcbb   :  { %2011 = vrot.lane.b32.xlu1 %v2000_v27, %s9144_s14  ;;  %2009 = vrot.lane.b32.xlu0 %v1999_v14, %s9144_s14 }
 0xcbf   :  { %2067 = vrot.lane.b32.xlu1 %v2056_v49, %s9148_s23  ;;  %2065 = vrot.lane.b32.xlu0 %v2052_v6, %s9148_s23 }
 0xd29   :  { %v2008_v11 = vpop.permute.xlu1 %2007  ;;  %v2006_v13 = vpop.permute.xlu0 %2005 }
 0xd2a   :  { %v2018_v16 = vadd.f32 %v2008_v11, %v9290_v41  ;;  %v2017_v37 = vadd.f32 %v2006_v13, %v9288_v40 }
 0xd2c   :  { %8764 = vtanh.f32 %v2018_v16 }
 0xd2d   :  { %8766 = vtanh.f32 %v2017_v37  ;;  %v2012_v18 = vpop.permute.xlu1 %2011  ;;  %v2010_v19 = vpop.permute.xlu0 %2009 }
 0xd2e   :  { %v2020_v4 = vadd.f32 %v2012_v18, %v9295_v45  ;;  %v2019_v20 = vadd.f32 %v2010_v19, %v9293_v44  ;;  %v2028_v18 = vsub.f32 1.0, %v9782_v62 }
 0xd30   :  { %8768 = vtanh.f32 %v2020_v4  ;;  %v2027_v4 = vsub.f32 1.0, %v9778_v61 }
 0xd31   :  { %8770 = vtanh.f32 %v2019_v20  ;;  %v2068_v52 = vpop.permute.xlu1 %2067  ;;  %v2066_v30 = vpop.permute.xlu0 %2065 }
 0xd32   :  { %v2078_v31 = vmul.f32 %v9774_v55, %v2068_v52  ;;  %v2077_v28 = vmul.f32 %v9772_v34, %v2066_v30 }
 0xd36   :  { %v8765_v21 = vpop.eup %8764 }
 0xd37   :  { %v8767_v32 = vpop.eup %8766  ;;  %2035 = vrot.lane.b32.xlu1 %v8765_v21, %s9146_s22 }
 0xd38   :  { %2033 = vrot.lane.b32.xlu0 %v8767_v32, %s9146_s22 }
 0xd3a   :  { %v8769_v9 = vpop.eup %8768 }
 0xd3b   :  { %v8771_v35 = vpop.eup %8770  ;;  %2039 = vrot.lane.b32.xlu1 %v8769_v9, %s9146_s22 }
 0xd3c   :  { %2037 = vrot.lane.b32.xlu0 %v8771_v35, %s9146_s22 }
 0xd3f   :  { %2071 = vrot.lane.b32.xlu1 %v2064_v46, %s9148_s23 }
 0xd40   :  { %2069 = vrot.lane.b32.xlu0 %v2060_v48, %s9148_s23 }
 0xd43   :  { %8538 = vperm.xlu1 %8490, %v8537_v10  }
 0xd44   :  { %8533 = vperm.xlu0 %8496, %v8532_v50  }
 0xd47   :  { %2228 = vperm.xlu1 %8490, %v2214_v51  }
 0xd48   :  { %2219 = vperm.xlu0 %8496, %v2213_v63  }
 0xd4b   :  { %2246 = vperm.xlu1 %8490, %v2216_v42  }
 0xd4c   :  { %2237 = vperm.xlu0 %8496, %v2215_v2  }
 0xda9   :  { %v2036_v23 = vpop.permute.xlu1 %2035 }
 0xdaa   :  { %v2046_v7 = vmul.f32 %v2036_v23, %v2026_v53  ;;  %v2034_v5 = vpop.permute.xlu0 %2033 }
 0xdab   :  { %v2045_v27 = vmul.f32 %v2034_v5, %v2025_v26 }
 0xdac   :  { %v2082_v14 = vadd.f32 %v2078_v31, %v2046_v7 }
 0xdad   :  { %v2081_v49 = vadd.f32 %v2077_v28, %v2045_v27  ;;  %v2040_v6 = vpop.permute.xlu1 %2039 }
 0xdae   :  { %v2152_v11 = vcombine.high %v2082_v14, %v2082_v14  ;;  %v2038_v13 = vpop.permute.xlu0 %2037  ;;  %v2048_v20 = vmul.f32 %v2040_v6, %v2028_v18 }
 0xdaf   :  { %v2137_v16 = vcombine.high %v2081_v49, %v2081_v49  ;;  %v2047_v9 = vmul.f32 %v2038_v13, %v2027_v4 }
 0xdb0   :  { %v2159_v37 = vrot.slane %v2152_v11, %v9354_v59 }
 0xdb1   :  { %v2144_v19 = vrot.slane %v2137_v16, %v9354_v59  ;;  %v2072_v55 = vpop.permute.xlu1 %2071 }
 0xdb2   :  { %v2080_v21 = vmul.f32 %v9782_v62, %v2072_v55  ;;  %v2070_v34 = vpop.permute.xlu0 %2069  ;;  %v2166_v32 = vrot.slane %v2159_v37, %v9354_v59 }
 0xdb3   :  { %v2079_v35 = vmul.f32 %v9778_v61, %v2070_v34  ;;  %v2151_v36 = vrot.slane %v2144_v19, %v9354_v59 }
 0xdb4   :  { %v2084_v15 = vadd.f32 %v2080_v21, %v2048_v20  ;;  %2199 = vrot.lane.b32.xlu1 %v2166_v32, %s9146_s22 }
 0xdb5   :  { %v2083_v46 = vadd.f32 %v2079_v35, %v2047_v9  ;;  %2197 = vrot.lane.b32.xlu0 %v2151_v36, %s9146_s22 }
 0xdb6   :  { %v2182_v25 = vcombine.high %v2084_v15, %v2084_v15 }
 0xdb7   :  { %v2167_v47 = vcombine.high %v2083_v46, %v2083_v46 }
 0xdb8   :  { %v2189_v48 = vrot.slane %v2182_v25, %v9354_v59 }
 0xdb9   :  { %v2174_v62 = vrot.slane %v2167_v47, %v9354_v59 }
 0xdba   :  { %v2196_v10 = vrot.slane %v2189_v48, %v9354_v59 }
 0xdbb   :  { %v2181_v50 = vrot.slane %v2174_v62, %v9354_v59 }
 0xdbc   :  { %2203 = vrot.lane.b32.xlu1 %v2196_v10, %s9146_s22 }
 0xdbd   :  { %2201 = vrot.lane.b32.xlu0 %v2181_v50, %s9146_s22 }
 0xdc2   :  { %v8539_v61 = vpop.permute.xlu1 %8538 }
 0xdc3   :  { %v8534_v51 = vpop.permute.xlu0 %8533  ;;  %v8541_v49 = vunpack.i.h.bf16 %v8539_v61  ;;  %v8540_v6 = vunpack.i.l.bf16 %v8539_v61 }
 0xdc4   :  { %v8536_v2 = vunpack.i.h.bf16 %v8534_v51  ;;  %v8535_v52 = vunpack.i.l.bf16 %v8534_v51 }
 0xdc5   :  { %v2132_v18 = vrot.slane %v8541_v49, %v9374_v39  ;;  %v2123_v20 = vrot.slane %v8540_v6, %v9374_v39 }
 0xdc6   :  { %v2229_v63 = vpop.permute.xlu1 %2228  ;;  %v2114_v23 = vrot.slane %v8536_v2, %v9374_v39  ;;  %v2105_v31 = vrot.slane %v8535_v52, %v9374_v39 }
 0xdc7   :  { %v2220_v42 = vpop.permute.xlu0 %2219  ;;  %v2234_v28 = vrot.slane %v2229_v63, %v9374_v39 }
 0xdc8   :  { %v2225_v27 = vrot.slane %v2220_v42, %v9374_v39 }
 0xdc9   :  { %v2254_v13 = vmul.f32 %v2234_v28, %v9735_v57 }
 0xdca   :  { %v2247_v30 = vpop.permute.xlu1 %2246  ;;  %v2253_v16 = vmul.f32 %v2225_v27, %v9742_v60 }
 0xdcb   :  { %v2238_v53 = vpop.permute.xlu0 %2237  ;;  %v2252_v11 = vrot.slane %v2247_v30, %v9374_v39 }
 0xdcc   :  { %v2243_v37 = vrot.slane %v2238_v53, %v9374_v39 }
 0xdcd   :  { %v2256_v21 = vmul.f32 %v2252_v11, %v9748_v43 }
 0xdce   :  { %v2255_v9 = vmul.f32 %v2243_v37, %v9746_v17 }
 0xe26   :  { %v2200_v26 = vpop.permute.xlu1 %2199 }
 0xe27   :  { %v2210_v7 = vmul.f32 %v2200_v26, %v2114_v23  ;;  %v2198_v5 = vpop.permute.xlu0 %2197 }
 0xe28   :  { %v2209_v14 = vmul.f32 %v2198_v5, %v2105_v31 }
 0xe29   :  { %2262 = vst.msk [vmem:[#allocation2 + $0x14] sm:$0x1] %vm570_vm6, %v2210_v7  ;;  %v9847_v19 = vadd.f32 %v2254_v13, %v2210_v7 }
 0xe2a   :  { %2261 = vst.msk [vmem:[#allocation2 + $0x4] sm:$0x1] %vm570_vm6, %v2209_v14  ;;  %v9849_v4 = vadd.f32 %v2253_v16, %v2209_v14 }
 0xe2c   :  { %v2269_v60 = vcombine.low %v9849_v4, %v9847_v19 }
 0xe2e   :  { %v2204_v55 = vpop.permute.xlu1 %2203  ;;  %v2277_v43 = vrot.slane %v2269_v60, %v9354_v59 }
 0xe2f   :  { %v2212_v34 = vmul.f32 %v2204_v55, %v2132_v18  ;;  %v2202_v32 = vpop.permute.xlu0 %2201 }
 0xe30   :  { %v2211_v57 = vmul.f32 %v2202_v32, %v2123_v20 }
 0xe31   :  { %v9854_v35 = vadd.f32 %v2256_v21, %v2212_v34  ;;  %2264 = vst.msk [vmem:[#allocation2 + $0x34] sm:$0x1] %vm570_vm6, %v2212_v34 }
 0xe32   :  { %v9859_v36 = vadd.f32 %v2255_v9, %v2211_v57  ;;  %2263 = vst.msk [vmem:[#allocation2 + $0x24] sm:$0x1] %vm570_vm6, %v2211_v57 }
 0xe34   :  { %v2270_v15 = vcombine.low %v9859_v36, %v9854_v35  ;;  %v2483_v56 = vrot.slane %v9859_v36, %v9374_v39 }
 0xe36   :  { %v2284_v46 = vrot.slane %v2270_v15, %v9354_v59 }
 0xe38   :  { %v2285_v17 = vcombine.low %v2277_v43, %v2284_v46 }
 0xe3a   :  { %v2292_v25 = vrot.slane %v2285_v17, %v9354_v59  ;;  %v2479_v17 = vrot.slane %v9847_v19, %v9374_v39 }
 0xe3c   :  { %8162 = vmatmul.mubr.msk.f32.vlgmr.msra.gmra.mrb[6].mxu1 %vm203_vm7, %v2292_v25  ;;  %v2475_v25 = vrot.slane %v9849_v4, %v9374_v39 }
 0xe3d   :  { %8389 = vmatpush3.bf16.msra.mxu1 %v9230_v8  ;;  %8183 = vmatprep.mubr.msk.f32.mxu1 %vm9142_vm0, %v9143_v1 }
 0xe3e   :  { %8390 = vmatprep.subr.bf16.mxu1 %v9141_v0 }
 0xe41   :  { %8392 = vmatpush3.bf16.msra.mxu1 %v9240_v12 }
 0xe42   :  { %8399 = vmatprep.subr.bf16.mxu1 %v9141_v0 }
 0xf0f   :  { %v2361_v47 = vpop.f32.mrb[6].mxu1 }
 0xf10   :  { %v8163_v48 = vpop.f32.mrb[7].mxu1  ;;  %v2402_v62 = vadd.f32 %v2361_v47, %v9275_v24  ;;  %v2366_v63 = vrot.slane %v2361_v47, 3  ;;  %v2367_v42 = vrot.slane %v2361_v47, 4  ;;  %v2368_v2 = vrot.slane %v2361_v47, 5 }
 0xf11   :  { %v2369_v30 = vrot.slane %v2361_v47, 6 }
 0xf12   :  { %v2405_v10 = vrot.slane %v2402_v62, 4  ;;  %v2404_v50 = vrot.slane %v2402_v62, 3  ;;  %v2407_v61 = vrot.slane %v2402_v62, 6  ;;  %v2406_v51 = vrot.slane %v2402_v62, 5 }
 0xf13   :  { %v2374_v52 = vadd.f32 %v2366_v63, %v9288_v40  ;;  %v2375_v53 = vadd.f32 %v2367_v42, %v9290_v41  ;;  %v2376_v23 = vadd.f32 %v2368_v2, %v9293_v44  ;;  %v2377_v31 = vadd.f32 %v2369_v30, %v9295_v45 }
 0xf14   :  { %2410 = vrot.lane.b32.xlu1 %v2405_v10, %s9144_s14  ;;  %2408 = vrot.lane.b32.xlu0 %v2404_v50, %s9144_s14 }
 0xf15   :  { %v7847_v26 = vmul.f32 -1.442695, %v2374_v52  ;;  %v7848_v7 = vmul.f32 -1.442695, %v2375_v53  ;;  %v7849_v5 = vmul.f32 -1.442695, %v2376_v23 }
 0xf16   :  { %v7850_v28 = vmul.f32 -1.442695, %v2377_v31  ;;  %v7853_v53 = vsel %vm2510_vm12, 1.0, %v9143_v1  ;;  %v7854_v23 = vsel %vm2511_vm13, 1.0, %v9143_v1  ;;  %v8542_v31 = vpack.i.bf16 %v7852_v3, %v7851_v58 }
 0xf17   :  { %8772 = vpow2.f32 %v7847_v26  ;;  %v2487_v26 = vrot.slane %v9854_v35, %v9374_v39  ;;  %v8547_v54 = vpack.i.bf16 %v7854_v23, %v7853_v53 }
 0xf18   :  { %2414 = vrot.lane.b32.xlu1 %v2407_v61, %s9144_s14  ;;  %2412 = vrot.lane.b32.xlu0 %v2406_v51, %s9144_s14  ;;  %8774 = vpow2.f32 %v7848_v7  ;;  %v2641_v7 = vsub.f32 1.0, %v7852_v3 }
 0xf19   :  { %8776 = vpow2.f32 %v7849_v5  ;;  %v2640_v5 = vsub.f32 1.0, %v7851_v58 }
 0xf1a   :  { %8778 = vpow2.f32 %v7850_v28  ;;  %v2643_v28 = vsub.f32 1.0, %v7854_v23 }
 0xf21   :  { %v8773_v27 = vpop.eup %8772 }
 0xf22   :  { %v8775_v14 = vpop.eup %8774  ;;  %v2390_v49 = vadd.f32 1.0, %v8773_v27  ;;  %v2642_v27 = vsub.f32 1.0, %v7853_v53 }
 0xf23   :  { %v8777_v6 = vpop.eup %8776  ;;  %v2391_v11 = vadd.f32 1.0, %v8775_v14 }
 0xf24   :  { %v8779_v13 = vpop.eup %8778  ;;  %v2392_v16 = vadd.f32 1.0, %v8777_v6  ;;  %8780 = vrcp.f32 %v2390_v49 }
 0xf25   :  { %v2393_v37 = vadd.f32 1.0, %v8779_v13  ;;  %8782 = vrcp.f32 %v2391_v11 }
 0xf26   :  { %8784 = vrcp.f32 %v2392_v16 }
 0xf27   :  { %8786 = vrcp.f32 %v2393_v37 }
 0xf2e   :  { %v9883_v18 = vpop.eup %8780 }
 0xf2f   :  { %v9885_v55 = vpop.eup %8782  ;;  %v2448_v13 = vsub.f32 1.0, %v9883_v18 }
 0xf30   :  { %v9889_v9 = vpop.eup %8784  ;;  %v2449_v6 = vsub.f32 1.0, %v9885_v55 }
 0xf31   :  { %v9893_v57 = vpop.eup %8786 }
 0xf86   :  { %v2411_v20 = vpop.permute.xlu1 %2410  ;;  %v2409_v21 = vpop.permute.xlu0 %2408 }
 0xf87   :  { %v2421_v34 = vmul.f32 %v9885_v55, %v2411_v20  ;;  %v2420_v32 = vmul.f32 %v9883_v18, %v2409_v21 }
 0xf89   :  { %2430 = vrot.lane.b32.xlu1 %v2421_v34, %s9144_s14  ;;  %2428 = vrot.lane.b32.xlu0 %v2420_v32, %s9144_s14 }
 0xf8a   :  { %v2415_v60 = vpop.permute.xlu1 %2414  ;;  %v2413_v15 = vpop.permute.xlu0 %2412 }
 0xf8b   :  { %v2423_v43 = vmul.f32 %v9893_v57, %v2415_v60  ;;  %v2422_v46 = vmul.f32 %v9889_v9, %v2413_v15 }
 0xf8d   :  { %2434 = vrot.lane.b32.xlu1 %v2423_v43, %s9144_s14  ;;  %2432 = vrot.lane.b32.xlu0 %v2422_v46, %s9144_s14 }
 0xf91   :  { %2490 = vrot.lane.b32.xlu1 %v2479_v17, %s9148_s23  ;;  %2488 = vrot.lane.b32.xlu0 %v2475_v25, %s9148_s23 }
 0xffb   :  { %v2431_v47 = vpop.permute.xlu1 %2430  ;;  %v2429_v48 = vpop.permute.xlu0 %2428 }
 0xffc   :  { %v2441_v62 = vadd.f32 %v2431_v47, %v9290_v41  ;;  %v2440_v10 = vadd.f32 %v2429_v48, %v9288_v40  ;;  %v2451_v47 = vsub.f32 1.0, %v9893_v57 }
 0xffe   :  { %8788 = vtanh.f32 %v2441_v62  ;;  %v2450_v62 = vsub.f32 1.0, %v9889_v9 }
 0xfff   :  { %8790 = vtanh.f32 %v2440_v10  ;;  %v2435_v50 = vpop.permute.xlu1 %2434  ;;  %v2433_v61 = vpop.permute.xlu0 %2432 }
0x1000   :  { %v2443_v51 = vadd.f32 %v2435_v50, %v9295_v45  ;;  %v2442_v63 = vadd.f32 %v2433_v61, %v9293_v44 }
0x1002   :  { %8792 = vtanh.f32 %v2443_v51 }
0x1003   :  { %8794 = vtanh.f32 %v2442_v63  ;;  %v2491_v14 = vpop.permute.xlu1 %2490  ;;  %v2489_v49 = vpop.permute.xlu0 %2488 }
0x1004   :  { %v2501_v16 = vmul.f32 %v9885_v55, %v2491_v14  ;;  %v2500_v21 = vmul.f32 %v9883_v18, %v2489_v49 }
0x1008   :  { %v8789_v42 = vpop.eup %8788 }
0x1009   :  { %v8791_v2 = vpop.eup %8790  ;;  %2458 = vrot.lane.b32.xlu1 %v8789_v42, %s9146_s22 }
0x100a   :  { %2456 = vrot.lane.b32.xlu0 %v8791_v2, %s9146_s22 }
0x100c   :  { %v8793_v52 = vpop.eup %8792 }
0x100d   :  { %v8795_v30 = vpop.eup %8794  ;;  %2462 = vrot.lane.b32.xlu1 %v8793_v52, %s9146_s22 }
0x100e   :  { %2460 = vrot.lane.b32.xlu0 %v8795_v30, %s9146_s22 }
0x1011   :  { %2494 = vrot.lane.b32.xlu1 %v2487_v26, %s9148_s23 }
0x1012   :  { %2492 = vrot.lane.b32.xlu0 %v2483_v56, %s9148_s23 }
0x1015   :  { %8548 = vperm.xlu1 %8490, %v8547_v54  }
0x1016   :  { %8543 = vperm.xlu0 %8496, %v8542_v31  }
0x1019   :  { %2655 = vperm.xlu1 %8490, %v2641_v7  }
0x101a   :  { %2646 = vperm.xlu0 %8496, %v2640_v5  }
0x101d   :  { %2673 = vperm.xlu1 %8490, %v2643_v28  }
0x101e   :  { %2664 = vperm.xlu0 %8496, %v2642_v27  }
0x107b   :  { %v2459_v11 = vpop.permute.xlu1 %2458 }
0x107c   :  { %v2469_v37 = vmul.f32 %v2459_v11, %v2449_v6  ;;  %v2457_v20 = vpop.permute.xlu0 %2456 }
0x107d   :  { %v2468_v34 = vmul.f32 %v2457_v20, %v2448_v13 }
0x107e   :  { %v2505_v32 = vadd.f32 %v2501_v16, %v2469_v37 }
0x107f   :  { %v2504_v60 = vadd.f32 %v2500_v21, %v2468_v34  ;;  %v2463_v15 = vpop.permute.xlu1 %2462 }
0x1080   :  { %v2576_v43 = vcombine.high %v2505_v32, %v2505_v32  ;;  %v2461_v46 = vpop.permute.xlu0 %2460  ;;  %v2471_v50 = vmul.f32 %v2463_v15, %v2451_v47 }
0x1081   :  { %v2560_v17 = vcombine.high %v2504_v60, %v2504_v60  ;;  %v2470_v63 = vmul.f32 %v2461_v46, %v2450_v62 }
0x1082   :  { %v2583_v25 = vrot.slane %v2576_v43, %v9354_v59 }
0x1083   :  { %v2567_v48 = vrot.slane %v2560_v17, %v9354_v59  ;;  %v2495_v55 = vpop.permute.xlu1 %2494 }
0x1084   :  { %v2584_v10 = vcombine.high %v2583_v25, %v2583_v25  ;;  %v2503_v18 = vmul.f32 %v9893_v57, %v2495_v55  ;;  %v2493_v61 = vpop.permute.xlu0 %2492 }
0x1085   :  { %v2568_v51 = vcombine.high %v2567_v48, %v2567_v48  ;;  %v2502_v42 = vmul.f32 %v9889_v9, %v2493_v61 }
0x1086   :  { %v2507_v2 = vadd.f32 %v2503_v18, %v2471_v50  ;;  %v2591_v52 = vrot.slane %v2584_v10, %v9354_v59 }
0x1087   :  { %v2506_v30 = vadd.f32 %v2502_v42, %v2470_v63  ;;  %v2575_v53 = vrot.slane %v2568_v51, %v9354_v59 }
0x1088   :  { %v2608_v23 = vcombine.high %v2507_v2, %v2507_v2  ;;  %2626 = vrot.lane.b32.xlu1 %v2591_v52, %s9146_s22 }
0x1089   :  { %v2592_v26 = vcombine.high %v2506_v30, %v2506_v30  ;;  %2624 = vrot.lane.b32.xlu0 %v2575_v53, %s9146_s22 }
0x108a   :  { %v2615_v58 = vrot.slane %v2608_v23, %v9354_v59 }
0x108b   :  { %v2599_v57 = vrot.slane %v2592_v26, %v9354_v59 }
0x108c   :  { %v2616_v3 = vcombine.high %v2615_v58, %v2615_v58 }
0x108d   :  { %v2600_v56 = vcombine.high %v2599_v57, %v2599_v57 }
0x108e   :  { %v2623_v9 = vrot.slane %v2616_v3, %v9354_v59 }
0x108f   :  { %v2607_v54 = vrot.slane %v2600_v56, %v9354_v59 }
0x1090   :  { %2630 = vrot.lane.b32.xlu1 %v2623_v9, %s9146_s22 }
0x1091   :  { %2628 = vrot.lane.b32.xlu0 %v2607_v54, %s9146_s22 }
0x1094   :  { %v8549_v31 = vpop.permute.xlu1 %8548 }
0x1095   :  { %v8544_v7 = vpop.permute.xlu0 %8543  ;;  %v8551_v60 = vunpack.i.h.bf16 %v8549_v31  ;;  %v8550_v15 = vunpack.i.l.bf16 %v8549_v31 }
0x1096   :  { %v8546_v27 = vunpack.i.h.bf16 %v8544_v7  ;;  %v8545_v14 = vunpack.i.l.bf16 %v8544_v7 }
0x1097   :  { %v2555_v47 = vrot.slane %v8551_v60, %v9374_v39  ;;  %v2546_v10 = vrot.slane %v8550_v15, %v9374_v39 }
0x1098   :  { %v2656_v5 = vpop.permute.xlu1 %2655  ;;  %v2537_v11 = vrot.slane %v8546_v27, %v9374_v39  ;;  %v2528_v16 = vrot.slane %v8545_v14, %v9374_v39 }
0x1099   :  { %v2647_v28 = vpop.permute.xlu0 %2646  ;;  %v2661_v21 = vrot.slane %v2656_v5, %v9374_v39 }
0x109a   :  { %v2652_v34 = vrot.slane %v2647_v28, %v9374_v39 }
0x109b   :  { %v2681_v46 = vmul.f32 %v2661_v21, %v9847_v19 }
0x109c   :  { %v2674_v49 = vpop.permute.xlu1 %2673  ;;  %v2680_v17 = vmul.f32 %v2652_v34, %v9849_v4 }
0x109d   :  { %v2665_v6 = vpop.permute.xlu0 %2664  ;;  %v2679_v43 = vrot.slane %v2674_v49, %v9374_v39 }
0x109e   :  { %v2670_v25 = vrot.slane %v2665_v6, %v9374_v39 }
0x109f   :  { %v2683_v50 = vmul.f32 %v2679_v43, %v9854_v35 }
0x10a0   :  { %v2682_v51 = vmul.f32 %v2670_v25, %v9859_v36 }
0x10fa   :  { %v2627_v13 = vpop.permute.xlu1 %2626 }
0x10fb   :  { %v2637_v37 = vmul.f32 %v2627_v13, %v2537_v11  ;;  %v2625_v20 = vpop.permute.xlu0 %2624 }
0x10fc   :  { %v2636_v32 = vmul.f32 %v2625_v20, %v2528_v16 }
0x10fd   :  { %2689 = vst.msk [vmem:[#allocation2 + $0x15] sm:$0x1] %vm570_vm6, %v2637_v37  ;;  %v9958_v48 = vadd.f32 %v2681_v46, %v2637_v37 }
0x10fe   :  { %2688 = vst.msk [vmem:[#allocation2 + $0x5] sm:$0x1] %vm570_vm6, %v2636_v32  ;;  %v9960_v62 = vadd.f32 %v2680_v17, %v2636_v32 }
0x1100   :  { %v2696_v4 = vcombine.low %v9960_v62, %v9958_v48 }
0x1102   :  { %v2631_v55 = vpop.permute.xlu1 %2630  ;;  %v2704_v35 = vrot.slane %v2696_v4, %v9354_v59  ;;  %v2906_v4 = vrot.slane %v9958_v48, %v9374_v39 }
0x1103   :  { %v2639_v18 = vmul.f32 %v2631_v55, %v2555_v47  ;;  %v2629_v61 = vpop.permute.xlu0 %2628 }
0x1104   :  { %v2638_v19 = vmul.f32 %v2629_v61, %v2546_v10 }
0x1105   :  { %v9965_v63 = vadd.f32 %v2683_v50, %v2639_v18  ;;  %2691 = vst.msk [vmem:[#allocation2 + $0x35] sm:$0x1] %vm570_vm6, %v2639_v18 }
0x1106   :  { %v9970_v42 = vadd.f32 %v2682_v51, %v2638_v19  ;;  %2690 = vst.msk [vmem:[#allocation2 + $0x25] sm:$0x1] %vm570_vm6, %v2638_v19 }
0x1108   :  { %v2697_v2 = vcombine.low %v9970_v42, %v9965_v63 }
0x110a   :  { %v2711_v52 = vrot.slane %v2697_v2, %v9354_v59  ;;  %v2902_v2 = vrot.slane %v9960_v62, %v9374_v39 }
0x110c   :  { %v2712_v36 = vcombine.low %v2704_v35, %v2711_v52 }
0x110e   :  { %v2719_v30 = vrot.slane %v2712_v36, %v9354_v59 }
0x1110   :  { %8173 = vmatmul.mubr.msk.f32.vlgmr.msra.gmra.mrb[12].mxu0 %vm203_vm7, %v2719_v30 }
0x1111   :  { %8395 = vmatpush3.bf16.msra.mxu0 %v9230_v8  ;;  %8194 = vmatprep.mubr.msk.f32.mxu0 %vm9142_vm0, %v9143_v1 }
0x1112   :  { %8396 = vmatprep.subr.bf16.mxu0 %v9141_v0 }
0x1115   :  { %8398 = vmatpush3.bf16.msra.mxu0 %v9240_v12 }
0x1116   :  { %8405 = vmatprep.subr.bf16.mxu0 %v9141_v0 }
0x11e3   :  { %v2788_v53 = vpop.f32.mrb[12].mxu0 }
0x11e4   :  { %v8174_v23 = vpop.f32.mrb[13].mxu0  ;;  %v2829_v26 = vadd.f32 %v2788_v53, %v9275_v24  ;;  %v2793_v9 = vrot.slane %v2788_v53, 2  ;;  %v2794_v54 = vrot.slane %v2788_v53, 3  ;;  %v2795_v31 = vrot.slane %v2788_v53, 4 }
0x11e5   :  { %v2796_v5 = vrot.slane %v2788_v53, 5 }
0x11e6   :  { %v2832_v58 = vrot.slane %v2829_v26, 3  ;;  %v2831_v57 = vrot.slane %v2829_v26, 2  ;;  %v2834_v3 = vrot.slane %v2829_v26, 5  ;;  %v2833_v56 = vrot.slane %v2829_v26, 4 }
0x11e7   :  { %v2801_v7 = vadd.f32 %v2793_v9, %v9288_v40  ;;  %v2802_v28 = vadd.f32 %v2794_v54, %v9290_v41  ;;  %v2803_v27 = vadd.f32 %v2795_v31, %v9293_v44  ;;  %v2804_v49 = vadd.f32 %v2796_v5, %v9295_v45  ;;  %v10031_v9 = vld [vmem:[%s11262_s5 + $0x3] sm:$0x1]  ;;  %v10037_v31 = vld [vmem:[%s11262_s5] sm:$0x1] }
0x11e8   :  { %2837 = vrot.lane.b32.xlu1 %v2832_v58, %s9144_s14  ;;  %2835 = vrot.lane.b32.xlu0 %v2831_v57, %s9144_s14  ;;  %vm2938_vm3 = vcmp.gt.s32.totalorder %v10031_v9, 6  ;;  %vm2935_vm4 = vcmp.gt.s32.totalorder %v10037_v31, 6  ;;  %vm3365_vm9 = vcmp.gt.s32.totalorder %v10031_v9, 7  ;;  %vm3362_vm10 = vcmp.gt.s32.totalorder %v10037_v31, 7 }
0x11e9   :  { %v7856_v14 = vmul.f32 -1.442695, %v2801_v7  ;;  %v7857_v6 = vmul.f32 -1.442695, %v2802_v28  ;;  %v7858_v11 = vmul.f32 -1.442695, %v2803_v27 }
0x11ea   :  { %v7859_v13 = vmul.f32 -1.442695, %v2804_v49  ;;  %v10043_v7 = vld [vmem:[%s11262_s5 + $0x1] sm:$0x1]  ;;  %v7863_v27 = vsel %vm2938_vm3, 1.0, %v9143_v1  ;;  %v7860_v49 = vsel %vm2935_vm4, 1.0, %v9143_v1 }
0x11eb   :  { %8796 = vpow2.f32 %v7856_v14  ;;  %vm2936_vm5 = vcmp.gt.s32.totalorder %v10043_v7, 6  ;;  %v2914_v14 = vrot.slane %v9965_v63, %v9374_v39  ;;  %vm3363_vm11 = vcmp.gt.s32.totalorder %v10043_v7, 7 }
0x11ec   :  { %2841 = vrot.lane.b32.xlu1 %v2834_v3, %s9144_s14  ;;  %2839 = vrot.lane.b32.xlu0 %v2833_v56, %s9144_s14  ;;  %8798 = vpow2.f32 %v7857_v6  ;;  %v10025_v56 = vld [vmem:[%s11262_s5 + $0x2] sm:$0x1]  ;;  %v7861_v6 = vsel %vm2936_vm5, 1.0, %v9143_v1  ;;  %vm3791_vm12 = vcmp.gt.s32.totalorder %v10037_v31, 8  ;;  %vm3792_vm13 = vcmp.gt.s32.totalorder %v10043_v7, 8 }
0x11ed   :  { %8800 = vpow2.f32 %v7858_v11  ;;  %vm2937_vm2 = vcmp.gt.s32.totalorder %v10025_v56, 6  ;;  %v2910_v11 = vrot.slane %v9970_v42, %v9374_v39  ;;  %vm3364_vm8 = vcmp.gt.s32.totalorder %v10025_v56, 7 }
0x11ee   :  { %8802 = vpow2.f32 %v7859_v13  ;;  %v7862_v28 = vsel %vm2937_vm2, 1.0, %v9143_v1  ;;  %vm3793_vm14 = vcmp.gt.s32.totalorder %v10025_v56, 8  ;;  %vm3794_vm15 = vcmp.gt.s32.totalorder %v10031_v9, 8 }
0x11ef   :  { %v8557_v13 = vpack.i.bf16 %v7863_v27, %v7862_v28  ;;  %v7880_v31 = vsel %vm3793_vm14, 1.0, %v9143_v1  ;;  %v7881_v7 = vsel %vm3794_vm15, 1.0, %v9143_v1 }
0x11f5   :  { %v8797_v16 = vpop.eup %8796 }
0x11f6   :  { %v8799_v37 = vpop.eup %8798  ;;  %v2817_v20 = vadd.f32 1.0, %v8797_v16  ;;  %v8552_v16 = vpack.i.bf16 %v7861_v6, %v7860_v49 }
0x11f7   :  { %v8801_v21 = vpop.eup %8800  ;;  %v2818_v34 = vadd.f32 1.0, %v8799_v37  ;;  %v3068_v37 = vsub.f32 1.0, %v7861_v6 }
0x11f8   :  { %v8803_v32 = vpop.eup %8802  ;;  %v2819_v60 = vadd.f32 1.0, %v8801_v21  ;;  %8804 = vrcp.f32 %v2817_v20  ;;  %v3067_v20 = vsub.f32 1.0, %v7860_v49  ;;  %v3070_v21 = vsub.f32 1.0, %v7863_v27 }
0x11f9   :  { %v2820_v15 = vadd.f32 1.0, %v8803_v32  ;;  %8806 = vrcp.f32 %v2818_v34  ;;  %v3069_v34 = vsub.f32 1.0, %v7862_v28 }
0x11fa   :  { %8808 = vrcp.f32 %v2819_v60 }
0x11fb   :  { %8810 = vrcp.f32 %v2820_v15 }
0x1202   :  { %v9994_v43 = vpop.eup %8804 }
0x1203   :  { %v9996_v46 = vpop.eup %8806 }
0x1204   :  { %v10000_v10 = vpop.eup %8808  ;;  %v2876_v15 = vsub.f32 1.0, %v9996_v46 }
0x1205   :  { %v10004_v50 = vpop.eup %8810 }
0x125a   :  { %v2838_v17 = vpop.permute.xlu1 %2837  ;;  %v2836_v25 = vpop.permute.xlu0 %2835 }
0x125b   :  { %v2848_v47 = vmul.f32 %v9996_v46, %v2838_v17  ;;  %v2847_v55 = vmul.f32 %v9994_v43, %v2836_v25  ;;  %v2875_v25 = vsub.f32 1.0, %v9994_v43 }
0x125d   :  { %2857 = vrot.lane.b32.xlu1 %v2848_v47, %s9144_s14  ;;  %2855 = vrot.lane.b32.xlu0 %v2847_v55, %s9144_s14 }
0x125e   :  { %v2842_v18 = vpop.permute.xlu1 %2841  ;;  %v2840_v61 = vpop.permute.xlu0 %2839 }
0x125f   :  { %v2850_v51 = vmul.f32 %v10004_v50, %v2842_v18  ;;  %v2849_v19 = vmul.f32 %v10000_v10, %v2840_v61 }
0x1261   :  { %2861 = vrot.lane.b32.xlu1 %v2850_v51, %s9144_s14  ;;  %2859 = vrot.lane.b32.xlu0 %v2849_v19, %s9144_s14 }
0x1265   :  { %2917 = vrot.lane.b32.xlu1 %v2906_v4, %s9148_s23  ;;  %2915 = vrot.lane.b32.xlu0 %v2902_v2, %s9148_s23 }
0x12cf   :  { %v2858_v35 = vpop.permute.xlu1 %2857  ;;  %v2856_v52 = vpop.permute.xlu0 %2855 }
0x12d0   :  { %v2868_v36 = vadd.f32 %v2858_v35, %v9290_v41  ;;  %v2867_v30 = vadd.f32 %v2856_v52, %v9288_v40 }
0x12d2   :  { %8812 = vtanh.f32 %v2868_v36 }
0x12d3   :  { %8814 = vtanh.f32 %v2867_v30  ;;  %v2862_v53 = vpop.permute.xlu1 %2861  ;;  %v2860_v23 = vpop.permute.xlu0 %2859 }
0x12d4   :  { %v2870_v26 = vadd.f32 %v2862_v53, %v9295_v45  ;;  %v2869_v58 = vadd.f32 %v2860_v23, %v9293_v44  ;;  %v2878_v53 = vsub.f32 1.0, %v10004_v50 }
0x12d6   :  { %8816 = vtanh.f32 %v2870_v26  ;;  %v2877_v26 = vsub.f32 1.0, %v10000_v10 }
0x12d7   :  { %8818 = vtanh.f32 %v2869_v58  ;;  %v2918_v32 = vpop.permute.xlu1 %2917  ;;  %v2916_v60 = vpop.permute.xlu0 %2915 }
0x12d8   :  { %v2928_v47 = vmul.f32 %v9996_v46, %v2918_v32  ;;  %v2927_v61 = vmul.f32 %v9994_v43, %v2916_v60 }
0x12dc   :  { %v8813_v57 = vpop.eup %8812 }
0x12dd   :  { %v8815_v3 = vpop.eup %8814  ;;  %2885 = vrot.lane.b32.xlu1 %v8813_v57, %s9146_s22 }
0x12de   :  { %2883 = vrot.lane.b32.xlu0 %v8815_v3, %s9146_s22 }
0x12e0   :  { %v8817_v54 = vpop.eup %8816 }
0x12e1   :  { %v8819_v5 = vpop.eup %8818  ;;  %2889 = vrot.lane.b32.xlu1 %v8817_v54, %s9146_s22 }
0x12e2   :  { %2887 = vrot.lane.b32.xlu0 %v8819_v5, %s9146_s22 }
0x12e5   :  { %2921 = vrot.lane.b32.xlu1 %v2914_v14, %s9148_s23 }
0x12e6   :  { %2919 = vrot.lane.b32.xlu0 %v2910_v11, %s9148_s23 }
0x12e9   :  { %8558 = vperm.xlu1 %8490, %v8557_v13  }
0x12ea   :  { %8553 = vperm.xlu0 %8496, %v8552_v16  }
0x12ed   :  { %3082 = vperm.xlu1 %8490, %v3068_v37  }
0x12ee   :  { %3073 = vperm.xlu0 %8496, %v3067_v20  }
0x12f1   :  { %3100 = vperm.xlu1 %8490, %v3070_v21  }
0x12f2   :  { %3091 = vperm.xlu0 %8496, %v3069_v34  }
0x134f   :  { %v2886_v17 = vpop.permute.xlu1 %2885 }
0x1350   :  { %v2896_v55 = vmul.f32 %v2886_v17, %v2876_v15  ;;  %v2884_v18 = vpop.permute.xlu0 %2883 }
0x1351   :  { %v2895_v51 = vmul.f32 %v2884_v18, %v2875_v25 }
0x1352   :  { %v2932_v19 = vadd.f32 %v2928_v47, %v2896_v55 }
0x1353   :  { %v2931_v4 = vadd.f32 %v2927_v61, %v2895_v51  ;;  %v2890_v2 = vpop.permute.xlu1 %2889 }
0x1354   :  { %v3003_v35 = vcombine.high %v2932_v19, %v2932_v19  ;;  %v2888_v52 = vpop.permute.xlu0 %2887  ;;  %v2898_v58 = vmul.f32 %v2890_v2, %v2878_v53 }
0x1355   :  { %v2987_v36 = vcombine.high %v2931_v4, %v2931_v4  ;;  %v2897_v54 = vmul.f32 %v2888_v52, %v2877_v26 }
0x1356   :  { %v3010_v30 = vrot.slane %v3003_v35, %v9354_v59 }
0x1357   :  { %v2994_v23 = vrot.slane %v2987_v36, %v9354_v59  ;;  %v2922_v46 = vpop.permute.xlu1 %2921 }
0x1358   :  { %v2930_v57 = vmul.f32 %v10004_v50, %v2922_v46  ;;  %v2920_v43 = vpop.permute.xlu0 %2919  ;;  %v3017_v3 = vrot.slane %v3010_v30, %v9354_v59 }
0x1359   :  { %v2929_v5 = vmul.f32 %v10000_v10, %v2920_v43  ;;  %v3001_v28 = vrot.slane %v2994_v23, %v9354_v59 }
0x135a   :  { %v2934_v27 = vadd.f32 %v2930_v57, %v2898_v58  ;;  %v3018_v14 = vcombine.high %v3017_v3, %v3017_v3 }
0x135b   :  { %v2933_v49 = vadd.f32 %v2929_v5, %v2897_v54  ;;  %v3002_v6 = vcombine.high %v3001_v28, %v3001_v28 }
0x135c   :  { %v3035_v11 = vcombine.high %v2934_v27, %v2934_v27  ;;  %3053 = vrot.lane.b32.xlu1 %v3018_v14, %s9146_s22 }
0x135d   :  { %v3019_v13 = vcombine.high %v2933_v49, %v2933_v49  ;;  %3051 = vrot.lane.b32.xlu0 %v3002_v6, %s9146_s22 }
0x135e   :  { %v3042_v50 = vrot.slane %v3035_v11, %v9354_v59 }
0x135f   :  { %v3026_v16 = vrot.slane %v3019_v13, %v9354_v59 }
0x1360   :  { %v3049_v37 = vrot.slane %v3042_v50, %v9354_v59 }
0x1361   :  { %v3033_v10 = vrot.slane %v3026_v16, %v9354_v59 }
0x1362   :  { %v3050_v20 = vcombine.high %v3049_v37, %v3049_v37 }
0x1363   :  { %v3034_v21 = vcombine.high %v3033_v10, %v3033_v10 }
0x1364   :  { %3057 = vrot.lane.b32.xlu1 %v3050_v20, %s9146_s22 }
0x1365   :  { %3055 = vrot.lane.b32.xlu0 %v3034_v21, %s9146_s22 }
0x1368   :  { %v8559_v34 = vpop.permute.xlu1 %8558 }
0x1369   :  { %v8554_v32 = vpop.permute.xlu0 %8553  ;;  %v8561_v36 = vunpack.i.h.bf16 %v8559_v34  ;;  %v8560_v30 = vunpack.i.l.bf16 %v8559_v34 }
0x136a   :  { %v8556_v17 = vunpack.i.h.bf16 %v8554_v32  ;;  %v8555_v25 = vunpack.i.l.bf16 %v8554_v32 }
0x136b   :  { %v2982_v58 = vrot.slane %v8561_v36, %v9374_v39  ;;  %v2973_v54 = vrot.slane %v8560_v30, %v9374_v39 }
0x136c   :  { %v3083_v60 = vpop.permute.xlu1 %3082  ;;  %v2964_v18 = vrot.slane %v8556_v17, %v9374_v39  ;;  %v2955_v51 = vrot.slane %v8555_v25, %v9374_v39 }
0x136d   :  { %v3074_v15 = vpop.permute.xlu0 %3073  ;;  %v3088_v2 = vrot.slane %v3083_v60, %v9374_v39 }
0x136e   :  { %v3079_v35 = vrot.slane %v3074_v15, %v9374_v39 }
0x136f   :  { %v3108_v23 = vmul.f32 %v3088_v2, %v9958_v48 }
0x1370   :  { %v3101_v47 = vpop.permute.xlu1 %3100  ;;  %v3107_v26 = vmul.f32 %v3079_v35, %v9960_v62 }
0x1371   :  { %v3092_v55 = vpop.permute.xlu0 %3091  ;;  %v3106_v53 = vrot.slane %v3101_v47, %v9374_v39 }
0x1372   :  { %v3097_v46 = vrot.slane %v3092_v55, %v9374_v39 }
0x1373   :  { %v3110_v5 = vmul.f32 %v3106_v53, %v9965_v63 }
0x1374   :  { %v3109_v14 = vmul.f32 %v3097_v46, %v9970_v42 }
0x13ce   :  { %v3054_v61 = vpop.permute.xlu1 %3053 }
0x13cf   :  { %v3064_v19 = vmul.f32 %v3054_v61, %v2964_v18  ;;  %v3052_v4 = vpop.permute.xlu0 %3051 }
0x13d0   :  { %v3063_v52 = vmul.f32 %v3052_v4, %v2955_v51 }
0x13d1   :  { %3116 = vst.msk [vmem:[#allocation2 + $0x16] sm:$0x1] %vm570_vm6, %v3064_v19  ;;  %v10089_v57 = vadd.f32 %v3108_v23, %v3064_v19 }
0x13d2   :  { %3115 = vst.msk [vmem:[#allocation2 + $0x6] sm:$0x1] %vm570_vm6, %v3063_v52  ;;  %v10091_v43 = vadd.f32 %v3107_v26, %v3063_v52 }
0x13d4   :  { %v3123_v62 = vcombine.low %v10091_v43, %v10089_v57 }
0x13d6   :  { %v3058_v3 = vpop.permute.xlu1 %3057  ;;  %v3131_v63 = vrot.slane %v3123_v62, %v9354_v59 }
0x13d7   :  { %v3066_v28 = vmul.f32 %v3058_v3, %v2982_v58  ;;  %v3056_v27 = vpop.permute.xlu0 %3055 }
0x13d8   :  { %v3065_v48 = vmul.f32 %v3056_v27, %v2973_v54 }
0x13d9   :  { %v10096_v49 = vadd.f32 %v3110_v5, %v3066_v28  ;;  %3118 = vst.msk [vmem:[#allocation2 + $0x36] sm:$0x1] %vm570_vm6, %v3066_v28 }
0x13da   :  { %v10101_v6 = vadd.f32 %v3109_v14, %v3065_v48  ;;  %3117 = vst.msk [vmem:[#allocation2 + $0x26] sm:$0x1] %vm570_vm6, %v3065_v48 }
0x13dc   :  { %v3124_v11 = vcombine.low %v10101_v6, %v10096_v49 }
0x13de   :  { %v3138_v13 = vrot.slane %v3124_v11, %v9354_v59 }
0x13e0   :  { %v3139_v42 = vcombine.low %v3131_v63, %v3138_v13 }
0x13e2   :  { %v3146_v50 = vrot.slane %v3139_v42, %v9354_v59  ;;  %v3333_v42 = vrot.slane %v10089_v57, %v9374_v39 }
0x13e4   :  { %8184 = vmatmul.mubr.msk.f32.vlgmr.msra.gmra.mrb[8].mxu1 %vm203_vm7, %v3146_v50  ;;  %v3329_v50 = vrot.slane %v10091_v43, %v9374_v39 }
0x13e5   :  { %8401 = vmatpush3.bf16.msra.mxu1 %v9230_v8  ;;  %8205 = vmatprep.mubr.msk.f32.mxu1 %vm9142_vm0, %v9143_v1 }
0x13e6   :  { %8402 = vmatprep.subr.bf16.mxu1 %v9141_v0 }
0x13e9   :  { %8404 = vmatpush3.bf16.msra.mxu1 %v9240_v12 }
0x13ea   :  { %8411 = vmatprep.subr.bf16.mxu1 %v9141_v0 }
0x14b7   :  { %v3215_v16 = vpop.f32.mrb[8].mxu1 }
0x14b8   :  { %v8185_v37 = vpop.f32.mrb[9].mxu1  ;;  %v3256_v10 = vadd.f32 %v3215_v16, %v9275_v24  ;;  %v3220_v60 = vrot.slane %v3215_v16, 1  ;;  %v3221_v15 = vrot.slane %v3215_v16, 2  ;;  %v3222_v17 = vrot.slane %v3215_v16, 3 }
0x14b9   :  { %v3223_v47 = vrot.slane %v3215_v16, 4 }
0x14ba   :  { %v3259_v20 = vrot.slane %v3256_v10, 2  ;;  %v3258_v21 = vrot.slane %v3256_v10, 1  ;;  %v3261_v34 = vrot.slane %v3256_v10, 4  ;;  %v3260_v32 = vrot.slane %v3256_v10, 3 }
0x14bb   :  { %v3228_v25 = vadd.f32 %v3220_v60, %v9288_v40  ;;  %v3229_v55 = vadd.f32 %v3221_v15, %v9290_v41  ;;  %v3230_v18 = vadd.f32 %v3222_v17, %v9293_v44  ;;  %v3231_v51 = vadd.f32 %v3223_v47, %v9295_v45 }
0x14bc   :  { %3264 = vrot.lane.b32.xlu1 %v3259_v20, %s9144_s14  ;;  %3262 = vrot.lane.b32.xlu0 %v3258_v21, %s9144_s14  ;;  %v7869_v47 = vsel %vm3362_vm10, 1.0, %v9143_v1 }
0x14bd   :  { %v7865_v61 = vmul.f32 -1.442695, %v3228_v25  ;;  %v7866_v19 = vmul.f32 -1.442695, %v3229_v55  ;;  %v7867_v4 = vmul.f32 -1.442695, %v3230_v18  ;;  %v3341_v25 = vrot.slane %v10096_v49, %v9374_v39 }
0x14be   :  { %v7868_v2 = vmul.f32 -1.442695, %v3231_v51  ;;  %v7870_v55 = vsel %vm3363_vm11, 1.0, %v9143_v1  ;;  %v3337_v18 = vrot.slane %v10101_v6, %v9374_v39 }
0x14bf   :  { %8820 = vpow2.f32 %v7865_v61  ;;  %v8562_v51 = vpack.i.bf16 %v7870_v55, %v7869_v47 }
0x14c0   :  { %3268 = vrot.lane.b32.xlu1 %v3261_v34, %s9144_s14  ;;  %3266 = vrot.lane.b32.xlu0 %v3260_v32, %s9144_s14  ;;  %8822 = vpow2.f32 %v7866_v19  ;;  %v3499_v19 = vsub.f32 1.0, %v7870_v55 }
0x14c1   :  { %8824 = vpow2.f32 %v7867_v4  ;;  %v3498_v4 = vsub.f32 1.0, %v7869_v47 }
0x14c2   :  { %8826 = vpow2.f32 %v7868_v2 }
0x14c9   :  { %v8821_v35 = vpop.eup %8820 }
0x14ca   :  { %v8823_v52 = vpop.eup %8822  ;;  %v3244_v36 = vadd.f32 1.0, %v8821_v35 }
0x14cb   :  { %v8825_v30 = vpop.eup %8824  ;;  %v3245_v53 = vadd.f32 1.0, %v8823_v52 }
0x14cc   :  { %v8827_v23 = vpop.eup %8826  ;;  %v3246_v26 = vadd.f32 1.0, %v8825_v30  ;;  %8828 = vrcp.f32 %v3244_v36 }
0x14cd   :  { %v3247_v46 = vadd.f32 1.0, %v8827_v23  ;;  %8830 = vrcp.f32 %v3245_v53 }
0x14ce   :  { %8832 = vrcp.f32 %v3246_v26 }
0x14cf   :  { %8834 = vrcp.f32 %v3247_v46 }
0x14d6   :  { %v10125_v58 = vpop.eup %8828 }
0x14d7   :  { %v10127_v3 = vpop.eup %8830  ;;  %v3302_v23 = vsub.f32 1.0, %v10125_v58 }
0x14d8   :  { %v10131_v14 = vpop.eup %8832  ;;  %v3303_v30 = vsub.f32 1.0, %v10127_v3 }
0x14d9   :  { %v10135_v48 = vpop.eup %8834 }
0x152e   :  { %v3265_v54 = vpop.permute.xlu1 %3264  ;;  %v3263_v5 = vpop.permute.xlu0 %3262 }
0x152f   :  { %v3275_v28 = vmul.f32 %v10127_v3, %v3265_v54  ;;  %v3274_v27 = vmul.f32 %v10125_v58, %v3263_v5 }
0x1531   :  { %3284 = vrot.lane.b32.xlu1 %v3275_v28, %s9144_s14  ;;  %3282 = vrot.lane.b32.xlu0 %v3274_v27, %s9144_s14 }
0x1532   :  { %v3269_v62 = vpop.permute.xlu1 %3268  ;;  %v3267_v11 = vpop.permute.xlu0 %3266 }
0x1533   :  { %v3277_v63 = vmul.f32 %v10135_v48, %v3269_v62  ;;  %v3276_v13 = vmul.f32 %v10131_v14, %v3267_v11 }
0x1535   :  { %3288 = vrot.lane.b32.xlu1 %v3277_v63, %s9144_s14  ;;  %3286 = vrot.lane.b32.xlu0 %v3276_v13, %s9144_s14 }
0x1539   :  { %3344 = vrot.lane.b32.xlu1 %v3333_v42, %s9148_s23  ;;  %3342 = vrot.lane.b32.xlu0 %v3329_v50, %s9148_s23 }
0x15a3   :  { %v3285_v16 = vpop.permute.xlu1 %3284  ;;  %v3283_v37 = vpop.permute.xlu0 %3282 }
0x15a4   :  { %v3295_v10 = vadd.f32 %v3285_v16, %v9290_v41  ;;  %v3294_v20 = vadd.f32 %v3283_v37, %v9288_v40  ;;  %v3305_v16 = vsub.f32 1.0, %v10135_v48 }
0x15a6   :  { %8836 = vtanh.f32 %v3295_v10  ;;  %v3304_v10 = vsub.f32 1.0, %v10131_v14 }
0x15a7   :  { %8838 = vtanh.f32 %v3294_v20  ;;  %v3289_v21 = vpop.permute.xlu1 %3288  ;;  %v3287_v34 = vpop.permute.xlu0 %3286 }
0x15a8   :  { %v3297_v32 = vadd.f32 %v3289_v21, %v9295_v45  ;;  %v3296_v60 = vadd.f32 %v3287_v34, %v9293_v44  ;;  %v7871_v44 = vsel %vm3364_vm8, 1.0, %v9143_v1  ;;  %v7872_v45 = vsel %vm3365_vm9, 1.0, %v9143_v1 }
0x15a9   :  { %v8567_v61 = vpack.i.bf16 %v7872_v45, %v7871_v44  ;;  %v3501_v2 = vsub.f32 1.0, %v7872_v45  ;;  %v3500_v35 = vsub.f32 1.0, %v7871_v44 }
0x15aa   :  { %8840 = vtanh.f32 %v3297_v32 }
0x15ab   :  { %8842 = vtanh.f32 %v3296_v60  ;;  %v3345_v52 = vpop.permute.xlu1 %3344  ;;  %v3343_v36 = vpop.permute.xlu0 %3342 }
0x15ac   :  { %v3355_v26 = vmul.f32 %v10127_v3, %v3345_v52  ;;  %v3354_v5 = vmul.f32 %v10125_v58, %v3343_v36 }
0x15b0   :  { %v8837_v15 = vpop.eup %8836 }
0x15b1   :  { %v8839_v17 = vpop.eup %8838  ;;  %3312 = vrot.lane.b32.xlu1 %v8837_v15, %s9146_s22 }
0x15b2   :  { %3310 = vrot.lane.b32.xlu0 %v8839_v17, %s9146_s22 }
0x15b4   :  { %v8841_v40 = vpop.eup %8840 }
0x15b5   :  { %v8843_v41 = vpop.eup %8842  ;;  %3316 = vrot.lane.b32.xlu1 %v8841_v40, %s9146_s22 }
0x15b6   :  { %3314 = vrot.lane.b32.xlu0 %v8843_v41, %s9146_s22 }
0x15b9   :  { %3348 = vrot.lane.b32.xlu1 %v3341_v25, %s9148_s23 }
0x15ba   :  { %3346 = vrot.lane.b32.xlu0 %v3337_v18, %s9148_s23 }
0x15bd   :  { %8568 = vperm.xlu1 %8490, %v8567_v61  }
0x15be   :  { %8563 = vperm.xlu0 %8496, %v8562_v51  }
0x15c1   :  { %3513 = vperm.xlu1 %8490, %v3499_v19  }
0x15c2   :  { %3504 = vperm.xlu0 %8496, %v3498_v4  }
0x15c5   :  { %3531 = vperm.xlu1 %8490, %v3501_v2  }
0x15c6   :  { %3522 = vperm.xlu0 %8496, %v3500_v35  }
0x1623   :  { %v3313_v53 = vpop.permute.xlu1 %3312 }
0x1624   :  { %v3323_v46 = vmul.f32 %v3313_v53, %v3303_v30  ;;  %v3311_v54 = vpop.permute.xlu0 %3310 }
0x1625   :  { %v3322_v28 = vmul.f32 %v3311_v54, %v3302_v23 }
0x1626   :  { %v3359_v27 = vadd.f32 %v3355_v26, %v3323_v46 }
0x1627   :  { %v3358_v62 = vadd.f32 %v3354_v5, %v3322_v28  ;;  %v3317_v11 = vpop.permute.xlu1 %3316 }
0x1628   :  { %v3431_v63 = vcombine.high %v3359_v27, %v3359_v27  ;;  %v3315_v13 = vpop.permute.xlu0 %3314  ;;  %v3325_v21 = vmul.f32 %v3317_v11, %v3305_v16 }
0x1629   :  { %v3414_v42 = vcombine.high %v3358_v62, %v3358_v62  ;;  %v3324_v60 = vmul.f32 %v3315_v13, %v3304_v10 }
0x162a   :  { %v3438_v50 = vrot.slane %v3431_v63, %v9354_v59 }
0x162b   :  { %v3421_v37 = vrot.slane %v3414_v42, %v9354_v59  ;;  %v3349_v3 = vpop.permute.xlu1 %3348 }
0x162c   :  { %v3439_v20 = vcombine.high %v3438_v50, %v3438_v50  ;;  %v3357_v58 = vmul.f32 %v10135_v48, %v3349_v3  ;;  %v3347_v34 = vpop.permute.xlu0 %3346 }
0x162d   :  { %v3422_v32 = vcombine.high %v3421_v37, %v3421_v37  ;;  %v3356_v15 = vmul.f32 %v10131_v14, %v3347_v34 }
0x162e   :  { %v3361_v17 = vadd.f32 %v3357_v58, %v3325_v21  ;;  %v3446_v40 = vrot.slane %v3439_v20, %v9354_v59 }
0x162f   :  { %v3360_v41 = vadd.f32 %v3356_v15, %v3324_v60  ;;  %v3429_v44 = vrot.slane %v3422_v32, %v9354_v59 }
0x1630   :  { %v3465_v45 = vcombine.high %v3361_v17, %v3361_v17  ;;  %v3447_v25 = vcombine.high %v3446_v40, %v3446_v40 }
0x1631   :  { %v3448_v47 = vcombine.high %v3360_v41, %v3360_v41  ;;  %v3430_v55 = vcombine.high %v3429_v44, %v3429_v44 }
0x1632   :  { %v3472_v18 = vrot.slane %v3465_v45, %v9354_v59  ;;  %3484 = vrot.lane.b32.xlu1 %v3447_v25, %s9146_s22 }
0x1633   :  { %v3455_v48 = vrot.slane %v3448_v47, %v9354_v59  ;;  %3482 = vrot.lane.b32.xlu0 %v3430_v55, %s9146_s22 }
0x1634   :  { %v3473_v61 = vcombine.high %v3472_v18, %v3472_v18 }
0x1635   :  { %v3456_v14 = vcombine.high %v3455_v48, %v3455_v48 }
0x1636   :  { %v3480_v51 = vrot.slane %v3473_v61, %v9354_v59 }
0x1637   :  { %v3463_v19 = vrot.slane %v3456_v14, %v9354_v59 }
0x1638   :  { %v3481_v4 = vcombine.high %v3480_v51, %v3480_v51 }
0x1639   :  { %v3464_v2 = vcombine.high %v3463_v19, %v3463_v19 }
0x163a   :  { %3488 = vrot.lane.b32.xlu1 %v3481_v4, %s9146_s22 }
0x163b   :  { %3486 = vrot.lane.b32.xlu0 %v3464_v2, %s9146_s22 }
0x163c   :  { %v8569_v35 = vpop.permute.xlu1 %8568 }
0x163d   :  { %v8564_v52 = vpop.permute.xlu0 %8563  ;;  %v8571_v42 = vunpack.i.h.bf16 %v8569_v35  ;;  %v8570_v50 = vunpack.i.l.bf16 %v8569_v35 }
0x163e   :  { %v8566_v53 = vunpack.i.h.bf16 %v8564_v52  ;;  %v8565_v23 = vunpack.i.l.bf16 %v8564_v52 }
0x163f   :  { %v3409_v20 = vrot.slane %v8571_v42, %v9374_v39  ;;  %v3400_v32 = vrot.slane %v8570_v50, %v9374_v39 }
0x1640   :  { %v3514_v36 = vpop.permute.xlu1 %3513  ;;  %v3391_v54 = vrot.slane %v8566_v53, %v9374_v39  ;;  %v3382_v28 = vrot.slane %v8565_v23, %v9374_v39 }
0x1641   :  { %v3505_v30 = vpop.permute.xlu0 %3504  ;;  %v3519_v11 = vrot.slane %v3514_v36, %v9374_v39 }
0x1642   :  { %v3510_v63 = vrot.slane %v3505_v30, %v9374_v39 }
0x1643   :  { %v3539_v37 = vmul.f32 %v3519_v11, %v10089_v57 }
0x1644   :  { %v3532_v26 = vpop.permute.xlu1 %3531  ;;  %v3538_v10 = vmul.f32 %v3510_v63, %v10091_v43 }
0x1645   :  { %v3523_v46 = vpop.permute.xlu0 %3522  ;;  %v3537_v16 = vrot.slane %v3532_v26, %v9374_v39 }
0x1646   :  { %v3528_v3 = vrot.slane %v3523_v46, %v9374_v39 }
0x1647   :  { %v3541_v60 = vmul.f32 %v3537_v16, %v10096_v49 }
0x1648   :  { %v3540_v40 = vmul.f32 %v3528_v3, %v10101_v6 }
0x16a4   :  { %v3485_v5 = vpop.permute.xlu1 %3484 }
0x16a5   :  { %v3495_v27 = vmul.f32 %v3485_v5, %v3391_v54  ;;  %v3483_v62 = vpop.permute.xlu0 %3482 }
0x16a6   :  { %v3494_v13 = vmul.f32 %v3483_v62, %v3382_v28 }
0x16a7   :  { %3547 = vst.msk [vmem:[#allocation2 + $0x17] sm:$0x1] %vm570_vm6, %v3495_v27  ;;  %v10200_v21 = vadd.f32 %v3539_v37, %v3495_v27 }
0x16a8   :  { %3546 = vst.msk [vmem:[#allocation2 + $0x7] sm:$0x1] %vm570_vm6, %v3494_v13  ;;  %v10202_v58 = vadd.f32 %v3538_v10, %v3494_v13 }
0x16aa   :  { %v3554_v43 = vcombine.low %v10202_v58, %v10200_v21 }
0x16ac   :  { %v3489_v34 = vpop.permute.xlu1 %3488  ;;  %v3562_v49 = vrot.slane %v3554_v43, %v9354_v59 }
0x16ad   :  { %v3497_v15 = vmul.f32 %v3489_v34, %v3409_v20  ;;  %v3487_v17 = vpop.permute.xlu0 %3486 }
0x16ae   :  { %v3496_v57 = vmul.f32 %v3487_v17, %v3400_v32 }
0x16af   :  { %v10207_v41 = vadd.f32 %v3541_v60, %v3497_v15  ;;  %3549 = vst.msk [vmem:[#allocation2 + $0x37] sm:$0x1] %vm570_vm6, %v3497_v15 }
0x16b0   :  { %v10212_v44 = vadd.f32 %v3540_v40, %v3496_v57  ;;  %3548 = vst.msk [vmem:[#allocation2 + $0x27] sm:$0x1] %vm570_vm6, %v3496_v57  ;;  %v3758_v40 = vrot.slane %v10202_v58, %v9374_v39  ;;  %v3762_v57 = vrot.slane %v10200_v21, %v9374_v39 }
0x16b1   :  { %v3770_v56 = vrot.slane %v10207_v41, %v9374_v39 }
0x16b2   :  { %v3555_v45 = vcombine.low %v10212_v44, %v10207_v41 }
0x16b4   :  { %v3569_v25 = vrot.slane %v3555_v45, %v9354_v59 }
0x16b6   :  { %v3570_v6 = vcombine.low %v3562_v49, %v3569_v25 }
0x16b8   :  { %v3577_v47 = vrot.slane %v3570_v6, %v9354_v59 }
0x16ba   :  { %8195 = vmatmul.mubr.msk.f32.vlgmr.msra.gmra.mrb[14].mxu0 %vm203_vm7, %v3577_v47 }
0x16bb   :  { %8407 = vmatpush3.bf16.msra.mxu0 %v9230_v8  ;;  %8216 = vmatprep.mubr.msk.f32.mxu0 %vm9142_vm0, %v9143_v1 }
0x16bc   :  { %8408 = vmatprep.subr.bf16.mxu0 %v9141_v0 }
0x16bf   :  { %8410 = vmatpush3.bf16.msra.mxu0 %v9240_v12 }
0x16c0   :  { %8417 = vmatprep.subr.bf16.mxu0 %v9141_v0 }
0x178d   :  { %v3646_v55 = vpop.f32.mrb[14].mxu0 }
0x178e   :  { %v8196_v18 = vpop.f32.mrb[15].mxu0  ;;  %v3686_v48 = vadd.f32 %v3646_v55, %v9275_v24  ;;  %v3651_v19 = vrot.slane %v3646_v55, 1  ;;  %v3652_v4 = vrot.slane %v3646_v55, 2  ;;  %v3658_v2 = vadd.f32 %v3646_v55, %v9273_v22 }
0x178f   :  { %v3653_v35 = vrot.slane %v3646_v55, 3 }
0x1790   :  { %3691 = vrot.lane.b32.xlu0 %v3686_v48, %s9144_s14  ;;  %v3688_v61 = vrot.slane %v3686_v48, 1  ;;  %v3689_v14 = vrot.slane %v3686_v48, 2  ;;  %v3690_v51 = vrot.slane %v3686_v48, 3  ;;  %v3659_v52 = vadd.f32 %v3651_v19, %v9277_v29 }
0x1791   :  { %v3660_v36 = vadd.f32 %v3652_v4, %v9281_v33  ;;  %v7874_v30 = vmul.f32 -1.442695, %v3658_v2  ;;  %v3661_v53 = vadd.f32 %v3653_v35, %v9285_v38  ;;  %v7878_v19 = vsel %vm3791_vm12, 1.0, %v9143_v1 }
0x1792   :  { %3693 = vrot.lane.b32.xlu1 %v3688_v61, %s9144_s14  ;;  %v7875_v23 = vmul.f32 -1.442695, %v3659_v52  ;;  %v7879_v4 = vsel %vm3792_vm13, 1.0, %v9143_v1  ;;  %v3766_v2 = vrot.slane %v10212_v44, %v9374_v39  ;;  %v8577_v35 = vpack.i.bf16 %v7881_v7, %v7880_v31 }
0x1793   :  { %8844 = vpow2.f32 %v7874_v30  ;;  %v7876_v26 = vmul.f32 -1.442695, %v3660_v36  ;;  %v7877_v46 = vmul.f32 -1.442695, %v3661_v53  ;;  %v8572_v9 = vpack.i.bf16 %v7879_v4, %v7878_v19 }
0x1794   :  { %3695 = vrot.lane.b32.xlu0 %v3689_v14, %s9144_s14  ;;  %8846 = vpow2.f32 %v7875_v23  ;;  %v3915_v52 = vsub.f32 1.0, %v7878_v19  ;;  %v3916_v36 = vsub.f32 1.0, %v7879_v4  ;;  %v3917_v30 = vsub.f32 1.0, %v7880_v31 }
0x1795   :  { %8848 = vpow2.f32 %v7876_v26  ;;  %v3918_v53 = vsub.f32 1.0, %v7881_v7 }
0x1796   :  { %3697 = vrot.lane.b32.xlu1 %v3690_v51, %s9144_s14  ;;  %8850 = vpow2.f32 %v7877_v46 }
0x179d   :  { %v8845_v54 = vpop.eup %8844 }
0x179e   :  { %v8847_v5 = vpop.eup %8846  ;;  %v3674_v28 = vadd.f32 1.0, %v8845_v54 }
0x179f   :  { %v8849_v27 = vpop.eup %8848  ;;  %v3675_v62 = vadd.f32 1.0, %v8847_v5 }
0x17a0   :  { %v8851_v11 = vpop.eup %8850  ;;  %v3676_v63 = vadd.f32 1.0, %v8849_v27  ;;  %8852 = vrcp.f32 %v3674_v28 }
0x17a1   :  { %v3677_v13 = vadd.f32 1.0, %v8851_v11  ;;  %8854 = vrcp.f32 %v3675_v62 }
0x17a2   :  { %8856 = vrcp.f32 %v3676_v63 }
0x17a3   :  { %8858 = vrcp.f32 %v3677_v13 }
0x17aa   :  { %v10236_v42 = vpop.eup %8852 }
0x17ab   :  { %v10239_v37 = vpop.eup %8854  ;;  %v3731_v46 = vsub.f32 1.0, %v10236_v42 }
0x17ac   :  { %v10243_v20 = vpop.eup %8856  ;;  %v3732_v27 = vsub.f32 1.0, %v10239_v37 }
0x17ad   :  { %v10247_v60 = vpop.eup %8858 }
0x1802   :  { %v3692_v50 = vpop.permute.xlu0 %3691 }
0x1803   :  { %v3703_v16 = vmul.f32 %v10236_v42, %v3692_v50 }
0x1804   :  { %v3694_v10 = vpop.permute.xlu1 %3693 }
0x1805   :  { %v3704_v3 = vmul.f32 %v10239_v37, %v3694_v10  ;;  %3711 = vrot.lane.b32.xlu0 %v3703_v16, %s9144_s14 }
0x1806   :  { %v3696_v34 = vpop.permute.xlu0 %3695 }
0x1807   :  { %v3705_v32 = vmul.f32 %v10243_v20, %v3696_v34  ;;  %3713 = vrot.lane.b32.xlu1 %v3704_v3, %s9144_s14 }
0x1808   :  { %v3698_v15 = vpop.permute.xlu1 %3697 }
0x1809   :  { %v3706_v17 = vmul.f32 %v10247_v60, %v3698_v15  ;;  %3715 = vrot.lane.b32.xlu0 %v3705_v32, %s9144_s14  ;;  %v3733_v32 = vsub.f32 1.0, %v10243_v20 }
0x180b   :  { %3717 = vrot.lane.b32.xlu1 %v3706_v17, %s9144_s14 }
0x180d   :  { %3771 = vrot.lane.b32.xlu0 %v3758_v40, %s9148_s23  ;;  %v3734_v40 = vsub.f32 1.0, %v10247_v60 }
0x180f   :  { %3773 = vrot.lane.b32.xlu1 %v3762_v57, %s9148_s23 }
0x1877   :  { %v3712_v43 = vpop.permute.xlu0 %3711 }
0x1878   :  { %v3723_v45 = vadd.f32 %v3712_v43, %v9273_v22 }
0x1879   :  { %v3714_v49 = vpop.permute.xlu1 %3713 }
0x187a   :  { %8860 = vtanh.f32 %v3723_v45  ;;  %v3724_v25 = vadd.f32 %v3714_v49, %v9277_v29 }
0x187b   :  { %v3716_v6 = vpop.permute.xlu0 %3715 }
0x187c   :  { %8862 = vtanh.f32 %v3724_v25  ;;  %v3725_v47 = vadd.f32 %v3716_v6, %v9281_v33 }
0x187d   :  { %v3718_v55 = vpop.permute.xlu1 %3717 }
0x187e   :  { %8864 = vtanh.f32 %v3725_v47  ;;  %v3726_v18 = vadd.f32 %v3718_v55, %v9285_v38 }
0x187f   :  { %v3772_v23 = vpop.permute.xlu0 %3771 }
0x1880   :  { %8866 = vtanh.f32 %v3726_v18  ;;  %v3783_v5 = vmul.f32 %v10236_v42, %v3772_v23 }
0x1881   :  { %v3774_v26 = vpop.permute.xlu1 %3773 }
0x1882   :  { %v3784_v11 = vmul.f32 %v10239_v37, %v3774_v26 }
0x1884   :  { %v8861_v48 = vpop.eup %8860 }
0x1885   :  { %3739 = vrot.lane.b32.xlu0 %v8861_v48, %s9146_s22 }
0x1886   :  { %v8863_v61 = vpop.eup %8862 }
0x1887   :  { %3741 = vrot.lane.b32.xlu1 %v8863_v61, %s9146_s22 }
0x1888   :  { %v8865_v14 = vpop.eup %8864 }
0x1889   :  { %3743 = vrot.lane.b32.xlu0 %v8865_v14, %s9146_s22 }
0x188a   :  { %v8867_v51 = vpop.eup %8866 }
0x188b   :  { %3745 = vrot.lane.b32.xlu1 %v8867_v51, %s9146_s22 }
0x188d   :  { %3775 = vrot.lane.b32.xlu0 %v3766_v2, %s9148_s23 }
0x188f   :  { %3777 = vrot.lane.b32.xlu1 %v3770_v56, %s9148_s23 }
0x1891   :  { %8573 = vperm.xlu0 %8496, %v8572_v9  }
0x1893   :  { %8578 = vperm.xlu1 %8490, %v8577_v35  }
0x1895   :  { %3921 = vperm.xlu0 %8496, %v3915_v52  }
0x1897   :  { %3930 = vperm.xlu1 %8490, %v3916_v36  }
0x1899   :  { %3939 = vperm.xlu0 %8496, %v3917_v30  }
0x189b   :  { %3948 = vperm.xlu1 %8490, %v3918_v53  }
0x18f7   :  { %v3740_v54 = vpop.permute.xlu0 %3739 }
0x18f8   :  { %v3751_v28 = vmul.f32 %v3740_v54, %v3731_v46 }
0x18f9   :  { %v3742_v62 = vpop.permute.xlu1 %3741 }
0x18fa   :  { %v3787_v63 = vadd.f32 %v3783_v5, %v3751_v28  ;;  %v3752_v13 = vmul.f32 %v3742_v62, %v3732_v27 }
0x18fb   :  { %v3744_v50 = vpop.permute.xlu0 %3743 }
0x18fc   :  { %v3849_v16 = vrot.slane %v3787_v63, %v9354_v59  ;;  %v3788_v10 = vadd.f32 %v3784_v11, %v3752_v13  ;;  %v3753_v17 = vmul.f32 %v3744_v50, %v3733_v32 }
0x18fd   :  { %v3746_v3 = vpop.permute.xlu1 %3745 }
0x18fe   :  { %v3863_v34 = vrot.slane %v3788_v10, %v9354_v59  ;;  %v3856_v15 = vrot.slane %v3849_v16, %v9354_v59  ;;  %v3754_v45 = vmul.f32 %v3746_v3, %v3734_v40 }
0x18ff   :  { %v3776_v42 = vpop.permute.xlu0 %3775 }
0x1900   :  { %v3785_v57 = vmul.f32 %v10243_v20, %v3776_v42  ;;  %3899 = vrot.lane.b32.xlu0 %v3856_v15, %s9146_s22  ;;  %v3870_v37 = vrot.slane %v3863_v34, %v9354_v59 }
0x1901   :  { %v3778_v43 = vpop.permute.xlu1 %3777 }
0x1902   :  { %v3789_v49 = vadd.f32 %v3785_v57, %v3753_v17  ;;  %v3786_v25 = vmul.f32 %v10247_v60, %v3778_v43  ;;  %3901 = vrot.lane.b32.xlu1 %v3870_v37, %s9146_s22 }
0x1904   :  { %v3877_v6 = vrot.slane %v3789_v49, %v9354_v59  ;;  %v3790_v47 = vadd.f32 %v3786_v25, %v3754_v45 }
0x1906   :  { %v3891_v55 = vrot.slane %v3790_v47, %v9354_v59  ;;  %v3884_v18 = vrot.slane %v3877_v6, %v9354_v59 }
0x1908   :  { %3903 = vrot.lane.b32.xlu0 %v3884_v18, %s9146_s22  ;;  %v3898_v20 = vrot.slane %v3891_v55, %v9354_v59 }
0x190a   :  { %3905 = vrot.lane.b32.xlu1 %v3898_v20, %s9146_s22 }
0x1910   :  { %v8574_v48 = vpop.permute.xlu0 %8573 }
0x1911   :  { %v8575_v60 = vunpack.i.l.bf16 %v8574_v48  ;;  %v8576_v4 = vunpack.i.h.bf16 %v8574_v48 }
0x1912   :  { %v8579_v61 = vpop.permute.xlu1 %8578 }
0x1913   :  { %v3811_v31 = vrot.slane %v8575_v60, %v9374_v39  ;;  %v3820_v9 = vrot.slane %v8576_v4, %v9374_v39  ;;  %v8580_v52 = vunpack.i.l.bf16 %v8579_v61  ;;  %v8581_v53 = vunpack.i.h.bf16 %v8579_v61 }
0x1914   :  { %v3922_v14 = vpop.permute.xlu0 %3921 }
0x1915   :  { %v3927_v23 = vrot.slane %v3922_v14, %v9374_v39  ;;  %v3829_v5 = vrot.slane %v8580_v52, %v9374_v39  ;;  %v3838_v63 = vrot.slane %v8581_v53, %v9374_v39 }
0x1916   :  { %v3931_v51 = vpop.permute.xlu1 %3930 }
0x1917   :  { %v3936_v36 = vrot.slane %v3931_v51, %v9374_v39  ;;  %v3955_v27 = vmul.f32 %v3927_v23, %v10202_v58 }
0x1918   :  { %v3940_v19 = vpop.permute.xlu0 %3939 }
0x1919   :  { %v3956_v26 = vmul.f32 %v3936_v36, %v10200_v21  ;;  %v3945_v46 = vrot.slane %v3940_v19, %v9374_v39 }
0x191a   :  { %v3949_v2 = vpop.permute.xlu1 %3948 }
0x191b   :  { %v3954_v54 = vrot.slane %v3949_v2, %v9374_v39  ;;  %v3957_v50 = vmul.f32 %v3945_v46, %v10212_v44 }
0x191d   :  { %v3958_v16 = vmul.f32 %v3954_v54, %v10207_v41 }
0x1972   :  { %v3900_v7 = vpop.permute.xlu0 %3899 }
0x1973   :  { %v3911_v56 = vmul.f32 %v3900_v7, %v3811_v31 }
0x1974   :  { %v3902_v35 = vpop.permute.xlu1 %3901 }
0x1975   :  { %3963 = vst.msk [vmem:[#allocation2 + $0x8] sm:$0x1] %vm570_vm6, %v3911_v56  ;;  %v3912_v30 = vmul.f32 %v3902_v35, %v3820_v9  ;;  %v10316_v21 = vadd.f32 %v3955_v27, %v3911_v56 }
0x1977   :  { %3964 = vst.msk [vmem:[#allocation2 + $0x18] sm:$0x1] %vm570_vm6, %v3912_v30  ;;  %v10311_v62 = vadd.f32 %v3956_v26, %v3912_v30 }
0x1979   :  { %v3971_v3 = vcombine.low %v10316_v21, %v10311_v62 }
0x197a   :  { %v3904_v28 = vpop.permute.xlu0 %3903 }
0x197b   :  { %v3913_v11 = vmul.f32 %v3904_v28, %v3829_v5  ;;  %v3979_v44 = vrot.slane %v3971_v3, %v9354_v59 }
0x197c   :  { %v3906_v13 = vpop.permute.xlu1 %3905 }
0x197d   :  { %3965 = vst.msk [vmem:[#allocation2 + $0x28] sm:$0x1] %vm570_vm6, %v3913_v11  ;;  %v3914_v10 = vmul.f32 %v3906_v13, %v3838_v63  ;;  %v10321_v34 = vadd.f32 %v3957_v50, %v3913_v11  ;;  %v4179_v11 = vrot.slane %v10311_v62, %v9374_v39  ;;  %v4175_v63 = vrot.slane %v10316_v21, %v9374_v39 }
0x197f   :  { %v10323_v58 = vadd.f32 %v3958_v16, %v3914_v10  ;;  %3966 = vst.msk [vmem:[#allocation2 + $0x38] sm:$0x1] %vm570_vm6, %v3914_v10 }
0x1981   :  { %v3972_v32 = vcombine.low %v10321_v34, %v10323_v58 }
0x1983   :  { %v3986_v41 = vrot.slane %v3972_v32, %v9354_v59 }
0x1985   :  { %v3987_v15 = vcombine.low %v3979_v44, %v3986_v41 }
0x1987   :  { %v3994_v42 = vrot.slane %v3987_v15, %v9354_v59 }
0x1989   :  { %8206 = vmatmul.mubr.msk.f32.vlgmr.msra.gmra.mrb[10].mxu1 %vm203_vm7, %v3994_v42 }
0x198a   :  { %8413 = vmatpush3.bf16.msra.mxu1 %v9230_v8  ;;  %8227 = vmatprep.mubr.msk.f32.mxu1 %vm9142_vm0, %v9143_v1 }
0x198b   :  { %8414 = vmatprep.subr.bf16.mxu1 %v9141_v0 }
0x198e   :  { %8416 = vmatpush3.bf16.msra.mxu1 %v9240_v12 }
0x198f   :  { %8423 = vmatprep.subr.bf16.mxu1 %v9141_v0 }
0x1a5c   :  { %v4063_v17 = vpop.f32.mrb[10].mxu1 }
0x1a5d   :  { %v8207_v40 = vpop.f32.mrb[11].mxu1  ;;  %v4103_v57 = vadd.f32 %v4063_v17, %v9275_v24  ;;  %v4068_v49 = vrot.slane %v4063_v17, 7  ;;  %v4070_v25 = vrot.slane %v4063_v17, 2  ;;  %v4076_v6 = vadd.f32 %v4063_v17, %v9277_v29 }
0x1a5e   :  { %v4069_v47 = vrot.slane %v4063_v17, 1  ;;  %v10378_v17 = vld [vmem:[%s11262_s5 + $0x2] sm:$0x1]  ;;  %v10384_v40 = vld [vmem:[%s11262_s5 + $0x3] sm:$0x1] }
0x1a5f   :  { %4110 = vrot.lane.b32.xlu1 %v4103_v57, %s9144_s14  ;;  %v4105_v37 = vrot.slane %v4103_v57, 7  ;;  %v4107_v43 = vrot.slane %v4103_v57, 2  ;;  %v4106_v45 = vrot.slane %v4103_v57, 1  ;;  %v4075_v55 = vadd.f32 %v4068_v49, %v9273_v22 }
0x1a60   :  { %v4078_v18 = vadd.f32 %v4070_v25, %v9285_v38  ;;  %v7884_v20 = vmul.f32 -1.442695, %v4076_v6  ;;  %v4077_v48 = vadd.f32 %v4069_v47, %v9281_v33  ;;  %vm4210_vm2 = vcmp.gt.s32.totalorder %v10378_v17, 9 }
0x1a61   :  { %4108 = vrot.lane.b32.xlu0 %v4105_v37, %s9144_s14  ;;  %v7883_v61 = vmul.f32 -1.442695, %v4075_v55  ;;  %vm4211_vm3 = vcmp.gt.s32.totalorder %v10384_v40, 9  ;;  %v10391_v37 = vld [vmem:[%s11262_s5] sm:$0x1]  ;;  %v7889_v49 = vsel %vm4210_vm2, 1.0, %v9143_v1  ;;  %v4187_v6 = vrot.slane %v10323_v58, %v9374_v39 }
0x1a62   :  { %8868 = vpow2.f32 %v7884_v20  ;;  %v7886_v14 = vmul.f32 -1.442695, %v4078_v18  ;;  %v7885_v51 = vmul.f32 -1.442695, %v4077_v48  ;;  %vm4208_vm4 = vcmp.gt.s32.totalorder %v10391_v37, 9 }
0x1a63   :  { %4114 = vrot.lane.b32.xlu1 %v4107_v43, %s9144_s14  ;;  %8870 = vpow2.f32 %v7883_v61  ;;  %v10397_v43 = vld [vmem:[%s11262_s5 + $0x1] sm:$0x1]  ;;  %v7890_v25 = vsel %vm4211_vm3, 1.0, %v9143_v1  ;;  %v7887_v47 = vsel %vm4208_vm4, 1.0, %v9143_v1  ;;  %v4183_v18 = vrot.slane %v10321_v34, %v9374_v39 }
0x1a64   :  { %8872 = vpow2.f32 %v7886_v14  ;;  %vm4209_vm5 = vcmp.gt.s32.totalorder %v10397_v43, 9  ;;  %v8587_v20 = vpack.i.bf16 %v7890_v25, %v7889_v49  ;;  %v4336_v14 = vsub.f32 1.0, %v7887_v47 }
0x1a65   :  { %4112 = vrot.lane.b32.xlu0 %v4106_v45, %s9144_s14  ;;  %8874 = vpow2.f32 %v7885_v51  ;;  %v7888_v55 = vsel %vm4209_vm5, 1.0, %v9143_v1  ;;  %v4339_v51 = vsub.f32 1.0, %v7890_v25  ;;  %vm4631_vm8 = vcmp.gt.s32.totalorder %v10378_v17, 10 }
0x1a66   :  { %v8582_v48 = vpack.i.bf16 %v7888_v55, %v7887_v47  ;;  %v4337_v61 = vsub.f32 1.0, %v7888_v55  ;;  %vm4632_vm9 = vcmp.gt.s32.totalorder %v10384_v40, 10  ;;  %vm4630_vm10 = vcmp.gt.s32.totalorder %v10397_v43, 10 }
0x1a67   :  { %vm4629_vm11 = vcmp.gt.s32.totalorder %v10391_v37, 10  ;;  %vm5050_vm12 = vcmp.gt.s32.totalorder %v10391_v37, 11  ;;  %vm5051_vm13 = vcmp.gt.s32.totalorder %v10397_v43, 11  ;;  %vm5052_vm14 = vcmp.gt.s32.totalorder %v10378_v17, 11 }
0x1a68   :  { %vm5053_vm15 = vcmp.gt.s32.totalorder %v10384_v40, 11  ;;  %v7907_v43 = vsel %vm5052_vm14, 1.0, %v9143_v1 }
0x1a6c   :  { %v8869_v60 = vpop.eup %8868 }
0x1a6d   :  { %v8871_v19 = vpop.eup %8870  ;;  %v4092_v4 = vadd.f32 1.0, %v8869_v60  ;;  %v4338_v60 = vsub.f32 1.0, %v7889_v49 }
0x1a6e   :  { %v8873_v2 = vpop.eup %8872  ;;  %v4091_v31 = vadd.f32 1.0, %v8871_v19 }
0x1a6f   :  { %v8875_v7 = vpop.eup %8874  ;;  %v4094_v56 = vadd.f32 1.0, %v8873_v2  ;;  %8876 = vrcp.f32 %v4092_v4 }
0x1a70   :  { %v4093_v9 = vadd.f32 1.0, %v8875_v7  ;;  %8878 = vrcp.f32 %v4091_v31 }
0x1a71   :  { %8880 = vrcp.f32 %v4094_v56 }
0x1a72   :  { %8882 = vrcp.f32 %v4093_v9 }
0x1a79   :  { %v10347_v35 = vpop.eup %8876 }
0x1a7a   :  { %v10350_v30 = vpop.eup %8878  ;;  %v4149_v2 = vsub.f32 1.0, %v10347_v35 }
0x1a7b   :  { %v10354_v26 = vpop.eup %8880  ;;  %v4148_v9 = vsub.f32 1.0, %v10350_v30 }
0x1a7c   :  { %v10358_v5 = vpop.eup %8882 }
0x1ad1   :  { %v4111_v52 = vpop.permute.xlu1 %4110 }
0x1ad2   :  { %v4121_v36 = vmul.f32 %v10347_v35, %v4111_v52 }
0x1ad3   :  { %v4109_v53 = vpop.permute.xlu0 %4108 }
0x1ad4   :  { %v4120_v23 = vmul.f32 %v10350_v30, %v4109_v53  ;;  %4130 = vrot.lane.b32.xlu1 %v4121_v36, %s9144_s14 }
0x1ad5   :  { %v4115_v46 = vpop.permute.xlu1 %4114 }
0x1ad6   :  { %v4123_v54 = vmul.f32 %v10354_v26, %v4115_v46  ;;  %4128 = vrot.lane.b32.xlu0 %v4120_v23, %s9144_s14 }
0x1ad7   :  { %v4113_v28 = vpop.permute.xlu0 %4112 }
0x1ad8   :  { %v4122_v27 = vmul.f32 %v10358_v5, %v4113_v28  ;;  %4134 = vrot.lane.b32.xlu1 %v4123_v54, %s9144_s14 }
0x1ada   :  { %4132 = vrot.lane.b32.xlu0 %v4122_v27, %s9144_s14 }
0x1adc   :  { %4190 = vrot.lane.b32.xlu1 %v4179_v11, %s9148_s23 }
0x1ade   :  { %4188 = vrot.lane.b32.xlu0 %v4175_v63, %s9148_s23 }
0x1b46   :  { %v4131_v13 = vpop.permute.xlu1 %4130 }
0x1b47   :  { %v4141_v50 = vadd.f32 %v4131_v13, %v9277_v29  ;;  %v4151_v13 = vsub.f32 1.0, %v10354_v26 }
0x1b48   :  { %v4129_v16 = vpop.permute.xlu0 %4128 }
0x1b49   :  { %8884 = vtanh.f32 %v4141_v50  ;;  %v4140_v10 = vadd.f32 %v4129_v16, %v9273_v22 }
0x1b4a   :  { %v4135_v3 = vpop.permute.xlu1 %4134 }
0x1b4b   :  { %8886 = vtanh.f32 %v4140_v10  ;;  %v4143_v32 = vadd.f32 %v4135_v3, %v9285_v38 }
0x1b4c   :  { %v4133_v44 = vpop.permute.xlu0 %4132 }
0x1b4d   :  { %8888 = vtanh.f32 %v4143_v32  ;;  %v4142_v41 = vadd.f32 %v4133_v44, %v9281_v33 }
0x1b4e   :  { %v4191_v19 = vpop.permute.xlu1 %4190 }
0x1b4f   :  { %8890 = vtanh.f32 %v4142_v41  ;;  %v4201_v7 = vmul.f32 %v10347_v35, %v4191_v19  ;;  %v4150_v35 = vsub.f32 1.0, %v10358_v5 }
0x1b50   :  { %v4189_v4 = vpop.permute.xlu0 %4188 }
0x1b51   :  { %v4200_v36 = vmul.f32 %v10350_v30, %v4189_v4 }
0x1b53   :  { %v8885_v15 = vpop.eup %8884 }
0x1b54   :  { %4158 = vrot.lane.b32.xlu1 %v8885_v15, %s9146_s22 }
0x1b55   :  { %v8887_v42 = vpop.eup %8886 }
0x1b56   :  { %4156 = vrot.lane.b32.xlu0 %v8887_v42, %s9146_s22 }
0x1b57   :  { %v8889_v57 = vpop.eup %8888 }
0x1b58   :  { %4162 = vrot.lane.b32.xlu1 %v8889_v57, %s9146_s22 }
0x1b59   :  { %v8891_v45 = vpop.eup %8890 }
0x1b5a   :  { %4160 = vrot.lane.b32.xlu0 %v8891_v45, %s9146_s22 }
0x1b5c   :  { %4194 = vrot.lane.b32.xlu1 %v4187_v6, %s9148_s23 }
0x1b5e   :  { %4192 = vrot.lane.b32.xlu0 %v4183_v18, %s9148_s23 }
0x1b60   :  { %8588 = vperm.xlu1 %8490, %v8587_v20  }
0x1b62   :  { %8583 = vperm.xlu0 %8496, %v8582_v48  }
0x1b64   :  { %4351 = vperm.xlu1 %8490, %v4337_v61  }
0x1b66   :  { %4342 = vperm.xlu0 %8496, %v4336_v14  }
0x1b68   :  { %4369 = vperm.xlu1 %8490, %v4339_v51  }
0x1b6a   :  { %4360 = vperm.xlu0 %8496, %v4338_v60  }
0x1bc6   :  { %v4159_v31 = vpop.permute.xlu1 %4158 }
0x1bc7   :  { %v4169_v56 = vmul.f32 %v4159_v31, %v4149_v2 }
0x1bc8   :  { %v4157_v52 = vpop.permute.xlu0 %4156 }
0x1bc9   :  { %v4205_v53 = vadd.f32 %v4201_v7, %v4169_v56  ;;  %v4168_v23 = vmul.f32 %v4157_v52, %v4148_v9 }
0x1bca   :  { %v4163_v46 = vpop.permute.xlu1 %4162 }
0x1bcb   :  { %v4281_v54 = vrot.slane %v4205_v53, %v9354_v59  ;;  %v4204_v28 = vadd.f32 %v4200_v36, %v4168_v23  ;;  %v4171_v10 = vmul.f32 %v4163_v46, %v4151_v13 }
0x1bcc   :  { %v4161_v27 = vpop.permute.xlu0 %4160 }
0x1bcd   :  { %v4282_v11 = vcombine.high %v4281_v54, %v4281_v54  ;;  %v4266_v63 = vrot.slane %v4204_v28, %v9354_v59  ;;  %v4170_v44 = vmul.f32 %v4161_v27, %v4150_v35 }
0x1bce   :  { %v4195_v50 = vpop.permute.xlu1 %4194 }
0x1bcf   :  { %v4267_v16 = vcombine.high %v4266_v63, %v4266_v63  ;;  %v4203_v3 = vmul.f32 %v10354_v26, %v4195_v50  ;;  %v4289_v30 = vrot.slane %v4282_v11, %v9354_v59 }
0x1bd0   :  { %v4193_v32 = vpop.permute.xlu0 %4192 }
0x1bd1   :  { %v4207_v41 = vadd.f32 %v4203_v3, %v4171_v10  ;;  %v4202_v15 = vmul.f32 %v10358_v5, %v4193_v32  ;;  %4322 = vrot.lane.b32.xlu1 %v4289_v30, %s9146_s22  ;;  %v4274_v42 = vrot.slane %v4267_v16, %v9354_v59 }
0x1bd3   :  { %v4311_v57 = vrot.slane %v4207_v41, %v9354_v59  ;;  %v4206_v45 = vadd.f32 %v4202_v15, %v4170_v44  ;;  %4320 = vrot.lane.b32.xlu0 %v4274_v42, %s9146_s22 }
0x1bd5   :  { %v4312_v49 = vcombine.high %v4311_v57, %v4311_v57  ;;  %v4296_v25 = vrot.slane %v4206_v45, %v9354_v59 }
0x1bd7   :  { %v4297_v26 = vcombine.high %v4296_v25, %v4296_v25  ;;  %v4319_v6 = vrot.slane %v4312_v49, %v9354_v59 }
0x1bd9   :  { %4326 = vrot.lane.b32.xlu1 %v4319_v6, %s9146_s22  ;;  %v4304_v47 = vrot.slane %v4297_v26, %v9354_v59 }
0x1bdb   :  { %4324 = vrot.lane.b32.xlu0 %v4304_v47, %s9146_s22 }
0x1bdf   :  { %v8589_v5 = vpop.permute.xlu1 %8588 }
0x1be0   :  { %v8591_v7 = vunpack.i.h.bf16 %v8589_v5  ;;  %v8590_v52 = vunpack.i.l.bf16 %v8589_v5 }
0x1be1   :  { %v8584_v55 = vpop.permute.xlu0 %8583 }
0x1be2   :  { %v8586_v48 = vunpack.i.h.bf16 %v8584_v55  ;;  %v8585_v14 = vunpack.i.l.bf16 %v8584_v55  ;;  %v4255_v54 = vrot.slane %v8591_v7, %v9374_v39  ;;  %v4246_v13 = vrot.slane %v8590_v52, %v9374_v39 }
0x1be3   :  { %v4352_v18 = vpop.permute.xlu1 %4351 }
0x1be4   :  { %v4237_v60 = vrot.slane %v8586_v48, %v9374_v39  ;;  %v4228_v2 = vrot.slane %v8585_v14, %v9374_v39  ;;  %v4357_v36 = vrot.slane %v4352_v18, %v9374_v39 }
0x1be5   :  { %v4343_v20 = vpop.permute.xlu0 %4342 }
0x1be6   :  { %v4348_v56 = vrot.slane %v4343_v20, %v9374_v39  ;;  %v4377_v27 = vmul.f32 %v4357_v36, %v10311_v62 }
0x1be7   :  { %v4370_v61 = vpop.permute.xlu1 %4369 }
0x1be8   :  { %v4376_v53 = vmul.f32 %v4348_v56, %v10316_v21  ;;  %v4375_v23 = vrot.slane %v4370_v61, %v9374_v39 }
0x1be9   :  { %v4361_v51 = vpop.permute.xlu0 %4360 }
0x1bea   :  { %v4366_v46 = vrot.slane %v4361_v51, %v9374_v39  ;;  %v4379_v50 = vmul.f32 %v4375_v23, %v10323_v58 }
0x1bec   :  { %v4378_v16 = vmul.f32 %v4366_v46, %v10321_v34 }
0x1c43   :  { %v4323_v19 = vpop.permute.xlu1 %4322 }
0x1c44   :  { %v4333_v4 = vmul.f32 %v4323_v19, %v4237_v60 }
0x1c45   :  { %v4321_v31 = vpop.permute.xlu0 %4320 }
0x1c46   :  { %4385 = vst.msk [vmem:[#allocation2 + $0x19] sm:$0x1] %vm570_vm6, %v4333_v4  ;;  %v4332_v9 = vmul.f32 %v4321_v31, %v4228_v2  ;;  %v10447_v21 = vadd.f32 %v4377_v27, %v4333_v4 }
0x1c48   :  { %4384 = vst.msk [vmem:[#allocation2 + $0x9] sm:$0x1] %vm570_vm6, %v4332_v9  ;;  %v10442_v11 = vadd.f32 %v4376_v53, %v4332_v9 }
0x1c4a   :  { %v4392_v3 = vcombine.low %v10442_v11, %v10447_v21 }
0x1c4b   :  { %v4327_v28 = vpop.permute.xlu1 %4326 }
0x1c4c   :  { %v4335_v63 = vmul.f32 %v4327_v28, %v4255_v54  ;;  %v4400_v58 = vrot.slane %v4392_v3, %v9354_v59 }
0x1c4d   :  { %v4325_v35 = vpop.permute.xlu0 %4324 }
0x1c4e   :  { %4387 = vst.msk [vmem:[#allocation2 + $0x39] sm:$0x1] %vm570_vm6, %v4335_v63  ;;  %v4334_v10 = vmul.f32 %v4325_v35, %v4246_v13  ;;  %v10452_v30 = vadd.f32 %v4379_v50, %v4335_v63 }
0x1c50   :  { %v10454_v62 = vadd.f32 %v4378_v16, %v4334_v10  ;;  %4386 = vst.msk [vmem:[#allocation2 + $0x29] sm:$0x1] %vm570_vm6, %v4334_v10  ;;  %v4600_v16 = vrot.slane %v10447_v21, %v9374_v39  ;;  %v4596_v10 = vrot.slane %v10442_v11, %v9374_v39 }
0x1c52   :  { %v4393_v32 = vcombine.low %v10454_v62, %v10452_v30 }
0x1c54   :  { %v4407_v34 = vrot.slane %v4393_v32, %v9354_v59 }
0x1c56   :  { %v4408_v44 = vcombine.low %v4400_v58, %v4407_v34 }
0x1c58   :  { %v4415_v41 = vrot.slane %v4408_v44, %v9354_v59 }
0x1c5a   :  { %8217 = vmatmul.mubr.msk.f32.vlgmr.msra.gmra.mrb[16].mxu0 %vm203_vm7, %v4415_v41 }
0x1c5b   :  { %8419 = vmatpush3.bf16.msra.mxu0 %v9230_v8  ;;  %8238 = vmatprep.mubr.msk.f32.mxu0 %vm9142_vm0, %v9143_v1 }
0x1c5c   :  { %8420 = vmatprep.subr.bf16.mxu0 %v9141_v0 }
0x1c5f   :  { %8422 = vmatpush3.bf16.msra.mxu0 %v9240_v12 }
0x1c60   :  { %8429 = vmatprep.subr.bf16.mxu0 %v9141_v0 }
0x1d2d   :  { %v4484_v15 = vpop.f32.mrb[16].mxu0 }
0x1d2e   :  { %v8218_v42 = vpop.f32.mrb[17].mxu0  ;;  %v4524_v57 = vadd.f32 %v4484_v15, %v9275_v24  ;;  %v4489_v26 = vrot.slane %v4484_v15, 6  ;;  %v4490_v6 = vrot.slane %v4484_v15, 7  ;;  %v4491_v5 = vrot.slane %v4484_v15, 1 }
0x1d2f   :  { %v4498_v18 = vadd.f32 %v4484_v15, %v9281_v33 }
0x1d30   :  { %v4527_v45 = vrot.slane %v4524_v57, 7  ;;  %v4526_v49 = vrot.slane %v4524_v57, 6  ;;  %v4528_v25 = vrot.slane %v4524_v57, 1  ;;  %v4496_v47 = vadd.f32 %v4489_v26, %v9273_v22 }
0x1d31   :  { %v4497_v55 = vadd.f32 %v4490_v6, %v9277_v29  ;;  %v4499_v48 = vadd.f32 %v4491_v5, %v9285_v38  ;;  %v7894_v14 = vmul.f32 -1.442695, %v4498_v18  ;;  %v7899_v26 = vsel %vm4632_vm9, 1.0, %v9143_v1 }
0x1d32   :  { %4531 = vrot.lane.b32.xlu1 %v4527_v45, %s9144_s14  ;;  %4529 = vrot.lane.b32.xlu0 %v4526_v49, %s9144_s14  ;;  %v7892_v20 = vmul.f32 -1.442695, %v4496_v47  ;;  %v4608_v6 = vrot.slane %v10452_v30, %v9374_v39  ;;  %v7896_v18 = vsel %vm4629_vm11, 1.0, %v9143_v1 }
0x1d33   :  { %v7893_v61 = vmul.f32 -1.442695, %v4497_v55  ;;  %v7895_v51 = vmul.f32 -1.442695, %v4499_v48  ;;  %v7897_v55 = vsel %vm4630_vm10, 1.0, %v9143_v1 }
0x1d34   :  { %8892 = vpow2.f32 %v7892_v20  ;;  %v4604_v20 = vrot.slane %v10454_v62, %v9374_v39  ;;  %v4758_v48 = vsub.f32 1.0, %v7897_v55 }
0x1d35   :  { %8894 = vpow2.f32 %v7893_v61  ;;  %v8592_v61 = vpack.i.bf16 %v7897_v55, %v7896_v18 }
0x1d36   :  { %4535 = vrot.lane.b32.xlu1 %v4528_v25, %s9144_s14  ;;  %4533 = vrot.lane.b32.xlu0 %v4524_v57, %s9144_s14  ;;  %8896 = vpow2.f32 %v7894_v14  ;;  %v7898_v25 = vsel %vm4631_vm8, 1.0, %v9143_v1  ;;  %v4760_v14 = vsub.f32 1.0, %v7899_v26 }
0x1d37   :  { %8898 = vpow2.f32 %v7895_v51  ;;  %v8597_v5 = vpack.i.bf16 %v7899_v26, %v7898_v25  ;;  %v4757_v51 = vsub.f32 1.0, %v7896_v18 }
0x1d3e   :  { %v8893_v60 = vpop.eup %8892 }
0x1d3f   :  { %v8895_v19 = vpop.eup %8894  ;;  %v4512_v4 = vadd.f32 1.0, %v8893_v60  ;;  %v4759_v60 = vsub.f32 1.0, %v7898_v25 }
0x1d40   :  { %v8897_v2 = vpop.eup %8896  ;;  %v4513_v31 = vadd.f32 1.0, %v8895_v19 }
0x1d41   :  { %v8899_v7 = vpop.eup %8898  ;;  %v4514_v56 = vadd.f32 1.0, %v8897_v2  ;;  %8900 = vrcp.f32 %v4512_v4 }
0x1d42   :  { %v4515_v9 = vadd.f32 1.0, %v8899_v7  ;;  %8902 = vrcp.f32 %v4513_v31 }
0x1d43   :  { %8904 = vrcp.f32 %v4514_v56 }
0x1d44   :  { %8906 = vrcp.f32 %v4515_v9 }
0x1d4b   :  { %v10478_v52 = vpop.eup %8900 }
0x1d4c   :  { %v10480_v36 = vpop.eup %8902 }
0x1d4d   :  { %v10484_v28 = vpop.eup %8904  ;;  %v4570_v4 = vsub.f32 1.0, %v10480_v36 }
0x1d4e   :  { %v10488_v27 = vpop.eup %8906 }
0x1da4   :  { %v4532_v53 = vpop.permute.xlu1 %4531  ;;  %v4530_v23 = vpop.permute.xlu0 %4529 }
0x1da5   :  { %v4542_v46 = vmul.f32 %v10480_v36, %v4532_v53  ;;  %v4541_v54 = vmul.f32 %v10478_v52, %v4530_v23 }
0x1da7   :  { %4551 = vrot.lane.b32.xlu1 %v4542_v46, %s9144_s14  ;;  %4549 = vrot.lane.b32.xlu0 %v4541_v54, %s9144_s14 }
0x1da8   :  { %v4536_v63 = vpop.permute.xlu1 %4535  ;;  %v4534_v13 = vpop.permute.xlu0 %4533 }
0x1da9   :  { %v4544_v35 = vmul.f32 %v10488_v27, %v4536_v63  ;;  %v4543_v50 = vmul.f32 %v10484_v28, %v4534_v13  ;;  %v4572_v63 = vsub.f32 1.0, %v10488_v27 }
0x1dab   :  { %4555 = vrot.lane.b32.xlu1 %v4544_v35, %s9144_s14  ;;  %4553 = vrot.lane.b32.xlu0 %v4543_v50, %s9144_s14  ;;  %v4569_v35 = vsub.f32 1.0, %v10478_v52 }
0x1daf   :  { %4611 = vrot.lane.b32.xlu1 %v4600_v16, %s9148_s23  ;;  %4609 = vrot.lane.b32.xlu0 %v4596_v10, %s9148_s23 }
0x1e19   :  { %v4552_v3 = vpop.permute.xlu1 %4551  ;;  %v4550_v32 = vpop.permute.xlu0 %4549 }
0x1e1a   :  { %v4562_v58 = vadd.f32 %v4552_v3, %v9277_v29  ;;  %v4561_v42 = vadd.f32 %v4550_v32, %v9273_v22 }
0x1e1c   :  { %8908 = vtanh.f32 %v4562_v58 }
0x1e1d   :  { %v4556_v34 = vpop.permute.xlu1 %4555  ;;  %v4554_v44 = vpop.permute.xlu0 %4553 }
0x1e1e   :  { %v4564_v41 = vadd.f32 %v4556_v34, %v9285_v38  ;;  %v4563_v15 = vadd.f32 %v4554_v44, %v9281_v33  ;;  %v4571_v34 = vsub.f32 1.0, %v10484_v28 }
0x1e20   :  { %8910 = vtanh.f32 %v4564_v41 }
0x1e21   :  { %8912 = vtanh.f32 %v4563_v15  ;;  %v4612_v19 = vpop.permute.xlu1 %4611  ;;  %v4610_v7 = vpop.permute.xlu0 %4609 }
0x1e22   :  { %8914 = vtanh.f32 %v4561_v42  ;;  %v4622_v31 = vmul.f32 %v10480_v36, %v4612_v19  ;;  %v4621_v36 = vmul.f32 %v10478_v52, %v4610_v7 }
0x1e26   :  { %v8909_v57 = vpop.eup %8908 }
0x1e27   :  { %4579 = vrot.lane.b32.xlu1 %v8909_v57, %s9146_s22 }
0x1e2a   :  { %v8911_v45 = vpop.eup %8910 }
0x1e2b   :  { %v8913_v49 = vpop.eup %8912  ;;  %4583 = vrot.lane.b32.xlu1 %v8911_v45, %s9146_s22 }
0x1e2c   :  { %4581 = vrot.lane.b32.xlu0 %v8913_v49, %s9146_s22  ;;  %v8915_v47 = vpop.eup %8914 }
0x1e2f   :  { %4615 = vrot.lane.b32.xlu1 %v4608_v6, %s9148_s23 }
0x1e30   :  { %4577 = vrot.lane.b32.xlu0 %v8915_v47, %s9146_s22 }
0x1e33   :  { %8598 = vperm.xlu1 %8490, %v8597_v5  }
0x1e34   :  { %4613 = vrot.lane.b32.xlu0 %v4604_v20, %s9148_s23 }
0x1e37   :  { %4772 = vperm.xlu1 %8490, %v4758_v48  }
0x1e38   :  { %8593 = vperm.xlu0 %8496, %v8592_v61  }
0x1e3b   :  { %4790 = vperm.xlu1 %8490, %v4760_v14  }
0x1e3c   :  { %4763 = vperm.xlu0 %8496, %v4757_v51  }
0x1e40   :  { %4781 = vperm.xlu0 %8496, %v4759_v60  }
0x1e99   :  { %v4580_v2 = vpop.permute.xlu1 %4579 }
0x1e9a   :  { %v4590_v56 = vmul.f32 %v4580_v2, %v4570_v4 }
0x1e9c   :  { %v4626_v9 = vadd.f32 %v4622_v31, %v4590_v56 }
0x1e9d   :  { %v4584_v53 = vpop.permute.xlu1 %4583 }
0x1e9e   :  { %v4702_v23 = vrot.slane %v4626_v9, %v9354_v59  ;;  %v4582_v46 = vpop.permute.xlu0 %4581  ;;  %v4592_v50 = vmul.f32 %v4584_v53, %v4572_v63 }
0x1e9f   :  { %v4591_v42 = vmul.f32 %v4582_v46, %v4571_v34 }
0x1ea0   :  { %v4709_v54 = vrot.slane %v4702_v23, %v9354_v59 }
0x1ea1   :  { %v4616_v13 = vpop.permute.xlu1 %4615 }
0x1ea2   :  { %v4624_v16 = vmul.f32 %v10488_v27, %v4616_v13  ;;  %v4578_v10 = vpop.permute.xlu0 %4577  ;;  %v4710_v3 = vcombine.high %v4709_v54, %v4709_v54 }
0x1ea3   :  { %v4589_v32 = vmul.f32 %v4578_v10, %v4569_v35 }
0x1ea4   :  { %v4628_v58 = vadd.f32 %v4624_v16, %v4592_v50  ;;  %4743 = vrot.lane.b32.xlu1 %v4710_v3, %s9146_s22 }
0x1ea5   :  { %v4625_v44 = vadd.f32 %v4621_v36, %v4589_v32 }
0x1ea6   :  { %v4732_v41 = vrot.slane %v4628_v58, %v9354_v59  ;;  %v4614_v15 = vpop.permute.xlu0 %4613 }
0x1ea7   :  { %v4687_v57 = vrot.slane %v4625_v44, %v9354_v59  ;;  %v4623_v45 = vmul.f32 %v10484_v28, %v4614_v15 }
0x1ea8   :  { %v4739_v27 = vrot.slane %v4732_v41, %v9354_v59 }
0x1ea9   :  { %v4694_v49 = vrot.slane %v4687_v57, %v9354_v59  ;;  %v4627_v52 = vadd.f32 %v4623_v45, %v4591_v42 }
0x1eaa   :  { %v4740_v25 = vcombine.high %v4739_v27, %v4739_v27 }
0x1eab   :  { %v4717_v26 = vrot.slane %v4627_v52, %v9354_v59  ;;  %v4695_v6 = vcombine.high %v4694_v49, %v4694_v49 }
0x1eac   :  { %4747 = vrot.lane.b32.xlu1 %v4740_v25, %s9146_s22 }
0x1ead   :  { %v4724_v47 = vrot.slane %v4717_v26, %v9354_v59  ;;  %4741 = vrot.lane.b32.xlu0 %v4695_v6, %s9146_s22 }
0x1eaf   :  { %v4725_v5 = vcombine.high %v4724_v47, %v4724_v47 }
0x1eb1   :  { %4745 = vrot.lane.b32.xlu0 %v4725_v5, %s9146_s22 }
0x1eb2   :  { %v8599_v55 = vpop.permute.xlu1 %8598 }
0x1eb3   :  { %v8601_v19 = vunpack.i.h.bf16 %v8599_v55  ;;  %v8600_v56 = vunpack.i.l.bf16 %v8599_v55 }
0x1eb5   :  { %v4676_v7 = vrot.slane %v8601_v19, %v9374_v39  ;;  %v4667_v3 = vrot.slane %v8600_v56, %v9374_v39 }
0x1eb6   :  { %v4773_v28 = vpop.permute.xlu1 %4772 }
0x1eb7   :  { %v8594_v18 = vpop.permute.xlu0 %8593  ;;  %v4778_v9 = vrot.slane %v4773_v28, %v9374_v39 }
0x1eb8   :  { %v8596_v20 = vunpack.i.h.bf16 %v8594_v18  ;;  %v8595_v4 = vunpack.i.l.bf16 %v8594_v18 }
0x1eb9   :  { %v4798_v16 = vmul.f32 %v4778_v9, %v10447_v21 }
0x1eba   :  { %v4791_v48 = vpop.permute.xlu1 %4790  ;;  %v4658_v14 = vrot.slane %v8596_v20, %v9374_v39  ;;  %v4649_v23 = vrot.slane %v8595_v4, %v9374_v39 }
0x1ebb   :  { %v4764_v61 = vpop.permute.xlu0 %4763  ;;  %v4796_v63 = vrot.slane %v4791_v48, %v9374_v39 }
0x1ebc   :  { %v4769_v31 = vrot.slane %v4764_v61, %v9374_v39 }
0x1ebd   :  { %v4800_v32 = vmul.f32 %v4796_v63, %v10452_v30 }
0x1ebe   :  { %v4797_v13 = vmul.f32 %v4769_v31, %v10442_v11 }
0x1ebf   :  { %v4782_v2 = vpop.permute.xlu0 %4781 }
0x1ec0   :  { %v4787_v35 = vrot.slane %v4782_v2, %v9374_v39 }
0x1ec2   :  { %v4799_v58 = vmul.f32 %v4787_v35, %v10454_v62 }
0x1f16   :  { %v4744_v51 = vpop.permute.xlu1 %4743 }
0x1f17   :  { %v4754_v60 = vmul.f32 %v4744_v51, %v4658_v14 }
0x1f19   :  { %4806 = vst.msk [vmem:[#allocation2 + $0x1a] sm:$0x1] %vm570_vm6, %v4754_v60  ;;  %v10559_v34 = vadd.f32 %v4798_v16, %v4754_v60 }
0x1f1e   :  { %v4748_v53 = vpop.permute.xlu1 %4747 }
0x1f1f   :  { %v4756_v46 = vmul.f32 %v4748_v53, %v4676_v7  ;;  %v4742_v54 = vpop.permute.xlu0 %4741 }
0x1f20   :  { %v4753_v50 = vmul.f32 %v4742_v54, %v4649_v23 }
0x1f21   :  { %4808 = vst.msk [vmem:[#allocation2 + $0x3a] sm:$0x1] %vm570_vm6, %v4756_v46  ;;  %v10561_v44 = vadd.f32 %v4800_v32, %v4756_v46 }
0x1f22   :  { %v10553_v10 = vadd.f32 %v4797_v13, %v4753_v50  ;;  %4805 = vst.msk [vmem:[#allocation2 + $0xa] sm:$0x1] %vm570_vm6, %v4753_v50 }
0x1f23   :  { %v4746_v36 = vpop.permute.xlu0 %4745 }
0x1f24   :  { %v4755_v11 = vmul.f32 %v4746_v36, %v4667_v3  ;;  %v4813_v41 = vcombine.low %v10553_v10, %v10559_v34 }
0x1f26   :  { %v10565_v21 = vadd.f32 %v4799_v58, %v4755_v11  ;;  %4807 = vst.msk [vmem:[#allocation2 + $0x2a] sm:$0x1] %vm570_vm6, %v4755_v11  ;;  %v4821_v42 = vrot.slane %v4813_v41, %v9354_v59  ;;  %v5021_v58 = vrot.slane %v10559_v34, %v9374_v39  ;;  %v5017_v11 = vrot.slane %v10553_v10, %v9374_v39 }
0x1f28   :  { %v4814_v15 = vcombine.low %v10565_v21, %v10561_v44 }
0x1f2a   :  { %v4828_v30 = vrot.slane %v4814_v15, %v9354_v59 }
0x1f2c   :  { %v4829_v62 = vcombine.low %v4821_v42, %v4828_v30 }
0x1f2e   :  { %v4836_v57 = vrot.slane %v4829_v62, %v9354_v59 }
0x1f30   :  { %8228 = vmatmul.mubr.msk.f32.vlgmr.msra.gmra.mrb[12].mxu1 %vm203_vm7, %v4836_v57 }
0x1f31   :  { %8425 = vmatpush3.bf16.msra.mxu1 %v9230_v8  ;;  %8249 = vmatprep.mubr.msk.f32.mxu1 %vm9142_vm0, %v9143_v1 }
0x1f32   :  { %8426 = vmatprep.subr.bf16.mxu1 %v9141_v0 }
0x1f35   :  { %8428 = vmatpush3.bf16.msra.mxu1 %v9240_v12 }
0x1f36   :  { %8435 = vmatprep.subr.bf16.mxu1 %v9141_v0 }
0x2003   :  { %v4905_v45 = vpop.f32.mrb[12].mxu1 }
0x2004   :  { %v8229_v27 = vpop.f32.mrb[13].mxu1  ;;  %v4945_v49 = vadd.f32 %v4905_v45, %v9275_v24  ;;  %v4910_v6 = vrot.slane %v4905_v45, 5  ;;  %v4911_v47 = vrot.slane %v4905_v45, 6  ;;  %v4912_v55 = vrot.slane %v4905_v45, 7 }
0x2005   :  { %v4920_v18 = vadd.f32 %v4905_v45, %v9285_v38 }
0x2006   :  { %v4948_v52 = vrot.slane %v4945_v49, 6  ;;  %v4947_v25 = vrot.slane %v4945_v49, 5  ;;  %v4949_v26 = vrot.slane %v4945_v49, 7  ;;  %v4917_v5 = vadd.f32 %v4910_v6, %v9273_v22 }
0x2007   :  { %v4918_v28 = vadd.f32 %v4911_v47, %v9277_v29  ;;  %v4919_v48 = vadd.f32 %v4912_v55, %v9281_v33  ;;  %v7904_v14 = vmul.f32 -1.442695, %v4920_v18  ;;  %v7906_v6 = vsel %vm5051_vm13, 1.0, %v9143_v1 }
0x2008   :  { %4952 = vrot.lane.b32.xlu1 %v4948_v52, %s9144_s14  ;;  %4950 = vrot.lane.b32.xlu0 %v4947_v25, %s9144_s14  ;;  %v7901_v20 = vmul.f32 -1.442695, %v4917_v5  ;;  %v5025_v5 = vrot.slane %v10565_v21, %v9374_v39  ;;  %v7908_v55 = vsel %vm5053_vm15, 1.0, %v9143_v1  ;;  %v5183_v18 = vsub.f32 1.0, %v7906_v6 }
0x2009   :  { %v7902_v61 = vmul.f32 -1.442695, %v4918_v28  ;;  %v7903_v51 = vmul.f32 -1.442695, %v4919_v48  ;;  %v5029_v28 = vrot.slane %v10561_v44, %v9374_v39  ;;  %v8607_v17 = vpack.i.bf16 %v7908_v55, %v7907_v43 }
0x200a   :  { %8916 = vpow2.f32 %v7901_v20  ;;  %v5184_v20 = vsub.f32 1.0, %v7907_v43  ;;  %v5185_v48 = vsub.f32 1.0, %v7908_v55 }
0x200b   :  { %8918 = vpow2.f32 %v7902_v61 }
0x200c   :  { %4956 = vrot.lane.b32.xlu1 %v4945_v49, %s9144_s14  ;;  %4954 = vrot.lane.b32.xlu0 %v4949_v26, %s9144_s14  ;;  %8920 = vpow2.f32 %v7904_v14  ;;  %v7905_v26 = vsel %vm5050_vm12, 1.0, %v9143_v1 }
0x200d   :  { %8922 = vpow2.f32 %v7903_v51  ;;  %v8602_v37 = vpack.i.bf16 %v7906_v6, %v7905_v26  ;;  %v5182_v40 = vsub.f32 1.0, %v7905_v26 }
0x2014   :  { %v8917_v60 = vpop.eup %8916 }
0x2015   :  { %v8919_v19 = vpop.eup %8918  ;;  %v4933_v4 = vadd.f32 1.0, %v8917_v60 }
0x2016   :  { %v8921_v2 = vpop.eup %8920  ;;  %v4934_v31 = vadd.f32 1.0, %v8919_v19 }
0x2017   :  { %v8923_v7 = vpop.eup %8922  ;;  %v4936_v56 = vadd.f32 1.0, %v8921_v2  ;;  %8924 = vrcp.f32 %v4933_v4 }
0x2018   :  { %v4935_v9 = vadd.f32 1.0, %v8923_v7  ;;  %8926 = vrcp.f32 %v4934_v31 }
0x2019   :  { %8928 = vrcp.f32 %v4936_v56 }
0x201a   :  { %8930 = vrcp.f32 %v4935_v9 }
0x2021   :  { %v10589_v53 = vpop.eup %8924 }
0x2022   :  { %v10591_v23 = vpop.eup %8926  ;;  %v4990_v51 = vsub.f32 1.0, %v10589_v53 }
0x2023   :  { %v10595_v35 = vpop.eup %8928  ;;  %v4991_v9 = vsub.f32 1.0, %v10591_v23 }
0x2024   :  { %v10599_v50 = vpop.eup %8930 }
0x207a   :  { %v4953_v46 = vpop.permute.xlu1 %4952  ;;  %v4951_v54 = vpop.permute.xlu0 %4950 }
0x207b   :  { %v4963_v63 = vmul.f32 %v10591_v23, %v4953_v46  ;;  %v4962_v13 = vmul.f32 %v10589_v53, %v4951_v54  ;;  %v4992_v54 = vsub.f32 1.0, %v10599_v50 }
0x207d   :  { %4972 = vrot.lane.b32.xlu1 %v4963_v63, %s9144_s14  ;;  %4970 = vrot.lane.b32.xlu0 %v4962_v13, %s9144_s14 }
0x207e   :  { %v4957_v16 = vpop.permute.xlu1 %4956  ;;  %v4955_v3 = vpop.permute.xlu0 %4954 }
0x207f   :  { %v4965_v36 = vmul.f32 %v10595_v35, %v4957_v16  ;;  %v4964_v32 = vmul.f32 %v10599_v50, %v4955_v3 }
0x2081   :  { %4976 = vrot.lane.b32.xlu1 %v4965_v36, %s9144_s14  ;;  %4974 = vrot.lane.b32.xlu0 %v4964_v32, %s9144_s14 }
0x2085   :  { %5032 = vrot.lane.b32.xlu1 %v5021_v58, %s9148_s23  ;;  %5030 = vrot.lane.b32.xlu0 %v5017_v11, %s9148_s23  ;;  %v4993_v58 = vsub.f32 1.0, %v10595_v35 }
0x20ef   :  { %v4973_v41 = vpop.permute.xlu1 %4972  ;;  %v4971_v15 = vpop.permute.xlu0 %4970 }
0x20f0   :  { %v4982_v42 = vadd.f32 %v4971_v15, %v9273_v22  ;;  %v4983_v27 = vadd.f32 %v4973_v41, %v9277_v29 }
0x20f2   :  { %8932 = vtanh.f32 %v4982_v42 }
0x20f3   :  { %v4977_v30 = vpop.permute.xlu1 %4976  ;;  %v4975_v62 = vpop.permute.xlu0 %4974 }
0x20f4   :  { %v4985_v57 = vadd.f32 %v4977_v30, %v9285_v38  ;;  %v4984_v45 = vadd.f32 %v4975_v62, %v9281_v33 }
0x20f6   :  { %8934 = vtanh.f32 %v4985_v57 }
0x20f7   :  { %8936 = vtanh.f32 %v4984_v45  ;;  %v5031_v61 = vpop.permute.xlu0 %5030  ;;  %v5033_v14 = vpop.permute.xlu1 %5032 }
0x20f8   :  { %8938 = vtanh.f32 %v4983_v27  ;;  %v5042_v19 = vmul.f32 %v10589_v53, %v5031_v61  ;;  %v5043_v13 = vmul.f32 %v10591_v23, %v5033_v14 }
0x20fc   :  { %v8933_v49 = vpop.eup %8932 }
0x20fd   :  { %4998 = vrot.lane.b32.xlu0 %v8933_v49, %s9146_s22 }
0x2100   :  { %v8935_v52 = vpop.eup %8934 }
0x2101   :  { %v8937_v25 = vpop.eup %8936  ;;  %5004 = vrot.lane.b32.xlu1 %v8935_v52, %s9146_s22 }
0x2102   :  { %5002 = vrot.lane.b32.xlu0 %v8937_v25, %s9146_s22  ;;  %v8939_v47 = vpop.eup %8938 }
0x2105   :  { %5000 = vrot.lane.b32.xlu1 %v8939_v47, %s9146_s22 }
0x2106   :  { %5034 = vrot.lane.b32.xlu0 %v5025_v5, %s9148_s23 }
0x2109   :  { %5036 = vrot.lane.b32.xlu1 %v5029_v28, %s9148_s23 }
0x210a   :  { %8603 = vperm.xlu0 %8496, %v8602_v37  }
0x210d   :  { %8608 = vperm.xlu1 %8490, %v8607_v17  }
0x210e   :  { %5188 = vperm.xlu0 %8496, %v5182_v40  }
0x2111   :  { %5197 = vperm.xlu1 %8490, %v5183_v18  }
0x2112   :  { %5206 = vperm.xlu0 %8496, %v5184_v20  }
0x2115   :  { %5215 = vperm.xlu1 %8490, %v5185_v48  }
0x216f   :  { %v4999_v60 = vpop.permute.xlu0 %4998 }
0x2170   :  { %v5010_v4 = vmul.f32 %v4999_v60, %v4990_v51 }
0x2172   :  { %v5046_v2 = vadd.f32 %v5042_v19, %v5010_v4 }
0x2173   :  { %v5005_v31 = vpop.permute.xlu1 %5004 }
0x2174   :  { %v5003_v7 = vpop.permute.xlu0 %5002  ;;  %v5108_v56 = vrot.slane %v5046_v2, %v9354_v59  ;;  %v5013_v30 = vmul.f32 %v5005_v31, %v4993_v58 }
0x2175   :  { %v5012_v36 = vmul.f32 %v5003_v7, %v4992_v54 }
0x2176   :  { %v5109_v46 = vcombine.high %v5108_v56, %v5108_v56 }
0x2177   :  { %v5001_v63 = vpop.permute.xlu1 %5000 }
0x2178   :  { %v5011_v16 = vmul.f32 %v5001_v63, %v4991_v9  ;;  %v5035_v3 = vpop.permute.xlu0 %5034  ;;  %v5116_v53 = vrot.slane %v5109_v46, %v9354_v59 }
0x2179   :  { %v5044_v32 = vmul.f32 %v10599_v50, %v5035_v3 }
0x217a   :  { %v5047_v11 = vadd.f32 %v5043_v13, %v5011_v16  ;;  %v5117_v42 = vcombine.high %v5116_v53, %v5116_v53 }
0x217b   :  { %v5048_v41 = vadd.f32 %v5044_v32, %v5012_v36  ;;  %v5037_v15 = vpop.permute.xlu1 %5036 }
0x217c   :  { %v5124_v62 = vrot.slane %v5047_v11, %v9354_v59  ;;  %v5045_v57 = vmul.f32 %v10595_v35, %v5037_v15  ;;  %5166 = vrot.lane.b32.xlu0 %v5117_v42, %s9146_s22 }
0x217d   :  { %v5140_v23 = vrot.slane %v5048_v41, %v9354_v59 }
0x217e   :  { %v5125_v45 = vcombine.high %v5124_v62, %v5124_v62  ;;  %v5049_v27 = vadd.f32 %v5045_v57, %v5013_v30 }
0x217f   :  { %v5141_v50 = vcombine.high %v5140_v23, %v5140_v23 }
0x2180   :  { %v5156_v49 = vrot.slane %v5049_v27, %v9354_v59  ;;  %v5132_v52 = vrot.slane %v5125_v45, %v9354_v59 }
0x2181   :  { %v5148_v25 = vrot.slane %v5141_v50, %v9354_v59 }
0x2182   :  { %v5157_v26 = vcombine.high %v5156_v49, %v5156_v49  ;;  %v5133_v6 = vcombine.high %v5132_v52, %v5132_v52 }
0x2183   :  { %v5149_v47 = vcombine.high %v5148_v25, %v5148_v25 }
0x2184   :  { %5168 = vrot.lane.b32.xlu1 %v5133_v6, %s9146_s22  ;;  %v5164_v35 = vrot.slane %v5157_v26, %v9354_v59 }
0x2185   :  { %5170 = vrot.lane.b32.xlu0 %v5149_v47, %s9146_s22 }
0x2186   :  { %v5165_v5 = vcombine.high %v5164_v35, %v5164_v35 }
0x2188   :  { %5172 = vrot.lane.b32.xlu1 %v5165_v5, %s9146_s22 }
0x2189   :  { %v8604_v37 = vpop.permute.xlu0 %8603 }
0x218a   :  { %v8605_v28 = vunpack.i.l.bf16 %v8604_v37  ;;  %v8606_v61 = vunpack.i.h.bf16 %v8604_v37 }
0x218c   :  { %v8609_v55 = vpop.permute.xlu1 %8608  ;;  %v5070_v18 = vrot.slane %v8605_v28, %v9374_v39  ;;  %v5079_v2 = vrot.slane %v8606_v61, %v9374_v39 }
0x218d   :  { %v5189_v43 = vpop.permute.xlu0 %5188  ;;  %v8610_v14 = vunpack.i.l.bf16 %v8609_v55  ;;  %v8611_v19 = vunpack.i.h.bf16 %v8609_v55 }
0x218e   :  { %v5194_v4 = vrot.slane %v5189_v43, %v9374_v39 }
0x218f   :  { %v5088_v7 = vrot.slane %v8610_v14, %v9374_v39  ;;  %v5097_v36 = vrot.slane %v8611_v19, %v9374_v39 }
0x2190   :  { %v5198_v40 = vpop.permute.xlu1 %5197  ;;  %v5222_v16 = vmul.f32 %v5194_v4, %v10553_v10 }
0x2191   :  { %v5207_v17 = vpop.permute.xlu0 %5206  ;;  %v5203_v60 = vrot.slane %v5198_v40, %v9374_v39 }
0x2192   :  { %v5212_v9 = vrot.slane %v5207_v17, %v9374_v39 }
0x2193   :  { %v5223_v56 = vmul.f32 %v5203_v60, %v10559_v34 }
0x2194   :  { %v5216_v51 = vpop.permute.xlu1 %5215  ;;  %v5224_v34 = vmul.f32 %v5212_v9, %v10565_v21 }
0x2195   :  { %v5221_v46 = vrot.slane %v5216_v51, %v9374_v39 }
0x2197   :  { %v5225_v53 = vmul.f32 %v5221_v46, %v10561_v44 }
0x21ee   :  { %v5167_v20 = vpop.permute.xlu0 %5166 }
0x21ef   :  { %v5178_v48 = vmul.f32 %v5167_v20, %v5070_v18 }
0x21f1   :  { %5230 = vst.msk [vmem:[#allocation2 + $0xb] sm:$0x1] %vm570_vm6, %v5178_v48  ;;  %v10670_v58 = vadd.f32 %v5222_v16, %v5178_v48 }
0x21f6   :  { %v5169_v31 = vpop.permute.xlu1 %5168 }
0x21f7   :  { %v5179_v54 = vmul.f32 %v5169_v31, %v5079_v2  ;;  %v5171_v63 = vpop.permute.xlu0 %5170 }
0x21f8   :  { %v5180_v13 = vmul.f32 %v5171_v63, %v5088_v7 }
0x21f9   :  { %v10663_v3 = vadd.f32 %v5223_v56, %v5179_v54  ;;  %5231 = vst.msk [vmem:[#allocation2 + $0x1b] sm:$0x1] %vm570_vm6, %v5179_v54 }
0x21fa   :  { %5232 = vst.msk [vmem:[#allocation2 + $0x2b] sm:$0x1] %vm570_vm6, %v5180_v13  ;;  %v5173_v32 = vpop.permute.xlu1 %5172  ;;  %v10674_v10 = vadd.f32 %v5224_v34, %v5180_v13  ;;  %v5444_v34 = vrot.slane %v10670_v58, %v9374_v39 }
0x21fb   :  { %v5181_v11 = vmul.f32 %v5173_v32, %v5097_v36  ;;  %v5238_v41 = vcombine.low %v10670_v58, %v10663_v3  ;;  %v5448_v32 = vrot.slane %v10663_v3, %v9374_v39 }
0x21fd   :  { %v10676_v15 = vadd.f32 %v5225_v53, %v5181_v11  ;;  %5233 = vst.msk [vmem:[#allocation2 + $0x3b] sm:$0x1] %vm570_vm6, %v5181_v11  ;;  %v5246_v30 = vrot.slane %v5238_v41, %v9354_v59 }
0x21ff   :  { %v5239_v42 = vcombine.low %v10674_v10, %v10676_v15 }
0x2201   :  { %v5253_v21 = vrot.slane %v5239_v42, %v9354_v59 }
0x2203   :  { %v5254_v44 = vcombine.low %v5246_v30, %v5253_v21 }
0x2205   :  { %v5261_v62 = vrot.slane %v5254_v44, %v9354_v59 }
0x2207   :  { %8239 = vmatmul.mubr.msk.f32.vlgmr.msra.gmra.mrb[18].mxu0 %vm203_vm7, %v5261_v62 }
0x2208   :  { %8431 = vmatpush3.bf16.msra.mxu0 %v9230_v8  ;;  %8260 = vmatprep.mubr.msk.f32.mxu0 %vm9142_vm0, %v9143_v1 }
0x2209   :  { %8432 = vmatprep.subr.bf16.mxu0 %v9141_v0 }
0x220c   :  { %8434 = vmatpush3.bf16.msra.mxu0 %v9240_v12 }
0x220d   :  { %8441 = vmatprep.subr.bf16.mxu0 %v9141_v0 }
0x22da   :  { %v5330_v57 = vpop.f32.mrb[18].mxu0 }
0x22db   :  { %v8240_v23 = vpop.f32.mrb[19].mxu0  ;;  %v5371_v45 = vadd.f32 %v5330_v57, %v9275_v24  ;;  %v5335_v25 = vrot.slane %v5330_v57, 4  ;;  %v5336_v26 = vrot.slane %v5330_v57, 5  ;;  %v5337_v6 = vrot.slane %v5330_v57, 6 }
0x22dc   :  { %v5338_v35 = vrot.slane %v5330_v57, 7 }
0x22dd   :  { %v5374_v27 = vrot.slane %v5371_v45, 5  ;;  %v5373_v50 = vrot.slane %v5371_v45, 4  ;;  %v5376_v49 = vrot.slane %v5371_v45, 7  ;;  %v5375_v52 = vrot.slane %v5371_v45, 6  ;;  %v10731_v45 = vld [vmem:[%s11262_s5 + $0x2] sm:$0x1] }
0x22de   :  { %v5343_v47 = vadd.f32 %v5335_v25, %v9273_v22  ;;  %v5344_v5 = vadd.f32 %v5336_v26, %v9277_v29  ;;  %v5345_v37 = vadd.f32 %v5337_v6, %v9281_v33  ;;  %v5346_v55 = vadd.f32 %v5338_v35, %v9285_v38 }
0x22df   :  { %5379 = vrot.lane.b32.xlu1 %v5374_v27, %s9144_s14  ;;  %5377 = vrot.lane.b32.xlu0 %v5373_v50, %s9144_s14  ;;  %vm5479_vm2 = vcmp.gt.s32.totalorder %v10731_v45, 12  ;;  %v10737_v27 = vld [vmem:[%s11262_s5 + $0x3] sm:$0x1]  ;;  %vm5902_vm8 = vcmp.gt.s32.totalorder %v10731_v45, 13  ;;  %vm6329_vm12 = vcmp.gt.s32.totalorder %v10731_v45, 14 }
0x22e0   :  { %v7910_v43 = vmul.f32 -1.442695, %v5343_v47  ;;  %v7911_v28 = vmul.f32 -1.442695, %v5344_v5  ;;  %v7912_v17 = vmul.f32 -1.442695, %v5345_v37  ;;  %v5456_v47 = vrot.slane %v10676_v15, %v9374_v39 }
0x22e1   :  { %v7913_v40 = vmul.f32 -1.442695, %v5346_v55  ;;  %vm5480_vm3 = vcmp.gt.s32.totalorder %v10737_v27, 12  ;;  %v7916_v26 = vsel %vm5479_vm2, 1.0, %v9143_v1  ;;  %v5452_v37 = vrot.slane %v10674_v10, %v9374_v39 }
0x22e2   :  { %8940 = vpow2.f32 %v7910_v43  ;;  %v7917_v6 = vsel %vm5480_vm3, 1.0, %v9143_v1  ;;  %vm5903_vm9 = vcmp.gt.s32.totalorder %v10737_v27, 13  ;;  %vm6330_vm13 = vcmp.gt.s32.totalorder %v10737_v27, 14 }
0x22e3   :  { %5383 = vrot.lane.b32.xlu1 %v5376_v49, %s9144_s14  ;;  %5381 = vrot.lane.b32.xlu0 %v5375_v52, %s9144_s14  ;;  %8942 = vpow2.f32 %v7911_v28  ;;  %v10743_v49 = vld [vmem:[%s11262_s5] sm:$0x1]  ;;  %v10749_v52 = vld [vmem:[%s11262_s5 + $0x1] sm:$0x1]  ;;  %v8617_v43 = vpack.i.bf16 %v7917_v6, %v7916_v26 }
0x22e4   :  { %8944 = vpow2.f32 %v7912_v17  ;;  %vm5477_vm4 = vcmp.gt.s32.totalorder %v10743_v49, 12  ;;  %vm5478_vm5 = vcmp.gt.s32.totalorder %v10749_v52, 12  ;;  %vm5900_vm10 = vcmp.gt.s32.totalorder %v10743_v49, 13 }
0x22e5   :  { %8946 = vpow2.f32 %v7913_v40  ;;  %v7914_v35 = vsel %vm5477_vm4, 1.0, %v9143_v1  ;;  %v7915_v5 = vsel %vm5478_vm5, 1.0, %v9143_v1  ;;  %v5608_v40 = vsub.f32 1.0, %v7917_v6 }
0x22e6   :  { %v8612_v55 = vpack.i.bf16 %v7915_v5, %v7914_v35  ;;  %v5606_v28 = vsub.f32 1.0, %v7915_v5  ;;  %v5605_v17 = vsub.f32 1.0, %v7914_v35  ;;  %vm5901_vm11 = vcmp.gt.s32.totalorder %v10749_v52, 13 }
0x22e7   :  { %vm6327_vm14 = vcmp.gt.s32.totalorder %v10743_v49, 14  ;;  %vm6328_vm15 = vcmp.gt.s32.totalorder %v10749_v52, 14 }
0x22e8   :  { %v7932_v45 = vsel %vm6327_vm14, 1.0, %v9143_v1  ;;  %v7933_v27 = vsel %vm6328_vm15, 1.0, %v9143_v1 }
0x22ec   :  { %v8941_v18 = vpop.eup %8940 }
0x22ed   :  { %v8943_v20 = vpop.eup %8942  ;;  %v5359_v48 = vadd.f32 1.0, %v8941_v18  ;;  %v5607_v18 = vsub.f32 1.0, %v7916_v26 }
0x22ee   :  { %v8945_v61 = vpop.eup %8944  ;;  %v5360_v14 = vadd.f32 1.0, %v8943_v20 }
0x22ef   :  { %v8947_v51 = vpop.eup %8946  ;;  %v5361_v60 = vadd.f32 1.0, %v8945_v61  ;;  %8948 = vrcp.f32 %v5359_v48 }
0x22f0   :  { %v5362_v19 = vadd.f32 1.0, %v8947_v51  ;;  %8950 = vrcp.f32 %v5360_v14 }
0x22f1   :  { %8952 = vrcp.f32 %v5361_v60 }
0x22f2   :  { %8954 = vrcp.f32 %v5362_v19 }
0x22f9   :  { %v10700_v4 = vpop.eup %8948 }
0x22fa   :  { %v10702_v2 = vpop.eup %8950  ;;  %v5417_v51 = vsub.f32 1.0, %v10700_v4 }
0x22fb   :  { %v10706_v46 = vpop.eup %8952  ;;  %v5418_v61 = vsub.f32 1.0, %v10702_v2 }
0x22fc   :  { %v10710_v54 = vpop.eup %8954 }
0x2351   :  { %v5380_v31 = vpop.permute.xlu1 %5379  ;;  %v5378_v7 = vpop.permute.xlu0 %5377 }
0x2352   :  { %v5390_v56 = vmul.f32 %v10702_v2, %v5380_v31  ;;  %v5389_v9 = vmul.f32 %v10700_v4, %v5378_v7 }
0x2354   :  { %5399 = vrot.lane.b32.xlu1 %v5390_v56, %s9144_s14  ;;  %5397 = vrot.lane.b32.xlu0 %v5389_v9, %s9144_s14 }
0x2355   :  { %v5384_v63 = vpop.permute.xlu1 %5383  ;;  %v5382_v13 = vpop.permute.xlu0 %5381 }
0x2356   :  { %v5392_v16 = vmul.f32 %v10710_v54, %v5384_v63  ;;  %v5391_v36 = vmul.f32 %v10706_v46, %v5382_v13 }
0x2358   :  { %5403 = vrot.lane.b32.xlu1 %v5392_v16, %s9144_s14  ;;  %5401 = vrot.lane.b32.xlu0 %v5391_v36, %s9144_s14 }
0x235c   :  { %5459 = vrot.lane.b32.xlu1 %v5448_v32, %s9148_s23  ;;  %5457 = vrot.lane.b32.xlu0 %v5444_v34, %s9148_s23 }
0x23c6   :  { %v5400_v53 = vpop.permute.xlu1 %5399  ;;  %v5398_v11 = vpop.permute.xlu0 %5397 }
0x23c7   :  { %v5410_v41 = vadd.f32 %v5400_v53, %v9277_v29  ;;  %v5409_v42 = vadd.f32 %v5398_v11, %v9273_v22  ;;  %v5420_v53 = vsub.f32 1.0, %v10710_v54 }
0x23c9   :  { %8956 = vtanh.f32 %v5410_v41  ;;  %v5419_v41 = vsub.f32 1.0, %v10706_v46 }
0x23ca   :  { %8958 = vtanh.f32 %v5409_v42  ;;  %v5404_v30 = vpop.permute.xlu1 %5403  ;;  %v5402_v21 = vpop.permute.xlu0 %5401 }
0x23cb   :  { %v5412_v44 = vadd.f32 %v5404_v30, %v9285_v38  ;;  %v5411_v62 = vadd.f32 %v5402_v21, %v9281_v33 }
0x23cd   :  { %8960 = vtanh.f32 %v5412_v44 }
0x23ce   :  { %8962 = vtanh.f32 %v5411_v62  ;;  %v5460_v20 = vpop.permute.xlu1 %5459  ;;  %v5458_v48 = vpop.permute.xlu0 %5457 }
0x23cf   :  { %v5470_v60 = vmul.f32 %v10702_v2, %v5460_v20  ;;  %v5469_v7 = vmul.f32 %v10700_v4, %v5458_v48 }
0x23d3   :  { %v8957_v57 = vpop.eup %8956 }
0x23d4   :  { %v8959_v23 = vpop.eup %8958  ;;  %5427 = vrot.lane.b32.xlu1 %v8957_v57, %s9146_s22 }
0x23d5   :  { %5425 = vrot.lane.b32.xlu0 %v8959_v23, %s9146_s22 }
0x23d7   :  { %v8961_v50 = vpop.eup %8960 }
0x23d8   :  { %v8963_v25 = vpop.eup %8962  ;;  %5431 = vrot.lane.b32.xlu1 %v8961_v50, %s9146_s22 }
0x23d9   :  { %5429 = vrot.lane.b32.xlu0 %v8963_v25, %s9146_s22 }
0x23dc   :  { %5463 = vrot.lane.b32.xlu1 %v5456_v47, %s9148_s23 }
0x23dd   :  { %5461 = vrot.lane.b32.xlu0 %v5452_v37, %s9148_s23 }
0x23e0   :  { %8618 = vperm.xlu1 %8490, %v8617_v43  }
0x23e1   :  { %8613 = vperm.xlu0 %8496, %v8612_v55  }
0x23e4   :  { %5620 = vperm.xlu1 %8490, %v5606_v28  }
0x23e5   :  { %5611 = vperm.xlu0 %8496, %v5605_v17  }
0x23e8   :  { %5638 = vperm.xlu1 %8490, %v5608_v40  }
0x23e9   :  { %5629 = vperm.xlu0 %8496, %v5607_v18  }
0x2446   :  { %v5428_v14 = vpop.permute.xlu1 %5427 }
0x2447   :  { %v5438_v19 = vmul.f32 %v5428_v14, %v5418_v61  ;;  %v5426_v31 = vpop.permute.xlu0 %5425 }
0x2448   :  { %v5437_v56 = vmul.f32 %v5426_v31, %v5417_v51 }
0x2449   :  { %v5474_v9 = vadd.f32 %v5470_v60, %v5438_v19 }
0x244a   :  { %v5473_v63 = vadd.f32 %v5469_v7, %v5437_v56  ;;  %v5432_v13 = vpop.permute.xlu1 %5431 }
0x244b   :  { %v5544_v16 = vcombine.high %v5474_v9, %v5474_v9  ;;  %v5430_v36 = vpop.permute.xlu0 %5429  ;;  %v5440_v30 = vmul.f32 %v5432_v13, %v5420_v53 }
0x244c   :  { %v5529_v32 = vcombine.high %v5473_v63, %v5473_v63  ;;  %v5439_v62 = vmul.f32 %v5430_v36, %v5419_v41 }
0x244d   :  { %v5551_v34 = vrot.slane %v5544_v16, %v9354_v59 }
0x244e   :  { %v5536_v11 = vrot.slane %v5529_v32, %v9354_v59  ;;  %v5464_v2 = vpop.permute.xlu1 %5463 }
0x244f   :  { %v5558_v42 = vrot.slane %v5551_v34, %v9354_v59  ;;  %v5472_v4 = vmul.f32 %v10710_v54, %v5464_v2  ;;  %v5462_v21 = vpop.permute.xlu0 %5461 }
0x2450   :  { %v5543_v44 = vrot.slane %v5536_v11, %v9354_v59  ;;  %v5471_v57 = vmul.f32 %v10706_v46, %v5462_v21 }
0x2451   :  { %v5476_v23 = vadd.f32 %v5472_v4, %v5440_v30  ;;  %5591 = vrot.lane.b32.xlu1 %v5558_v42, %s9146_s22 }
0x2452   :  { %v5475_v50 = vadd.f32 %v5471_v57, %v5439_v62  ;;  %5589 = vrot.lane.b32.xlu0 %v5543_v44, %s9146_s22 }
0x2453   :  { %v5574_v25 = vcombine.high %v5476_v23, %v5476_v23 }
0x2454   :  { %v5559_v26 = vcombine.high %v5475_v50, %v5475_v50 }
0x2455   :  { %v5581_v6 = vrot.slane %v5574_v25, %v9354_v59 }
0x2456   :  { %v5566_v47 = vrot.slane %v5559_v26, %v9354_v59 }
0x2457   :  { %v5588_v54 = vrot.slane %v5581_v6, %v9354_v59 }
0x2458   :  { %v5573_v35 = vrot.slane %v5566_v47, %v9354_v59 }
0x2459   :  { %5595 = vrot.lane.b32.xlu1 %v5588_v54, %s9146_s22 }
0x245a   :  { %5593 = vrot.lane.b32.xlu0 %v5573_v35, %s9146_s22 }
0x245f   :  { %v8619_v46 = vpop.permute.xlu1 %8618 }
0x2460   :  { %v8614_v5 = vpop.permute.xlu0 %8613  ;;  %v8621_v31 = vunpack.i.h.bf16 %v8619_v46  ;;  %v8620_v7 = vunpack.i.l.bf16 %v8619_v46 }
0x2461   :  { %v8616_v55 = vunpack.i.h.bf16 %v8614_v5  ;;  %v8615_v28 = vunpack.i.l.bf16 %v8614_v5 }
0x2462   :  { %v5524_v16 = vrot.slane %v8621_v31, %v9374_v39  ;;  %v5515_v53 = vrot.slane %v8620_v7, %v9374_v39 }
0x2463   :  { %v5621_v37 = vpop.permute.xlu1 %5620  ;;  %v5506_v18 = vrot.slane %v8616_v55, %v9374_v39  ;;  %v5497_v48 = vrot.slane %v8615_v28, %v9374_v39 }
0x2464   :  { %v5612_v43 = vpop.permute.xlu0 %5611  ;;  %v5626_v51 = vrot.slane %v5621_v37, %v9374_v39 }
0x2465   :  { %v5617_v60 = vrot.slane %v5612_v43, %v9374_v39 }
0x2466   :  { %v5646_v9 = vmul.f32 %v5626_v51, %v10663_v3 }
0x2467   :  { %v5639_v17 = vpop.permute.xlu1 %5638  ;;  %v5645_v63 = vmul.f32 %v5617_v60, %v10670_v58 }
0x2468   :  { %v5630_v40 = vpop.permute.xlu0 %5629  ;;  %v5644_v56 = vrot.slane %v5639_v17, %v9374_v39 }
0x2469   :  { %v5635_v13 = vrot.slane %v5630_v40, %v9374_v39 }
0x246a   :  { %v5648_v11 = vmul.f32 %v5644_v56, %v10676_v15 }
0x246b   :  { %v5647_v42 = vmul.f32 %v5635_v13, %v10674_v10 }
0x24c3   :  { %v5592_v20 = vpop.permute.xlu1 %5591 }
0x24c4   :  { %v5602_v61 = vmul.f32 %v5592_v20, %v5506_v18  ;;  %v5590_v14 = vpop.permute.xlu0 %5589 }
0x24c5   :  { %v5601_v19 = vmul.f32 %v5590_v14, %v5497_v48 }
0x24c6   :  { %5654 = vst.msk [vmem:[#allocation2 + $0x1c] sm:$0x1] %vm570_vm6, %v5602_v61  ;;  %v10795_v36 = vadd.f32 %v5646_v9, %v5602_v61 }
0x24c7   :  { %5653 = vst.msk [vmem:[#allocation2 + $0xc] sm:$0x1] %vm570_vm6, %v5601_v19  ;;  %v10797_v32 = vadd.f32 %v5645_v63, %v5601_v19 }
0x24c9   :  { %v5661_v58 = vcombine.low %v10797_v32, %v10795_v36 }
0x24cb   :  { %v5596_v34 = vpop.permute.xlu1 %5595  ;;  %v5669_v15 = vrot.slane %v5661_v58, %v9354_v59 }
0x24cc   :  { %v5604_v41 = vmul.f32 %v5596_v34, %v5524_v16  ;;  %v5594_v2 = vpop.permute.xlu0 %5593 }
0x24cd   :  { %v5603_v3 = vmul.f32 %v5594_v2, %v5515_v53 }
0x24ce   :  { %v10802_v30 = vadd.f32 %v5648_v11, %v5604_v41  ;;  %5656 = vst.msk [vmem:[#allocation2 + $0x3c] sm:$0x1] %vm570_vm6, %v5604_v41 }
0x24cf   :  { %v10807_v4 = vadd.f32 %v5647_v42, %v5603_v3  ;;  %5655 = vst.msk [vmem:[#allocation2 + $0x2c] sm:$0x1] %vm570_vm6, %v5603_v3  ;;  %v5871_v42 = vrot.slane %v10795_v36, %v9374_v39  ;;  %v5867_v3 = vrot.slane %v10797_v32, %v9374_v39 }
0x24d1   :  { %v5662_v21 = vcombine.low %v10807_v4, %v10802_v30 }
0x24d3   :  { %v5676_v44 = vrot.slane %v5662_v21, %v9354_v59 }
0x24d5   :  { %v5677_v10 = vcombine.low %v5669_v15, %v5676_v44 }
0x24d7   :  { %v5684_v62 = vrot.slane %v5677_v10, %v9354_v59 }
0x24d9   :  { %8250 = vmatmul.mubr.msk.f32.vlgmr.msra.gmra.mrb[14].mxu1 %vm203_vm7, %v5684_v62 }
0x24da   :  { %8437 = vmatpush3.bf16.msra.mxu1 %v9230_v8  ;;  %8271 = vmatprep.mubr.msk.f32.mxu1 %vm9142_vm0, %v9143_v1 }
0x24db   :  { %8438 = vmatprep.subr.bf16.mxu1 %v9141_v0 }
0x24de   :  { %8440 = vmatpush3.bf16.msra.mxu1 %v9240_v12 }
0x24df   :  { %8445 = vmatprep.subr.bf16.mxu1 %v9141_v0 }
0x25ac   :  { %v5753_v57 = vpop.f32.mrb[14].mxu1 }
0x25ad   :  { %v8251_v23 = vpop.f32.mrb[15].mxu1  ;;  %v5794_v50 = vadd.f32 %v5753_v57, %v9275_v24  ;;  %v5758_v47 = vrot.slane %v5753_v57, 3  ;;  %v5759_v12 = vrot.slane %v5753_v57, 4  ;;  %v5760_v54 = vrot.slane %v5753_v57, 5 }
0x25ae   :  { %v5761_v46 = vrot.slane %v5753_v57, 6 }
0x25af   :  { %v5797_v25 = vrot.slane %v5794_v50, 4  ;;  %v5796_v26 = vrot.slane %v5794_v50, 3  ;;  %v5799_v8 = vrot.slane %v5794_v50, 6  ;;  %v5798_v6 = vrot.slane %v5794_v50, 5 }
0x25b0   :  { %v5766_v35 = vadd.f32 %v5758_v47, %v9273_v22  ;;  %v5767_v5 = vadd.f32 %v5759_v12, %v9277_v29  ;;  %v5768_v37 = vadd.f32 %v5760_v54, %v9281_v33  ;;  %v5769_v55 = vadd.f32 %v5761_v46, %v9285_v38 }
0x25b1   :  { %5802 = vrot.lane.b32.xlu1 %v5797_v25, %s9144_s14  ;;  %5800 = vrot.lane.b32.xlu0 %v5796_v26, %s9144_s14  ;;  %v7926_v47 = vsel %vm5903_vm9, 1.0, %v9143_v1  ;;  %v5879_v12 = vrot.slane %v10802_v30, %v9374_v39  ;;  %v7923_v54 = vsel %vm5900_vm10, 1.0, %v9143_v1  ;;  %v5875_v46 = vrot.slane %v10807_v4, %v9374_v39 }
0x25b2   :  { %v7919_v43 = vmul.f32 -1.442695, %v5766_v35  ;;  %v7920_v28 = vmul.f32 -1.442695, %v5767_v5  ;;  %v7921_v17 = vmul.f32 -1.442695, %v5768_v37 }
0x25b3   :  { %v7922_v40 = vmul.f32 -1.442695, %v5769_v55  ;;  %v7924_v35 = vsel %vm5901_vm11, 1.0, %v9143_v1  ;;  %v6032_v55 = vsub.f32 1.0, %v7923_v54  ;;  %vm7278_vm9 = vcmask 1042434  }
0x25b4   :  { %8964 = vpow2.f32 %v7919_v43  ;;  %v8622_v37 = vpack.i.bf16 %v7924_v35, %v7923_v54  ;;  %v6033_v43 = vsub.f32 1.0, %v7924_v35  ;;  %vm7281_vm10 = vcmask 1043459  }
0x25b5   :  { %5806 = vrot.lane.b32.xlu1 %v5799_v8, %s9144_s14  ;;  %5804 = vrot.lane.b32.xlu0 %v5798_v6, %s9144_s14  ;;  %8966 = vpow2.f32 %v7920_v28  ;;  %v7925_v6 = vsel %vm5902_vm8, 1.0, %v9143_v1  ;;  %v6035_v28 = vsub.f32 1.0, %v7926_v47  ;;  %vm11132_vm8 = vmpackc.low %vm203_vm7, %vm203_vm7  ;;  %vm7284_vm11 = vcmask 125952  }
0x25b6   :  { %8968 = vpow2.f32 %v7921_v17  ;;  %v8627_v5 = vpack.i.bf16 %v7926_v47, %v7925_v6  ;;  %v6034_v17 = vsub.f32 1.0, %v7925_v6 }
0x25b7   :  { %8970 = vpow2.f32 %v7922_v40 }
0x25be   :  { %v8965_v18 = vpop.eup %8964 }
0x25bf   :  { %v8967_v20 = vpop.eup %8966  ;;  %v5782_v48 = vadd.f32 1.0, %v8965_v18 }
0x25c0   :  { %v8969_v61 = vpop.eup %8968  ;;  %v5783_v14 = vadd.f32 1.0, %v8967_v20 }
0x25c1   :  { %v8971_v51 = vpop.eup %8970  ;;  %v5784_v60 = vadd.f32 1.0, %v8969_v61  ;;  %8972 = vrcp.f32 %v5782_v48 }
0x25c2   :  { %v5785_v19 = vadd.f32 1.0, %v8971_v51  ;;  %8974 = vrcp.f32 %v5783_v14 }
0x25c3   :  { %8976 = vrcp.f32 %v5784_v60 }
0x25c4   :  { %8978 = vrcp.f32 %v5785_v19 }
0x25cb   :  { %v10831_v31 = vpop.eup %8972 }
0x25cc   :  { %v10833_v7 = vpop.eup %8974  ;;  %v5840_v61 = vsub.f32 1.0, %v10831_v31 }
0x25cd   :  { %v10837_v16 = vpop.eup %8976  ;;  %v5841_v20 = vsub.f32 1.0, %v10833_v7 }
0x25ce   :  { %v10841_v34 = vpop.eup %8978 }
0x2623   :  { %v5803_v56 = vpop.permute.xlu1 %5802  ;;  %v5801_v9 = vpop.permute.xlu0 %5800 }
0x2624   :  { %v5813_v63 = vmul.f32 %v10833_v7, %v5803_v56  ;;  %v5812_v13 = vmul.f32 %v10831_v31, %v5801_v9 }
0x2626   :  { %5822 = vrot.lane.b32.xlu1 %v5813_v63, %s9144_s14  ;;  %5820 = vrot.lane.b32.xlu0 %v5812_v13, %s9144_s14 }
0x2627   :  { %v5807_v53 = vpop.permute.xlu1 %5806  ;;  %v5805_v11 = vpop.permute.xlu0 %5804 }
0x2628   :  { %v5815_v41 = vmul.f32 %v10841_v34, %v5807_v53  ;;  %v5814_v2 = vmul.f32 %v10837_v16, %v5805_v11 }
0x262a   :  { %5826 = vrot.lane.b32.xlu1 %v5815_v41, %s9144_s14  ;;  %5824 = vrot.lane.b32.xlu0 %v5814_v2, %s9144_s14 }
0x262e   :  { %5882 = vrot.lane.b32.xlu1 %v5871_v42, %s9148_s23  ;;  %5880 = vrot.lane.b32.xlu0 %v5867_v3, %s9148_s23  ;;  %v5843_v42 = vsub.f32 1.0, %v10841_v34 }
0x2698   :  { %v5823_v58 = vpop.permute.xlu1 %5822  ;;  %v5821_v21 = vpop.permute.xlu0 %5820 }
0x2699   :  { %v5833_v15 = vadd.f32 %v5823_v58, %v9277_v29  ;;  %v5832_v44 = vadd.f32 %v5821_v21, %v9273_v22  ;;  %v5842_v58 = vsub.f32 1.0, %v10837_v16 }
0x269b   :  { %8980 = vtanh.f32 %v5833_v15 }
0x269c   :  { %8982 = vtanh.f32 %v5832_v44  ;;  %v5827_v10 = vpop.permute.xlu1 %5826  ;;  %v5825_v62 = vpop.permute.xlu0 %5824 }
0x269d   :  { %v5835_v57 = vadd.f32 %v5827_v10, %v9285_v38  ;;  %v5834_v23 = vadd.f32 %v5825_v62, %v9281_v33 }
0x269f   :  { %8984 = vtanh.f32 %v5835_v57 }
0x26a0   :  { %8986 = vtanh.f32 %v5834_v23  ;;  %v5883_v40 = vpop.permute.xlu1 %5882  ;;  %v5881_v18 = vpop.permute.xlu0 %5880 }
0x26a1   :  { %v5893_v14 = vmul.f32 %v10833_v7, %v5883_v40  ;;  %v5892_v19 = vmul.f32 %v10831_v31, %v5881_v18 }
0x26a5   :  { %v8981_v50 = vpop.eup %8980 }
0x26a6   :  { %v8983_v25 = vpop.eup %8982  ;;  %5850 = vrot.lane.b32.xlu1 %v8981_v50, %s9146_s22 }
0x26a7   :  { %5848 = vrot.lane.b32.xlu0 %v8983_v25, %s9146_s22 }
0x26a9   :  { %v8985_v26 = vpop.eup %8984 }
0x26aa   :  { %v8987_v8 = vpop.eup %8986  ;;  %5854 = vrot.lane.b32.xlu1 %v8985_v26, %s9146_s22 }
0x26ab   :  { %5852 = vrot.lane.b32.xlu0 %v8987_v8, %s9146_s22 }
0x26ae   :  { %5886 = vrot.lane.b32.xlu1 %v5879_v12, %s9148_s23 }
0x26af   :  { %5884 = vrot.lane.b32.xlu0 %v5875_v46, %s9148_s23 }
0x26b2   :  { %8628 = vperm.xlu1 %8490, %v8627_v5  }
0x26b3   :  { %8623 = vperm.xlu0 %8496, %v8622_v37  }
0x26b6   :  { %6047 = vperm.xlu1 %8490, %v6033_v43  }
0x26b7   :  { %6038 = vperm.xlu0 %8496, %v6032_v55  }
0x26ba   :  { %6065 = vperm.xlu1 %8490, %v6035_v28  }
0x26bb   :  { %6056 = vperm.xlu0 %8496, %v6034_v17  }
0x2718   :  { %v5851_v48 = vpop.permute.xlu1 %5850 }
0x2719   :  { %v5861_v51 = vmul.f32 %v5851_v48, %v5841_v20  ;;  %v5849_v60 = vpop.permute.xlu0 %5848 }
0x271a   :  { %v5860_v56 = vmul.f32 %v5849_v60, %v5840_v61 }
0x271b   :  { %v5897_v9 = vadd.f32 %v5893_v14, %v5861_v51 }
0x271c   :  { %v5896_v63 = vadd.f32 %v5892_v19, %v5860_v56  ;;  %v5855_v13 = vpop.permute.xlu1 %5854 }
0x271d   :  { %v5968_v53 = vcombine.high %v5897_v9, %v5897_v9  ;;  %v5853_v11 = vpop.permute.xlu0 %5852  ;;  %v5863_v15 = vmul.f32 %v5855_v13, %v5843_v42 }
0x271e   :  { %v5952_v41 = vcombine.high %v5896_v63, %v5896_v63  ;;  %v5862_v62 = vmul.f32 %v5853_v11, %v5842_v58 }
0x271f   :  { %v5975_v2 = vrot.slane %v5968_v53, %v9354_v59 }
0x2720   :  { %v5959_v3 = vrot.slane %v5952_v41, %v9354_v59  ;;  %v5887_v7 = vpop.permute.xlu1 %5886 }
0x2721   :  { %v5976_v21 = vcombine.high %v5975_v2, %v5975_v2  ;;  %v5895_v31 = vmul.f32 %v10841_v34, %v5887_v7  ;;  %v5885_v44 = vpop.permute.xlu0 %5884 }
0x2722   :  { %v5960_v10 = vcombine.high %v5959_v3, %v5959_v3  ;;  %v5894_v57 = vmul.f32 %v10837_v16, %v5885_v44 }
0x2723   :  { %v5899_v23 = vadd.f32 %v5895_v31, %v5863_v15  ;;  %v5983_v50 = vrot.slane %v5976_v21, %v9354_v59 }
0x2724   :  { %v5898_v25 = vadd.f32 %v5894_v57, %v5862_v62  ;;  %v5967_v26 = vrot.slane %v5960_v10, %v9354_v59 }
0x2725   :  { %v6000_v8 = vcombine.high %v5899_v23, %v5899_v23  ;;  %6018 = vrot.lane.b32.xlu1 %v5983_v50, %s9146_s22 }
0x2726   :  { %v5984_v6 = vcombine.high %v5898_v25, %v5898_v25  ;;  %6016 = vrot.lane.b32.xlu0 %v5967_v26, %s9146_s22 }
0x2727   :  { %v6007_v47 = vrot.slane %v6000_v8, %v9354_v59 }
0x2728   :  { %v5991_v34 = vrot.slane %v5984_v6, %v9354_v59 }
0x2729   :  { %v6008_v12 = vcombine.high %v6007_v47, %v6007_v47 }
0x272a   :  { %v5992_v54 = vcombine.high %v5991_v34, %v5991_v34 }
0x272b   :  { %v6015_v16 = vrot.slane %v6008_v12, %v9354_v59 }
0x272c   :  { %v5999_v35 = vrot.slane %v5992_v54, %v9354_v59 }
0x272d   :  { %6022 = vrot.lane.b32.xlu1 %v6015_v16, %s9146_s22 }
0x272e   :  { %6020 = vrot.lane.b32.xlu0 %v5999_v35, %s9146_s22 }
0x2731   :  { %v8629_v46 = vpop.permute.xlu1 %8628 }
0x2732   :  { %v8624_v5 = vpop.permute.xlu0 %8623  ;;  %v8631_v56 = vunpack.i.h.bf16 %v8629_v46  ;;  %v8630_v9 = vunpack.i.l.bf16 %v8629_v46 }
0x2733   :  { %v8626_v55 = vunpack.i.h.bf16 %v8624_v5  ;;  %v8625_v28 = vunpack.i.l.bf16 %v8624_v5 }
0x2734   :  { %v5947_v41 = vrot.slane %v8631_v56, %v9374_v39  ;;  %v5938_v58 = vrot.slane %v8630_v9, %v9374_v39 }
0x2735   :  { %v6048_v37 = vpop.permute.xlu1 %6047  ;;  %v5929_v18 = vrot.slane %v8626_v55, %v9374_v39  ;;  %v5920_v48 = vrot.slane %v8625_v28, %v9374_v39 }
0x2736   :  { %v6039_v43 = vpop.permute.xlu0 %6038  ;;  %v6053_v51 = vrot.slane %v6048_v37, %v9374_v39 }
0x2737   :  { %v6044_v60 = vrot.slane %v6039_v43, %v9374_v39 }
0x2738   :  { %v6073_v13 = vmul.f32 %v6053_v51, %v10795_v36 }
0x2739   :  { %v6066_v17 = vpop.permute.xlu1 %6065  ;;  %v6072_v53 = vmul.f32 %v6044_v60, %v10797_v32 }
0x273a   :  { %v6057_v40 = vpop.permute.xlu0 %6056  ;;  %v6071_v63 = vrot.slane %v6066_v17, %v9374_v39 }
0x273b   :  { %v6062_v11 = vrot.slane %v6057_v40, %v9374_v39 }
0x273c   :  { %v6075_v7 = vmul.f32 %v6071_v63, %v10802_v30 }
0x273d   :  { %v6074_v31 = vmul.f32 %v6062_v11, %v10807_v4 }
0x2797   :  { %v6019_v20 = vpop.permute.xlu1 %6018 }
0x2798   :  { %v6029_v61 = vmul.f32 %v6019_v20, %v5929_v18  ;;  %v6017_v14 = vpop.permute.xlu0 %6016 }
0x2799   :  { %v6028_v19 = vmul.f32 %v6017_v14, %v5920_v48 }
0x279a   :  { %6081 = vst.msk [vmem:[#allocation2 + $0x1d] sm:$0x1] %vm570_vm6, %v6029_v61  ;;  %v10906_v2 = vadd.f32 %v6073_v13, %v6029_v61 }
0x279b   :  { %6080 = vst.msk [vmem:[#allocation2 + $0xd] sm:$0x1] %vm570_vm6, %v6028_v19  ;;  %v10908_v42 = vadd.f32 %v6072_v53, %v6028_v19 }
0x279d   :  { %v6088_v32 = vcombine.low %v10908_v42, %v10906_v2 }
0x279f   :  { %v6023_v3 = vpop.permute.xlu1 %6022  ;;  %v6096_v30 = vrot.slane %v6088_v32, %v9354_v59 }
0x27a0   :  { %v6031_v21 = vmul.f32 %v6023_v3, %v5947_v41  ;;  %v6021_v15 = vpop.permute.xlu0 %6020 }
0x27a1   :  { %v6030_v36 = vmul.f32 %v6021_v15, %v5938_v58 }
0x27a2   :  { %v10913_v44 = vadd.f32 %v6075_v7, %v6031_v21  ;;  %6083 = vst.msk [vmem:[#allocation2 + $0x3d] sm:$0x1] %vm570_vm6, %v6031_v21 }
0x27a3   :  { %v10918_v10 = vadd.f32 %v6074_v31, %v6030_v36  ;;  %6082 = vst.msk [vmem:[#allocation2 + $0x2d] sm:$0x1] %vm570_vm6, %v6030_v36  ;;  %v6298_v31 = vrot.slane %v10906_v2, %v9374_v39  ;;  %v6294_v36 = vrot.slane %v10908_v42, %v9374_v39 }
0x27a5   :  { %v6089_v62 = vcombine.low %v10918_v10, %v10913_v44  ;;  %v6302_v49 = vrot.slane %v10918_v10, %v9374_v39 }
0x27a7   :  { %v6103_v57 = vrot.slane %v6089_v62, %v9354_v59 }
0x27a9   :  { %v6104_v4 = vcombine.low %v6096_v30, %v6103_v57 }
0x27ab   :  { %v6111_v23 = vrot.slane %v6104_v4, %v9354_v59 }
0x27ad   :  { %8261 = vmatmul.mubr.msk.f32.vlgmr.msra.gmra.mrb[20].mxu0 %vm203_vm7, %v6111_v23 }
0x27ae   :  { %8278 = vmatprep.mubr.msk.f32.mxu0 %vm9142_vm0, %v9143_v1 }
0x2880   :  { %v6180_v50 = vpop.f32.mrb[20].mxu0 }
0x2881   :  { %v8262_v25 = vpop.f32.mrb[21].mxu0  ;;  %v6221_v26 = vadd.f32 %v6180_v50, %v9275_v24  ;;  %v6185_v12 = vrot.slane %v6180_v50, 2  ;;  %v6186_v54 = vrot.slane %v6180_v50, 3  ;;  %v6187_v16 = vrot.slane %v6180_v50, 4 }
0x2882   :  { %v6188_v46 = vrot.slane %v6180_v50, 5 }
0x2883   :  { %v6224_v8 = vrot.slane %v6221_v26, 3  ;;  %v6223_v6 = vrot.slane %v6221_v26, 2  ;;  %v6226_v47 = vrot.slane %v6221_v26, 5  ;;  %v6225_v34 = vrot.slane %v6221_v26, 4 }
0x2884   :  { %v6193_v35 = vadd.f32 %v6185_v12, %v9273_v22  ;;  %v6194_v5 = vadd.f32 %v6186_v54, %v9277_v29  ;;  %v6195_v37 = vadd.f32 %v6187_v16, %v9281_v33  ;;  %v6196_v55 = vadd.f32 %v6188_v46, %v9285_v38 }
0x2885   :  { %6229 = vrot.lane.b32.xlu1 %v6224_v8, %s9144_s14  ;;  %6227 = vrot.lane.b32.xlu0 %v6223_v6, %s9144_s14  ;;  %v7935_v12 = vsel %vm6330_vm13, 1.0, %v9143_v1  ;;  %v6306_v54 = vrot.slane %v10913_v44, %v9374_v39  ;;  %v8632_v16 = vpack.i.bf16 %v7933_v27, %v7932_v45  ;;  %v6459_v46 = vsub.f32 1.0, %v7932_v45 }
0x2886   :  { %v7928_v43 = vmul.f32 -1.442695, %v6193_v35  ;;  %v7929_v28 = vmul.f32 -1.442695, %v6194_v5  ;;  %v7930_v17 = vmul.f32 -1.442695, %v6195_v37 }
0x2887   :  { %v7931_v40 = vmul.f32 -1.442695, %v6196_v55  ;;  %v6460_v35 = vsub.f32 1.0, %v7933_v27  ;;  %v6462_v5 = vsub.f32 1.0, %v7935_v12 }
0x2888   :  { %8988 = vpow2.f32 %v7928_v43 }
0x2889   :  { %6233 = vrot.lane.b32.xlu1 %v6226_v47, %s9144_s14  ;;  %6231 = vrot.lane.b32.xlu0 %v6225_v34, %s9144_s14  ;;  %8990 = vpow2.f32 %v7929_v28  ;;  %v7934_v34 = vsel %vm6329_vm12, 1.0, %v9143_v1  ;;  %vm7720_vm12 = vcmask 122880  }
0x288a   :  { %8992 = vpow2.f32 %v7930_v17  ;;  %v8637_v52 = vpack.i.bf16 %v7935_v12, %v7934_v34  ;;  %v6461_v37 = vsub.f32 1.0, %v7934_v34 }
0x288b   :  { %8994 = vpow2.f32 %v7931_v40 }
0x2892   :  { %v8989_v18 = vpop.eup %8988 }
0x2893   :  { %v8991_v20 = vpop.eup %8990  ;;  %v6209_v48 = vadd.f32 1.0, %v8989_v18 }
0x2894   :  { %v8993_v61 = vpop.eup %8992  ;;  %v6210_v14 = vadd.f32 1.0, %v8991_v20 }
0x2895   :  { %v8995_v51 = vpop.eup %8994  ;;  %v6211_v60 = vadd.f32 1.0, %v8993_v61  ;;  %8996 = vrcp.f32 %v6209_v48 }
0x2896   :  { %v6212_v19 = vadd.f32 1.0, %v8995_v51  ;;  %8998 = vrcp.f32 %v6210_v14 }
0x2897   :  { %9000 = vrcp.f32 %v6211_v60 }
0x2898   :  { %9002 = vrcp.f32 %v6212_v19 }
0x289f   :  { %v10938_v56 = vpop.eup %8996 }
0x28a0   :  { %v10940_v9 = vpop.eup %8998  ;;  %v6267_v40 = vsub.f32 1.0, %v10938_v56 }
0x28a1   :  { %v10944_v41 = vpop.eup %9000  ;;  %v6268_v28 = vsub.f32 1.0, %v10940_v9 }
0x28a2   :  { %v10948_v3 = vpop.eup %9002 }
0x28f7   :  { %v6230_v63 = vpop.permute.xlu1 %6229  ;;  %v6228_v13 = vpop.permute.xlu0 %6227 }
0x28f8   :  { %v6240_v53 = vmul.f32 %v10940_v9, %v6230_v63  ;;  %v6239_v11 = vmul.f32 %v10938_v56, %v6228_v13 }
0x28fa   :  { %6249 = vrot.lane.b32.xlu1 %v6240_v53, %s9144_s14  ;;  %6247 = vrot.lane.b32.xlu0 %v6239_v11, %s9144_s14 }
0x28fb   :  { %v6234_v58 = vpop.permute.xlu1 %6233  ;;  %v6232_v7 = vpop.permute.xlu0 %6231 }
0x28fc   :  { %v6242_v21 = vmul.f32 %v10948_v3, %v6234_v58  ;;  %v6241_v15 = vmul.f32 %v10944_v41, %v6232_v7  ;;  %v6270_v58 = vsub.f32 1.0, %v10948_v3 }
0x28fe   :  { %6253 = vrot.lane.b32.xlu1 %v6242_v21, %s9144_s14  ;;  %6251 = vrot.lane.b32.xlu0 %v6241_v15, %s9144_s14  ;;  %v6269_v21 = vsub.f32 1.0, %v10944_v41 }
0x2902   :  { %6309 = vrot.lane.b32.xlu1 %v6298_v31, %s9148_s23  ;;  %6307 = vrot.lane.b32.xlu0 %v6294_v36, %s9148_s23 }
0x296c   :  { %v6250_v32 = vpop.permute.xlu1 %6249  ;;  %v6248_v62 = vpop.permute.xlu0 %6247 }
0x296d   :  { %v6260_v30 = vadd.f32 %v6250_v32, %v9277_v29  ;;  %v6259_v57 = vadd.f32 %v6248_v62, %v9273_v22 }
0x296f   :  { %9004 = vtanh.f32 %v6260_v30 }
0x2970   :  { %9006 = vtanh.f32 %v6259_v57  ;;  %v6254_v4 = vpop.permute.xlu1 %6253  ;;  %v6252_v23 = vpop.permute.xlu0 %6251 }
0x2971   :  { %v6262_v50 = vadd.f32 %v6254_v4, %v9285_v38  ;;  %v6261_v25 = vadd.f32 %v6252_v23, %v9281_v33 }
0x2973   :  { %9008 = vtanh.f32 %v6262_v50 }
0x2974   :  { %9010 = vtanh.f32 %v6261_v25  ;;  %v6310_v43 = vpop.permute.xlu1 %6309  ;;  %v6308_v55 = vpop.permute.xlu0 %6307 }
0x2975   :  { %v6320_v18 = vmul.f32 %v10940_v9, %v6310_v43  ;;  %v6319_v61 = vmul.f32 %v10938_v56, %v6308_v55 }
0x2979   :  { %v9005_v26 = vpop.eup %9004 }
0x297a   :  { %v9007_v8 = vpop.eup %9006  ;;  %6277 = vrot.lane.b32.xlu1 %v9005_v26, %s9146_s22 }
0x297b   :  { %6275 = vrot.lane.b32.xlu0 %v9007_v8, %s9146_s22 }
0x297d   :  { %v9009_v6 = vpop.eup %9008 }
0x297e   :  { %v9011_v47 = vpop.eup %9010  ;;  %6281 = vrot.lane.b32.xlu1 %v9009_v6, %s9146_s22 }
0x297f   :  { %6279 = vrot.lane.b32.xlu0 %v9011_v47, %s9146_s22 }
0x2982   :  { %6313 = vrot.lane.b32.xlu1 %v6306_v54, %s9148_s23 }
0x2983   :  { %6311 = vrot.lane.b32.xlu0 %v6302_v49, %s9148_s23 }
0x2986   :  { %8638 = vperm.xlu1 %8490, %v8637_v52  }
0x2987   :  { %8633 = vperm.xlu0 %8496, %v8632_v16  }
0x298a   :  { %6474 = vperm.xlu1 %8490, %v6460_v35  }
0x298b   :  { %6465 = vperm.xlu0 %8496, %v6459_v46  }
0x298e   :  { %6492 = vperm.xlu1 %8490, %v6462_v5  }
0x298f   :  { %6483 = vperm.xlu0 %8496, %v6461_v37  }
0x29ec   :  { %v6278_v17 = vpop.permute.xlu1 %6277 }
0x29ed   :  { %v6288_v20 = vmul.f32 %v6278_v17, %v6268_v28  ;;  %v6276_v48 = vpop.permute.xlu0 %6275 }
0x29ee   :  { %v6287_v14 = vmul.f32 %v6276_v48, %v6267_v40 }
0x29ef   :  { %v6324_v51 = vadd.f32 %v6320_v18, %v6288_v20 }
0x29f0   :  { %v6323_v60 = vadd.f32 %v6319_v61, %v6287_v14  ;;  %v6282_v19 = vpop.permute.xlu1 %6281 }
0x29f1   :  { %v6395_v63 = vcombine.high %v6324_v51, %v6324_v51  ;;  %v6280_v13 = vpop.permute.xlu0 %6279  ;;  %v6290_v31 = vmul.f32 %v6282_v19, %v6270_v58 }
0x29f2   :  { %v6379_v53 = vcombine.high %v6323_v60, %v6323_v60  ;;  %v6289_v62 = vmul.f32 %v6280_v13, %v6269_v21 }
0x29f3   :  { %v6402_v11 = vrot.slane %v6395_v63, %v9354_v59 }
0x29f4   :  { %v6386_v7 = vrot.slane %v6379_v53, %v9354_v59  ;;  %v6314_v9 = vpop.permute.xlu1 %6313 }
0x29f5   :  { %v6409_v15 = vrot.slane %v6402_v11, %v9354_v59  ;;  %v6322_v56 = vmul.f32 %v10948_v3, %v6314_v9  ;;  %v6312_v36 = vpop.permute.xlu0 %6311 }
0x29f6   :  { %v6393_v32 = vrot.slane %v6386_v7, %v9354_v59  ;;  %v6321_v30 = vmul.f32 %v10944_v41, %v6312_v36 }
0x29f7   :  { %v6326_v57 = vadd.f32 %v6322_v56, %v6290_v31  ;;  %v6410_v4 = vcombine.high %v6409_v15, %v6409_v15 }
0x29f8   :  { %v6325_v23 = vadd.f32 %v6321_v30, %v6289_v62  ;;  %v6394_v50 = vcombine.high %v6393_v32, %v6393_v32 }
0x29f9   :  { %v6427_v25 = vcombine.high %v6326_v57, %v6326_v57  ;;  %6445 = vrot.lane.b32.xlu1 %v6410_v4, %s9146_s22 }
0x29fa   :  { %v6411_v26 = vcombine.high %v6325_v23, %v6325_v23  ;;  %6443 = vrot.lane.b32.xlu0 %v6394_v50, %s9146_s22 }
0x29fb   :  { %v6434_v8 = vrot.slane %v6427_v25, %v9354_v59 }
0x29fc   :  { %v6418_v3 = vrot.slane %v6411_v26, %v9354_v59 }
0x29fd   :  { %v6441_v6 = vrot.slane %v6434_v8, %v9354_v59 }
0x29fe   :  { %v6425_v47 = vrot.slane %v6418_v3, %v9354_v59 }
0x29ff   :  { %v6442_v34 = vcombine.high %v6441_v6, %v6441_v6 }
0x2a00   :  { %v6426_v41 = vcombine.high %v6425_v47, %v6425_v47 }
0x2a01   :  { %6449 = vrot.lane.b32.xlu1 %v6442_v34, %s9146_s22 }
0x2a02   :  { %6447 = vrot.lane.b32.xlu0 %v6426_v41, %s9146_s22 }
0x2a05   :  { %v8639_v12 = vpop.permute.xlu1 %8638 }
0x2a06   :  { %v8634_v54 = vpop.permute.xlu0 %8633  ;;  %v8641_v18 = vunpack.i.h.bf16 %v8639_v12  ;;  %v8640_v20 = vunpack.i.l.bf16 %v8639_v12 }
0x2a07   :  { %v8636_v49 = vunpack.i.h.bf16 %v8634_v54  ;;  %v8635_v52 = vunpack.i.l.bf16 %v8634_v54 }
0x2a08   :  { %v6374_v60 = vrot.slane %v8641_v18, %v9374_v39  ;;  %v6365_v53 = vrot.slane %v8640_v20, %v9374_v39 }
0x2a09   :  { %v6475_v45 = vpop.permute.xlu1 %6474  ;;  %v6356_v46 = vrot.slane %v8636_v49, %v9374_v39  ;;  %v6347_v37 = vrot.slane %v8635_v52, %v9374_v39 }
0x2a0a   :  { %v6466_v27 = vpop.permute.xlu0 %6465  ;;  %v6480_v28 = vrot.slane %v6475_v45, %v9374_v39 }
0x2a0b   :  { %v6471_v17 = vrot.slane %v6466_v27, %v9374_v39 }
0x2a0c   :  { %v6500_v61 = vmul.f32 %v6480_v28, %v10906_v2 }
0x2a0d   :  { %v6493_v16 = vpop.permute.xlu1 %6492  ;;  %v6499_v14 = vmul.f32 %v6471_v17, %v10908_v42 }
0x2a0e   :  { %v6484_v35 = vpop.permute.xlu0 %6483  ;;  %v6498_v48 = vrot.slane %v6493_v16, %v9374_v39 }
0x2a0f   :  { %v6489_v51 = vrot.slane %v6484_v35, %v9374_v39 }
0x2a10   :  { %v6502_v11 = vmul.f32 %v6498_v48, %v10913_v44 }
0x2a11   :  { %v6501_v21 = vmul.f32 %v6489_v51, %v10918_v10 }
0x2a6b   :  { %v6446_v5 = vpop.permute.xlu1 %6445 }
0x2a6c   :  { %v6456_v43 = vmul.f32 %v6446_v5, %v6356_v46  ;;  %v6444_v55 = vpop.permute.xlu0 %6443 }
0x2a6d   :  { %v6455_v40 = vmul.f32 %v6444_v55, %v6347_v37 }
0x2a6e   :  { %6508 = vst.msk [vmem:[#allocation2 + $0x1e] sm:$0x1] %vm570_vm6, %v6456_v43  ;;  %v11013_v19 = vadd.f32 %v6500_v61, %v6456_v43 }
0x2a6f   :  { %6507 = vst.msk [vmem:[#allocation2 + $0xe] sm:$0x1] %vm570_vm6, %v6455_v40  ;;  %v11015_v63 = vadd.f32 %v6499_v14, %v6455_v40 }
0x2a71   :  { %v6515_v42 = vcombine.low %v11015_v63, %v11013_v19 }
0x2a73   :  { %v6450_v13 = vpop.permute.xlu1 %6449  ;;  %v6523_v44 = vrot.slane %v6515_v42, %v9354_v59 }
0x2a74   :  { %v6458_v58 = vmul.f32 %v6450_v13, %v6374_v60  ;;  %v6448_v7 = vpop.permute.xlu0 %6447  ;;  %v6721_v13 = vrot.slane %v11015_v63, %v9374_v39 }
0x2a75   :  { %v6457_v2 = vmul.f32 %v6448_v7, %v6365_v53  ;;  %v6725_v53 = vrot.slane %v11013_v19, %v9374_v39  ;;  %v9063_v7 = vld [vmem:[%s11262_s5 + $0x3] sm:$0x1] }
0x2a76   :  { %v11020_v9 = vadd.f32 %v6502_v11, %v6458_v58  ;;  %6510 = vst.msk [vmem:[#allocation2 + $0x3e] sm:$0x1] %vm570_vm6, %v6458_v58  ;;  %v9062_v58 = vld [vmem:[%s11262_s5 + $0x2] sm:$0x1]  ;;  %vm6757_vm3 = vcmp.gt.s32.totalorder %v9063_v7, 15 }
0x2a77   :  { %v11025_v15 = vadd.f32 %v6501_v21, %v6457_v2  ;;  %6509 = vst.msk [vmem:[#allocation2 + $0x2e] sm:$0x1] %vm570_vm6, %v6457_v2  ;;  %vm6756_vm2 = vcmp.gt.s32.totalorder %v9062_v58, 15  ;;  %v11080_v2 = vsel %vm6757_vm3, 1.0, %v9143_v1 }
0x2a78   :  { %v11077_v21 = vsel %vm6756_vm2, 1.0, %v9143_v1  ;;  %v6733_v42 = vrot.slane %v11020_v9, %v9374_v39 }
0x2a79   :  { %v6516_v31 = vcombine.low %v11025_v15, %v11020_v9  ;;  %v6729_v11 = vrot.slane %v11025_v15, %v9374_v39 }
0x2a7b   :  { %v6530_v56 = vrot.slane %v6516_v31, %v9354_v59  ;;  %v8647_v31 = vpack.i.bf16 %v11080_v2, %v11077_v21 }
0x2a7d   :  { %v6531_v10 = vcombine.low %v6523_v44, %v6530_v56 }
0x2a7f   :  { %v6538_v36 = vrot.slane %v6531_v10, %v9354_v59 }
0x2a81   :  { %8272 = vmatmul.mubr.msk.f32.vlgmr.msra.gmra.mrb[16].mxu1 %vm203_vm7, %v6538_v36 }
0x2a82   :  { %8285 = vmatprep.mubr.msk.f32.mxu1 %vm9142_vm0, %v9143_v1 }
0x2b54   :  { %v6607_v32 = vpop.f32.mrb[16].mxu1 }
0x2b55   :  { %v8273_v62 = vpop.f32.mrb[17].mxu1  ;;  %v6648_v30 = vadd.f32 %v6607_v32, %v9275_v24  ;;  %v6612_v25 = vrot.slane %v6607_v32, 1  ;;  %v6613_v26 = vrot.slane %v6607_v32, 2  ;;  %v6614_v8 = vrot.slane %v6607_v32, 3 }
0x2b56   :  { %v6615_v6 = vrot.slane %v6607_v32, 4 }
0x2b57   :  { %v6651_v57 = vrot.slane %v6648_v30, 2  ;;  %v6650_v4 = vrot.slane %v6648_v30, 1  ;;  %v6653_v23 = vrot.slane %v6648_v30, 4  ;;  %v6652_v50 = vrot.slane %v6648_v30, 3 }
0x2b58   :  { %v6620_v3 = vadd.f32 %v6612_v25, %v9273_v22  ;;  %v6621_v24 = vadd.f32 %v6613_v26, %v9277_v29  ;;  %v6622_v47 = vadd.f32 %v6614_v8, %v9281_v33  ;;  %v6623_v41 = vadd.f32 %v6615_v6, %v9285_v38 }
0x2b59   :  { %6656 = vrot.lane.b32.xlu1 %v6651_v57, %s9144_s14  ;;  %6654 = vrot.lane.b32.xlu0 %v6650_v4, %s9144_s14 }
0x2b5a   :  { %v7937_v34 = vmul.f32 -1.442695, %v6620_v3  ;;  %v7938_v12 = vmul.f32 -1.442695, %v6621_v24  ;;  %v7939_v54 = vmul.f32 -1.442695, %v6622_v47 }
0x2b5b   :  { %v7940_v45 = vmul.f32 -1.442695, %v6623_v41 }
0x2b5c   :  { %9012 = vpow2.f32 %v7937_v34 }
0x2b5d   :  { %6660 = vrot.lane.b32.xlu1 %v6653_v23, %s9144_s14  ;;  %6658 = vrot.lane.b32.xlu0 %v6652_v50, %s9144_s14  ;;  %9014 = vpow2.f32 %v7938_v12 }
0x2b5e   :  { %9016 = vpow2.f32 %v7939_v54 }
0x2b5f   :  { %9018 = vpow2.f32 %v7940_v45 }
0x2b66   :  { %v9013_v27 = vpop.eup %9012 }
0x2b67   :  { %v9015_v49 = vpop.eup %9014  ;;  %v6636_v52 = vadd.f32 1.0, %v9013_v27 }
0x2b68   :  { %v9017_v16 = vpop.eup %9016  ;;  %v6637_v35 = vadd.f32 1.0, %v9015_v49 }
0x2b69   :  { %v9019_v46 = vpop.eup %9018  ;;  %v6638_v5 = vadd.f32 1.0, %v9017_v16  ;;  %9020 = vrcp.f32 %v6636_v52 }
0x2b6a   :  { %v6639_v37 = vadd.f32 1.0, %v9019_v46  ;;  %9022 = vrcp.f32 %v6637_v35 }
0x2b6b   :  { %9024 = vrcp.f32 %v6638_v5 }
0x2b6c   :  { %9026 = vrcp.f32 %v6639_v37 }
0x2b73   :  { %v11045_v43 = vpop.eup %9020 }
0x2b74   :  { %v11047_v55 = vpop.eup %9022  ;;  %v6694_v6 = vsub.f32 1.0, %v11045_v43 }
0x2b75   :  { %v11051_v20 = vpop.eup %9024  ;;  %v6695_v54 = vsub.f32 1.0, %v11047_v55 }
0x2b76   :  { %v11055_v48 = vpop.eup %9026  ;;  %v6696_v46 = vsub.f32 1.0, %v11051_v20 }
0x2bcb   :  { %v6657_v28 = vpop.permute.xlu1 %6656  ;;  %v6655_v17 = vpop.permute.xlu0 %6654 }
0x2bcc   :  { %v6667_v40 = vmul.f32 %v11047_v55, %v6657_v28  ;;  %v6666_v18 = vmul.f32 %v11045_v43, %v6655_v17 }
0x2bce   :  { %6676 = vrot.lane.b32.xlu1 %v6667_v40, %s9144_s14  ;;  %6674 = vrot.lane.b32.xlu0 %v6666_v18, %s9144_s14 }
0x2bcf   :  { %v6661_v61 = vpop.permute.xlu1 %6660  ;;  %v6659_v14 = vpop.permute.xlu0 %6658 }
0x2bd0   :  { %v6669_v51 = vmul.f32 %v11055_v48, %v6661_v61  ;;  %v6668_v60 = vmul.f32 %v11051_v20, %v6659_v14 }
0x2bd2   :  { %6680 = vrot.lane.b32.xlu1 %v6669_v51, %s9144_s14  ;;  %6678 = vrot.lane.b32.xlu0 %v6668_v60, %s9144_s14 }
0x2bd6   :  { %6734 = vrot.lane.b32.xlu1 %v6721_v13, %s9148_s23 }
0x2bda   :  { %6736 = vrot.lane.b32.xlu1 %v6725_v53, %s9148_s23 }
0x2bde   :  { %6738 = vrot.lane.b32.xlu1 %v6729_v11, %s9148_s23 }
0x2be2   :  { %6740 = vrot.lane.b32.xlu1 %v6733_v42, %s9148_s23 }
0x2be6   :  { %8648 = vperm.xlu1 %8490, %v8647_v31  }
0x2c40   :  { %v6675_v44 = vpop.permute.xlu0 %6674  ;;  %v6677_v56 = vpop.permute.xlu1 %6676 }
0x2c41   :  { %v6686_v10 = vadd.f32 %v6675_v44, %v9273_v22  ;;  %v6687_v36 = vadd.f32 %v6677_v56, %v9277_v29  ;;  %v9064_v22 = vld [vmem:[%s11262_s5] sm:$0x1]  ;;  %v9065_v29 = vld [vmem:[%s11262_s5 + $0x1] sm:$0x1] }
0x2c42   :  { %vm6754_vm4 = vcmp.gt.s32.totalorder %v9064_v22, 15  ;;  %vm6755_vm5 = vcmp.gt.s32.totalorder %v9065_v29, 15  ;;  %v6893_v22 = vsub.f32 1.0, %v11080_v2 }
0x2c43   :  { %9028 = vtanh.f32 %v6686_v10  ;;  %v7942_v50 = vsel %vm6755_vm5, 1.0, %v9143_v1 }
0x2c44   :  { %v6679_v32 = vpop.permute.xlu0 %6678  ;;  %9030 = vtanh.f32 %v6687_v36  ;;  %v6681_v30 = vpop.permute.xlu1 %6680 }
0x2c45   :  { %v6688_v62 = vadd.f32 %v6679_v32, %v9281_v33  ;;  %v6689_v57 = vadd.f32 %v6681_v30, %v9285_v38  ;;  %v7941_v38 = vsel %vm6754_vm4, 1.0, %v9143_v1  ;;  %v6891_v32 = vsub.f32 1.0, %v7942_v50 }
0x2c46   :  { %v8642_v26 = vpack.i.bf16 %v7942_v50, %v7941_v38  ;;  %v6890_v31 = vsub.f32 1.0, %v7941_v38 }
0x2c47   :  { %9032 = vtanh.f32 %v6688_v62 }
0x2c48   :  { %9034 = vtanh.f32 %v6689_v57  ;;  %v6735_v8 = vpop.permute.xlu1 %6734 }
0x2c49   :  { %v6746_v47 = vmul.f32 %v11045_v43, %v6735_v8 }
0x2c4c   :  { %v6737_v3 = vpop.permute.xlu1 %6736 }
0x2c4d   :  { %v9029_v4 = vpop.eup %9028  ;;  %v6747_v27 = vmul.f32 %v11047_v55, %v6737_v3  ;;  %v6697_v55 = vsub.f32 1.0, %v11055_v48 }
0x2c4e   :  { %6702 = vrot.lane.b32.xlu0 %v9029_v4, %s9146_s22  ;;  %v9031_v23 = vpop.eup %9030  ;;  %v6892_v4 = vsub.f32 1.0, %v11077_v21 }
0x2c50   :  { %v6739_v41 = vpop.permute.xlu1 %6738 }
0x2c51   :  { %v9033_v33 = vpop.eup %9032  ;;  %v6748_v37 = vmul.f32 %v11051_v20, %v6739_v41 }
0x2c52   :  { %6704 = vrot.lane.b32.xlu0 %v9031_v23, %s9146_s22  ;;  %v9035_v25 = vpop.eup %9034 }
0x2c54   :  { %v6741_v28 = vpop.permute.xlu1 %6740 }
0x2c55   :  { %v6749_v51 = vmul.f32 %v11055_v48, %v6741_v28 }
0x2c56   :  { %6706 = vrot.lane.b32.xlu0 %v9033_v33, %s9146_s22 }
0x2c5a   :  { %6708 = vrot.lane.b32.xlu0 %v9035_v25, %s9146_s22 }
0x2c5e   :  { %8643 = vperm.xlu0 %8496, %v8642_v26  }
0x2c65   :  { %v8649_v25 = vpop.permute.xlu1 %8648 }
0x2c66   :  { %v8650_v3 = vunpack.i.l.bf16 %v8649_v25 }
0x2c68   :  { %v6792_v2 = vrot.slane %v8650_v3, %v9374_v39 }
0x2cc0   :  { %v6703_v24 = vpop.permute.xlu0 %6702 }
0x2cc1   :  { %v6714_v34 = vmul.f32 %v6703_v24, %v6694_v6 }
0x2cc3   :  { %v6750_v12 = vadd.f32 %v6746_v47, %v6714_v34  ;;  %v8651_v47 = vunpack.i.h.bf16 %v8649_v25 }
0x2cc4   :  { %v6705_v45 = vpop.permute.xlu0 %6704 }
0x2cc5   :  { %v6806_v49 = vcombine.high %v6750_v12, %v6750_v12  ;;  %v6715_v52 = vmul.f32 %v6705_v45, %v6695_v54  ;;  %v6942_v12 = vld [vmem:[#allocation2] sm:$0xff] }
0x2cc7   :  { %v6813_v16 = vrot.slane %v6806_v49, %v9354_v59  ;;  %v6751_v35 = vadd.f32 %v6747_v27, %v6715_v52  ;;  %v6801_v27 = vrot.slane %v8651_v47, %v9374_v39 }
0x2cc8   :  { %v6707_v5 = vpop.permute.xlu0 %6706 }
0x2cc9   :  { %v6814_v43 = vcombine.high %v6813_v16, %v6813_v16  ;;  %v6823_v17 = vcombine.high %v6751_v35, %v6751_v35  ;;  %v6716_v40 = vmul.f32 %v6707_v5, %v6696_v46  ;;  %v6944_v35 = vld [vmem:[#allocation2 + $0x10] sm:$0xff] }
0x2ccb   :  { %v6821_v18 = vrot.slane %v6814_v43, %v9354_v59  ;;  %v6830_v61 = vrot.slane %v6823_v17, %v9354_v59  ;;  %v6752_v14 = vadd.f32 %v6748_v37, %v6716_v40 }
0x2ccc   :  { %v6709_v60 = vpop.permute.xlu0 %6708 }
0x2ccd   :  { %v6831_v13 = vcombine.high %v6830_v61, %v6830_v61  ;;  %v6840_v53 = vcombine.high %v6752_v14, %v6752_v14  ;;  %v6717_v11 = vmul.f32 %v6709_v60, %v6697_v55  ;;  %v6822_v58 = vcombine.high %v6821_v18, %v6821_v18  ;;  %v6946_v14 = vld [vmem:[#allocation2 + $0x20] sm:$0xff] }
0x2ccf   :  { %v6838_v20 = vrot.slane %v6831_v13, %v9354_v59  ;;  %v6847_v7 = vrot.slane %v6840_v53, %v9354_v59  ;;  %v6753_v42 = vadd.f32 %v6749_v51, %v6717_v11  ;;  %6874 = vrot.lane.b32.xlu0 %v6822_v58, %s9146_s22  ;;  %v6948_v11 = vld [vmem:[#allocation2 + $0x30] sm:$0xff] }
0x2cd1   :  { %v6848_v44 = vcombine.high %v6847_v7, %v6847_v7  ;;  %v6857_v56 = vcombine.high %v6753_v42, %v6753_v42  ;;  %v6839_v10 = vcombine.high %v6838_v20, %v6838_v20 }
0x2cd3   :  { %v6855_v36 = vrot.slane %v6848_v44, %v9354_v59  ;;  %v6864_v48 = vrot.slane %v6857_v56, %v9354_v59  ;;  %6896 = vperm.xlu0 %8496, %v6890_v31   ;;  %6876 = vrot.lane.b32.xlu1 %v6839_v10, %s9146_s22 }
0x2cd5   :  { %v6865_v62 = vcombine.high %v6864_v48, %v6864_v48  ;;  %v6856_v30 = vcombine.high %v6855_v36, %v6855_v36 }
0x2cd7   :  { %v6872_v57 = vrot.slane %v6865_v62, %v9354_v59  ;;  %6905 = vperm.xlu0 %8496, %v6891_v32   ;;  %6878 = vrot.lane.b32.xlu1 %v6856_v30, %s9146_s22 }
0x2cd9   :  { %v6873_v23 = vcombine.high %v6872_v57, %v6872_v57 }
0x2cdb   :  { %6914 = vperm.xlu0 %8496, %v6892_v4   ;;  %6880 = vrot.lane.b32.xlu1 %v6873_v23, %s9146_s22 }
0x2cdd   :  { %v8644_v29 = vpop.permute.xlu0 %8643 }
0x2cde   :  { %v8645_v33 = vunpack.i.l.bf16 %v8644_v29  ;;  %v8646_v38 = vunpack.i.h.bf16 %v8644_v29 }
0x2cdf   :  { %6923 = vperm.xlu1 %8490, %v6893_v22  }
0x2ce0   :  { %v6774_v50 = vrot.slane %v8645_v33, %v9374_v39  ;;  %v6783_v21 = vrot.slane %v8646_v38, %v9374_v39 }
0x2d41   :  { %v6875_v26 = vpop.permute.xlu0 %6874 }
0x2d42   :  { %v6886_v8 = vmul.f32 %v6875_v26, %v6774_v50 }
0x2d44   :  { %6938 = vst.msk [vmem:[#allocation2 + $0xf] sm:$0x1] %vm570_vm6, %v6886_v8 }
0x2d45   :  { %v6877_v6 = vpop.permute.xlu1 %6876 }
0x2d46   :  { %v6887_v24 = vmul.f32 %v6877_v6, %v6783_v21 }
0x2d48   :  { %6939 = vst.msk [vmem:[#allocation2 + $0x1f] sm:$0x1] %vm570_vm6, %v6887_v24 }
0x2d49   :  { %v6879_v34 = vpop.permute.xlu1 %6878 }
0x2d4a   :  { %v6888_v41 = vmul.f32 %v6879_v34, %v6792_v2 }
0x2d4b   :  { %v6943_v54 = vld [vmem:[#allocation2 + $0x8] sm:$0xff] }
0x2d4c   :  { %6940 = vst.msk [vmem:[#allocation2 + $0x2f] sm:$0x1] %vm570_vm6, %v6888_v41  ;;  %v8442_v49 = vpack.c.bf16 %v6943_v54, %v6942_v12 }
0x2d4d   :  { %v6881_v52 = vpop.permute.xlu1 %6880 }
0x2d4e   :  { %v6889_v16 = vmul.f32 %v6881_v52, %v6801_v27  ;;  %8444 = vmatpush3.bf16.xpose.msk.msra.mxu0 %vm11132_vm8, %v8442_v49 }
0x2d4f   :  { %v6945_v46 = vld [vmem:[#allocation2 + $0x18] sm:$0xff]  ;;  %8449 = vmatprep.subr.bf16.mxu0 %v9141_v0 }
0x2d50   :  { %6941 = vst.msk [vmem:[#allocation2 + $0x3f] sm:$0x1] %vm570_vm6, %v6889_v16  ;;  %v11142_v5 = vpack.c.bf16 %v6945_v46, %v6944_v35  ;;  %vm7275_vm6 = vcmask 1041409  }
0x2d52   :  { %v6897_v37 = vpop.permute.xlu0 %6896  ;;  %8448 = vmatpush3.bf16.xpose.msk.msra.mxu1 %vm11132_vm8, %v11142_v5 }
0x2d53   :  { %v6902_v28 = vrot.slane %v6897_v37, %v9374_v39  ;;  %8453 = vmatprep.subr.bf16.mxu1 %v9141_v0  ;;  %v6947_v17 = vld [vmem:[#allocation2 + $0x28] sm:$0xff] }
0x2d54   :  { %v8450_v55 = vpack.c.bf16 %v6947_v17, %v6946_v14 }
0x2d55   :  { %v6930_v43 = vmul.f32 %v6902_v28, %v11015_v63 }
0x2d56   :  { %v6906_v40 = vpop.permute.xlu0 %6905 }
0x2d57   :  { %v6934_v18 = vadd.f32 %v6930_v43, %v6886_v8  ;;  %v6911_v61 = vrot.slane %v6906_v40, %v9374_v39  ;;  %v6949_v60 = vld [vmem:[#allocation2 + $0x38] sm:$0xff] }
0x2d58   :  { %v11159_v58 = vpack.c.bf16 %v6949_v60, %v6948_v11 }
0x2d59   :  { %v6931_v51 = vmul.f32 %v6911_v61, %v11013_v19  ;;  %8279 = vmatmul.mubr.msk.f32.vlgmr.msra.gmra.mrb[22].mxu0 %vm203_vm7, %v6934_v18 }
0x2d5a   :  { %8452 = vmatpush3.bf16.xpose.msk.msra.mxu0 %vm11132_vm8, %v8450_v55  ;;  %v6915_v13 = vpop.permute.xlu0 %6914  ;;  %8292 = vmatprep.mubr.msk.f32.mxu0 %vm9142_vm0, %v9143_v1 }
0x2d5b   :  { %v6935_v63 = vadd.f32 %v6931_v51, %v6887_v24  ;;  %v6920_v53 = vrot.slane %v6915_v13, %v9374_v39  ;;  %8457 = vmatprep.subr.bf16.mxu0 %v9141_v0 }
0x2d5d   :  { %v6932_v19 = vmul.f32 %v6920_v53, %v11025_v15  ;;  %8286 = vmatmul.mubr.msk.f32.vlgmr.msra.gmra.mrb[18].mxu1 %vm203_vm7, %v6935_v63  ;;  %v7628_v53 = vld [vmem:[%s11263_s6 + $0x8] sm:$0xff] }
0x2d5e   :  { %8456 = vmatpush3.bf16.xpose.msk.msra.mxu1 %vm11132_vm8, %v11159_v58  ;;  %v6924_v20 = vpop.permute.xlu1 %6923  ;;  %8299 = vmatprep.mubr.msk.f32.mxu1 %vm9142_vm0, %v9143_v1 }
0x2d5f   :  { %v6936_v7 = vadd.f32 %v6932_v19, %v6888_v41  ;;  %v6929_v42 = vrot.slane %v6924_v20, %v9374_v39  ;;  %8463 = vmatprep.subr.bf16.mxu1 %v9141_v0 }
0x2d61   :  { %v6933_v31 = vmul.f32 %v6929_v42, %v11020_v9  ;;  %8293 = vmatmul.mubr.msk.f32.vlgmr.msra.gmra.mrb[24].mxu0 %vm203_vm7, %v6936_v7 }
0x2d62   :  { %8459 = vmatpush3.bf16.msra.mxu0 %v8442_v49  ;;  %8306 = vmatprep.mubr.msk.f32.mxu0 %vm9142_vm0, %v9143_v1 }
0x2d63   :  { %v6937_v15 = vadd.f32 %v6933_v31, %v6889_v16  ;;  %8460 = vmatprep.subr.bf16.mxu0 %v9141_v0 }
0x2d65   :  { %8300 = vmatmul.mubr.msk.f32.vlgmr.msra.gmra.mrb[20].mxu1 %vm203_vm7, %v6937_v15 }
0x2d66   :  { %8465 = vmatpush3.bf16.msra.mxu1 %v8450_v55  ;;  %8320 = vmatprep.mubr.msk.f32.mxu1 %vm9142_vm0, %v9143_v1 }
0x2d67   :  { %8469 = vmatprep.subr.bf16.mxu1 %v9141_v0 }
0x2e2c   :  { %v7025_v39 = vpop.f32.mrb[22].mxu0 }
0x2e2d   :  { %v8280_v44 = vpop.f32.mrb[23].mxu0  ;;  %v7266_v4 = vmul.f32 0.17677669, %v7025_v39 }
0x2e30   :  { %v7104_v9 = vpop.f32.mrb[18].mxu1 }
0x2e31   :  { %v8287_v56 = vpop.f32.mrb[19].mxu1  ;;  %v7267_v10 = vmul.f32 0.17677669, %v7104_v9 }
0x2e33   :  { %v7274_v62 = vrot.slane %v7267_v10, 7 }
0x2e34   :  { %v7183_v36 = vpop.f32.mrb[24].mxu0 }
0x2e35   :  { %v7268_v48 = vmul.f32 0.17677669, %v7183_v36  ;;  %v8294_v32 = vpop.f32.mrb[25].mxu0  ;;  %v7276_v29 = vsel %vm7275_vm6, %v7274_v62, %v7266_v4 }
0x2e37   :  { %v7277_v30 = vrot.slane %v7268_v48, 6 }
0x2e38   :  { %v7262_v57 = vpop.f32.mrb[20].mxu1 }
0x2e39   :  { %v7269_v23 = vmul.f32 0.17677669, %v7262_v57  ;;  %v8301_v22 = vpop.f32.mrb[21].mxu1  ;;  %v7279_v38 = vsel %vm7278_vm9, %v7277_v30, %v7276_v29 }
0x2e3b   :  { %v7280_v33 = vrot.slane %v7269_v23, 5 }
0x2e3d   :  { %v7282_v50 = vsel %vm7281_vm10, %v7280_v33, %v7279_v38 }
0x2e3e   :  { %v7285_v25 = vsel %vm7284_vm11, %v7282_v50, -inf }
0x2e3f   :  { %7286 = vmax.xlane.f32.xlu0 %v7285_v25 }
0x2ecc   :  { %v7287_v26 = vpop.xlane.xlu0 %7286 }
0x2ecd   :  { %v7289_v8 = vrot.slane %v7287_v26, 1  ;;  %v7290_v3 = vrot.slane %v7287_v26, 2  ;;  %v7291_v21 = vrot.slane %v7287_v26, 3  ;;  %v7296_v6 = vsub.f32 %v7266_v4, %v7287_v26 }
0x2ecf   :  { %v7297_v24 = vsub.f32 %v7267_v10, %v7289_v8  ;;  %v7298_v47 = vsub.f32 %v7268_v48, %v7290_v3  ;;  %v7299_v2 = vsub.f32 %v7269_v23, %v7291_v21  ;;  %v7300_v34 = vmul.f32 1.442695, %v7296_v6 }
0x2ed1   :  { %v7302_v41 = vmul.f32 1.442695, %v7297_v24  ;;  %v7304_v12 = vmul.f32 1.442695, %v7298_v47  ;;  %v7306_v54 = vmul.f32 1.442695, %v7299_v2  ;;  %9036 = vpow2.f32 %v7300_v34 }
0x2ed3   :  { %9038 = vpow2.f32 %v7302_v41 }
0x2ed4   :  { %9040 = vpow2.f32 %v7304_v12 }
0x2ed5   :  { %9042 = vpow2.f32 %v7306_v54 }
0x2edb   :  { %v9037_v45 = vpop.eup %9036 }
0x2edd   :  { %v9039_v27 = vpop.eup %9038 }
0x2ede   :  { %v9041_v49 = vpop.eup %9040  ;;  %v7312_v52 = vrot.slane %v9039_v27, 7 }
0x2edf   :  { %v9043_v16 = vpop.eup %9042  ;;  %v7314_v35 = vrot.slane %v9041_v49, 6 }
0x2ee0   :  { %v7313_v46 = vsel %vm7275_vm6, %v7312_v52, %v9037_v45  ;;  %v7316_v37 = vrot.slane %v9043_v16, 5 }
0x2ee1   :  { %v7315_v28 = vsel %vm7278_vm9, %v7314_v35, %v7313_v46 }
0x2ee2   :  { %v7317_v43 = vsel %vm7281_vm10, %v7316_v37, %v7315_v28 }
0x2ee3   :  { %v7319_v17 = vsel %vm7284_vm11, %v7317_v43, 0.0 }
0x2ee4   :  { %7320 = vadd.xlane.f32.xlu1 %v7319_v17 }
0x2f71   :  { %v7321_v40 = vpop.xlane.xlu1 %7320 }
0x2f72   :  { %9044 = vrcp.f32 %v7321_v40 }
0x2f7c   :  { %v9045_v18 = vpop.eup %9044 }
0x2f7d   :  { %v7331_v61 = vmul.f32 %v9045_v18, %v9037_v45  ;;  %v7325_v14 = vrot.slane %v9045_v18, 2  ;;  %v7324_v55 = vrot.slane %v9045_v18, 1  ;;  %v7326_v51 = vrot.slane %v9045_v18, 3 }
0x2f7f   :  { %8307 = vmatmul.mubr.msk.f32.vlgmr.msra.gmra.mrb[26].mxu0 %vm64_vm1, %v7331_v61  ;;  %v7333_v60 = vmul.f32 %v9041_v49, %v7325_v14  ;;  %v7332_v13 = vmul.f32 %v9039_v27, %v7324_v55  ;;  %v7334_v63 = vmul.f32 %v9043_v16, %v7326_v51  ;;  %7721 = vst.msk [vmem:[#allocation7] sm:$0x1] %vm7720_vm12, %v7331_v61 }
0x2f80   :  { %8462 = vmatpush3.bf16.msra.mxu0 %v11142_v5  ;;  %8313 = vmatprep.mubr.msk.f32.mxu0 %vm9142_vm0, %v9143_v1  ;;  %v7627_v5 = vld [vmem:[%s11263_s6] sm:$0xff] }
0x2f81   :  { %8321 = vmatmul.mubr.msk.f32.vlgmr.msra.gmra.mrb[22].mxu1 %vm64_vm1, %v7333_v60  ;;  %8466 = vmatprep.subr.bf16.mxu0 %v9141_v0  ;;  %7722 = vst.msk [vmem:[#allocation7 + $0x1] sm:$0x1] %vm7720_vm12, %v7332_v13  ;;  %7723 = vst.msk [vmem:[#allocation7 + $0x2] sm:$0x1] %vm7720_vm12, %v7333_v60  ;;  %v8470_v11 = vpack.c.bf16 %v7628_v53, %v7627_v5 }
0x2f82   :  { %7724 = vst.msk [vmem:[#allocation7 + $0x3] sm:$0x1] %vm7720_vm12, %v7334_v63  ;;  %8338 = vmatprep.mubr.msk.f32.mxu1 %vm9142_vm0, %v9143_v1 }
0x2f83   :  { %8314 = vmatmul.mubr.msk.f32.vlgmr.msra.gmra.mrb[28].mxu0 %vm64_vm1, %v7332_v13  ;;  %8471 = vmatpush3.bf16.msra.mxu1 %v8470_v11 }
0x2f84   :  { %8468 = vmatpush3.bf16.msra.mxu0 %v11159_v58  ;;  %8327 = vmatprep.mubr.msk.f32.mxu0 %vm9142_vm0, %v9143_v1  ;;  %v7629_v58 = vld [vmem:[%s11263_s6 + $0x10] sm:$0xff]  ;;  %v7630_v1 = vld [vmem:[%s11263_s6 + $0x18] sm:$0xff]  ;;  %s9149_s6 = smov [#allocation7]  }
0x2f85   :  { %8472 = vmatprep.subr.bf16.mxu1 %v9141_v0  ;;  %v8473_v19 = vpack.c.bf16 %v7630_v1, %v7629_v58  ;;  %s7776_s20 = sshll.u32 %s9149_s6, 4  ;;  %s7777_s20 = int_to_ptr.vmem [resolvable:$true] %s7776_s20 }
0x2f86   :  { %s9088_s21 = scalar_lea.vmem %s7777_s20, 64  ;;  %p9093_p9 = scmp.lt.s32.totalorder %s7777_s20, %s7777_s20 }
0x2f87   :  { %8328 = vmatmul.mubr.msk.f32.vlgmr.msra.gmra.mrb[30].mxu0 %vm64_vm1, %v7334_v63  ;;  %8474 = vmatpush3.bf16.msra.mxu1 %v8473_v19  ;;  %p9089_p8 = scmp.ne.s32.totalorder %s7777_s20, %s9088_s21  ;;  %p9094_p10 = scmp.lt.s32.totalorder %s9088_s21, %s9088_s21 }
0x2f89   :  { %p9095_p11 = por %p9094_p10, %p9093_p9 }
0x2f8b   :  { %p9096_p12 = pnand %p9095_p11, %p9089_p8 }
0x3052   :  { %v7404_v20 = vpop.f32.mrb[26].mxu0 }
0x3053   :  { %v8308_v7 = vpop.f32.mrb[27].mxu0 }
0x3054   :  { %v7550_v42 = vpop.f32.mrb[22].mxu1 }
0x3055   :  { %v8322_v31 = vpop.f32.mrb[23].mxu1  ;;  %v7644_v9 = vrot.slane %v7550_v42, 6 }
0x3056   :  { %v7477_v15 = vpop.f32.mrb[28].mxu0 }
0x3057   :  { %v7642_v39 = vrot.slane %v7477_v15, 7  ;;  %v8315_v44 = vpop.f32.mrb[29].mxu0 }
0x3059   :  { %v7643_v0 = vsel %vm7275_vm6, %v7642_v39, %v7404_v20 }
0x305a   :  { %v7623_v56 = vpop.f32.mrb[30].mxu0  ;;  %v7645_v10 = vsel %vm7278_vm9, %v7644_v9, %v7643_v0 }
0x305b   :  { %v7646_v36 = vrot.slane %v7623_v56, 5  ;;  %v8329_v48 = vpop.f32.mrb[31].mxu0 }
0x305d   :  { %v7647_v32 = vsel %vm7281_vm10, %v7646_v36, %v7645_v10 }
0x305e   :  { %8339 = vmatmul.mubr.msk.f32.vlgmr.msra.gmra.mrb[24].mxu1 %vm203_vm7, %v7647_v32 }
0x305f   :  { %9099 = shalt.err (!%p9096_p12)
}
0x3060   :  { %s9100_s26 = scalar_lea.hbm %s11266_s9, 64 }
0x3061   :  { %p9101_p13 = scmp.ne.s32.totalorder %s11266_s9, %s9100_s26  ;;  %p9104_p0 = scmp.lt.u32.totalorder %s9100_s26, %s11266_s9 }
0x3063   :  { %p9106_p1 = pnand %p9104_p0, %p9101_p13 }
0x3065   :  { %9109 = shalt.err (!%p9106_p1)
}
0x3066   :  { %s9150_s30 = smov 16   ;;  %s9151_s10 = smov 1   ;;  %v7961_v62 = vld [vmem:[%s11264_s7] ss:$0 sm:$0xff]  ;;  %vm7754_vm0 = vcmask 32768  }
0x3067   :  { %7782 = dma.vmem_to_hbm [thread:$0]  %s7777_s20, 64, %s11266_s9, [#allocation8], %s9150_s30, %s9150_s30, %s9151_s10  }
0x3068   :  { %s9152_s23 = smov [#allocation6]  }
0x3069   :  { %s7764_s13 = sshll.u32 %s9152_s23, 4  ;;  %s7765_s13 = int_to_ptr.vmem [resolvable:$true] %s7764_s13 }
0x306a   :  { %s9110_s7 = scalar_lea.vmem %s7765_s13, 64  ;;  %p9115_p3 = scmp.lt.s32.totalorder %s7765_s13, %s7765_s13 }
0x306b   :  { %p9111_p2 = scmp.ne.s32.totalorder %s7765_s13, %s9110_s7  ;;  %p9116_p4 = scmp.lt.s32.totalorder %s9110_s7, %s9110_s7 }
0x306d   :  { %p9117_p5 = por %p9116_p4, %p9115_p3 }
0x306f   :  { %p9118_p6 = pnand %p9117_p5, %p9111_p2 }
0x3131   :  { %v7716_v30 = vpop.f32.mrb[24].mxu1 }
0x3132   :  { %v7717_v57 = vadd.f32 %v7961_v62, %v7716_v30  ;;  %v8340_v4 = vpop.f32.mrb[25].mxu1 }
0x3134   :  { %v7732_v23 = vrot.slane %v7717_v57, %v9354_v59 }
0x3136   :  { %v7733_v22 = vcombine.high %v7732_v23, %v7732_v23  ;;  %v7740_v29 = vrot.slane %v7732_v23, %v9354_v59 }
0x3138   :  { %v7747_v33 = vrot.slane %v7733_v22, %v9354_v59  ;;  %v7748_v38 = vcombine.high %v7740_v29, %v7740_v29  ;;  %7755 = vst.msk [vmem:[#allocation6] sm:$0x1] %vm7754_vm0, %v7740_v29 }
0x313a   :  { %v7749_v50 = vcombine.high %v7747_v33, %v7747_v33  ;;  %7756 = vst.msk [vmem:[#allocation6 + $0x1] sm:$0x1] %vm7754_vm0, %v7747_v33  ;;  %7757 = vst.msk [vmem:[#allocation6 + $0x2] sm:$0x1] %vm7754_vm0, %v7748_v38 }
0x313c   :  { %7758 = vst.msk [vmem:[#allocation6 + $0x3] sm:$0x1] %vm7754_vm0, %v7749_v50 }
0x313d   :  { %9121 = shalt.err (!%p9118_p6)
}
0x313e   :  { %s9122_s4 = scalar_lea.hbm %s11265_s8, 64 }
0x313f   :  { %p9123_p7 = scmp.ne.s32.totalorder %s11265_s8, %s9122_s4  ;;  %p9126_p8 = scmp.lt.u32.totalorder %s9122_s4, %s11265_s8 }
0x3141   :  { %p9128_p9 = pnand %p9126_p8, %p9123_p7 }
0x3143   :  { %9131 = shalt.err (!%p9128_p9)
}
0x3144   :  { %7770 = dma.vmem_to_hbm [thread:$0]  %s7765_s13, 64, %s11265_s8, [#allocation5], %s9150_s30, %s9150_s30, %s9151_s10  }
0x3145   :  { %9134 = dma.done.wait [#allocation5], 64  }
0x3146   :  { %9135 = vsyncadd [#allocation5], 4294967232 }
0x3147   :  { %9136 = dma.done.wait [#allocation8], 64  }
0x3148   :  { %9137 = vsyncadd [#allocation8], 4294967232 }
0x3149   :  { %7789 = vsyncpa [#allocation4], 1 }
0x314a   :  { %7790 = vsyncpa [#allocation5], 1 }
0x314b   :  { %7791 = vsyncpa [#allocation8], 1 }

</bundles_post_ra>
